<compile_context>
chip_gen: v6e
topology: v6e:2x2x1
jax: 0.10.0
libtpu: 0.0.40
codegen_flags: <defaults>
</compile_context>

<pallas_src>
import functools

import jax
import jax.numpy as jnp
from jax import lax
from jax.experimental import pallas as pl
from jax.experimental.pallas import tpu as pltpu


def cab_kernel(x_ref, w1_ref, w2_ref, alpha_ref, wd_ref, wu_ref, out_ref,
               pad_ref):
    """Processes one block of `bb` batch elements per grid step.

    x_ref    : (bb, H, W, C)     f32   NHWC input block (unpadded)
    w1_ref   : (9*C, C)          bf16  conv1 weights, rows ordered (ky, kx, cin)
    w2_ref   : (9*C, C)          bf16  conv2 weights, same ordering
    alpha_ref: (1,)              f32   PReLU slope, lives in SMEM
    wd_ref   : (C, C//r)         f32   1x1 squeeze conv as a matrix
    wu_ref   : (C//r, C)         f32   1x1 excite conv as a matrix
    out_ref  : (bb, H, W, C)     f32
    pad_ref  : (bb, H+2, W+2, C) f32   VMEM scratch used for "same" padding
    """
    bb, H, W, C = x_ref.shape
    Hp, Wp = H + 2, W + 2
    HW = H * W
    M = bb * HW

    alpha = alpha_ref[0]
    x = x_ref[...]                                       # (bb, H, W, C) f32

    # Zero only the 1-pixel border of the pad scratch; the interior is fully
    # overwritten below. Done every step -> correct no matter which core or
    # order the (parallel) grid steps run in.
    zrow = jnp.zeros((bb, 1, Wp, C), jnp.float32)
    zcol = jnp.zeros((bb, Hp, 1, C), jnp.float32)
    pad_ref[:, 0:1, :, :] = zrow
    pad_ref[:, Hp - 1:Hp, :, :] = zrow
    pad_ref[:, :, 0:1, :] = zcol
    pad_ref[:, :, Wp - 1:Wp, :] = zcol

    def conv3x3(w_ref):
        # im2col: one (M, 9C) x (9C, C) bf16 matmul instead of 9 K=C matmuls.
        pad = pad_ref[...]                               # (bb, Hp, Wp, C)
        cols = []
        for dy in range(3):
            for dx in range(3):
                cols.append(pad[:, dy:dy + H, dx:dx + W, :].reshape(M, C))
        patches = jnp.concatenate(cols, axis=-1).astype(jnp.bfloat16)
        return jnp.dot(patches, w_ref[...],
                       preferred_element_type=jnp.float32)   # (M, C) f32

    # ---- conv1 (3x3, same padding) -> PReLU (shared alpha) ----------------
    pad_ref[:, 1:H + 1, 1:W + 1, :] = x
    acc1 = conv3x3(w1_ref)
    act = jnp.where(acc1 > 0, acc1, alpha * acc1)        # f32

    # ---- conv2 (reuse the zero-bordered scratch) ---------------------------
    pad_ref[:, 1:H + 1, 1:W + 1, :] = act.reshape(bb, H, W, C)
    acc2 = conv3x3(w2_ref)                               # (M, C) f32

    # ---- Channel attention: GAP -> 1x1 -> ReLU -> 1x1 -> sigmoid ----------
    gap_rows = [jnp.mean(acc2[b * HW:(b + 1) * HW, :], axis=0, keepdims=True)
                for b in range(bb)]
    gap = gap_rows[0] if bb == 1 else jnp.concatenate(gap_rows, axis=0)
    hid = jnp.maximum(
        jnp.dot(gap, wd_ref[...], preferred_element_type=jnp.float32), 0.0)
    att = jax.nn.sigmoid(
        jnp.dot(hid, wu_ref[...], preferred_element_type=jnp.float32))  # (bb,C)

    # ---- scale by attention + residual ------------------------------------
    out = acc2.reshape(bb, HW, C) * att[:, None, :] + x.reshape(bb, HW, C)
    out_ref[...] = out.reshape(bb, H, W, C)


def _pick_batch_block(batch):
    """v7x (2 TensorCores/chip): keep 1 batch element per grid step so the
    parallel batch axis shards across cores. Single-TC chips (v5e/v6e): fold
    the whole batch into one grid step to avoid per-step overhead."""
    try:
        kind = jax.devices()[0].device_kind.lower()
    except Exception:
        kind = ""
    if ("v7" in kind) or ("7x" in kind) or ("tpu7" in kind):
        return 1
    return batch


@functools.partial(jax.jit, static_argnames=("bb",))
def _cab_forward(x_nchw, w1_hwio, w2_hwio, alpha, wd, wu, *, bb):
    B, C, H, W = x_nchw.shape
    Cr = wd.shape[1]

    # NCHW -> NHWC (no jnp.pad: padding happens inside the kernel).
    x_nhwc = jnp.transpose(x_nchw, (0, 2, 3, 1)).astype(jnp.float32)

    # Conv weights flattened to (9*C, C); row order (ky, kx, cin) matches the
    # in-kernel im2col column order. bf16 for the MXU.
    w1_flat = jnp.reshape(w1_hwio, (9 * C, C)).astype(jnp.bfloat16)
    w2_flat = jnp.reshape(w2_hwio, (9 * C, C)).astype(jnp.bfloat16)
    alpha1 = jnp.reshape(alpha, (1,)).astype(jnp.float32)
    wd32 = wd.astype(jnp.float32)
    wu32 = wu.astype(jnp.float32)

    out_nhwc = pl.pallas_call(
        cab_kernel,
        out_shape=jax.ShapeDtypeStruct((B, H, W, C), jnp.float32),
        grid_spec=pltpu.PrefetchScalarGridSpec(
            num_scalar_prefetch=0,
            grid=(B // bb,),
            in_specs=[
                pl.BlockSpec((bb, H, W, C), lambda b: (b, 0, 0, 0)),
                pl.BlockSpec((9 * C, C), lambda b: (0, 0)),
                pl.BlockSpec((9 * C, C), lambda b: (0, 0)),
                pl.BlockSpec(memory_space=pltpu.MemorySpace.SMEM),
                pl.BlockSpec((C, Cr), lambda b: (0, 0)),
                pl.BlockSpec((Cr, C), lambda b: (0, 0)),
            ],
            out_specs=pl.BlockSpec((bb, H, W, C), lambda b: (b, 0, 0, 0)),
            scratch_shapes=[pltpu.VMEM((bb, H + 2, W + 2, C), jnp.float32)],
        ),
        compiler_params=pltpu.CompilerParams(
            dimension_semantics=("parallel",)),
    )(x_nhwc, w1_flat, w2_flat, alpha1, wd32, wu32)

    return jnp.transpose(out_nhwc, (0, 3, 1, 2))          # back to NCHW


def cab_forward(x_nchw, w1_hwio, w2_hwio, alpha, wd, wu):
    """CAB forward. x_nchw: (B, C, H, W) float32. Returns (B, C, H, W)."""
    B = x_nchw.shape[0]
    bb = _pick_batch_block(B)
    if B % bb:
        bb = 1
    return _cab_forward(x_nchw, w1_hwio, w2_hwio, alpha, wd, wu, bb=bb)


def ref_cab(x_nchw, w1_hwio, w2_hwio, alpha, wd, wu):
    """Pure-JAX reference (mirrors the PyTorch module, f32 throughout)."""
    x = jnp.transpose(x_nchw, (0, 2, 3, 1))
    dn = ("NHWC", "HWIO", "NHWC")
    b1 = lax.conv_general_dilated(x, w1_hwio, (1, 1), "SAME",
                                  dimension_numbers=dn)
    a = jnp.where(b1 > 0, b1, alpha * b1)
    b2 = lax.conv_general_dilated(a, w2_hwio, (1, 1), "SAME",
                                  dimension_numbers=dn)
    gap = jnp.mean(b2, axis=(1, 2), keepdims=True)        # (B,1,1,C)
    hid = jnp.maximum(jnp.einsum("bijc,cd->bijd", gap, wd), 0.0)
    att = jax.nn.sigmoid(jnp.einsum("bijd,dc->bijc", hid, wu))
    out = b2 * att + x
    return jnp.transpose(out, (0, 3, 1, 2))


if __name__ == "__main__":
    # CAB(in_c=16, r=4, bias=False) on a (B=2, C=16, H=16, W=16) input.
    B, C, H, W, r = 2, 16, 16, 16, 4
    Cr = C // r

    key = jax.random.PRNGKey(0)
    kx, k1, k2, kd, ku = jax.random.split(key, 5)

    x = jax.random.normal(kx, (B, C, H, W), jnp.float32)

    # Deterministic synthetic weights (PyTorch Conv2d OIHW layout -> HWIO).
    w1_oihw = 0.1 * jax.random.normal(k1, (C, C, 3, 3), jnp.float32)
    w2_oihw = 0.1 * jax.random.normal(k2, (C, C, 3, 3), jnp.float32)
    w1_hwio = jnp.transpose(w1_oihw, (2, 3, 1, 0))         # (3,3,Cin,Cout)
    w2_hwio = jnp.transpose(w2_oihw, (2, 3, 1, 0))
    # 1x1 convs of ChannelAttention as (Cin, Cout) matrices.
    wd = 0.1 * jax.random.normal(kd, (C, Cr), jnp.float32)  # squeeze
    wu = 0.1 * jax.random.normal(ku, (Cr, C), jnp.float32)  # excite
    alpha = jnp.float32(0.25)                                # nn.PReLU() init

    out = cab_forward(x, w1_hwio, w2_hwio, alpha, wd, wu)
    out = jax.block_until_ready(out)

    ref = jax.block_until_ready(ref_cab(x, w1_hwio, w2_hwio, alpha, wd, wu))
    assert out.shape == (B, C, H, W)
    # Tolerance accounts for bf16 MXU inputs (f32 accumulation) vs f32 ref.
    assert jnp.allclose(out, ref, rtol=5e-2, atol=5e-2), (
        float(jnp.max(jnp.abs(out - ref))))

    print("KERNEL_OK")
</pallas_src>

<mosaic_0001>
module attributes {stable_mosaic.version = 11 : i64} {
  func.func @cab_kernel(%arg0: i32, %arg1: memref<2x16x16x16xf32, #tpu.memory_space<vmem>>, %arg2: memref<144x16xbf16, #tpu.memory_space<vmem>>, %arg3: memref<144x16xbf16, #tpu.memory_space<vmem>>, %arg4: memref<1xf32, #tpu.memory_space<smem>>, %arg5: memref<16x4xf32, #tpu.memory_space<vmem>>, %arg6: memref<4x16xf32, #tpu.memory_space<vmem>>, %arg7: memref<2x16x16x16xf32, #tpu.memory_space<vmem>>, %arg8: memref<2x18x18x16xf32, #tpu.memory_space<vmem>>) attributes {dimension_semantics = [#tpu.dimension_semantics<parallel>], iteration_bounds = array<i64: 1>, scalar_prefetch = 0 : i64, scratch_operands = 1 : i64, tpu.core_type = #tpu.core_type<tc>, window_params = [{transform_indices = @transform_0, window_bounds = array<i64: 2, 16, 16, 16>}, {pipeline_mode = #tpu.pipeline_mode<synchronous>, transform_indices = @transform_1, window_bounds = array<i64: 144, 16>}, {pipeline_mode = #tpu.pipeline_mode<synchronous>, transform_indices = @transform_2, window_bounds = array<i64: 144, 16>}, {transform_indices = @transform_3, window_bounds = array<i64: 1>}, {pipeline_mode = #tpu.pipeline_mode<synchronous>, transform_indices = @transform_4, window_bounds = array<i64: 16, 4>}, {pipeline_mode = #tpu.pipeline_mode<synchronous>, transform_indices = @transform_5, window_bounds = array<i64: 4, 16>}, {transform_indices = @transform_6, window_bounds = array<i64: 2, 16, 16, 16>}]} {
    %c0 = arith.constant 0 : index
    %0 = memref.load %arg4[%c0] : memref<1xf32, #tpu.memory_space<smem>>
    %c0_0 = arith.constant 0 : index
    %c0_1 = arith.constant 0 : index
    %c0_2 = arith.constant 0 : index
    %c0_3 = arith.constant 0 : index
    %1 = vector.load %arg1[%c0_0, %c0_1, %c0_2, %c0_3] : memref<2x16x16x16xf32, #tpu.memory_space<vmem>>, vector<2x16x16x16xf32>
    %cst = arith.constant 0.000000e+00 : f32
    %2 = vector.broadcast %cst : f32 to vector<2x1x18x16xf32>
    %cst_4 = arith.constant 0.000000e+00 : f32
    %3 = vector.broadcast %cst_4 : f32 to vector<2x18x1x16xf32>
    %c0_5 = arith.constant 0 : index
    %c0_6 = arith.constant 0 : index
    %c0_7 = arith.constant 0 : index
    %c0_8 = arith.constant 0 : index
    %4 = vector.load %arg8[%c0_5, %c0_6, %c0_7, %c0_8] : memref<2x18x18x16xf32, #tpu.memory_space<vmem>>, vector<2x1x18x16xf32>
    tpu.vector_store %arg8[%c0_5, %c0_6, %c0_7, %c0_8], %2 {strides = array<i32>} : memref<2x18x18x16xf32, #tpu.memory_space<vmem>>, vector<2x1x18x16xf32>,
    %c0_9 = arith.constant 0 : index
    %c17 = arith.constant 17 : index
    %c0_10 = arith.constant 0 : index
    %c0_11 = arith.constant 0 : index
    %5 = vector.load %arg8[%c0_9, %c17, %c0_10, %c0_11] : memref<2x18x18x16xf32, #tpu.memory_space<vmem>>, vector<2x1x18x16xf32>
    tpu.vector_store %arg8[%c0_9, %c17, %c0_10, %c0_11], %2 {strides = array<i32>} : memref<2x18x18x16xf32, #tpu.memory_space<vmem>>, vector<2x1x18x16xf32>,
    %c0_12 = arith.constant 0 : index
    %c0_13 = arith.constant 0 : index
    %c0_14 = arith.constant 0 : index
    %c0_15 = arith.constant 0 : index
    %6 = vector.load %arg8[%c0_12, %c0_13, %c0_14, %c0_15] : memref<2x18x18x16xf32, #tpu.memory_space<vmem>>, vector<2x18x1x16xf32>
    tpu.vector_store %arg8[%c0_12, %c0_13, %c0_14, %c0_15], %3 {strides = array<i32>} : memref<2x18x18x16xf32, #tpu.memory_space<vmem>>, vector<2x18x1x16xf32>,
    %c0_16 = arith.constant 0 : index
    %c0_17 = arith.constant 0 : index
    %c17_18 = arith.constant 17 : index
    %c0_19 = arith.constant 0 : index
    %7 = vector.load %arg8[%c0_16, %c0_17, %c17_18, %c0_19] : memref<2x18x18x16xf32, #tpu.memory_space<vmem>>, vector<2x18x1x16xf32>
    tpu.vector_store %arg8[%c0_16, %c0_17, %c17_18, %c0_19], %3 {strides = array<i32>} : memref<2x18x18x16xf32, #tpu.memory_space<vmem>>, vector<2x18x1x16xf32>,
    %c0_20 = arith.constant 0 : index
    %c1 = arith.constant 1 : index
    %c1_21 = arith.constant 1 : index
    %c0_22 = arith.constant 0 : index
    %8 = vector.load %arg8[%c0_20, %c1, %c1_21, %c0_22] : memref<2x18x18x16xf32, #tpu.memory_space<vmem>>, vector<2x16x16x16xf32>
    tpu.vector_store %arg8[%c0_20, %c1, %c1_21, %c0_22], %1 {strides = array<i32>} : memref<2x18x18x16xf32, #tpu.memory_space<vmem>>, vector<2x16x16x16xf32>,
    %c0_23 = arith.constant 0 : index
    %c0_24 = arith.constant 0 : index
    %c0_25 = arith.constant 0 : index
    %c0_26 = arith.constant 0 : index
    %9 = vector.load %arg8[%c0_23, %c0_24, %c0_25, %c0_26] : memref<2x18x18x16xf32, #tpu.memory_space<vmem>>, vector<2x18x18x16xf32>
    %10 = vector.extract_strided_slice %9 {offsets = [0, 0, 0, 0], sizes = [2, 16, 16, 16], strides = [1, 1, 1, 1]} : vector<2x18x18x16xf32> to vector<2x16x16x16xf32>
    %11 = vector.shape_cast %10 : vector<2x16x16x16xf32> to vector<512x16xf32>
    %12 = vector.extract_strided_slice %9 {offsets = [0, 0, 1, 0], sizes = [2, 16, 16, 16], strides = [1, 1, 1, 1]} : vector<2x18x18x16xf32> to vector<2x16x16x16xf32>
    %13 = vector.shape_cast %12 : vector<2x16x16x16xf32> to vector<512x16xf32>
    %14 = vector.extract_strided_slice %9 {offsets = [0, 0, 2, 0], sizes = [2, 16, 16, 16], strides = [1, 1, 1, 1]} : vector<2x18x18x16xf32> to vector<2x16x16x16xf32>
    %15 = vector.shape_cast %14 : vector<2x16x16x16xf32> to vector<512x16xf32>
    %16 = vector.extract_strided_slice %9 {offsets = [0, 1, 0, 0], sizes = [2, 16, 16, 16], strides = [1, 1, 1, 1]} : vector<2x18x18x16xf32> to vector<2x16x16x16xf32>
    %17 = vector.shape_cast %16 : vector<2x16x16x16xf32> to vector<512x16xf32>
    %18 = vector.extract_strided_slice %9 {offsets = [0, 1, 1, 0], sizes = [2, 16, 16, 16], strides = [1, 1, 1, 1]} : vector<2x18x18x16xf32> to vector<2x16x16x16xf32>
    %19 = vector.shape_cast %18 : vector<2x16x16x16xf32> to vector<512x16xf32>
    %20 = vector.extract_strided_slice %9 {offsets = [0, 1, 2, 0], sizes = [2, 16, 16, 16], strides = [1, 1, 1, 1]} : vector<2x18x18x16xf32> to vector<2x16x16x16xf32>
    %21 = vector.shape_cast %20 : vector<2x16x16x16xf32> to vector<512x16xf32>
    %22 = vector.extract_strided_slice %9 {offsets = [0, 2, 0, 0], sizes = [2, 16, 16, 16], strides = [1, 1, 1, 1]} : vector<2x18x18x16xf32> to vector<2x16x16x16xf32>
    %23 = vector.shape_cast %22 : vector<2x16x16x16xf32> to vector<512x16xf32>
    %24 = vector.extract_strided_slice %9 {offsets = [0, 2, 1, 0], sizes = [2, 16, 16, 16], strides = [1, 1, 1, 1]} : vector<2x18x18x16xf32> to vector<2x16x16x16xf32>
    %25 = vector.shape_cast %24 : vector<2x16x16x16xf32> to vector<512x16xf32>
    %26 = vector.extract_strided_slice %9 {offsets = [0, 2, 2, 0], sizes = [2, 16, 16, 16], strides = [1, 1, 1, 1]} : vector<2x18x18x16xf32> to vector<2x16x16x16xf32>
    %27 = vector.shape_cast %26 : vector<2x16x16x16xf32> to vector<512x16xf32>
    %28 = tpu.concatenate %11, %13, %15, %17, %19, %21, %23, %25, %27 in 1 : vector<512x16xf32>, vector<512x16xf32>, vector<512x16xf32>, vector<512x16xf32>, vector<512x16xf32>, vector<512x16xf32>, vector<512x16xf32>, vector<512x16xf32>, vector<512x16xf32> -> vector<512x144xf32>
    %29 = arith.truncf %28 : vector<512x144xf32> to vector<512x144xbf16>
    %c0_27 = arith.constant 0 : index
    %c0_28 = arith.constant 0 : index
    %30 = vector.load %arg2[%c0_27, %c0_28] : memref<144x16xbf16, #tpu.memory_space<vmem>>, vector<144x16xbf16>
    %cst_29 = arith.constant dense<0.000000e+00> : vector<512x16xf32>
    %31 = tpu.matmul %29, %30, %cst_29 {dimension_numbers = #tpu.dot_dimension_numbers<[1], [0], [0], [1], [0, 0, 1, 1], [], []>} : vector<512x144xbf16>, vector<144x16xbf16>, vector<512x16xf32> -> vector<512x16xf32>
    %cst_30 = arith.constant 0.000000e+00 : f32
    %32 = vector.broadcast %cst_30 : f32 to vector<512x16xf32>
    %33 = arith.cmpf ogt, %31, %32 : vector<512x16xf32>
    %34 = vector.broadcast %0 : f32 to vector<512x16xf32>
    %35 = arith.mulf %34, %31 : vector<512x16xf32>
    %36 = arith.select %33, %31, %35 : vector<512x16xi1>, vector<512x16xf32>
    %37 = vector.shape_cast %36 : vector<512x16xf32> to vector<2x16x16x16xf32>
    %c0_31 = arith.constant 0 : index
    %c1_32 = arith.constant 1 : index
    %c1_33 = arith.constant 1 : index
    %c0_34 = arith.constant 0 : index
    %38 = vector.load %arg8[%c0_31, %c1_32, %c1_33, %c0_34] : memref<2x18x18x16xf32, #tpu.memory_space<vmem>>, vector<2x16x16x16xf32>
    tpu.vector_store %arg8[%c0_31, %c1_32, %c1_33, %c0_34], %37 {strides = array<i32>} : memref<2x18x18x16xf32, #tpu.memory_space<vmem>>, vector<2x16x16x16xf32>,
    %c0_35 = arith.constant 0 : index
    %c0_36 = arith.constant 0 : index
    %c0_37 = arith.constant 0 : index
    %c0_38 = arith.constant 0 : index
    %39 = vector.load %arg8[%c0_35, %c0_36, %c0_37, %c0_38] : memref<2x18x18x16xf32, #tpu.memory_space<vmem>>, vector<2x18x18x16xf32>
    %40 = vector.extract_strided_slice %39 {offsets = [0, 0, 0, 0], sizes = [2, 16, 16, 16], strides = [1, 1, 1, 1]} : vector<2x18x18x16xf32> to vector<2x16x16x16xf32>
    %41 = vector.shape_cast %40 : vector<2x16x16x16xf32> to vector<512x16xf32>
    %42 = vector.extract_strided_slice %39 {offsets = [0, 0, 1, 0], sizes = [2, 16, 16, 16], strides = [1, 1, 1, 1]} : vector<2x18x18x16xf32> to vector<2x16x16x16xf32>
    %43 = vector.shape_cast %42 : vector<2x16x16x16xf32> to vector<512x16xf32>
    %44 = vector.extract_strided_slice %39 {offsets = [0, 0, 2, 0], sizes = [2, 16, 16, 16], strides = [1, 1, 1, 1]} : vector<2x18x18x16xf32> to vector<2x16x16x16xf32>
    %45 = vector.shape_cast %44 : vector<2x16x16x16xf32> to vector<512x16xf32>
    %46 = vector.extract_strided_slice %39 {offsets = [0, 1, 0, 0], sizes = [2, 16, 16, 16], strides = [1, 1, 1, 1]} : vector<2x18x18x16xf32> to vector<2x16x16x16xf32>
    %47 = vector.shape_cast %46 : vector<2x16x16x16xf32> to vector<512x16xf32>
    %48 = vector.extract_strided_slice %39 {offsets = [0, 1, 1, 0], sizes = [2, 16, 16, 16], strides = [1, 1, 1, 1]} : vector<2x18x18x16xf32> to vector<2x16x16x16xf32>
    %49 = vector.shape_cast %48 : vector<2x16x16x16xf32> to vector<512x16xf32>
    %50 = vector.extract_strided_slice %39 {offsets = [0, 1, 2, 0], sizes = [2, 16, 16, 16], strides = [1, 1, 1, 1]} : vector<2x18x18x16xf32> to vector<2x16x16x16xf32>
    %51 = vector.shape_cast %50 : vector<2x16x16x16xf32> to vector<512x16xf32>
    %52 = vector.extract_strided_slice %39 {offsets = [0, 2, 0, 0], sizes = [2, 16, 16, 16], strides = [1, 1, 1, 1]} : vector<2x18x18x16xf32> to vector<2x16x16x16xf32>
    %53 = vector.shape_cast %52 : vector<2x16x16x16xf32> to vector<512x16xf32>
    %54 = vector.extract_strided_slice %39 {offsets = [0, 2, 1, 0], sizes = [2, 16, 16, 16], strides = [1, 1, 1, 1]} : vector<2x18x18x16xf32> to vector<2x16x16x16xf32>
    %55 = vector.shape_cast %54 : vector<2x16x16x16xf32> to vector<512x16xf32>
    %56 = vector.extract_strided_slice %39 {offsets = [0, 2, 2, 0], sizes = [2, 16, 16, 16], strides = [1, 1, 1, 1]} : vector<2x18x18x16xf32> to vector<2x16x16x16xf32>
    %57 = vector.shape_cast %56 : vector<2x16x16x16xf32> to vector<512x16xf32>
    %58 = tpu.concatenate %41, %43, %45, %47, %49, %51, %53, %55, %57 in 1 : vector<512x16xf32>, vector<512x16xf32>, vector<512x16xf32>, vector<512x16xf32>, vector<512x16xf32>, vector<512x16xf32>, vector<512x16xf32>, vector<512x16xf32>, vector<512x16xf32> -> vector<512x144xf32>
    %59 = arith.truncf %58 : vector<512x144xf32> to vector<512x144xbf16>
    %c0_39 = arith.constant 0 : index
    %c0_40 = arith.constant 0 : index
    %60 = vector.load %arg3[%c0_39, %c0_40] : memref<144x16xbf16, #tpu.memory_space<vmem>>, vector<144x16xbf16>
    %cst_41 = arith.constant dense<0.000000e+00> : vector<512x16xf32>
    %61 = tpu.matmul %59, %60, %cst_41 {dimension_numbers = #tpu.dot_dimension_numbers<[1], [0], [0], [1], [0, 0, 1, 1], [], []>} : vector<512x144xbf16>, vector<144x16xbf16>, vector<512x16xf32> -> vector<512x16xf32>
    %62 = vector.extract_strided_slice %61 {offsets = [0, 0], sizes = [256, 16], strides = [1, 1]} : vector<512x16xf32> to vector<256x16xf32>
    %cst_42 = arith.constant dense<0.000000e+00> : vector<16xf32>
    %63 = vector.multi_reduction <add>, %62, %cst_42 [0] : vector<256x16xf32> to vector<16xf32>
    %64 = vector.shape_cast %63 : vector<16xf32> to vector<1x16xf32>
    %cst_43 = arith.constant 2.560000e+02 : f32
    %65 = vector.broadcast %cst_43 : f32 to vector<1x16xf32>
    %66 = arith.divf %64, %65 : vector<1x16xf32>
    %67 = vector.extract_strided_slice %61 {offsets = [256, 0], sizes = [256, 16], strides = [1, 1]} : vector<512x16xf32> to vector<256x16xf32>
    %cst_44 = arith.constant dense<0.000000e+00> : vector<16xf32>
    %68 = vector.multi_reduction <add>, %67, %cst_44 [0] : vector<256x16xf32> to vector<16xf32>
    %69 = vector.shape_cast %68 : vector<16xf32> to vector<1x16xf32>
    %cst_45 = arith.constant 2.560000e+02 : f32
    %70 = vector.broadcast %cst_45 : f32 to vector<1x16xf32>
    %71 = arith.divf %69, %70 : vector<1x16xf32>
    %72 = tpu.concatenate %66, %71 in 0 : vector<1x16xf32>, vector<1x16xf32> -> vector<2x16xf32>
    %c0_46 = arith.constant 0 : index
    %c0_47 = arith.constant 0 : index
    %73 = vector.load %arg5[%c0_46, %c0_47] : memref<16x4xf32, #tpu.memory_space<vmem>>, vector<16x4xf32>
    %cst_48 = arith.constant dense<0.000000e+00> : vector<2x4xf32>
    %74 = tpu.matmul %72, %73, %cst_48 {dimension_numbers = #tpu.dot_dimension_numbers<[1], [0], [0], [1], [0, 0, 1, 1], [], []>} : vector<2x16xf32>, vector<16x4xf32>, vector<2x4xf32> -> vector<2x4xf32>
    %cst_49 = arith.constant 0.000000e+00 : f32
    %75 = vector.broadcast %cst_49 : f32 to vector<2x4xf32>
    %76 = arith.maximumf %74, %75 : vector<2x4xf32>
    %c0_50 = arith.constant 0 : index
    %c0_51 = arith.constant 0 : index
    %77 = vector.load %arg6[%c0_50, %c0_51] : memref<4x16xf32, #tpu.memory_space<vmem>>, vector<4x16xf32>
    %cst_52 = arith.constant dense<0.000000e+00> : vector<2x16xf32>
    %78 = tpu.matmul %76, %77, %cst_52 {dimension_numbers = #tpu.dot_dimension_numbers<[1], [0], [0], [1], [0, 0, 1, 1], [], []>} : vector<2x4xf32>, vector<4x16xf32>, vector<2x16xf32> -> vector<2x16xf32>
    %79 = arith.negf %78 : vector<2x16xf32>
    %80 = math.exp %79 : vector<2x16xf32>
    %cst_53 = arith.constant 1.000000e+00 : f32
    %81 = vector.broadcast %cst_53 : f32 to vector<2x16xf32>
    %82 = arith.addf %81, %80 : vector<2x16xf32>
    %83 = arith.divf %81, %82 : vector<2x16xf32>
    %84 = vector.shape_cast %61 : vector<512x16xf32> to vector<2x256x16xf32>
    %85 = vector.shape_cast %83 : vector<2x16xf32> to vector<2x1x16xf32>
    %86 = vector.broadcast %85 : vector<2x1x16xf32> to vector<2x256x16xf32>
    %87 = arith.mulf %84, %86 : vector<2x256x16xf32>
    %88 = vector.shape_cast %1 : vector<2x16x16x16xf32> to vector<2x256x16xf32>
    %89 = arith.addf %87, %88 : vector<2x256x16xf32>
    %90 = vector.shape_cast %89 : vector<2x256x16xf32> to vector<2x16x16x16xf32>
    %c0_54 = arith.constant 0 : index
    %c0_55 = arith.constant 0 : index
    %c0_56 = arith.constant 0 : index
    %c0_57 = arith.constant 0 : index
    %91 = vector.load %arg7[%c0_54, %c0_55, %c0_56, %c0_57] : memref<2x16x16x16xf32, #tpu.memory_space<vmem>>, vector<2x16x16x16xf32>
    tpu.vector_store %arg7[%c0_54, %c0_55, %c0_56, %c0_57], %90 {strides = array<i32>} : memref<2x16x16x16xf32, #tpu.memory_space<vmem>>, vector<2x16x16x16xf32>,
    return
  }
  func.func @transform_0(%arg0: i32) -> (i32, i32, i32, i32) {
    %c0_i32 = arith.constant 0 : i32
    %c0_i32_0 = arith.constant 0 : i32
    %c0_i32_1 = arith.constant 0 : i32
    %c0_i32_2 = arith.constant 0 : i32
    return %arg0, %c0_i32, %c0_i32_0, %c0_i32_1 : i32, i32, i32, i32
  }
  func.func @transform_1(%arg0: i32) -> (i32, i32) {
    %c0_i32 = arith.constant 0 : i32
    %c0_i32_0 = arith.constant 0 : i32
    %c0_i32_1 = arith.constant 0 : i32
    return %c0_i32, %c0_i32_0 : i32, i32
  }
  func.func @transform_2(%arg0: i32) -> (i32, i32) {
    %c0_i32 = arith.constant 0 : i32
    %c0_i32_0 = arith.constant 0 : i32
    %c0_i32_1 = arith.constant 0 : i32
    return %c0_i32, %c0_i32_0 : i32, i32
  }
  func.func @transform_3(%arg0: i32) -> i32 {
    %c0_i32 = arith.constant 0 : i32
    %c0_i32_0 = arith.constant 0 : i32
    return %c0_i32 : i32
  }
  func.func @transform_4(%arg0: i32) -> (i32, i32) {
    %c0_i32 = arith.constant 0 : i32
    %c0_i32_0 = arith.constant 0 : i32
    %c0_i32_1 = arith.constant 0 : i32
    return %c0_i32, %c0_i32_0 : i32, i32
  }
  func.func @transform_5(%arg0: i32) -> (i32, i32) {
    %c0_i32 = arith.constant 0 : i32
    %c0_i32_0 = arith.constant 0 : i32
    %c0_i32_1 = arith.constant 0 : i32
    return %c0_i32, %c0_i32_0 : i32, i32
  }
  func.func @transform_6(%arg0: i32) -> (i32, i32, i32, i32) {
    %c0_i32 = arith.constant 0 : i32
    %c0_i32_0 = arith.constant 0 : i32
    %c0_i32_1 = arith.constant 0 : i32
    %c0_i32_2 = arith.constant 0 : i32
    return %arg0, %c0_i32, %c0_i32_0, %c0_i32_1 : i32, i32, i32, i32
  }
}

</mosaic_0001>

<bundles_post_ra>
// kernel: _cab_forward.1
= control target key start
LH: loop header
LB: loop body
LE: loop exit
PB: predicated region body
PF: predicated region fallthrough
CT: control target
= control target key end

     0   :  { %vm90_vm0 = vcmask 130048   ;;  %vm93_vm1 = vcmask 123904   ;;  %vm105_vm2 = vcmask 122880   ;;  %v16385_v0 = vmov 0.0   ;;  %s9462_s19 = smov 16   ;;  %s9464_s9 = smov 48   ;;  %s16378_s0 = inlined_call_operand.vmem [shape: f32[2,16,16,16], index: 0, kind: input, shape index: {}]   ;;  %s16379_s1 = inlined_call_operand.vmem [shape: bf16[144,16], index: 1, kind: input, shape index: {}]   ;;  %s16380_s2 = inlined_call_operand.vmem [shape: bf16[144,16], index: 2, kind: input, shape index: {}]   ;;  %s16381_s3 = inlined_call_operand.<no memory space> [shape: f32[1], index: 3, kind: input, shape index: {}]   ;;  %s16382_s4 = inlined_call_operand.vmem [shape: f32[16,4], index: 4, kind: input, shape index: {}]   ;;  %s16383_s5 = inlined_call_operand.vmem [shape: f32[4,16], index: 5, kind: input, shape index: {}]   ;;  %s16384_s6 = inlined_call_operand.vmem [shape: f32[2,16,16,16], index: 6, kind: output, shape index: {}]  }
   0x1   :  { %91 = vst.msk [vmem:[#allocation2] sm:$0xff] %vm90_vm0, %v16385_v0  ;;  %92 = vst.msk [vmem:[#allocation2 + $0x8] sm:$0xff] %vm90_vm0, %v16385_v0  ;;  %v9658_v1 = vld [vmem:[%s16378_s0 + $0x10] sm:$0xff]  ;;  %v9663_v2 = vld [vmem:[%s16378_s0 + $0x18] sm:$0xff]  ;;  %vm447_vm3 = vcmask 1046528   ;;  %vm608_vm4 = vcmask 1045504  }
   0x2   :  { %94 = vst.msk [vmem:[#allocation2 + $0x10] sm:$0x3] %vm93_vm1, %v16385_v0  ;;  %97 = vst.msk [vmem:[#allocation2 + $0x1c0] sm:$0x3] %vm93_vm1, %v16385_v0  ;;  %v9668_v3 = vld [vmem:[%s16378_s0 + $0x20] sm:$0xff]  ;;  %v9693_v4 = vld [vmem:[%s16378_s0 + $0x28] sm:$0xff] }
   0x3   :  { %95 = vst.msk [vmem:[#allocation2 + $0x1b0] sm:$0xff] %vm90_vm0, %v16385_v0  ;;  %96 = vst.msk [vmem:[#allocation2 + $0x1b8] sm:$0xff] %vm90_vm0, %v16385_v0  ;;  %v9700_v5 = vld [vmem:[%s16378_s0] sm:$0xff]  ;;  %v9705_v6 = vld [vmem:[%s16378_s0 + $0x8] sm:$0xff]  ;;  %s9465_s10 = smov 64   ;;  %s9467_s24 = smov 80  }
   0x4   :  { %99 = vst.msk [vmem:[#allocation2 + $0x198] sm:$0xff] %vm90_vm0, %v16385_v0  ;;  %100 = vst.msk [vmem:[#allocation2 + $0x1a0] sm:$0xff] %vm90_vm0, %v16385_v0  ;;  %v9716_v7 = vld [vmem:[%s16378_s0 + $0x40] sm:$0xff]  ;;  %v9721_v8 = vld [vmem:[%s16378_s0 + $0x48] sm:$0xff]  ;;  %s9469_s7 = smov 112   ;;  %vm2293_vm5 = vcmask 261120  }
   0x5   :  { %101 = vst.msk [vmem:[#allocation2 + $0x1a8] sm:$0x3] %vm93_vm1, %v16385_v0  ;;  %104 = vst.msk [vmem:[#allocation2 + $0x358] sm:$0x3] %vm93_vm1, %v16385_v0  ;;  %v9726_v9 = vld [vmem:[%s16378_s0 + $0x30] sm:$0xff]  ;;  %v9735_v10 = vld [vmem:[%s16378_s0 + $0x38] sm:$0xff] }
   0x6   :  { %102 = vst.msk [vmem:[#allocation2 + $0x348] sm:$0xff] %vm90_vm0, %v16385_v0  ;;  %103 = vst.msk [vmem:[#allocation2 + $0x350] sm:$0xff] %vm90_vm0, %v16385_v0  ;;  %v9742_v11 = vld [vmem:[%s16378_s0 + $0x60] sm:$0xff]  ;;  %v9747_v12 = vld [vmem:[%s16378_s0 + $0x68] sm:$0xff]  ;;  %vm2358_vm6 = vcmask 392192   ;;  %vm2423_vm7 = vcmask 523264  }
   0x7   :  { %107 = vst.msk [vmem:[#allocation2 + $0x18] sm:$0x1] %vm105_vm2, %v16385_v0  ;;  %108 = vst.msk [vmem:[#allocation2 + $0x30] sm:$0x1] %vm105_vm2, %v16385_v0  ;;  %v9758_v13 = vld [vmem:[%s16378_s0 + $0x50] sm:$0xff]  ;;  %v9763_v14 = vld [vmem:[%s16378_s0 + $0x58] sm:$0xff] }
   0x8   :  { %109 = vst.msk [vmem:[#allocation2 + $0x48] sm:$0x1] %vm105_vm2, %v16385_v0  ;;  %110 = vst.msk [vmem:[#allocation2 + $0x60] sm:$0x1] %vm105_vm2, %v16385_v0  ;;  %v9768_v15 = vld [vmem:[%s16378_s0 + $0x80] sm:$0xff]  ;;  %v9777_v16 = vld [vmem:[%s16378_s0 + $0x88] sm:$0xff] }
   0x9   :  { %111 = vst.msk [vmem:[#allocation2 + $0x78] sm:$0x1] %vm105_vm2, %v16385_v0  ;;  %112 = vst.msk [vmem:[#allocation2 + $0x90] sm:$0x1] %vm105_vm2, %v16385_v0  ;;  %v9784_v17 = vld [vmem:[%s16378_s0 + $0x70] sm:$0xff]  ;;  %v9789_v18 = vld [vmem:[%s16378_s0 + $0x78] sm:$0xff] }
   0xa   :  { %113 = vst.msk [vmem:[#allocation2 + $0xa8] sm:$0x1] %vm105_vm2, %v16385_v0  ;;  %114 = vst.msk [vmem:[#allocation2 + $0xc0] sm:$0x1] %vm105_vm2, %v16385_v0  ;;  %v9800_v19 = vld [vmem:[%s16378_s0 + $0xa0] sm:$0xff]  ;;  %v9805_v20 = vld [vmem:[%s16378_s0 + $0xa8] sm:$0xff] }
   0xb   :  { %115 = vst.msk [vmem:[#allocation2 + $0xd8] sm:$0x1] %vm105_vm2, %v16385_v0  ;;  %116 = vst.msk [vmem:[#allocation2 + $0xf0] sm:$0x1] %vm105_vm2, %v16385_v0  ;;  %v9810_v21 = vld [vmem:[%s16378_s0 + $0x90] sm:$0xff]  ;;  %v9812_v22 = vld [vmem:[#allocation2 + $0x8] sm:$0xff] }
   0xc   :  { %117 = vst.msk [vmem:[#allocation2 + $0x108] sm:$0x1] %vm105_vm2, %v16385_v0  ;;  %118 = vst.msk [vmem:[#allocation2 + $0x120] sm:$0x1] %vm105_vm2, %v16385_v0  ;;  %v9821_v23 = vld [vmem:[%s16378_s0 + $0x98] sm:$0xff]  ;;  %v9828_v24 = vld [vmem:[%s16378_s0 + $0xc0] sm:$0xff] }
   0xd   :  { %119 = vst.msk [vmem:[#allocation2 + $0x138] sm:$0x1] %vm105_vm2, %v16385_v0  ;;  %120 = vst.msk [vmem:[#allocation2 + $0x150] sm:$0x1] %vm105_vm2, %v16385_v0  ;;  %v449_v27 = vrot.slane %v9812_v22, 1  ;;  %vm2488_vm8 = vcmask 654336  }
   0xe   :  { %121 = vst.msk [vmem:[#allocation2 + $0x168] sm:$0x1] %vm105_vm2, %v16385_v0  ;;  %122 = vst.msk [vmem:[#allocation2 + $0x180] sm:$0x1] %vm105_vm2, %v16385_v0  ;;  %vm2553_vm9 = vcmask 785408   ;;  %vm2618_vm10 = vcmask 916480  }
   0xf   :  { %125 = vst.msk [vmem:[#allocation2 + $0x1c8] sm:$0x1] %vm105_vm2, %v16385_v0  ;;  %126 = vst.msk [vmem:[#allocation2 + $0x1e0] sm:$0x1] %vm105_vm2, %v16385_v0 }
  0x10   :  { %127 = vst.msk [vmem:[#allocation2 + $0x1f8] sm:$0x1] %vm105_vm2, %v16385_v0  ;;  %128 = vst.msk [vmem:[#allocation2 + $0x210] sm:$0x1] %vm105_vm2, %v16385_v0 }
  0x11   :  { %129 = vst.msk [vmem:[#allocation2 + $0x228] sm:$0x1] %vm105_vm2, %v16385_v0  ;;  %130 = vst.msk [vmem:[#allocation2 + $0x240] sm:$0x1] %vm105_vm2, %v16385_v0 }
  0x12   :  { %131 = vst.msk [vmem:[#allocation2 + $0x258] sm:$0x1] %vm105_vm2, %v16385_v0  ;;  %132 = vst.msk [vmem:[#allocation2 + $0x270] sm:$0x1] %vm105_vm2, %v16385_v0 }
  0x13   :  { %133 = vst.msk [vmem:[#allocation2 + $0x288] sm:$0x1] %vm105_vm2, %v16385_v0  ;;  %134 = vst.msk [vmem:[#allocation2 + $0x2a0] sm:$0x1] %vm105_vm2, %v16385_v0 }
  0x14   :  { %135 = vst.msk [vmem:[#allocation2 + $0x2b8] sm:$0x1] %vm105_vm2, %v16385_v0  ;;  %136 = vst.msk [vmem:[#allocation2 + $0x2d0] sm:$0x1] %vm105_vm2, %v16385_v0 }
  0x15   :  { %137 = vst.msk [vmem:[#allocation2 + $0x2e8] sm:$0x1] %vm105_vm2, %v16385_v0  ;;  %138 = vst.msk [vmem:[#allocation2 + $0x300] sm:$0x1] %vm105_vm2, %v16385_v0 }
  0x16   :  { %139 = vst.msk [vmem:[#allocation2 + $0x318] sm:$0x1] %vm105_vm2, %v16385_v0  ;;  %140 = vst.msk [vmem:[#allocation2 + $0x330] sm:$0x1] %vm105_vm2, %v16385_v0 }
  0x17   :  { %143 = vst.msk [vmem:[#allocation2 + $0x29] sm:$0x1] %vm105_vm2, %v16385_v0  ;;  %144 = vst.msk [vmem:[#allocation2 + $0x41] sm:$0x1] %vm105_vm2, %v16385_v0 }
  0x18   :  { %145 = vst.msk [vmem:[#allocation2 + $0x59] sm:$0x1] %vm105_vm2, %v16385_v0  ;;  %146 = vst.msk [vmem:[#allocation2 + $0x71] sm:$0x1] %vm105_vm2, %v16385_v0 }
  0x19   :  { %147 = vst.msk [vmem:[#allocation2 + $0x89] sm:$0x1] %vm105_vm2, %v16385_v0  ;;  %148 = vst.msk [vmem:[#allocation2 + $0xa1] sm:$0x1] %vm105_vm2, %v16385_v0 }
  0x1a   :  { %149 = vst.msk [vmem:[#allocation2 + $0xb9] sm:$0x1] %vm105_vm2, %v16385_v0  ;;  %150 = vst.msk [vmem:[#allocation2 + $0xd1] sm:$0x1] %vm105_vm2, %v16385_v0 }
  0x1b   :  { %151 = vst.msk [vmem:[#allocation2 + $0xe9] sm:$0x1] %vm105_vm2, %v16385_v0  ;;  %152 = vst.msk [vmem:[#allocation2 + $0x101] sm:$0x1] %vm105_vm2, %v16385_v0 }
  0x1c   :  { %153 = vst.msk [vmem:[#allocation2 + $0x119] sm:$0x1] %vm105_vm2, %v16385_v0  ;;  %154 = vst.msk [vmem:[#allocation2 + $0x131] sm:$0x1] %vm105_vm2, %v16385_v0 }
  0x1d   :  { %155 = vst.msk [vmem:[#allocation2 + $0x149] sm:$0x1] %vm105_vm2, %v16385_v0  ;;  %156 = vst.msk [vmem:[#allocation2 + $0x161] sm:$0x1] %vm105_vm2, %v16385_v0 }
  0x1e   :  { %157 = vst.msk [vmem:[#allocation2 + $0x179] sm:$0x1] %vm105_vm2, %v16385_v0  ;;  %158 = vst.msk [vmem:[#allocation2 + $0x191] sm:$0x1] %vm105_vm2, %v16385_v0 }
  0x1f   :  { %161 = vst.msk [vmem:[#allocation2 + $0x1d9] sm:$0x1] %vm105_vm2, %v16385_v0  ;;  %162 = vst.msk [vmem:[#allocation2 + $0x1f1] sm:$0x1] %vm105_vm2, %v16385_v0 }
  0x20   :  { %163 = vst.msk [vmem:[#allocation2 + $0x209] sm:$0x1] %vm105_vm2, %v16385_v0  ;;  %164 = vst.msk [vmem:[#allocation2 + $0x221] sm:$0x1] %vm105_vm2, %v16385_v0 }
  0x21   :  { %165 = vst.msk [vmem:[#allocation2 + $0x239] sm:$0x1] %vm105_vm2, %v16385_v0  ;;  %166 = vst.msk [vmem:[#allocation2 + $0x251] sm:$0x1] %vm105_vm2, %v16385_v0 }
  0x22   :  { %167 = vst.msk [vmem:[#allocation2 + $0x269] sm:$0x1] %vm105_vm2, %v16385_v0  ;;  %168 = vst.msk [vmem:[#allocation2 + $0x281] sm:$0x1] %vm105_vm2, %v16385_v0 }
  0x23   :  { %169 = vst.msk [vmem:[#allocation2 + $0x299] sm:$0x1] %vm105_vm2, %v16385_v0  ;;  %170 = vst.msk [vmem:[#allocation2 + $0x2b1] sm:$0x1] %vm105_vm2, %v16385_v0 }
  0x24   :  { %171 = vst.msk [vmem:[#allocation2 + $0x2c9] sm:$0x1] %vm105_vm2, %v16385_v0  ;;  %172 = vst.msk [vmem:[#allocation2 + $0x2e1] sm:$0x1] %vm105_vm2, %v16385_v0 }
  0x25   :  { %173 = vst.msk [vmem:[#allocation2 + $0x2f9] sm:$0x1] %vm105_vm2, %v16385_v0  ;;  %174 = vst.msk [vmem:[#allocation2 + $0x311] sm:$0x1] %vm105_vm2, %v16385_v0 }
  0x26   :  { %175 = vst.msk [vmem:[#allocation2 + $0x329] sm:$0x1] %vm105_vm2, %v16385_v0  ;;  %176 = vst.msk [vmem:[#allocation2 + $0x341] sm:$0x1] %vm105_vm2, %v16385_v0 }
  0x27   :  { %16864 = vst [vmem:[#allocation4_spill] sm:$0xff] %v9658_v1  ;;  %16865 = vst [vmem:[#allocation5_spill] sm:$0xff] %v9663_v2 }
  0x28   :  { %16866 = vst [vmem:[#allocation6_spill] sm:$0xff] %v9668_v3  ;;  %106 = vst.msk [vmem:[#allocation2] sm:$0x1] %vm105_vm2, %v16385_v0 }
  0x29   :  { %142 = vst.msk [vmem:[#allocation2 + $0x11] sm:$0x1] %vm105_vm2, %v16385_v0  ;;  %123 = vst.msk [vmem:[#allocation2 + $0x198] sm:$0x1] %vm105_vm2, %v16385_v0 }
  0x2a   :  { %181 = vst.msk [vmem:[#allocation2 + $0x31] sm:$0xff] %vm90_vm0, %v9658_v1  ;;  %182 = vst.msk [vmem:[#allocation2 + $0x39] sm:$0xff] %vm90_vm0, %v9663_v2  ;;  %v10059_v1 = vld [vmem:[%s16378_s0 + $0x120] sm:$0xff] }
  0x2b   :  { %124 = vst.msk [vmem:[#allocation2 + $0x1b0] sm:$0x1] %vm105_vm2, %v16385_v0  ;;  %141 = vst.msk [vmem:[#allocation2 + $0x348] sm:$0x1] %vm105_vm2, %v16385_v0 }
  0x2c   :  { %159 = vst.msk [vmem:[#allocation2 + $0x1a9] sm:$0x1] %vm105_vm2, %v16385_v0  ;;  %160 = vst.msk [vmem:[#allocation2 + $0x1c1] sm:$0x1] %vm105_vm2, %v16385_v0 }
  0x2d   :  { %177 = vst.msk [vmem:[#allocation2 + $0x359] sm:$0x1] %vm105_vm2, %v16385_v0  ;;  %16867 = vst [vmem:[#allocation7_spill] sm:$0xff] %v9693_v4 }
  0x2e   :  { %183 = vst.msk [vmem:[#allocation2 + $0x49] sm:$0xff] %vm90_vm0, %v9668_v3  ;;  %16868 = vst [vmem:[#allocation8_spill] sm:$0xff] %v9700_v5 }
  0x2f   :  { %16869 = vst [vmem:[#allocation9_spill] sm:$0xff] %v9705_v6  ;;  %184 = vst.msk [vmem:[#allocation2 + $0x51] sm:$0xff] %vm90_vm0, %v9693_v4  ;;  %v9830_v25 = vld [vmem:[#allocation2] sm:$0xff] }
  0x30   :  { %179 = vst.msk [vmem:[#allocation2 + $0x19] sm:$0xff] %vm90_vm0, %v9700_v5  ;;  %180 = vst.msk [vmem:[#allocation2 + $0x21] sm:$0xff] %vm90_vm0, %v9705_v6  ;;  %v9832_v26 = vld [vmem:[#allocation2 + $0x10] sm:$0x3]  ;;  %v448_v29 = vrot.slane %v9830_v25, 1  ;;  %v10068_v6 = vld [vmem:[%s16378_s0 + $0x128] sm:$0xff] }
  0x31   :  { %16870 = vst [vmem:[#allocation10_spill] sm:$0xff] %v9716_v7  ;;  %16871 = vst [vmem:[#allocation11_spill] sm:$0xff] %v9721_v8  ;;  %v9835_v28 = vld [vmem:[#allocation2 + $0x30] sm:$0xff]  ;;  %v451_v30 = vrot.slane %v9832_v26, 1  ;;  %v9843_v31 = vld [vmem:[#allocation2 + $0x38] sm:$0xff] }
  0x32   :  { %16872 = vst [vmem:[#allocation12_spill] sm:$0xff] %v9726_v9  ;;  %187 = vst.msk [vmem:[#allocation2 + $0x79] sm:$0xff] %vm90_vm0, %v9716_v7  ;;  %v9845_v32 = vld [vmem:[#allocation2 + $0x40] sm:$0x3]  ;;  %v458_v33 = vrot.slane %v9835_v28, 1  ;;  %v459_v34 = vrot.slane %v9843_v31, 1  ;;  %v450_v39 = vsel %vm447_vm3, %v448_v29, %v449_v27 }
  0x33   :  { %188 = vst.msk [vmem:[#allocation2 + $0x81] sm:$0xff] %vm90_vm0, %v9721_v8  ;;  %16873 = vst [vmem:[#allocation13_spill] sm:$0xff] %v9735_v10  ;;  %v461_v35 = vrot.slane %v9845_v32, 1  ;;  %v452_v40 = vsel %vm447_vm3, %v449_v27, %v451_v30  ;;  %v9972_v8 = vld [vmem:[%s16378_s0 + $0xb0] sm:$0xff]  ;;  %v10054_v2 = vld [vmem:[#allocation2 + $0x1c0] sm:$0x3] }
  0x34   :  { %185 = vst.msk [vmem:[#allocation2 + $0x61] sm:$0xff] %vm90_vm0, %v9726_v9  ;;  %16874 = vst [vmem:[#allocation14_spill] sm:$0xff] %v9742_v11  ;;  %v7061_v46 = vpack.i.bf16 %v452_v40, %v450_v39  ;;  %v460_v47 = vsel %vm447_vm3, %v458_v33, %v459_v34  ;;  %v9986_v9 = vld [vmem:[%s16378_s0 + $0xb8] sm:$0xff] }
  0x35   :  { %16875 = vst [vmem:[#allocation15_spill] sm:$0xff] %v9747_v12  ;;  %186 = vst.msk [vmem:[#allocation2 + $0x69] sm:$0xff] %vm90_vm0, %v9735_v10  ;;  %v9850_v36 = vld [vmem:[#allocation2 + $0x48] sm:$0xff]  ;;  %v462_v48 = vsel %vm447_vm3, %v459_v34, %v461_v35 }
  0x36   :  { %191 = vst.msk [vmem:[#allocation2 + $0xa9] sm:$0xff] %vm90_vm0, %v9742_v11  ;;  %192 = vst.msk [vmem:[#allocation2 + $0xb1] sm:$0xff] %vm90_vm0, %v9747_v12  ;;  %v9852_v37 = vld [vmem:[#allocation2 + $0x50] sm:$0xff]  ;;  %v9858_v41 = vld [vmem:[#allocation2 + $0x58] sm:$0x3]  ;;  %v463_v42 = vrot.slane %v9850_v36, 1  ;;  %v9875_v53 = vpack.i.bf16 %v462_v48, %v460_v47  ;;  %7062 = vrot.lane.b32.xlu0 %v7061_v46, %s9462_s19 }
  0x37   :  { %16876 = vst [vmem:[#allocation16_spill] sm:$0xff] %v9758_v13  ;;  %16877 = vst [vmem:[#allocation17_spill] sm:$0xff] %v9763_v14  ;;  %v9854_v38 = vld [vmem:[#allocation2 + $0x18] sm:$0xff]  ;;  %v464_v43 = vrot.slane %v9852_v37, 1  ;;  %v9862_v44 = vld [vmem:[#allocation2 + $0x20] sm:$0xff]  ;;  %v466_v49 = vrot.slane %v9858_v41, 1 }
  0x38   :  { %16878 = vst [vmem:[#allocation18_spill] sm:$0xff] %v9768_v15  ;;  %189 = vst.msk [vmem:[#allocation2 + $0x91] sm:$0xff] %vm90_vm0, %v9758_v13  ;;  %v9869_v50 = vld [vmem:[#allocation2 + $0x28] sm:$0x3]  ;;  %v453_v55 = vrot.slane %v9854_v38, 1  ;;  %v454_v60 = vrot.slane %v9862_v44, 1  ;;  %7072 = vrot.lane.b32.xlu1 %v9875_v53, %s9462_s19 }
  0x39   :  { %190 = vst.msk [vmem:[#allocation2 + $0x99] sm:$0xff] %vm90_vm0, %v9763_v14  ;;  %16879 = vst [vmem:[#allocation19_spill] sm:$0xff] %v9777_v16  ;;  %v9864_v45 = vld [vmem:[#allocation2 + $0x78] sm:$0xff]  ;;  %v465_v54 = vsel %vm447_vm3, %v463_v42, %v464_v43  ;;  %v467_v59 = vsel %vm447_vm3, %v464_v43, %v466_v49  ;;  %v456_v61 = vrot.slane %v9869_v50, 1  ;;  %v9967_v13 = vld [vmem:[%s16378_s0 + $0xc8] sm:$0xff] }
  0x3a   :  { %195 = vst.msk [vmem:[#allocation2 + $0xd9] sm:$0xff] %vm90_vm0, %v9768_v15  ;;  %16880 = vst [vmem:[#allocation20_spill] sm:$0xff] %v9784_v17  ;;  %v9871_v51 = vld [vmem:[#allocation2 + $0x80] sm:$0xff]  ;;  %v9873_v52 = vld [vmem:[#allocation2 + $0x88] sm:$0x3]  ;;  %v473_v62 = vrot.slane %v9864_v45, 1  ;;  %v9894_v27 = vpack.i.bf16 %v467_v59, %v465_v54  ;;  %v455_v39 = vsel %vm447_vm3, %v453_v55, %v454_v60 }
  0x3b   :  { %16881 = vst [vmem:[#allocation21_spill] sm:$0xff] %v9789_v18  ;;  %196 = vst.msk [vmem:[#allocation2 + $0xe1] sm:$0xff] %vm90_vm0, %v9777_v16  ;;  %v9879_v56 = vld [vmem:[#allocation2 + $0x60] sm:$0xff]  ;;  %v474_v29 = vrot.slane %v9871_v51, 1  ;;  %v476_v30 = vrot.slane %v9873_v52, 1  ;;  %v457_v40 = vsel %vm447_vm3, %v454_v60, %v456_v61 }
  0x3c   :  { %193 = vst.msk [vmem:[#allocation2 + $0xc1] sm:$0xff] %vm90_vm0, %v9784_v17  ;;  %194 = vst.msk [vmem:[#allocation2 + $0xc9] sm:$0xff] %vm90_vm0, %v9789_v18  ;;  %v9881_v57 = vld [vmem:[#allocation2 + $0x68] sm:$0xff]  ;;  %v9883_v58 = vld [vmem:[#allocation2 + $0x70] sm:$0x3]  ;;  %v468_v33 = vrot.slane %v9879_v56, 1  ;;  %v9913_v49 = vpack.i.bf16 %v457_v40, %v455_v39  ;;  %7077 = vrot.lane.b32.xlu1 %v9894_v27, %s9462_s19 }
  0x3d   :  { %16882 = vst [vmem:[#allocation22_spill] sm:$0xff] %v9800_v19  ;;  %16883 = vst [vmem:[#allocation23_spill] sm:$0xff] %v9805_v20  ;;  %v9890_v63 = vld [vmem:[#allocation2 + $0xa8] sm:$0xff]  ;;  %v9899_v34 = vld [vmem:[#allocation2 + $0xb0] sm:$0xff]  ;;  %v469_v42 = vrot.slane %v9881_v57, 1  ;;  %v471_v43 = vrot.slane %v9883_v58, 1  ;;  %v475_v54 = vsel %vm447_vm3, %v473_v62, %v474_v29  ;;  %v477_v59 = vsel %vm447_vm3, %v474_v29, %v476_v30 }
  0x3e   :  { %16884 = vst [vmem:[#allocation24_spill] sm:$0xff] %v9810_v21  ;;  %199 = vst.msk [vmem:[#allocation2 + $0x109] sm:$0xff] %vm90_vm0, %v9800_v19  ;;  %v9901_v35 = vld [vmem:[#allocation2 + $0xb8] sm:$0x3]  ;;  %v483_v55 = vrot.slane %v9890_v63, 1  ;;  %v484_v39 = vrot.slane %v9899_v34, 1  ;;  %7067 = vrot.lane.b32.xlu0 %v9913_v49, %s9462_s19 }
  0x3f   :  { %200 = vst.msk [vmem:[#allocation2 + $0x111] sm:$0xff] %vm90_vm0, %v9805_v20  ;;  %16885 = vst [vmem:[#allocation25_spill] sm:$0xff] %v9821_v23  ;;  %v9907_v46 = vld [vmem:[#allocation2 + $0x90] sm:$0xff]  ;;  %v470_v20 = vsel %vm447_vm3, %v468_v33, %v469_v42  ;;  %v472_v19 = vsel %vm447_vm3, %v469_v42, %v471_v43  ;;  %v486_v33 = vrot.slane %v9901_v35, 1 }
  0x40   :  { %197 = vst.msk [vmem:[#allocation2 + $0xf1] sm:$0xff] %vm90_vm0, %v9810_v21  ;;  %16886 = vst [vmem:[#allocation26_spill] sm:$0xff] %v9828_v24  ;;  %v9909_v47 = vld [vmem:[#allocation2 + $0x98] sm:$0xff]  ;;  %v9911_v48 = vld [vmem:[#allocation2 + $0xa0] sm:$0x3]  ;;  %v9939_v30 = vpack.i.bf16 %v472_v19, %v470_v20  ;;  %v478_v42 = vrot.slane %v9907_v46, 1 }
  0x41   :  { %198 = vst.msk [vmem:[#allocation2 + $0xf9] sm:$0xff] %vm90_vm0, %v9821_v23  ;;  %203 = vst.msk [vmem:[#allocation2 + $0x139] sm:$0xff] %vm90_vm0, %v9828_v24  ;;  %v9918_v0 = vld [vmem:[#allocation2 + $0xd8] sm:$0xff]  ;;  %v9924_v24 = vpack.i.bf16 %v477_v59, %v475_v54  ;;  %v479_v43 = vrot.slane %v9909_v47, 1  ;;  %v485_v23 = vsel %vm447_vm3, %v483_v55, %v484_v39  ;;  %v481_v21 = vrot.slane %v9911_v48, 1 }
  0x42   :  { %16887 = vst [vmem:[#allocation27_spill] sm:$0xff] %v9875_v53  ;;  %16888 = vst [vmem:[#allocation28_spill] sm:$0xff] %v9894_v27  ;;  %v9920_v60 = vld [vmem:[#allocation2 + $0xe0] sm:$0xff]  ;;  %v9922_v61 = vld [vmem:[#allocation2 + $0xe8] sm:$0x3]  ;;  %v493_v16 = vrot.slane %v9918_v0, 1  ;;  %v487_v17 = vsel %vm447_vm3, %v484_v39, %v486_v33  ;;  %7082 = vrot.lane.b32.xlu0 %v9939_v30, %s9462_s19 }
  0x43   :  { %16889 = vst [vmem:[#allocation29_spill] sm:$0xff] %v9913_v49  ;;  %16890 = vst [vmem:[#allocation30_spill] sm:$0xff] %v9924_v24  ;;  %v9929_v40 = vld [vmem:[#allocation2 + $0xc0] sm:$0xff]  ;;  %v9931_v62 = vld [vmem:[#allocation2 + $0xc8] sm:$0xff]  ;;  %v494_v15 = vrot.slane %v9920_v60, 1  ;;  %v480_v12 = vsel %vm447_vm3, %v478_v42, %v479_v43  ;;  %v496_v11 = vrot.slane %v9922_v61, 1  ;;  %v9974_v7 = vpack.i.bf16 %v487_v17, %v485_v23  ;;  %7087 = vrot.lane.b32.xlu1 %v9924_v24, %s9462_s19 }
  0x44   :  { %v9933_v29 = vld [vmem:[#allocation2 + $0xd0] sm:$0x3]  ;;  %16891 = vst [vmem:[#allocation31_spill] sm:$0xff] %v9939_v30  ;;  %v488_v55 = vrot.slane %v9929_v40, 1  ;;  %16895 = vst [vmem:[#allocation35_spill] sm:$0xff] %v9967_v13  ;;  %v482_v39 = vsel %vm447_vm3, %v479_v43, %v481_v21  ;;  %v489_v42 = vrot.slane %v9931_v62, 1 }
  0x45   :  { %v9944_v54 = vld [vmem:[#allocation2 + $0x108] sm:$0xff]  ;;  %16896 = vst [vmem:[#allocation36_spill] sm:$0xff] %v9972_v8  ;;  %16897 = vst [vmem:[#allocation37_spill] sm:$0xff] %v9974_v7  ;;  %v495_v33 = vsel %vm447_vm3, %v493_v16, %v494_v15  ;;  %v9993_v17 = vld [vmem:[%s16378_s0 + $0xe0] sm:$0xff]  ;;  %v10004_v21 = vpack.i.bf16 %v482_v39, %v480_v12  ;;  %v497_v23 = vsel %vm447_vm3, %v494_v15, %v496_v11  ;;  %v491_v43 = vrot.slane %v9933_v29, 1 }
  0x46   :  { %v9946_v59 = vld [vmem:[#allocation2 + $0x118] sm:$0x3]  ;;  %v9952_v19 = vld [vmem:[#allocation2 + $0x110] sm:$0xff]  ;;  %204 = vst.msk [vmem:[#allocation2 + $0x141] sm:$0xff] %vm90_vm0, %v9967_v13  ;;  %16899 = vst [vmem:[#allocation39_spill] sm:$0xff] %v9986_v9  ;;  %v503_v13 = vrot.slane %v9944_v54, 1  ;;  %v490_v39 = vsel %vm447_vm3, %v488_v55, %v489_v42 }
  0x47   :  { %v9954_v20 = vld [vmem:[#allocation2 + $0xf0] sm:$0xff]  ;;  %201 = vst.msk [vmem:[#allocation2 + $0x121] sm:$0xff] %vm90_vm0, %v9972_v8  ;;  %16900 = vst [vmem:[#allocation40_spill] sm:$0xff] %v9993_v17  ;;  %v9998_v16 = vld [vmem:[%s16378_s0 + $0xe8] sm:$0xff]  ;;  %v492_v4 = vsel %vm447_vm3, %v489_v42, %v491_v43  ;;  %v10061_v42 = vpack.i.bf16 %v497_v23, %v495_v33  ;;  %7097 = vrot.lane.b32.xlu1 %v9974_v7, %s9462_s19  ;;  %7092 = vrot.lane.b32.xlu0 %v10004_v21, %s9462_s19 }
  0x48   :  { %16892 = vst [vmem:[#allocation32_spill] sm:$0xff] %v9954_v20  ;;  %v9956_v18 = vld [vmem:[#allocation2 + $0xf8] sm:$0xff]  ;;  %v9962_v14 = vld [vmem:[#allocation2 + $0x100] sm:$0x3]  ;;  %16901 = vst [vmem:[#allocation41_spill] sm:$0xff] %v9998_v16  ;;  %v498_v3 = vrot.slane %v9954_v20, 1  ;;  %v10063_v43 = vpack.i.bf16 %v492_v4, %v490_v39 }
  0x49   :  { %16893 = vst [vmem:[#allocation33_spill] sm:$0xff] %v9956_v18  ;;  %16894 = vst [vmem:[#allocation34_spill] sm:$0xff] %v9962_v14  ;;  %v9981_v10 = vld [vmem:[#allocation2 + $0x138] sm:$0xff]  ;;  %v10018_v12 = vld [vmem:[%s16378_s0 + $0xd0] sm:$0xff] }
  0x4a   :  { %16898 = vst [vmem:[#allocation38_spill] sm:$0xff] %v9981_v10  ;;  %16902 = vst [vmem:[#allocation42_spill] sm:$0xff] %v10004_v21  ;;  %v10023_v11 = vld [vmem:[%s16378_s0 + $0xd8] sm:$0xff]  ;;  %v10025_v15 = vld [vmem:[#allocation2 + $0x1b0] sm:$0xff] }
  0x4b   :  { %202 = vst.msk [vmem:[#allocation2 + $0x129] sm:$0xff] %vm90_vm0, %v9986_v9  ;;  %207 = vst.msk [vmem:[#allocation2 + $0x169] sm:$0xff] %vm90_vm0, %v9993_v17  ;;  %v504_v9 = vrot.slane %v9952_v19, 1  ;;  %v506_v17 = vrot.slane %v9946_v59, 1  ;;  %v10042_v8 = vld [vmem:[%s16378_s0 + $0x108] sm:$0xff]  ;;  %v10044_v55 = vld [vmem:[#allocation2 + $0x1b8] sm:$0xff]  ;;  %7107 = vrot.lane.b32.xlu1 %v10061_v42, %s9462_s19  ;;  %7102 = vrot.lane.b32.xlu0 %v10063_v43, %s9462_s19 }
  0x4c   :  { %208 = vst.msk [vmem:[#allocation2 + $0x171] sm:$0xff] %vm90_vm0, %v9998_v16  ;;  %16903 = vst [vmem:[#allocation43_spill] sm:$0xff] %v10018_v12  ;;  %v10037_v16 = vld [vmem:[%s16378_s0 + $0x100] sm:$0xff]  ;;  %v10080_v33 = vld [vmem:[%s16378_s0 + $0x118] sm:$0xff] }
  0x4d   :  { %16904 = vst [vmem:[#allocation44_spill] sm:$0xff] %v10023_v11  ;;  %16905 = vst [vmem:[#allocation45_spill] sm:$0xff] %v10025_v15  ;;  %v505_v4 = vsel %vm447_vm3, %v503_v13, %v504_v9  ;;  %v507_v23 = vsel %vm447_vm3, %v504_v9, %v506_v17  ;;  %v528_v13 = vrot.slane %v10025_v15, 1  ;;  %v10131_v17 = vld [vmem:[#allocation2 + $0x148] sm:$0x3] }
  0x4e   :  { %205 = vst.msk [vmem:[#allocation2 + $0x151] sm:$0xff] %vm90_vm0, %v10018_v12  ;;  %206 = vst.msk [vmem:[#allocation2 + $0x159] sm:$0xff] %vm90_vm0, %v10023_v11  ;;  %v499_v12 = vrot.slane %v9956_v18, 1  ;;  %v501_v11 = vrot.slane %v9962_v14, 1  ;;  %v516_v7 = vrot.slane %v10131_v17, 1 }
  0x4f   :  { %16906 = vst [vmem:[#allocation46_spill] sm:$0xff] %v10037_v16  ;;  %16907 = vst [vmem:[#allocation47_spill] sm:$0xff] %v10042_v8 }
  0x50   :  { %211 = vst.msk [vmem:[#allocation2 + $0x1c9] sm:$0xff] %vm90_vm0, %v10037_v16  ;;  %212 = vst.msk [vmem:[#allocation2 + $0x1d1] sm:$0xff] %vm90_vm0, %v10042_v8  ;;  %v10075_v8 = vld [vmem:[%s16378_s0 + $0x110] sm:$0xff]  ;;  %v500_v39 = vsel %vm447_vm3, %v498_v3, %v499_v12  ;;  %v10099_v16 = vld [vmem:[%s16378_s0 + $0x140] sm:$0xff]  ;;  %v502_v9 = vsel %vm447_vm3, %v499_v12, %v501_v11 }
  0x51   :  { %16908 = vst [vmem:[#allocation48_spill] sm:$0xff] %v10054_v2  ;;  %16909 = vst [vmem:[#allocation49_spill] sm:$0xff] %v10059_v1  ;;  %v10104_v3 = vld [vmem:[%s16378_s0 + $0x148] sm:$0xff]  ;;  %v10122_v12 = vld [vmem:[%s16378_s0 + $0x138] sm:$0xff] }
  0x52   :  { %16910 = vst [vmem:[#allocation50_spill] sm:$0xff] %v10061_v42  ;;  %16911 = vst [vmem:[#allocation51_spill] sm:$0xff] %v10063_v43  ;;  %v10127_v11 = vld [vmem:[%s16378_s0 + $0x160] sm:$0xff]  ;;  %v10145_v24 = vld [vmem:[#allocation2 + $0x128] sm:$0xff] }
  0x53   :  { %16912 = vst [vmem:[#allocation52_spill] sm:$0xff] %v10068_v6  ;;  %215 = vst.msk [vmem:[#allocation2 + $0x1f9] sm:$0xff] %vm90_vm0, %v10059_v1  ;;  %v513_v1 = vrot.slane %v9981_v10, 1  ;;  %v10147_v21 = vld [vmem:[#allocation2 + $0x130] sm:$0x3]  ;;  %v10160_v27 = vld [vmem:[#allocation2 + $0x168] sm:$0xff] }
  0x54   :  { %16913 = vst [vmem:[#allocation53_spill] sm:$0xff] %v10075_v8  ;;  %16914 = vst [vmem:[#allocation54_spill] sm:$0xff] %v10080_v33  ;;  %v10162_v30 = vld [vmem:[#allocation2 + $0x170] sm:$0xff]  ;;  %v10164_v49 = vld [vmem:[#allocation2 + $0x178] sm:$0x3]  ;;  %v523_v43 = vrot.slane %v10160_v27, 1 }
  0x55   :  { %216 = vst.msk [vmem:[#allocation2 + $0x201] sm:$0xff] %vm90_vm0, %v10068_v6  ;;  %213 = vst.msk [vmem:[#allocation2 + $0x1e1] sm:$0xff] %vm90_vm0, %v10075_v8  ;;  %v10129_v6 = vld [vmem:[#allocation2 + $0x140] sm:$0xff]  ;;  %v10156_v8 = vpack.i.bf16 %v502_v9, %v500_v39  ;;  %v10172_v39 = vld [vmem:[#allocation2 + $0x158] sm:$0xff] }
  0x56   :  { %214 = vst.msk [vmem:[#allocation2 + $0x1e9] sm:$0xff] %vm90_vm0, %v10080_v33  ;;  %16915 = vst [vmem:[#allocation55_spill] sm:$0xff] %v10099_v16  ;;  %v10117_v33 = vld [vmem:[%s16378_s0 + $0x130] sm:$0xff]  ;;  %v514_v5 = vrot.slane %v10129_v6, 1  ;;  %v10174_v9 = vld [vmem:[#allocation2 + $0x160] sm:$0x3] }
  0x57   :  { %16916 = vst [vmem:[#allocation56_spill] sm:$0xff] %v10104_v3  ;;  %219 = vst.msk [vmem:[#allocation2 + $0x229] sm:$0xff] %vm90_vm0, %v10099_v16  ;;  %v10154_v16 = vpack.i.bf16 %v507_v23, %v505_v4  ;;  %v524_v4 = vrot.slane %v10162_v30, 1  ;;  %v10170_v23 = vld [vmem:[#allocation2 + $0x150] sm:$0xff]  ;;  %7112 = vrot.lane.b32.xlu0 %v10156_v8, %s9462_s19 }
  0x58   :  { %220 = vst.msk [vmem:[#allocation2 + $0x231] sm:$0xff] %vm90_vm0, %v10104_v3  ;;  %16917 = vst [vmem:[#allocation57_spill] sm:$0xff] %v10117_v33  ;;  %v10133_v3 = vld [vmem:[#allocation2 + $0x120] sm:$0xff]  ;;  %v515_v53 = vsel %vm447_vm3, %v513_v1, %v514_v5  ;;  %v517_v42 = vsel %vm447_vm3, %v514_v5, %v516_v7  ;;  %v526_v1 = vrot.slane %v10164_v49, 1  ;;  %v10183_v5 = vld [vmem:[#allocation2 + $0x1d0] sm:$0xff] }
  0x59   :  { %16918 = vst [vmem:[#allocation58_spill] sm:$0xff] %v10122_v12  ;;  %16919 = vst [vmem:[#allocation59_spill] sm:$0xff] %v10127_v11  ;;  %v10176_v15 = vpack.i.bf16 %v517_v42, %v515_v53  ;;  %v10185_v7 = vld [vmem:[#allocation2 + $0x1d8] sm:$0x3]  ;;  %v519_v53 = vrot.slane %v10172_v39, 1  ;;  %7117 = vrot.lane.b32.xlu1 %v10154_v16, %s9462_s19 }
  0x5a   :  { %16920 = vst [vmem:[#allocation60_spill] sm:$0xff] %v10129_v6  ;;  %16921 = vst [vmem:[#allocation61_spill] sm:$0xff] %v10131_v17  ;;  %v518_v17 = vrot.slane %v10170_v23, 1  ;;  %v10192_v42 = vld [vmem:[#allocation2 + $0x1f8] sm:$0xff] }
  0x5b   :  { %16922 = vst [vmem:[#allocation62_spill] sm:$0xff] %v10133_v3  ;;  %217 = vst.msk [vmem:[#allocation2 + $0x211] sm:$0xff] %vm90_vm0, %v10117_v33  ;;  %v508_v33 = vrot.slane %v10133_v3, 1  ;;  %v10181_v3 = vld [vmem:[#allocation2 + $0x1c8] sm:$0xff] }
  0x5c   :  { %218 = vst.msk [vmem:[#allocation2 + $0x219] sm:$0xff] %vm90_vm0, %v10122_v12  ;;  %223 = vst.msk [vmem:[#allocation2 + $0x259] sm:$0xff] %vm90_vm0, %v10127_v11  ;;  %v509_v11 = vrot.slane %v10145_v24, 1  ;;  %v511_v12 = vrot.slane %v10147_v21, 1 }
  0x5d   :  { %16923 = vst [vmem:[#allocation63_spill] sm:$0xff] %v10145_v24  ;;  %16924 = vst [vmem:[#allocation64_spill] sm:$0xff] %v10147_v21  ;;  %7127 = vrot.lane.b32.xlu1 %v10176_v15, %s9462_s19 }
  0x5e   :  { %16925 = vst [vmem:[#allocation65_spill] sm:$0xff] %v10154_v16  ;;  %16926 = vst [vmem:[#allocation66_spill] sm:$0xff] %v10156_v8  ;;  %v510_v21 = vsel %vm447_vm3, %v508_v33, %v509_v11  ;;  %v512_v24 = vsel %vm447_vm3, %v509_v11, %v511_v12  ;;  %v527_v33 = vsel %vm447_vm3, %v524_v4, %v526_v1  ;;  %v521_v12 = vrot.slane %v10174_v9, 1  ;;  %v10204_v11 = vld [vmem:[#allocation2 + $0x208] sm:$0x3] }
  0x5f   :  { %16927 = vst [vmem:[#allocation67_spill] sm:$0xff] %v10160_v27  ;;  %16928 = vst [vmem:[#allocation68_spill] sm:$0xff] %v10162_v30  ;;  %v10187_v30 = vpack.i.bf16 %v512_v24, %v510_v21  ;;  %v525_v27 = vsel %vm447_vm3, %v523_v43, %v524_v4  ;;  %v533_v24 = vrot.slane %v10181_v3, 1  ;;  %v534_v21 = vrot.slane %v10183_v5, 1  ;;  %v10202_v43 = vld [vmem:[#allocation2 + $0x200] sm:$0xff]  ;;  %v10215_v1 = vld [vmem:[#allocation2 + $0x1e8] sm:$0xff] }
  0x60   :  { %16929 = vst [vmem:[#allocation69_spill] sm:$0xff] %v10164_v49  ;;  %16930 = vst [vmem:[#allocation70_spill] sm:$0xff] %v10170_v23  ;;  %v536_v23 = vrot.slane %v10185_v7, 1  ;;  %v16938_v16 = vrot.slane %v10044_v55, 1  ;;  %v10213_v4 = vld [vmem:[#allocation2 + $0x1e0] sm:$0xff]  ;;  %v10218_v49 = vpack.i.bf16 %v527_v33, %v525_v27  ;;  %v522_v6 = vsel %vm447_vm3, %v519_v53, %v521_v12  ;;  %v10237_v12 = vld [vmem:[#allocation2 + $0x230] sm:$0xff] }
  0x61   :  { %16931 = vst [vmem:[#allocation71_spill] sm:$0xff] %v10172_v39  ;;  %16932 = vst [vmem:[#allocation72_spill] sm:$0xff] %v10174_v9  ;;  %v520_v39 = vsel %vm447_vm3, %v518_v17, %v519_v53  ;;  %v535_v10 = vsel %vm447_vm3, %v533_v24, %v534_v21  ;;  %v16941_v17 = vrot.slane %v10054_v2, 1  ;;  %v543_v27 = vrot.slane %v10192_v42, 1  ;;  %v10239_v24 = vld [vmem:[#allocation2 + $0x238] sm:$0x3]  ;;  %7122 = vrot.lane.b32.xlu0 %v10187_v30, %s9462_s19 }
  0x62   :  { %16933 = vst [vmem:[#allocation73_spill] sm:$0xff] %v10176_v15  ;;  %16934 = vst [vmem:[#allocation74_spill] sm:$0xff] %v10187_v30  ;;  %v10211_v8 = vsel %vm447_vm3, %v528_v13, %v16938_v16  ;;  %v16942_v14 = vmov %v16938_v16  ;;  %v10229_v16 = vld [vmem:[#allocation2 + $0x1f0] sm:$0x3]  ;;  %v10231_v13 = vld [vmem:[#allocation2 + $0x228] sm:$0xff]  ;;  %v537_v20 = vsel %vm447_vm3, %v534_v21, %v536_v23  ;;  %v544_v33 = vrot.slane %v10202_v43, 1  ;;  %7137 = vrot.lane.b32.xlu1 %v10218_v49, %s9462_s19 }
  0x63   :  { %16935 = vst [vmem:[#allocation75_spill] sm:$0xff] %v10192_v42  ;;  %16936 = vst [vmem:[#allocation76_spill] sm:$0xff] %v10202_v43  ;;  %v10227_v18 = vsel %vm447_vm3, %v16942_v14, %v16941_v17  ;;  %v546_v53 = vrot.slane %v10204_v11, 1  ;;  %v10244_v14 = vld [vmem:[%s16378_s0 + $0x168] sm:$0xff]  ;;  %v10249_v17 = vld [vmem:[%s16378_s0 + $0x150] sm:$0xff]  ;;  %v10255_v23 = vpack.i.bf16 %v522_v6, %v520_v39  ;;  %v10257_v21 = vpack.i.bf16 %v537_v20, %v535_v10 }
  0x64   :  { %16937 = vst [vmem:[#allocation77_spill] sm:$0xff] %v10204_v11  ;;  %16939 = vst [vmem:[#allocation78_spill] sm:$0xff] %v10215_v1  ;;  %v538_v9 = vrot.slane %v10213_v4, 1  ;;  %v539_v11 = vrot.slane %v10215_v1, 1  ;;  %v10261_v43 = vld [vmem:[#allocation2 + $0x210] sm:$0xff]  ;;  %v10263_v42 = vld [vmem:[#allocation2 + $0x218] sm:$0xff] }
  0x65   :  { %16940 = vst [vmem:[#allocation79_spill] sm:$0xff] %v10218_v49  ;;  %16943 = vst [vmem:[#allocation80_spill] sm:$0xff] %v10229_v16  ;;  %v10265_v2 = vld [vmem:[#allocation2 + $0x220] sm:$0x3]  ;;  %v10272_v6 = vld [vmem:[%s16378_s0 + $0x158] sm:$0xff]  ;;  %v541_v20 = vrot.slane %v10229_v16, 1  ;;  %v547_v30 = vsel %vm447_vm3, %v544_v33, %v546_v53  ;;  %7132 = vrot.lane.b32.xlu0 %v10255_v23, %s9462_s19 }
  0x66   :  { %16944 = vst [vmem:[#allocation81_spill] sm:$0xff] %v10231_v13  ;;  %16945 = vst [vmem:[#allocation82_spill] sm:$0xff] %v10237_v12  ;;  %v10279_v10 = vld [vmem:[%s16378_s0 + $0x180] sm:$0xff]  ;;  %v10287_v39 = vld [vmem:[%s16378_s0 + $0x188] sm:$0xff]  ;;  %v553_v16 = vrot.slane %v10231_v13, 1  ;;  %v554_v1 = vrot.slane %v10237_v12, 1  ;;  %v540_v53 = vsel %vm447_vm3, %v538_v9, %v539_v11  ;;  %7147 = vrot.lane.b32.xlu1 %v10257_v21, %s9462_s19 }
  0x67   :  { %16946 = vst [vmem:[#allocation83_spill] sm:$0xff] %v10239_v24  ;;  %16947 = vst [vmem:[#allocation84_spill] sm:$0xff] %v10244_v14  ;;  %v10317_v15 = vld [vmem:[%s16378_s0 + $0x1a8] sm:$0xff]  ;;  %v10377_v9 = vld [vmem:[%s16378_s0 + $0x1b8] sm:$0xff] }
  0x68   :  { %16948 = vst [vmem:[#allocation85_spill] sm:$0xff] %v10249_v17  ;;  %16949 = vst [vmem:[#allocation86_spill] sm:$0xff] %v10255_v23 }
  0x69   :  { %16950 = vst [vmem:[#allocation87_spill] sm:$0xff] %v10257_v21  ;;  %16951 = vst [vmem:[#allocation88_spill] sm:$0xff] %v10261_v43 }
  0x6a   :  { %16952 = vst [vmem:[#allocation89_spill] sm:$0xff] %v10263_v42  ;;  %16953 = vst [vmem:[#allocation90_spill] sm:$0xff] %v10265_v2 }
  0x6b   :  { %224 = vst.msk [vmem:[#allocation2 + $0x261] sm:$0xff] %vm90_vm0, %v10244_v14  ;;  %16954 = vst [vmem:[#allocation91_spill] sm:$0xff] %v10272_v6  ;;  %v10294_v14 = vld [vmem:[%s16378_s0 + $0x170] sm:$0xff] }
  0x6c   :  { %221 = vst.msk [vmem:[#allocation2 + $0x241] sm:$0xff] %vm90_vm0, %v10249_v17  ;;  %16955 = vst [vmem:[#allocation92_spill] sm:$0xff] %v10279_v10  ;;  %v10299_v17 = vld [vmem:[%s16378_s0 + $0x178] sm:$0xff] }
  0x6d   :  { %222 = vst.msk [vmem:[#allocation2 + $0x249] sm:$0xff] %vm90_vm0, %v10272_v6  ;;  %16956 = vst [vmem:[#allocation93_spill] sm:$0xff] %v10287_v39  ;;  %v7141_v6 = vpack.i.bf16 %v10227_v18, %v10211_v8  ;;  %v10322_v8 = vld [vmem:[%s16378_s0 + $0x190] sm:$0xff]  ;;  %v16962_v18 = vrot.slane %v9862_v44, 2 }
  0x6e   :  { %227 = vst.msk [vmem:[#allocation2 + $0x289] sm:$0xff] %vm90_vm0, %v10279_v10  ;;  %16957 = vst [vmem:[#allocation94_spill] sm:$0xff] %v10294_v14  ;;  %v10312_v10 = vld [vmem:[%s16378_s0 + $0x1a0] sm:$0xff] }
  0x6f   :  { %16958 = vst [vmem:[#allocation95_spill] sm:$0xff] %v10299_v17  ;;  %228 = vst.msk [vmem:[#allocation2 + $0x291] sm:$0xff] %vm90_vm0, %v10287_v39  ;;  %v16963_v39 = vrot.slane %v9854_v38, 2  ;;  %v10340_v38 = vld [vmem:[%s16378_s0 + $0x198] sm:$0xff]  ;;  %7142 = vrot.lane.b32.xlu0 %v7141_v6, %s9462_s19 }
  0x70   :  { %225 = vst.msk [vmem:[#allocation2 + $0x271] sm:$0xff] %vm90_vm0, %v10294_v14  ;;  %226 = vst.msk [vmem:[#allocation2 + $0x279] sm:$0xff] %vm90_vm0, %v10299_v17  ;;  %v545_v14 = vsel %vm447_vm3, %v543_v27, %v544_v33  ;;  %v10347_v27 = vld [vmem:[%s16378_s0 + $0x1c0] sm:$0xff]  ;;  %v10352_v33 = vld [vmem:[%s16378_s0 + $0x1c8] sm:$0xff] }
  0x71   :  { %16959 = vst [vmem:[#allocation96_spill] sm:$0xff] %v10312_v10  ;;  %16960 = vst [vmem:[#allocation97_spill] sm:$0xff] %v10317_v15  ;;  %v616_v17 = vsel %vm608_vm4, %v16963_v39, %v16962_v18  ;;  %v542_v39 = vsel %vm447_vm3, %v539_v11, %v541_v20  ;;  %v556_v18 = vrot.slane %v10239_v24, 1  ;;  %v16970_v11 = vrot.slane %v9869_v50, 2  ;;  %v10394_v50 = vld [vmem:[%s16378_s0 + $0x1e0] sm:$0xff] }
  0x72   :  { %16961 = vst [vmem:[#allocation98_spill] sm:$0xff] %v10322_v8  ;;  %231 = vst.msk [vmem:[#allocation2 + $0x2b9] sm:$0xff] %vm90_vm0, %v10312_v10  ;;  %v10372_v10 = vld [vmem:[%s16378_s0 + $0x1b0] sm:$0xff]  ;;  %v16971_v20 = vrot.slane %v9862_v44, 2  ;;  %v10399_v44 = vld [vmem:[%s16378_s0 + $0x1e8] sm:$0xff] }
  0x73   :  { %232 = vst.msk [vmem:[#allocation2 + $0x2c1] sm:$0xff] %vm90_vm0, %v10317_v15  ;;  %16964 = vst [vmem:[#allocation99_spill] sm:$0xff] %v10340_v38  ;;  %v10361_v15 = vld [vmem:[#allocation2 + $0x258] sm:$0xff]  ;;  %v10434_v49 = vld [vmem:[#allocation2 + $0x260] sm:$0xff] }
  0x74   :  { %229 = vst.msk [vmem:[#allocation2 + $0x2a1] sm:$0xff] %vm90_vm0, %v10322_v8  ;;  %16965 = vst [vmem:[#allocation100_spill] sm:$0xff] %v10347_v27  ;;  %v551_v8 = vrot.slane %v10265_v2, 1  ;;  %v10436_v23 = vld [vmem:[#allocation2 + $0x268] sm:$0x3]  ;;  %v10439_v2 = vld [vmem:[#allocation2 + $0x240] sm:$0xff] }
  0x75   :  { %16966 = vst [vmem:[#allocation101_spill] sm:$0xff] %v10352_v33  ;;  %16967 = vst [vmem:[#allocation102_spill] sm:$0xff] %v10361_v15 }
  0x76   :  { %230 = vst.msk [vmem:[#allocation2 + $0x2a9] sm:$0xff] %vm90_vm0, %v10340_v38  ;;  %235 = vst.msk [vmem:[#allocation2 + $0x2e9] sm:$0xff] %vm90_vm0, %v10347_v27  ;;  %v618_v38 = vsel %vm608_vm4, %v16971_v20, %v16970_v11  ;;  %v548_v27 = vrot.slane %v10261_v43, 1  ;;  %v10404_v11 = vld [vmem:[%s16378_s0 + $0x1d0] sm:$0xff] }
  0x77   :  { %236 = vst.msk [vmem:[#allocation2 + $0x2f1] sm:$0xff] %vm90_vm0, %v10352_v33  ;;  %16968 = vst [vmem:[#allocation103_spill] sm:$0xff] %v10372_v10  ;;  %v549_v33 = vrot.slane %v10263_v42, 1  ;;  %v10406_v20 = vpack.i.bf16 %v618_v38, %v616_v17  ;;  %v10427_v17 = vld [vmem:[%s16378_s0 + $0xf8] sm:$0xff]  ;;  %v10429_v38 = vpack.i.bf16 %v547_v30, %v545_v14  ;;  %v557_v30 = vsel %vm447_vm3, %v554_v1, %v556_v18  ;;  %v10470_v42 = vld [vmem:[#allocation2 + $0x270] sm:$0xff] }
  0x78   :  { %16969 = vst [vmem:[#allocation104_spill] sm:$0xff] %v10377_v9  ;;  %233 = vst.msk [vmem:[#allocation2 + $0x2d1] sm:$0xff] %vm90_vm0, %v10372_v10  ;;  %v10422_v10 = vld [vmem:[%s16378_s0 + $0xf0] sm:$0xff]  ;;  %v566_v14 = vrot.slane %v10436_v23, 1  ;;  %v10466_v18 = vld [vmem:[#allocation2 + $0x298] sm:$0x3] }
  0x79   :  { %234 = vst.msk [vmem:[#allocation2 + $0x2d9] sm:$0xff] %vm90_vm0, %v10377_v9  ;;  %16972 = vst [vmem:[#allocation105_spill] sm:$0xff] %v10394_v50  ;;  %v10415_v9 = vld [vmem:[%s16378_s0 + $0x1d8] sm:$0xff]  ;;  %7157 = vrot.lane.b32.xlu1 %v10429_v38, %s9462_s19 }
  0x7a   :  { %16973 = vst [vmem:[#allocation106_spill] sm:$0xff] %v10399_v44  ;;  %16974 = vst [vmem:[#allocation107_spill] sm:$0xff] %v10404_v11  ;;  %v10481_v43 = vld [vmem:[#allocation2 + $0x2c0] sm:$0xff] }
  0x7b   :  { %239 = vst.msk [vmem:[#allocation2 + $0x319] sm:$0xff] %vm90_vm0, %v10394_v50  ;;  %240 = vst.msk [vmem:[#allocation2 + $0x321] sm:$0xff] %vm90_vm0, %v10399_v44  ;;  %v10431_v44 = vpack.i.bf16 %v542_v39, %v540_v53  ;;  %v555_v50 = vsel %vm447_vm3, %v553_v16, %v554_v1  ;;  %v564_v16 = vrot.slane %v10434_v49, 1  ;;  %v10453_v53 = vld [vmem:[#allocation2 + $0x248] sm:$0xff]  ;;  %v10455_v39 = vld [vmem:[#allocation2 + $0x250] sm:$0x3] }
  0x7c   :  { %16975 = vst [vmem:[#allocation108_spill] sm:$0xff] %v10415_v9  ;;  %237 = vst.msk [vmem:[#allocation2 + $0x301] sm:$0xff] %vm90_vm0, %v10404_v11  ;;  %v563_v11 = vrot.slane %v10361_v15, 1  ;;  %v559_v21 = vrot.slane %v10453_v53, 1  ;;  %v561_v6 = vrot.slane %v10455_v39, 1  ;;  %v10462_v15 = vld [vmem:[#allocation2 + $0x288] sm:$0xff] }
  0x7d   :  { %16976 = vst [vmem:[#allocation109_spill] sm:$0xff] %v10422_v10  ;;  %16977 = vst [vmem:[#allocation110_spill] sm:$0xff] %v10427_v17  ;;  %v10464_v1 = vld [vmem:[#allocation2 + $0x290] sm:$0xff]  ;;  %7152 = vrot.lane.b32.xlu0 %v10431_v44, %s9462_s19  ;;  %v10500_v13 = vld [vmem:[#allocation2 + $0x2a8] sm:$0xff] }
  0x7e   :  { %16978 = vst [vmem:[#allocation111_spill] sm:$0xff] %v10429_v38  ;;  %16979 = vst [vmem:[#allocation112_spill] sm:$0xff] %v10431_v44  ;;  %v562_v24 = vsel %vm447_vm3, %v559_v21, %v561_v6  ;;  %v10498_v38 = vld [vmem:[#allocation2 + $0x2a0] sm:$0xff]  ;;  %v584_v44 = vrot.slane %v10481_v43, 1 }
  0x7f   :  { %16980 = vst [vmem:[#allocation113_spill] sm:$0xff] %v10434_v49  ;;  %16981 = vst [vmem:[#allocation114_spill] sm:$0xff] %v10436_v23  ;;  %v573_v23 = vrot.slane %v10462_v15, 1  ;;  %v574_v49 = vrot.slane %v10464_v1, 1 }
  0x80   :  { %16982 = vst [vmem:[#allocation115_spill] sm:$0xff] %v10439_v2  ;;  %238 = vst.msk [vmem:[#allocation2 + $0x309] sm:$0xff] %vm90_vm0, %v10415_v9  ;;  %v558_v9 = vrot.slane %v10439_v2, 1  ;;  %v10472_v2 = vld [vmem:[#allocation2 + $0x278] sm:$0xff] }
  0x81   :  { %209 = vst.msk [vmem:[#allocation2 + $0x181] sm:$0xff] %vm90_vm0, %v10422_v10  ;;  %210 = vst.msk [vmem:[#allocation2 + $0x189] sm:$0xff] %vm90_vm0, %v10427_v17  ;;  %v550_v10 = vsel %vm447_vm3, %v548_v27, %v549_v33  ;;  %v552_v17 = vsel %vm447_vm3, %v549_v33, %v551_v8  ;;  %v10474_v27 = vld [vmem:[#allocation2 + $0x280] sm:$0x3]  ;;  %v565_v8 = vsel %vm447_vm3, %v563_v11, %v564_v16  ;;  %v568_v11 = vrot.slane %v10470_v42, 1 }
  0x82   :  { %16983 = vst [vmem:[#allocation116_spill] sm:$0xff] %v10453_v53  ;;  %16984 = vst [vmem:[#allocation117_spill] sm:$0xff] %v10455_v39  ;;  %v567_v33 = vsel %vm447_vm3, %v564_v16, %v566_v14  ;;  %v576_v39 = vrot.slane %v10466_v18, 1  ;;  %v10479_v53 = vld [vmem:[#allocation2 + $0x2b8] sm:$0xff]  ;;  %v569_v16 = vrot.slane %v10472_v2, 1  ;;  %v571_v12 = vrot.slane %v10474_v27, 1 }
  0x83   :  { %16985 = vst [vmem:[#allocation118_spill] sm:$0xff] %v10462_v15  ;;  %16986 = vst [vmem:[#allocation119_spill] sm:$0xff] %v10464_v1  ;;  %v10487_v1 = vpack.i.bf16 %v557_v30, %v555_v50  ;;  %v10489_v15 = vpack.i.bf16 %v552_v17, %v550_v10  ;;  %v10493_v14 = vld [vmem:[#allocation2 + $0x2c8] sm:$0x3]  ;;  %v10502_v50 = vld [vmem:[#allocation2 + $0x2b0] sm:$0x3]  ;;  %v10504_v10 = vpack.i.bf16 %v567_v33, %v565_v8 }
  0x84   :  { %16987 = vst [vmem:[#allocation120_spill] sm:$0xff] %v10466_v18  ;;  %16988 = vst [vmem:[#allocation121_spill] sm:$0xff] %v10472_v2  ;;  %v560_v18 = vsel %vm447_vm3, %v558_v9, %v559_v21  ;;  %v575_v17 = vsel %vm447_vm3, %v573_v23, %v574_v49  ;;  %v583_v30 = vrot.slane %v10479_v53, 1  ;;  %v577_v9 = vsel %vm447_vm3, %v574_v49, %v576_v39  ;;  %v10513_v2 = vld [vmem:[#allocation2 + $0x2e8] sm:$0xff]  ;;  %v10524_v33 = vld [vmem:[#allocation2 + $0x2f0] sm:$0xff] }
  0x85   :  { %16989 = vst [vmem:[#allocation122_spill] sm:$0xff] %v10474_v27  ;;  %16990 = vst [vmem:[#allocation123_spill] sm:$0xff] %v10487_v1  ;;  %v570_v21 = vsel %vm447_vm3, %v568_v11, %v569_v16  ;;  %v572_v6 = vsel %vm447_vm3, %v569_v16, %v571_v12  ;;  %v586_v27 = vrot.slane %v10493_v14, 1  ;;  %7167 = vrot.lane.b32.xlu1 %v10487_v1, %s9462_s19  ;;  %7162 = vrot.lane.b32.xlu0 %v10489_v15, %s9462_s19  ;;  %v10526_v12 = vld [vmem:[#allocation2 + $0x2f8] sm:$0x3]  ;;  %v10528_v11 = vld [vmem:[#allocation2 + $0x2d0] sm:$0xff] }
  0x86   :  { %16991 = vst [vmem:[#allocation124_spill] sm:$0xff] %v10489_v15  ;;  %16992 = vst [vmem:[#allocation125_spill] sm:$0xff] %v10493_v14  ;;  %v10519_v23 = vpack.i.bf16 %v562_v24, %v560_v18  ;;  %v578_v8 = vrot.slane %v10498_v38, 1  ;;  %v579_v49 = vrot.slane %v10500_v13, 1  ;;  %v581_v39 = vrot.slane %v10502_v50, 1  ;;  %v10530_v16 = vld [vmem:[#allocation2 + $0x2d8] sm:$0xff] }
  0x87   :  { %16993 = vst [vmem:[#allocation126_spill] sm:$0xff] %v10498_v38  ;;  %16994 = vst [vmem:[#allocation127_spill] sm:$0xff] %v10500_v13  ;;  %v10532_v1 = vpack.i.bf16 %v577_v9, %v575_v17  ;;  %v10534_v14 = vpack.i.bf16 %v572_v6, %v570_v21  ;;  %v585_v24 = vsel %vm447_vm3, %v583_v30, %v584_v44  ;;  %v10537_v18 = vld [vmem:[#allocation2 + $0x2e0] sm:$0x3]  ;;  %v594_v13 = vrot.slane %v10524_v33, 1  ;;  %v10552_v21 = vld [vmem:[#allocation2 + $0x318] sm:$0xff] }
  0x88   :  { %16995 = vst [vmem:[#allocation128_spill] sm:$0xff] %v10502_v50  ;;  %16996 = vst [vmem:[#allocation129_spill] sm:$0xff] %v10504_v10  ;;  %v587_v15 = vsel %vm447_vm3, %v584_v44, %v586_v27  ;;  %v593_v50 = vrot.slane %v10513_v2, 1  ;;  %v596_v38 = vrot.slane %v10526_v12, 1  ;;  %v580_v17 = vsel %vm447_vm3, %v578_v8, %v579_v49  ;;  %v10554_v6 = vld [vmem:[#allocation2 + $0x320] sm:$0xff] }
  0x89   :  { %16997 = vst [vmem:[#allocation130_spill] sm:$0xff] %v10513_v2  ;;  %16998 = vst [vmem:[#allocation131_spill] sm:$0xff] %v10519_v23  ;;  %7177 = vrot.lane.b32.xlu1 %v10504_v10, %s9462_s19  ;;  %7172 = vrot.lane.b32.xlu0 %v10519_v23, %s9462_s19  ;;  %v582_v30 = vsel %vm447_vm3, %v579_v49, %v581_v39  ;;  %v588_v9 = vrot.slane %v10528_v11, 1  ;;  %v589_v44 = vrot.slane %v10530_v16, 1  ;;  %v591_v27 = vrot.slane %v10537_v18, 1  ;;  %v10558_v10 = vld [vmem:[#allocation2 + $0x300] sm:$0xff] }
  0x8a   :  { %16999 = vst [vmem:[#allocation132_spill] sm:$0xff] %v10524_v33  ;;  %17000 = vst [vmem:[#allocation133_spill] sm:$0xff] %v10526_v12  ;;  %v10556_v12 = vld [vmem:[#allocation2 + $0x328] sm:$0x3]  ;;  %v10562_v23 = vld [vmem:[#allocation2 + $0x310] sm:$0x3]  ;;  %v10564_v8 = vpack.i.bf16 %v587_v15, %v585_v24  ;;  %v10566_v49 = vpack.i.bf16 %v582_v30, %v580_v17  ;;  %v595_v39 = vsel %vm447_vm3, %v593_v50, %v594_v13 }
  0x8b   :  { %17001 = vst [vmem:[#allocation134_spill] sm:$0xff] %v10528_v11  ;;  %17002 = vst [vmem:[#allocation135_spill] sm:$0xff] %v10530_v16  ;;  %v10560_v33 = vld [vmem:[#allocation2 + $0x308] sm:$0xff]  ;;  %v590_v16 = vsel %vm447_vm3, %v588_v9, %v589_v44  ;;  %v603_v11 = vrot.slane %v10552_v21, 1  ;;  %v604_v2 = vrot.slane %v10554_v6, 1  ;;  %v606_v15 = vrot.slane %v10556_v12, 1 }
  0x8c   :  { %17003 = vst [vmem:[#allocation136_spill] sm:$0xff] %v10532_v1  ;;  %17004 = vst [vmem:[#allocation137_spill] sm:$0xff] %v10534_v14  ;;  %v592_v24 = vsel %vm447_vm3, %v589_v44, %v591_v27  ;;  %v598_v50 = vrot.slane %v10558_v10, 1  ;;  %v10585_v17 = vld [vmem:[%s16378_s0 + $0x1f0] sm:$0xff]  ;;  %v10590_v30 = vld [vmem:[%s16378_s0 + $0x1f8] sm:$0xff]  ;;  %v612_v9 = vrot.slane %v9832_v26, 2 }
  0x8d   :  { %17005 = vst [vmem:[#allocation138_spill] sm:$0xff] %v10537_v18  ;;  %17006 = vst [vmem:[#allocation139_spill] sm:$0xff] %v10562_v23  ;;  %v597_v18 = vsel %vm447_vm3, %v594_v13, %v596_v38  ;;  %7187 = vrot.lane.b32.xlu1 %v10532_v1, %s9462_s19  ;;  %7182 = vrot.lane.b32.xlu0 %v10534_v14, %s9462_s19  ;;  %v599_v13 = vrot.slane %v10560_v33, 1  ;;  %v601_v38 = vrot.slane %v10562_v23, 1  ;;  %v610_v44 = vrot.slane %v9812_v22, 2  ;;  %s9463_s0 = smov 32  }
  0x8e   :  { %17007 = vst [vmem:[#allocation140_spill] sm:$0xff] %v10564_v8  ;;  %17008 = vst [vmem:[#allocation141_spill] sm:$0xff] %v10566_v49  ;;  %v609_v27 = vrot.slane %v9830_v25, 2  ;;  %v10603_v1 = vpack.i.bf16 %v597_v18, %v595_v39  ;;  %v10605_v14 = vpack.i.bf16 %v592_v24, %v590_v16  ;;  %v605_v22 = vsel %vm447_vm3, %v603_v11, %v604_v2 }
  0x8f   :  { %17009 = vst [vmem:[#allocation142_spill] sm:$0xff] %v10585_v17  ;;  %17010 = vst [vmem:[#allocation143_spill] sm:$0xff] %v10590_v30  ;;  %v607_v26 = vsel %vm447_vm3, %v604_v2, %v606_v15  ;;  %v613_v25 = vsel %vm608_vm4, %v610_v44, %v612_v9  ;;  %v627_v18 = vrot.slane %v9858_v41, 2  ;;  %v619_v16 = vrot.slane %v9835_v28, 2 }
  0x90   :  { %241 = vst.msk [vmem:[#allocation2 + $0x331] sm:$0xff] %vm90_vm0, %v10585_v17  ;;  %242 = vst.msk [vmem:[#allocation2 + $0x339] sm:$0xff] %vm90_vm0, %v10590_v30  ;;  %v600_v17 = vsel %vm447_vm3, %v598_v50, %v599_v13  ;;  %v602_v30 = vsel %vm447_vm3, %v599_v13, %v601_v38  ;;  %v611_v23 = vsel %vm608_vm4, %v609_v27, %v610_v44  ;;  %v620_v39 = vrot.slane %v9843_v31, 2 }
  0x91   :  { %7197 = vrot.lane.b32.xlu1 %v10564_v8, %s9462_s19  ;;  %7192 = vrot.lane.b32.xlu0 %v10566_v49, %s9462_s19  ;;  %17011 = vst [vmem:[#allocation144_spill] sm:$0xff] %v10603_v1  ;;  %17012 = vst [vmem:[#allocation145_spill] sm:$0xff] %v10605_v14  ;;  %v624_v8 = vrot.slane %v9850_v36, 2  ;;  %v625_v49 = vrot.slane %v9852_v37, 2  ;;  %v10620_v2 = vpack.i.bf16 %v607_v26, %v605_v22  ;;  %v622_v36 = vrot.slane %v9845_v32, 2 }
  0x92   :  { %v10622_v11 = vpack.i.bf16 %v602_v30, %v600_v17  ;;  %v634_v37 = vrot.slane %v9864_v45, 2  ;;  %v635_v41 = vrot.slane %v9871_v51, 2  ;;  %v637_v15 = vrot.slane %v9873_v52, 2 }
  0x93   :  { %17013 = vst [vmem:[#allocation146_spill] sm:$0xff] %v10620_v2  ;;  %v629_v24 = vrot.slane %v9879_v56, 2  ;;  %v630_v50 = vrot.slane %v9881_v57, 2  ;;  %v632_v13 = vrot.slane %v9883_v58, 2  ;;  %v7221_v38 = vpack.i.bf16 %v613_v25, %v611_v23 }
  0x94   :  { %17014 = vst [vmem:[#allocation147_spill] sm:$0xff] %v10622_v11  ;;  %v10638_v28 = vsel %vm608_vm4, %v624_v8, %v625_v49  ;;  %v10641_v31 = vsel %vm608_vm4, %v625_v49, %v627_v18  ;;  %v10644_v32 = vsel %vm608_vm4, %v619_v16, %v620_v39  ;;  %v10647_v45 = vsel %vm608_vm4, %v620_v39, %v622_v36 }
  0x95   :  { %7207 = vrot.lane.b32.xlu1 %v10603_v1, %s9462_s19  ;;  %7202 = vrot.lane.b32.xlu0 %v10605_v14, %s9462_s19  ;;  %17015 = vst [vmem:[#allocation148_spill] sm:$0xff] %v10638_v28  ;;  %17016 = vst [vmem:[#allocation149_spill] sm:$0xff] %v10641_v31  ;;  %v10650_v51 = vsel %vm608_vm4, %v634_v37, %v635_v41  ;;  %v644_v52 = vrot.slane %v9890_v63, 2  ;;  %v645_v56 = vrot.slane %v9899_v34, 2  ;;  %v647_v8 = vrot.slane %v9901_v35, 2 }
  0x96   :  { %17017 = vst [vmem:[#allocation150_spill] sm:$0xff] %v10644_v32  ;;  %17018 = vst [vmem:[#allocation151_spill] sm:$0xff] %v10647_v45  ;;  %v10655_v57 = vsel %vm608_vm4, %v635_v41, %v637_v15  ;;  %v10658_v58 = vsel %vm608_vm4, %v629_v24, %v630_v50  ;;  %v10661_v23 = vsel %vm608_vm4, %v630_v50, %v632_v13  ;;  %v639_v49 = vrot.slane %v9907_v46, 2  ;;  %v17029_v50 = vld [vmem:[#allocation32_spill] sm:$0xff]  ;;  %v17030_v13 = vld [vmem:[#allocation33_spill] sm:$0xff] }
  0x97   :  { %17019 = vst [vmem:[#allocation152_spill] sm:$0xff] %v10650_v51  ;;  %17020 = vst [vmem:[#allocation153_spill] sm:$0xff] %v10655_v57  ;;  %v640_v17 = vrot.slane %v9909_v47, 2  ;;  %v642_v30 = vrot.slane %v9911_v48, 2  ;;  %v10672_v63 = vpack.i.bf16 %v10641_v31, %v10638_v28  ;;  %v10676_v34 = vpack.i.bf16 %v10647_v45, %v10644_v32  ;;  %v17084_v31 = vld [vmem:[#allocation88_spill] sm:$0xff]  ;;  %v17103_v32 = vld [vmem:[#allocation122_spill] sm:$0xff] }
  0x98   :  { %17021 = vst [vmem:[#allocation154_spill] sm:$0xff] %v10658_v58  ;;  %17022 = vst [vmem:[#allocation155_spill] sm:$0xff] %v10661_v23  ;;  %v10680_v35 = vpack.i.bf16 %v10655_v57, %v10650_v51  ;;  %v10684_v46 = vpack.i.bf16 %v10661_v23, %v10658_v58  ;;  %v10687_v47 = vsel %vm608_vm4, %v644_v52, %v645_v56  ;;  %v654_v9 = vrot.slane %v9918_v0, 2  ;;  %v17074_v57 = vld [vmem:[#allocation80_spill] sm:$0xff]  ;;  %v17080_v23 = vld [vmem:[#allocation81_spill] sm:$0xff] }
  0x99   :  { %7217 = vrot.lane.b32.xlu1 %v10620_v2, %s9462_s19  ;;  %7212 = vrot.lane.b32.xlu0 %v10622_v11, %s9462_s19  ;;  %17024 = vst [vmem:[#allocation157_spill] sm:$0xff] %v10687_v47  ;;  %v10690_v48 = vsel %vm608_vm4, %v645_v56, %v647_v8  ;;  %v694_v44 = vrot.slane %v10181_v3, 2  ;;  %v695_v27 = vrot.slane %v10183_v5, 2  ;;  %v10696_v22 = vsel %vm608_vm4, %v639_v49, %v640_v17 }
  0x9a   :  { %17023 = vst [vmem:[#allocation156_spill] sm:$0xff] %v10680_v35  ;;  %17025 = vst [vmem:[#allocation158_spill] sm:$0xff] %v10690_v48  ;;  %v10699_v26 = vsel %vm608_vm4, %v640_v17, %v642_v30  ;;  %v655_v25 = vrot.slane %v9920_v60, 2  ;;  %v697_v18 = vrot.slane %v10185_v7, 2  ;;  %v657_v0 = vrot.slane %v9922_v61, 2  ;;  %v17040_v17 = vld [vmem:[#allocation38_spill] sm:$0xff] }
  0x9b   :  { %17026 = vst [vmem:[#allocation159_spill] sm:$0xff] %v10696_v22  ;;  %17027 = vst [vmem:[#allocation160_spill] sm:$0xff] %v10699_v26  ;;  %v649_v16 = vrot.slane %v9929_v40, 2  ;;  %v650_v39 = vrot.slane %v9931_v62, 2  ;;  %v652_v36 = vrot.slane %v9933_v29, 2  ;;  %v664_v37 = vrot.slane %v9944_v54, 2 }
  0x9c   :  { %v665_v60 = vrot.slane %v9952_v19, 2  ;;  %v696_v7 = vsel %vm608_vm4, %v694_v44, %v695_v27  ;;  %v698_v41 = vsel %vm608_vm4, %v695_v27, %v697_v18  ;;  %v667_v15 = vrot.slane %v9946_v59, 2  ;;  %v17041_v44 = vld [vmem:[#allocation60_spill] sm:$0xff]  ;;  %v17042_v27 = vld [vmem:[#allocation61_spill] sm:$0xff] }
  0x9d   :  { %7227 = vrot.lane.b32.xlu1 %v10406_v20, %s9463_s0  ;;  %7222 = vrot.lane.b32.xlu0 %v7221_v38, %s9463_s0  ;;  %v10716_v24 = vpack.i.bf16 %v698_v41, %v696_v7  ;;  %v659_v61 = vrot.slane %v17029_v50, 2  ;;  %v660_v40 = vrot.slane %v17030_v13, 2  ;;  %v17031_v38 = vld [vmem:[#allocation34_spill] sm:$0xff]  ;;  %v10727_v29 = vpack.i.bf16 %v10690_v48, %v10687_v47  ;;  %v17049_v41 = vld [vmem:[#allocation64_spill] sm:$0xff] }
  0x9e   :  { %v662_v62 = vrot.slane %v17031_v38, 2  ;;  %v10731_v54 = vpack.i.bf16 %v10699_v26, %v10696_v22  ;;  %v10734_v59 = vsel %vm608_vm4, %v654_v9, %v655_v25  ;;  %v10737_v19 = vsel %vm608_vm4, %v655_v25, %v657_v0  ;;  %v17071_v48 = vld [vmem:[#allocation76_spill] sm:$0xff]  ;;  %v17072_v26 = vld [vmem:[#allocation77_spill] sm:$0xff] }
  0x9f   :  { %17028 = vst [vmem:[#allocation161_spill] sm:$0xff] %v10716_v24  ;;  %17032 = vst [vmem:[#allocation32_spill] sm:$0xff] %v10727_v29  ;;  %v10740_v52 = vsel %vm608_vm4, %v649_v16, %v650_v39  ;;  %v10743_v56 = vsel %vm608_vm4, %v650_v39, %v652_v36  ;;  %v10746_v8 = vsel %vm608_vm4, %v664_v37, %v665_v60  ;;  %v674_v30 = vrot.slane %v17040_v17, 2  ;;  %v17045_v16 = vld [vmem:[#allocation62_spill] sm:$0xff]  ;;  %v17046_v36 = vld [vmem:[#allocation63_spill] sm:$0xff] }
  0xa0   :  { %17033 = vst [vmem:[#allocation33_spill] sm:$0xff] %v10731_v54  ;;  %17034 = vst [vmem:[#allocation34_spill] sm:$0xff] %v10734_v59  ;;  %v10749_v49 = vsel %vm608_vm4, %v665_v60, %v667_v15  ;;  %v675_v9 = vrot.slane %v17041_v44, 2  ;;  %v677_v18 = vrot.slane %v17042_v27, 2  ;;  %v10755_v25 = vsel %vm608_vm4, %v659_v61, %v660_v40  ;;  %v17056_v44 = vld [vmem:[#allocation68_spill] sm:$0xff] }
  0xa1   :  { %7237 = vrot.lane.b32.xlu1 %v10672_v63, %s9463_s0  ;;  %7232 = vrot.lane.b32.xlu0 %v10676_v34, %s9463_s0  ;;  %17035 = vst [vmem:[#allocation162_spill] sm:$0xff] %v10737_v19  ;;  %17036 = vst [vmem:[#allocation163_spill] sm:$0xff] %v10740_v52  ;;  %v10758_v0 = vsel %vm608_vm4, %v660_v40, %v662_v62  ;;  %v669_v39 = vrot.slane %v17045_v16, 2  ;;  %v670_v37 = vrot.slane %v17046_v36, 2  ;;  %v672_v15 = vrot.slane %v17049_v41, 2  ;;  %v17055_v62 = vld [vmem:[#allocation67_spill] sm:$0xff] }
  0xa2   :  { %17037 = vst [vmem:[#allocation164_spill] sm:$0xff] %v10743_v56  ;;  %17038 = vst [vmem:[#allocation165_spill] sm:$0xff] %v10746_v8  ;;  %v10768_v60 = vpack.i.bf16 %v10737_v19, %v10734_v59  ;;  %v10772_v7 = vpack.i.bf16 %v10743_v56, %v10740_v52  ;;  %v10777_v50 = vpack.i.bf16 %v10749_v49, %v10746_v8  ;;  %v684_v17 = vrot.slane %v17055_v62, 2  ;;  %v17057_v41 = vld [vmem:[#allocation69_spill] sm:$0xff]  ;;  %v17060_v8 = vld [vmem:[#allocation71_spill] sm:$0xff] }
  0xa3   :  { %17039 = vst [vmem:[#allocation166_spill] sm:$0xff] %v10749_v49  ;;  %17043 = vst [vmem:[#allocation38_spill] sm:$0xff] %v10755_v25  ;;  %v10781_v61 = vpack.i.bf16 %v10758_v0, %v10755_v25  ;;  %v10784_v13 = vsel %vm608_vm4, %v674_v30, %v675_v9  ;;  %v10787_v40 = vsel %vm608_vm4, %v675_v9, %v677_v18  ;;  %v685_v27 = vrot.slane %v17056_v44, 2  ;;  %v17059_v9 = vld [vmem:[#allocation70_spill] sm:$0xff]  ;;  %v17070_v56 = vld [vmem:[#allocation75_spill] sm:$0xff] }
  0xa4   :  { %17044 = vst [vmem:[#allocation60_spill] sm:$0xff] %v10758_v0  ;;  %17047 = vst [vmem:[#allocation61_spill] sm:$0xff] %v10768_v60  ;;  %v10790_v38 = vsel %vm608_vm4, %v669_v39, %v670_v37  ;;  %v687_v49 = vrot.slane %v17057_v41, 2  ;;  %v10800_v30 = vsel %vm608_vm4, %v670_v37, %v672_v15  ;;  %v679_v18 = vrot.slane %v17059_v9, 2  ;;  %v17061_v0 = vld [vmem:[#allocation72_spill] sm:$0xff] }
  0xa5   :  { %7247 = vrot.lane.b32.xlu1 %v10680_v35, %s9463_s0  ;;  %7242 = vrot.lane.b32.xlu0 %v10684_v46, %s9463_s0  ;;  %17048 = vst [vmem:[#allocation62_spill] sm:$0xff] %v10772_v7  ;;  %17050 = vst [vmem:[#allocation63_spill] sm:$0xff] %v10777_v50  ;;  %v680_v39 = vrot.slane %v17060_v8, 2  ;;  %v682_v25 = vrot.slane %v17061_v0, 2  ;;  %v10807_v19 = vpack.i.bf16 %v10787_v40, %v10784_v13  ;;  %v704_v52 = vrot.slane %v17070_v56, 2 }
  0xa6   :  { %17051 = vst [vmem:[#allocation64_spill] sm:$0xff] %v10781_v61  ;;  %17052 = vst [vmem:[#allocation167_spill] sm:$0xff] %v10784_v13  ;;  %v10811_v41 = vpack.i.bf16 %v10800_v30, %v10790_v38  ;;  %v10814_v59 = vsel %vm608_vm4, %v684_v17, %v685_v27  ;;  %v10821_v37 = vsel %vm608_vm4, %v685_v27, %v687_v49  ;;  %v690_v17 = vrot.slane %v10044_v55, 2  ;;  %v17073_v27 = vld [vmem:[#allocation78_spill] sm:$0xff] }
  0xa7   :  { %17053 = vst [vmem:[#allocation168_spill] sm:$0xff] %v10787_v40  ;;  %17054 = vst [vmem:[#allocation169_spill] sm:$0xff] %v10790_v38  ;;  %v10824_v0 = vsel %vm608_vm4, %v679_v18, %v680_v39  ;;  %v10827_v15 = vsel %vm608_vm4, %v680_v39, %v682_v25  ;;  %v17068_v40 = vld [vmem:[#allocation45_spill] sm:$0xff]  ;;  %v705_v47 = vrot.slane %v17071_v48, 2  ;;  %v707_v22 = vrot.slane %v17072_v26, 2 }
  0xa8   :  { %17058 = vst [vmem:[#allocation67_spill] sm:$0xff] %v10800_v30  ;;  %17062 = vst [vmem:[#allocation68_spill] sm:$0xff] %v10807_v19  ;;  %v689_v13 = vrot.slane %v17068_v40, 2  ;;  %v17069_v30 = vld [vmem:[#allocation48_spill] sm:$0xff]  ;;  %v699_v49 = vrot.slane %v10213_v4, 2  ;;  %v700_v18 = vrot.slane %v17073_v27, 2  ;;  %v10844_v55 = vpack.i.bf16 %v10821_v37, %v10814_v59 }
  0xa9   :  { %7257 = vrot.lane.b32.xlu1 %v10727_v29, %s9463_s0  ;;  %7252 = vrot.lane.b32.xlu0 %v10731_v54, %s9463_s0  ;;  %17063 = vst [vmem:[#allocation69_spill] sm:$0xff] %v10811_v41  ;;  %17064 = vst [vmem:[#allocation70_spill] sm:$0xff] %v10814_v59  ;;  %v692_v38 = vrot.slane %v17069_v30, 2  ;;  %v702_v51 = vrot.slane %v17074_v57, 2  ;;  %v10848_v25 = vpack.i.bf16 %v10827_v15, %v10824_v0  ;;  %v17081_v59 = vld [vmem:[#allocation82_spill] sm:$0xff]  ;;  %v732_v29 = vrot.slane %v17103_v32, 2 }
  0xaa   :  { %17065 = vst [vmem:[#allocation71_spill] sm:$0xff] %v10821_v37  ;;  %17066 = vst [vmem:[#allocation72_spill] sm:$0xff] %v10824_v0  ;;  %v691_v26 = vsel %vm608_vm4, %v689_v13, %v690_v17  ;;  %v10853_v57 = vsel %vm608_vm4, %v704_v52, %v705_v47  ;;  %v10856_v30 = vsel %vm608_vm4, %v705_v47, %v707_v22  ;;  %v714_v37 = vrot.slane %v17080_v23, 2  ;;  %v17083_v0 = vld [vmem:[#allocation83_spill] sm:$0xff]  ;;  %v17086_v22 = vld [vmem:[#allocation90_spill] sm:$0xff] }
  0xab   :  { %17067 = vst [vmem:[#allocation170_spill] sm:$0xff] %v10827_v15  ;;  %17075 = vst [vmem:[#allocation45_spill] sm:$0xff] %v10844_v55  ;;  %v693_v40 = vsel %vm608_vm4, %v690_v17, %v692_v38  ;;  %v10859_v39 = vsel %vm608_vm4, %v699_v49, %v700_v18  ;;  %v715_v58 = vrot.slane %v17081_v59, 2  ;;  %v10864_v15 = vsel %vm608_vm4, %v700_v18, %v702_v51  ;;  %v17085_v17 = vld [vmem:[#allocation89_spill] sm:$0xff] }
  0xac   :  { %17076 = vst [vmem:[#allocation48_spill] sm:$0xff] %v10848_v25  ;;  %17077 = vst [vmem:[#allocation75_spill] sm:$0xff] %v10853_v57  ;;  %v717_v13 = vrot.slane %v17083_v0, 2  ;;  %v709_v38 = vrot.slane %v17084_v31, 2  ;;  %v710_v52 = vrot.slane %v17085_v17, 2  ;;  %v7301_v47 = vpack.i.bf16 %v693_v40, %v691_v26  ;;  %v17092_v26 = vld [vmem:[#allocation102_spill] sm:$0xff] }
  0xad   :  { %7267 = vrot.lane.b32.xlu1 %v10768_v60, %s9463_s0  ;;  %7262 = vrot.lane.b32.xlu0 %v10772_v7, %s9463_s0  ;;  %17078 = vst [vmem:[#allocation76_spill] sm:$0xff] %v10856_v30  ;;  %17079 = vst [vmem:[#allocation77_spill] sm:$0xff] %v10859_v39  ;;  %v712_v49 = vrot.slane %v17086_v22, 2  ;;  %v10876_v28 = vpack.i.bf16 %v10856_v30, %v10853_v57  ;;  %v10880_v51 = vpack.i.bf16 %v10864_v15, %v10859_v39  ;;  %v17094_v30 = vld [vmem:[#allocation113_spill] sm:$0xff]  ;;  %v17096_v39 = vld [vmem:[#allocation115_spill] sm:$0xff] }
  0xae   :  { %17082 = vst [vmem:[#allocation78_spill] sm:$0xff] %v10864_v15  ;;  %v10883_v0 = vsel %vm608_vm4, %v714_v37, %v715_v58  ;;  %v10886_v18 = vsel %vm608_vm4, %v715_v58, %v717_v13  ;;  %v724_v40 = vrot.slane %v17092_v26, 2  ;;  %v725_v57 = vrot.slane %v17094_v30, 2  ;;  %v17095_v37 = vld [vmem:[#allocation114_spill] sm:$0xff]  ;;  %v17097_v13 = vld [vmem:[#allocation116_spill] sm:$0xff]  ;;  %v17100_v60 = vld [vmem:[#allocation119_spill] sm:$0xff] }
  0xaf   :  { %17087 = vst [vmem:[#allocation80_spill] sm:$0xff] %v10876_v28  ;;  %17088 = vst [vmem:[#allocation81_spill] sm:$0xff] %v10880_v51  ;;  %v10896_v22 = vsel %vm608_vm4, %v710_v52, %v712_v49  ;;  %v727_v15 = vrot.slane %v17095_v37, 2  ;;  %v719_v58 = vrot.slane %v17096_v39, 2  ;;  %v10915_v37 = vpack.i.bf16 %v10886_v18, %v10883_v0 }
  0xb0   :  { %17089 = vst [vmem:[#allocation82_spill] sm:$0xff] %v10883_v0  ;;  %17090 = vst [vmem:[#allocation83_spill] sm:$0xff] %v10886_v18 }
  0xb1   :  { %7277 = vrot.lane.b32.xlu1 %v10777_v50, %s9463_s0  ;;  %7272 = vrot.lane.b32.xlu0 %v10781_v61, %s9463_s0  ;;  %17093 = vst [vmem:[#allocation89_spill] sm:$0xff] %v10896_v22  ;;  %v735_v61 = vrot.slane %v17100_v60, 2  ;;  %17104 = vst [vmem:[#allocation90_spill] sm:$0xff] %v10915_v37  ;;  %v10925_v7 = vsel %vm608_vm4, %v725_v57, %v727_v15  ;;  %v745_v15 = vrot.slane %v10481_v43, 2 }
  0xb2   :  { %17107 = vst [vmem:[#allocation114_spill] sm:$0xff] %v10925_v7 }
  0xb5   :  { %7287 = vrot.lane.b32.xlu1 %v10807_v19, %s9463_s0  ;;  %7282 = vrot.lane.b32.xlu0 %v10811_v41, %s9463_s0  ;;  %v17099_v41 = vld [vmem:[#allocation118_spill] sm:$0xff] }
  0xb6   :  { %v734_v50 = vrot.slane %v17099_v41, 2 }
  0xb9   :  { %7297 = vrot.lane.b32.xlu1 %v10844_v55, %s9463_s0  ;;  %7292 = vrot.lane.b32.xlu0 %v10848_v25, %s9463_s0  ;;  %v10889_v55 = vsel %vm608_vm4, %v709_v38, %v710_v52  ;;  %v720_v25 = vrot.slane %v17097_v13, 2  ;;  %v17098_v38 = vld [vmem:[#allocation117_spill] sm:$0xff] }
  0xba   :  { %17091 = vst [vmem:[#allocation88_spill] sm:$0xff] %v10889_v55  ;;  %v722_v19 = vrot.slane %v17098_v38, 2  ;;  %v17102_v52 = vld [vmem:[#allocation121_spill] sm:$0xff]  ;;  %v10919_v38 = vpack.i.bf16 %v10896_v22, %v10889_v55  ;;  %v17116_v55 = vld [vmem:[#allocation127_spill] sm:$0xff] }
  0xbb   :  { %v730_v49 = vrot.slane %v17102_v52, 2  ;;  %v10928_v32 = vsel %vm608_vm4, %v719_v58, %v720_v25  ;;  %v17114_v58 = vld [vmem:[#allocation125_spill] sm:$0xff] }
  0xbc   :  { %17105 = vst [vmem:[#allocation102_spill] sm:$0xff] %v10919_v38  ;;  %17108 = vst [vmem:[#allocation115_spill] sm:$0xff] %v10928_v32  ;;  %v747_v22 = vrot.slane %v17114_v58, 2 }
  0xbd   :  { %7307 = vrot.lane.b32.xlu1 %v10716_v24, %s9463_s0  ;;  %7302 = vrot.lane.b32.xlu0 %v7301_v47, %s9463_s0  ;;  %v17101_v24 = vld [vmem:[#allocation120_spill] sm:$0xff]  ;;  %v729_v47 = vrot.slane %v10470_v42, 2 }
  0xbe   :  { %v737_v45 = vrot.slane %v17101_v24, 2  ;;  %v10922_v24 = vsel %vm608_vm4, %v724_v40, %v725_v57  ;;  %v744_v40 = vrot.slane %v10479_v53, 2  ;;  %v10945_v57 = vsel %vm608_vm4, %v730_v49, %v732_v29 }
  0xbf   :  { %17106 = vst [vmem:[#allocation113_spill] sm:$0xff] %v10922_v24  ;;  %v10940_v0 = vsel %vm608_vm4, %v729_v47, %v730_v49  ;;  %17113 = vst [vmem:[#allocation120_spill] sm:$0xff] %v10945_v57 }
  0xc0   :  { %v10937_v18 = vsel %vm608_vm4, %v735_v61, %v737_v45  ;;  %17112 = vst [vmem:[#allocation119_spill] sm:$0xff] %v10940_v0  ;;  %v10956_v45 = vpack.i.bf16 %v10925_v7, %v10922_v24  ;;  %v10969_v58 = vpack.i.bf16 %v10945_v57, %v10940_v0  ;;  %v10975_v7 = vsel %vm608_vm4, %v745_v15, %v747_v22  ;;  %v17129_v22 = vld [vmem:[#allocation134_spill] sm:$0xff]  ;;  %v17130_v57 = vld [vmem:[#allocation135_spill] sm:$0xff] }
  0xc1   :  { %7317 = vrot.lane.b32.xlu1 %v10876_v28, %s9463_s0  ;;  %7312 = vrot.lane.b32.xlu0 %v10880_v51, %s9463_s0  ;;  %v10931_v28 = vsel %vm608_vm4, %v720_v25, %v722_v19  ;;  %v10934_v51 = vsel %vm608_vm4, %v734_v50, %v735_v61  ;;  %17111 = vst [vmem:[#allocation118_spill] sm:$0xff] %v10937_v18  ;;  %v17115_v19 = vld [vmem:[#allocation126_spill] sm:$0xff]  ;;  %v740_v50 = vrot.slane %v17116_v55, 2  ;;  %v17119_v61 = vld [vmem:[#allocation128_spill] sm:$0xff] }
  0xc2   :  { %17109 = vst [vmem:[#allocation116_spill] sm:$0xff] %v10931_v28  ;;  %17110 = vst [vmem:[#allocation117_spill] sm:$0xff] %v10934_v51  ;;  %v739_v25 = vrot.slane %v17115_v19, 2  ;;  %v10960_v29 = vpack.i.bf16 %v10931_v28, %v10928_v32  ;;  %v742_v47 = vrot.slane %v17119_v61, 2  ;;  %v10965_v49 = vpack.i.bf16 %v10937_v18, %v10934_v51  ;;  %v17125_v28 = vld [vmem:[#allocation130_spill] sm:$0xff]  ;;  %v17126_v61 = vld [vmem:[#allocation132_spill] sm:$0xff] }
  0xc3   :  { %17117 = vst [vmem:[#allocation121_spill] sm:$0xff] %v10956_v45  ;;  %17121 = vst [vmem:[#allocation126_spill] sm:$0xff] %v10969_v58  ;;  %v754_v32 = vrot.slane %v17125_v28, 2  ;;  %v17131_v0 = vld [vmem:[#allocation138_spill] sm:$0xff] }
  0xc4   :  { %17118 = vst [vmem:[#allocation122_spill] sm:$0xff] %v10960_v29  ;;  %17120 = vst [vmem:[#allocation125_spill] sm:$0xff] %v10965_v49  ;;  %v10978_v24 = vsel %vm608_vm4, %v739_v25, %v740_v50  ;;  %v10987_v18 = vsel %vm608_vm4, %v740_v50, %v742_v47  ;;  %v750_v25 = vrot.slane %v17130_v57, 2  ;;  %v752_v35 = vrot.slane %v17131_v0, 2 }
  0xc5   :  { %7327 = vrot.lane.b32.xlu1 %v10915_v37, %s9463_s0  ;;  %7322 = vrot.lane.b32.xlu0 %v10919_v38, %s9463_s0  ;;  %v10972_v37 = vsel %vm608_vm4, %v744_v40, %v745_v15  ;;  %17123 = vst [vmem:[#allocation128_spill] sm:$0xff] %v10975_v7  ;;  %17124 = vst [vmem:[#allocation171_spill] sm:$0xff] %v10978_v24  ;;  %v755_v38 = vrot.slane %v17126_v61, 2  ;;  %v17128_v40 = vld [vmem:[#allocation133_spill] sm:$0xff]  ;;  %v749_v15 = vrot.slane %v17129_v22, 2  ;;  %v764_v50 = vrot.slane %v10552_v21, 2 }
  0xc6   :  { %17122 = vst [vmem:[#allocation127_spill] sm:$0xff] %v10972_v37  ;;  %17127 = vst [vmem:[#allocation130_spill] sm:$0xff] %v10987_v18  ;;  %v757_v51 = vrot.slane %v17128_v40, 2  ;;  %v10995_v54 = vpack.i.bf16 %v10975_v7, %v10972_v37  ;;  %v765_v40 = vrot.slane %v10554_v6, 2  ;;  %v767_v7 = vrot.slane %v10556_v12, 2 }
  0xc7   :  { %v11013_v47 = vsel %vm608_vm4, %v749_v15, %v750_v25  ;;  %v11020_v37 = vsel %vm608_vm4, %v750_v25, %v752_v35 }
  0xc8   :  { %17132 = vst [vmem:[#allocation132_spill] sm:$0xff] %v10995_v54  ;;  %v11010_v0 = vsel %vm608_vm4, %v755_v38, %v757_v51  ;;  %17136 = vst [vmem:[#allocation138_spill] sm:$0xff] %v11013_v47  ;;  %v11025_v51 = vpop.permute.xlu1 %7072  ;;  %v11037_v35 = vpack.i.bf16 %v11020_v37, %v11013_v47  ;;  %v11096_v47 = vld [vmem:[#allocation2 + $0x60] sm:$0xff] }
  0xc9   :  { %7337 = vrot.lane.b32.xlu1 %v10956_v45, %s9463_s0  ;;  %7332 = vrot.lane.b32.xlu0 %v10960_v29, %s9463_s0  ;;  %v10999_v45 = vpack.i.bf16 %v10987_v18, %v10978_v24  ;;  %v11002_v29 = vsel %vm608_vm4, %v754_v32, %v755_v38  ;;  %17135 = vst [vmem:[#allocation135_spill] sm:$0xff] %v11010_v0  ;;  %v11017_v32 = vpop.permute.xlu0 %7062  ;;  %17137 = vst [vmem:[#allocation172_spill] sm:$0xff] %v11020_v37  ;;  %v759_v18 = vrot.slane %v10558_v10, 2 }
  0xca   :  { %17134 = vst [vmem:[#allocation134_spill] sm:$0xff] %v11002_v29  ;;  %v760_v24 = vrot.slane %v10560_v33, 2  ;;  %v11033_v12 = vpack.i.bf16 %v11010_v0, %v11002_v29  ;;  %17140 = vst [vmem:[#allocation173_spill] sm:$0xff] %v11037_v35  ;;  %v11040_v38 = vsel %vm608_vm4, %v764_v50, %v765_v40  ;;  %v11075_v50 = vld [vmem:[#allocation2 + $0x30] sm:$0xff] }
  0xcb   :  { %17133 = vst [vmem:[#allocation133_spill] sm:$0xff] %v10999_v45  ;;  %17141 = vst [vmem:[#allocation174_spill] sm:$0xff] %v11040_v38 }
  0xcc   :  { %v11046_v15 = vsel %vm608_vm4, %v759_v18, %v760_v24  ;;  %17150 = vst [vmem:[#allocation183_spill] sm:$0xff] %v11075_v50  ;;  %17156 = vst [vmem:[#allocation189_spill] sm:$0xff] %v11096_v47 }
  0xcd   :  { %7347 = vrot.lane.b32.xlu1 %v10965_v49, %s9463_s0  ;;  %7342 = vrot.lane.b32.xlu0 %v10969_v58, %s9463_s0  ;;  %v17138_v49 = vld [vmem:[#allocation139_spill] sm:$0xff]  ;;  %17143 = vst [vmem:[#allocation176_spill] sm:$0xff] %v11046_v15  ;;  %v11053_v0 = vpop.permute.xlu0 %7067 }
  0xce   :  { %v762_v58 = vrot.slane %v17138_v49, 2  ;;  %17139 = vst [vmem:[#allocation139_spill] sm:$0xff] %v11033_v12  ;;  %v11043_v49 = vsel %vm608_vm4, %v765_v40, %v767_v7  ;;  %17145 = vst [vmem:[#allocation178_spill] sm:$0xff] %v11053_v0  ;;  %v11077_v40 = vld [vmem:[#allocation2 + $0x38] sm:$0xff] }
  0xcf   :  { %17142 = vst [vmem:[#allocation175_spill] sm:$0xff] %v11043_v49  ;;  %v11061_v7 = vpack.i.bf16 %v11043_v49, %v11040_v38  ;;  %17151 = vst [vmem:[#allocation184_spill] sm:$0xff] %v11077_v40  ;;  %v11081_v49 = vpack.i.bf16 %v11077_v40, %v11075_v50  ;;  %v11083_v38 = vld [vmem:[#allocation2 + $0x18] sm:$0xff] }
  0xd0   :  { %v11049_v25 = vsel %vm608_vm4, %v760_v24, %v762_v58  ;;  %17152 = vst [vmem:[#allocation185_spill] sm:$0xff] %v11083_v38 }
  0xd1   :  { %7357 = vrot.lane.b32.xlu1 %v10995_v54, %s9463_s0  ;;  %7352 = vrot.lane.b32.xlu0 %v10999_v45, %s9463_s0  ;;  %17144 = vst [vmem:[#allocation177_spill] sm:$0xff] %v11049_v25  ;;  %v11051_v54 = vpop.permute.xlu1 %7077  ;;  %17146 = vst [vmem:[#allocation179_spill] sm:$0xff] %v11061_v7  ;;  %v11065_v18 = vpack.i.bf16 %v11049_v25, %v11046_v15  ;;  %v11069_v58 = vpop.permute.xlu0 %7082  ;;  %v11085_v25 = vld [vmem:[#allocation2 + $0x20] sm:$0xff] }
  0xd2   :  { %17149 = vst [vmem:[#allocation182_spill] sm:$0xff] %v11069_v58  ;;  %17153 = vst [vmem:[#allocation186_spill] sm:$0xff] %v11085_v25  ;;  %v7381_v15 = vpack.i.bf16 %v11085_v25, %v11083_v38  ;;  %v11128_v38 = vld [vmem:[#allocation2 + $0x78] sm:$0xff]  ;;  %v11130_v25 = vld [vmem:[#allocation2 + $0x80] sm:$0xff] }
  0xd3   :  { %17147 = vst [vmem:[#allocation180_spill] sm:$0xff] %v11065_v18  ;;  %17164 = vst [vmem:[#allocation197_spill] sm:$0xff] %v11128_v38 }
  0xd4   :  { %17165 = vst [vmem:[#allocation198_spill] sm:$0xff] %v11130_v25 }
  0xd5   :  { %7367 = vrot.lane.b32.xlu1 %v11033_v12, %s9463_s0  ;;  %7362 = vrot.lane.b32.xlu0 %v11037_v35, %s9463_s0  ;;  %v11067_v24 = vpop.permute.xlu1 %7087  ;;  %v11091_v37 = vpop.permute.xlu0 %7092  ;;  %v11104_v12 = vld [vmem:[#allocation2 + $0x48] sm:$0xff]  ;;  %v11106_v35 = vld [vmem:[#allocation2 + $0x50] sm:$0xff] }
  0xd6   :  { %17148 = vst [vmem:[#allocation181_spill] sm:$0xff] %v11067_v24  ;;  %17155 = vst [vmem:[#allocation188_spill] sm:$0xff] %v11091_v37  ;;  %v11110_v45 = vpack.i.bf16 %v11106_v35, %v11104_v12  ;;  %v11196_v24 = vld [vmem:[#allocation2 + $0x110] sm:$0xff] }
  0xd7   :  { %17158 = vst [vmem:[#allocation191_spill] sm:$0xff] %v11104_v12  ;;  %17159 = vst [vmem:[#allocation192_spill] sm:$0xff] %v11106_v35 }
  0xd8   :  { %17181 = vst [vmem:[#allocation214_spill] sm:$0xff] %v11196_v24 }
  0xd9   :  { %7377 = vrot.lane.b32.xlu1 %v11061_v7, %s9463_s0  ;;  %7372 = vrot.lane.b32.xlu0 %v11065_v18, %s9463_s0  ;;  %v11089_v29 = vpop.permute.xlu1 %7097  ;;  %v11098_v7 = vld [vmem:[#allocation2 + $0x68] sm:$0xff] }
  0xda   :  { %17154 = vst [vmem:[#allocation187_spill] sm:$0xff] %v11089_v29  ;;  %17157 = vst [vmem:[#allocation190_spill] sm:$0xff] %v11098_v7  ;;  %v11102_v18 = vpack.i.bf16 %v11098_v7, %v11096_v47  ;;  %v11114_v29 = vpop.permute.xlu0 %7102  ;;  %v11122_v47 = vld [vmem:[#allocation2 + $0x98] sm:$0xff] }
  0xdb   :  { %17161 = vst [vmem:[#allocation194_spill] sm:$0xff] %v11114_v29  ;;  %17163 = vst [vmem:[#allocation196_spill] sm:$0xff] %v11122_v47  ;;  %v11134_v29 = vpack.i.bf16 %v11130_v25, %v11128_v38  ;;  %v11152_v38 = vld [vmem:[#allocation2 + $0xa8] sm:$0xff]  ;;  %v11154_v25 = vld [vmem:[#allocation2 + $0xb0] sm:$0xff] }
  0xdc   :  { %17170 = vst [vmem:[#allocation203_spill] sm:$0xff] %v11152_v38  ;;  %17171 = vst [vmem:[#allocation204_spill] sm:$0xff] %v11154_v25 }
  0xdd   :  { %7387 = vrot.lane.b32.xlu1 %v11081_v49, %s9464_s9  ;;  %7382 = vrot.lane.b32.xlu0 %v7381_v15, %s9464_s9  ;;  %v11112_v37 = vpop.permute.xlu1 %7107  ;;  %v11120_v15 = vld [vmem:[#allocation2 + $0x90] sm:$0xff] }
  0xde   :  { %17160 = vst [vmem:[#allocation193_spill] sm:$0xff] %v11112_v37  ;;  %17162 = vst [vmem:[#allocation195_spill] sm:$0xff] %v11120_v15  ;;  %v11126_v7 = vpack.i.bf16 %v11122_v47, %v11120_v15  ;;  %v11138_v58 = vpop.permute.xlu0 %7112  ;;  %v11144_v15 = vld [vmem:[#allocation2 + $0xc0] sm:$0xff]  ;;  %v11146_v47 = vld [vmem:[#allocation2 + $0xc8] sm:$0xff] }
  0xdf   :  { %17167 = vst [vmem:[#allocation200_spill] sm:$0xff] %v11138_v58  ;;  %17168 = vst [vmem:[#allocation201_spill] sm:$0xff] %v11144_v15  ;;  %v11150_v12 = vpack.i.bf16 %v11146_v47, %v11144_v15  ;;  %v11158_v58 = vpack.i.bf16 %v11154_v25, %v11152_v38  ;;  %v11168_v15 = vld [vmem:[#allocation2 + $0xf0] sm:$0xff]  ;;  %v11176_v38 = vld [vmem:[#allocation2 + $0xd8] sm:$0xff] }
  0xe0   :  { %17169 = vst [vmem:[#allocation202_spill] sm:$0xff] %v11146_v47  ;;  %17174 = vst [vmem:[#allocation207_spill] sm:$0xff] %v11168_v15  ;;  %v11170_v47 = vld [vmem:[#allocation2 + $0xf8] sm:$0xff]  ;;  %v11178_v25 = vld [vmem:[#allocation2 + $0xe0] sm:$0xff] }
  0xe1   :  { %7397 = vrot.lane.b32.xlu1 %v11102_v18, %s9464_s9  ;;  %7392 = vrot.lane.b32.xlu0 %v11110_v45, %s9464_s9  ;;  %v11136_v37 = vpop.permute.xlu1 %7117  ;;  %17175 = vst [vmem:[#allocation208_spill] sm:$0xff] %v11170_v47  ;;  %v11174_v50 = vpack.i.bf16 %v11170_v47, %v11168_v15  ;;  %17176 = vst [vmem:[#allocation209_spill] sm:$0xff] %v11176_v38  ;;  %v7436_v15 = vpack.i.bf16 %v17046_v36, %v17045_v16  ;;  %v11194_v47 = vld [vmem:[#allocation2 + $0x108] sm:$0xff]  ;;  %v11211_v36 = vld [vmem:[#allocation2 + $0x138] sm:$0xff] }
  0xe2   :  { %17166 = vst [vmem:[#allocation199_spill] sm:$0xff] %v11136_v37  ;;  %v11162_v35 = vpop.permute.xlu0 %7122  ;;  %17177 = vst [vmem:[#allocation210_spill] sm:$0xff] %v11178_v25  ;;  %v7446_v16 = vpack.i.bf16 %v17060_v8, %v17059_v9  ;;  %v7451_v9 = vpack.i.bf16 %v17056_v44, %v17055_v62  ;;  %v7476_v62 = vpack.i.bf16 %v17085_v17, %v17084_v31 }
  0xe3   :  { %17173 = vst [vmem:[#allocation206_spill] sm:$0xff] %v11162_v35  ;;  %v11182_v35 = vpack.i.bf16 %v11178_v25, %v11176_v38  ;;  %17180 = vst [vmem:[#allocation213_spill] sm:$0xff] %v11194_v47  ;;  %v11200_v38 = vpack.i.bf16 %v11196_v24, %v11194_v47  ;;  %v11213_v25 = vld [vmem:[#allocation2 + $0x140] sm:$0xff]  ;;  %v7471_v44 = vpack.i.bf16 %v17071_v48, %v17070_v56 }
  0xe4   :  { %17184 = vst [vmem:[#allocation217_spill] sm:$0xff] %v11211_v36  ;;  %17185 = vst [vmem:[#allocation218_spill] sm:$0xff] %v11213_v25  ;;  %v11217_v47 = vpack.i.bf16 %v11213_v25, %v11211_v36  ;;  %v11219_v24 = vld [vmem:[#allocation2 + $0x180] sm:$0xff]  ;;  %v7496_v48 = vpack.i.bf16 %v17102_v52, %v10470_v42  ;;  %v7491_v56 = vpack.i.bf16 %v17094_v30, %v17092_v26 }
  0xe5   :  { %7407 = vrot.lane.b32.xlu1 %v11126_v7, %s9464_s9  ;;  %7402 = vrot.lane.b32.xlu0 %v11134_v29, %s9464_s9  ;;  %v11160_v37 = vpop.permute.xlu1 %7127  ;;  %v7516_v30 = vpack.i.bf16 %v17130_v57, %v17129_v22  ;;  %v7511_v26 = vpack.i.bf16 %v10481_v43, %v10479_v53  ;;  %v11309_v57 = vld [vmem:[#allocation2 + $0x338] sm:$0xff] }
  0xe6   :  { %17172 = vst [vmem:[#allocation205_spill] sm:$0xff] %v11160_v37  ;;  %v11186_v40 = vpop.permute.xlu0 %7132 }
  0xe7   :  { %17179 = vst [vmem:[#allocation212_spill] sm:$0xff] %v11186_v40 }
  0xe9   :  { %7417 = vrot.lane.b32.xlu1 %v11150_v12, %s9464_s9  ;;  %7412 = vrot.lane.b32.xlu0 %v11158_v58, %s9464_s9  ;;  %v11184_v37 = vpop.permute.xlu1 %7137 }
  0xea   :  { %17178 = vst [vmem:[#allocation211_spill] sm:$0xff] %v11184_v37  ;;  %v11204_v40 = vpop.permute.xlu0 %7142 }
  0xeb   :  { %17183 = vst [vmem:[#allocation216_spill] sm:$0xff] %v11204_v40 }
  0xed   :  { %7427 = vrot.lane.b32.xlu1 %v11174_v50, %s9464_s9  ;;  %7422 = vrot.lane.b32.xlu0 %v11182_v35, %s9464_s9  ;;  %v11202_v37 = vpop.permute.xlu1 %7147 }
  0xee   :  { %17182 = vst [vmem:[#allocation215_spill] sm:$0xff] %v11202_v37  ;;  %v11221_v37 = vld [vmem:[#allocation2 + $0x188] sm:$0xff] }
  0xef   :  { %v11232_v8 = vpack.i.bf16 %v11221_v37, %v11219_v24 }
  0xf1   :  { %7437 = vrot.lane.b32.xlu1 %v7436_v15, %s9464_s9  ;;  %7432 = vrot.lane.b32.xlu0 %v11200_v38, %s9464_s9  ;;  %v11223_v40 = vpop.permute.xlu1 %7157  ;;  %v11225_v15 = vpop.permute.xlu0 %7152 }
  0xf2   :  { %17186 = vst [vmem:[#allocation219_spill] sm:$0xff] %v11223_v40  ;;  %17187 = vst [vmem:[#allocation220_spill] sm:$0xff] %v11225_v15  ;;  %v7461_v15 = vpack.i.bf16 %v10183_v5, %v10181_v3  ;;  %v7486_v3 = vpack.i.bf16 %v17097_v13, %v17096_v39  ;;  %v7481_v5 = vpack.i.bf16 %v17081_v59, %v17080_v23 }
  0xf3   :  { %v7506_v23 = vpack.i.bf16 %v17116_v55, %v17115_v19  ;;  %v7501_v59 = vpack.i.bf16 %v17100_v60, %v17099_v41  ;;  %v7526_v60 = vpack.i.bf16 %v10560_v33, %v10558_v10  ;;  %v7521_v41 = vpack.i.bf16 %v17126_v61, %v17125_v28  ;;  %v11307_v19 = vld [vmem:[#allocation2 + $0x330] sm:$0xff] }
  0xf4   :  { %v7536_v53 = vpack.i.bf16 %v11309_v57, %v11307_v19  ;;  %v7531_v10 = vpack.i.bf16 %v10554_v6, %v10552_v21 }
  0xf5   :  { %7447 = vrot.lane.b32.xlu1 %v7446_v16, %s9464_s9  ;;  %7442 = vrot.lane.b32.xlu0 %v11217_v47, %s9464_s9  ;;  %v7466_v16 = vpack.i.bf16 %v17073_v27, %v10213_v4 }
  0xf7   :  { %v11236_v36 = vpop.permute.xlu1 %7167  ;;  %v11238_v25 = vpop.permute.xlu0 %7162 }
  0xf9   :  { %7457 = vrot.lane.b32.xlu1 %v11232_v8, %s9464_s9  ;;  %7452 = vrot.lane.b32.xlu0 %v7451_v9, %s9464_s9 }
  0xfb   :  { %v11247_v40 = vpop.permute.xlu1 %7177  ;;  %v11249_v0 = vpop.permute.xlu0 %7172 }
  0xfd   :  { %7467 = vrot.lane.b32.xlu1 %v7466_v16, %s9464_s9  ;;  %7462 = vrot.lane.b32.xlu0 %v7461_v15, %s9464_s9  ;;  %v17203_v16 = vld [vmem:[#allocation27_spill] sm:$0xff] }
  0xff   :  { %v11257_v9 = vpop.permute.xlu1 %7187  ;;  %v11259_v4 = vpop.permute.xlu0 %7182 }
 0x100   :  { %17188 = vst [vmem:[#allocation221_spill] sm:$0xff] %v11257_v9  ;;  %17189 = vst [vmem:[#allocation222_spill] sm:$0xff] %v11259_v4  ;;  %v17243_v9 = vld [vmem:[#allocation123_spill] sm:$0xff] }
 0x101   :  { %7477 = vrot.lane.b32.xlu1 %v7476_v62, %s9464_s9  ;;  %7472 = vrot.lane.b32.xlu0 %v7471_v44, %s9464_s9  ;;  %v17204_v62 = vld [vmem:[#allocation29_spill] sm:$0xff]  ;;  %v17207_v44 = vld [vmem:[#allocation31_spill] sm:$0xff] }
 0x103   :  { %v11267_v27 = vpop.permute.xlu1 %7197  ;;  %v11269_v31 = vpop.permute.xlu0 %7192 }
 0x104   :  { %17190 = vst [vmem:[#allocation223_spill] sm:$0xff] %v11267_v27  ;;  %17191 = vst [vmem:[#allocation224_spill] sm:$0xff] %v11269_v31 }
 0x105   :  { %7487 = vrot.lane.b32.xlu1 %v7486_v3, %s9464_s9  ;;  %7482 = vrot.lane.b32.xlu0 %v7481_v5, %s9464_s9  ;;  %v17208_v3 = vld [vmem:[#allocation28_spill] sm:$0xff] }
 0x107   :  { %v11277_v17 = vpop.permute.xlu1 %7207  ;;  %v11279_v39 = vpop.permute.xlu0 %7202 }
 0x108   :  { %17192 = vst [vmem:[#allocation225_spill] sm:$0xff] %v11277_v17  ;;  %17193 = vst [vmem:[#allocation226_spill] sm:$0xff] %v11279_v39 }
 0x109   :  { %7497 = vrot.lane.b32.xlu1 %v7496_v48, %s9464_s9  ;;  %7492 = vrot.lane.b32.xlu0 %v7491_v56, %s9464_s9  ;;  %v17211_v56 = vld [vmem:[#allocation42_spill] sm:$0xff] }
 0x10b   :  { %v11287_v13 = vpop.permute.xlu1 %7217  ;;  %v11289_v42 = vpop.permute.xlu0 %7212 }
 0x10c   :  { %17194 = vst [vmem:[#allocation227_spill] sm:$0xff] %v11287_v13  ;;  %17195 = vst [vmem:[#allocation228_spill] sm:$0xff] %v11289_v42  ;;  %v17220_v42 = vld [vmem:[#allocation50_spill] sm:$0xff]  ;;  %v775_v13 = vrot.slane %v11219_v24, 1 }
 0x10d   :  { %7507 = vrot.lane.b32.xlu1 %v7506_v23, %s9464_s9  ;;  %7502 = vrot.lane.b32.xlu0 %v7501_v59, %s9464_s9  ;;  %v17212_v23 = vld [vmem:[#allocation30_spill] sm:$0xff] }
 0x10f   :  { %v11297_v52 = vpop.permute.xlu1 %7227  ;;  %v11299_v55 = vpop.permute.xlu0 %7222 }
 0x110   :  { %17196 = vst [vmem:[#allocation229_spill] sm:$0xff] %v11299_v55 }
 0x111   :  { %7517 = vrot.lane.b32.xlu1 %v7516_v30, %s9464_s9  ;;  %7512 = vrot.lane.b32.xlu0 %v7511_v26, %s9464_s9  ;;  %v17215_v26 = vld [vmem:[#allocation51_spill] sm:$0xff] }
 0x113   :  { %v11311_v22 = vpop.permute.xlu1 %7237  ;;  %v11313_v43 = vpop.permute.xlu0 %7232 }
 0x114   :  { %17197 = vst [vmem:[#allocation230_spill] sm:$0xff] %v11311_v22  ;;  %17198 = vst [vmem:[#allocation231_spill] sm:$0xff] %v11313_v43  ;;  %v17250_v22 = vld [vmem:[#allocation141_spill] sm:$0xff] }
 0x115   :  { %7527 = vrot.lane.b32.xlu1 %v7526_v60, %s9464_s9  ;;  %7522 = vrot.lane.b32.xlu0 %v7521_v41, %s9464_s9  ;;  %v17216_v60 = vld [vmem:[#allocation37_spill] sm:$0xff] }
 0x117   :  { %v11321_v33 = vpop.permute.xlu1 %7247  ;;  %v11323_v28 = vpop.permute.xlu0 %7242 }
 0x118   :  { %17199 = vst [vmem:[#allocation232_spill] sm:$0xff] %v11321_v33  ;;  %17200 = vst [vmem:[#allocation233_spill] sm:$0xff] %v11323_v28  ;;  %v17246_v28 = vld [vmem:[#allocation137_spill] sm:$0xff] }
 0x119   :  { %7537 = vrot.lane.b32.xlu1 %v7536_v53, %s9464_s9  ;;  %7532 = vrot.lane.b32.xlu0 %v7531_v10, %s9464_s9  ;;  %v11363_v10 = vld [vmem:[#allocation2 + $0x190] sm:$0x3] }
 0x11a   :  { %v778_v39 = vrot.slane %v11363_v10, 1 }
 0x11b   :  { %v11327_v61 = vpop.permute.xlu1 %7257  ;;  %v11329_v15 = vpop.permute.xlu0 %7252 }
 0x11c   :  { %17201 = vst [vmem:[#allocation234_spill] sm:$0xff] %v11327_v61  ;;  %17202 = vst [vmem:[#allocation235_spill] sm:$0xff] %v11329_v15  ;;  %v9301_v15 = vld [vmem:[%s16379_s1 + $0x38] sm:$0xff]  }
 0x11d   :  { %7547 = vrot.lane.b32.xlu1 %v17203_v16, %s9465_s10  ;;  %7542 = vrot.lane.b32.xlu0 %v17204_v62, %s9465_s10  ;;  %v17219_v62 = vld [vmem:[#allocation66_spill] sm:$0xff] }
 0x11f   :  { %v11335_v21 = vpop.permute.xlu1 %7267  ;;  %v11337_v6 = vpop.permute.xlu0 %7262 }
 0x120   :  { %17205 = vst [vmem:[#allocation27_spill] sm:$0xff] %v11335_v21  ;;  %17206 = vst [vmem:[#allocation29_spill] sm:$0xff] %v11337_v6  ;;  %v17227_v6 = vld [vmem:[#allocation86_spill] sm:$0xff] }
 0x121   :  { %7557 = vrot.lane.b32.xlu1 %v17207_v44, %s9465_s10  ;;  %7552 = vrot.lane.b32.xlu0 %v17208_v3, %s9465_s10 }
 0x123   :  { %v11343_v5 = vpop.permute.xlu1 %7277  ;;  %v11345_v48 = vpop.permute.xlu0 %7272 }
 0x124   :  { %17209 = vst [vmem:[#allocation31_spill] sm:$0xff] %v11343_v5  ;;  %17210 = vst [vmem:[#allocation28_spill] sm:$0xff] %v11345_v48 }
 0x125   :  { %7567 = vrot.lane.b32.xlu1 %v17211_v56, %s9465_s10  ;;  %7562 = vrot.lane.b32.xlu0 %v17212_v23, %s9465_s10 }
 0x127   :  { %v11351_v59 = vpop.permute.xlu1 %7287  ;;  %v11353_v30 = vpop.permute.xlu0 %7282 }
 0x128   :  { %17213 = vst [vmem:[#allocation42_spill] sm:$0xff] %v11351_v59  ;;  %17214 = vst [vmem:[#allocation30_spill] sm:$0xff] %v11353_v30  ;;  %v776_v59 = vrot.slane %v11221_v37, 1 }
 0x129   :  { %7577 = vrot.lane.b32.xlu1 %v17215_v26, %s9465_s10  ;;  %7572 = vrot.lane.b32.xlu0 %v17216_v60, %s9465_s10 }
 0x12a   :  { %v777_v48 = vsel %vm447_vm3, %v775_v13, %v776_v59  ;;  %v779_v5 = vsel %vm447_vm3, %v776_v59, %v778_v39  ;;  %v17231_v39 = vld [vmem:[#allocation79_spill] sm:$0xff] }
 0x12b   :  { %v11359_v41 = vpop.permute.xlu1 %7297  ;;  %v11361_v53 = vpop.permute.xlu0 %7292 }
 0x12c   :  { %17217 = vst [vmem:[#allocation51_spill] sm:$0xff] %v11359_v41  ;;  %17218 = vst [vmem:[#allocation37_spill] sm:$0xff] %v11361_v53  ;;  %v17223_v41 = vld [vmem:[#allocation74_spill] sm:$0xff]  ;;  %v17224_v53 = vld [vmem:[#allocation65_spill] sm:$0xff] }
 0x12d   :  { %7587 = vrot.lane.b32.xlu1 %v17219_v62, %s9465_s10  ;;  %7582 = vrot.lane.b32.xlu0 %v17220_v42, %s9465_s10 }
 0x12f   :  { %v11372_v17 = vpop.permute.xlu1 %7307  ;;  %v11374_v30 = vpop.permute.xlu0 %7302 }
 0x130   :  { %17221 = vst [vmem:[#allocation66_spill] sm:$0xff] %v11372_v17  ;;  %17222 = vst [vmem:[#allocation50_spill] sm:$0xff] %v11374_v30  ;;  %v17228_v17 = vld [vmem:[#allocation73_spill] sm:$0xff]  ;;  %v11390_v30 = vpack.i.bf16 %v779_v5, %v777_v48  ;;  %v17235_v5 = vld [vmem:[#allocation87_spill] sm:$0xff] }
 0x131   :  { %7597 = vrot.lane.b32.xlu1 %v17223_v41, %s9465_s10  ;;  %7592 = vrot.lane.b32.xlu0 %v17224_v53, %s9465_s10 }
 0x133   :  { %v11382_v21 = vpop.permute.xlu1 %7317  ;;  %v11384_v31 = vpop.permute.xlu0 %7312 }
 0x134   :  { %17225 = vst [vmem:[#allocation74_spill] sm:$0xff] %v11382_v21  ;;  %17226 = vst [vmem:[#allocation65_spill] sm:$0xff] %v11384_v31  ;;  %v17234_v31 = vld [vmem:[#allocation112_spill] sm:$0xff]  ;;  %v17239_v21 = vld [vmem:[#allocation111_spill] sm:$0xff] }
 0x135   :  { %7607 = vrot.lane.b32.xlu1 %v17227_v6, %s9465_s10  ;;  %7602 = vrot.lane.b32.xlu0 %v17228_v17, %s9465_s10 }
 0x137   :  { %v11392_v27 = vpop.permute.xlu1 %7327  ;;  %v11394_v61 = vpop.permute.xlu0 %7322 }
 0x138   :  { %17229 = vst [vmem:[#allocation86_spill] sm:$0xff] %v11392_v27  ;;  %17230 = vst [vmem:[#allocation73_spill] sm:$0xff] %v11394_v61  ;;  %v17238_v61 = vld [vmem:[#allocation124_spill] sm:$0xff] }
 0x139   :  { %7617 = vrot.lane.b32.xlu1 %v11390_v30, %s9465_s10  ;;  %7612 = vrot.lane.b32.xlu0 %v17231_v39, %s9465_s10 }
 0x13b   :  { %v11400_v13 = vpop.permute.xlu1 %7337  ;;  %v11402_v59 = vpop.permute.xlu0 %7332 }
 0x13c   :  { %17232 = vst [vmem:[#allocation79_spill] sm:$0xff] %v11400_v13  ;;  %17233 = vst [vmem:[#allocation236_spill] sm:$0xff] %v11402_v59  ;;  %v17242_v59 = vld [vmem:[#allocation131_spill] sm:$0xff] }
 0x13d   :  { %7627 = vrot.lane.b32.xlu1 %v17234_v31, %s9465_s10  ;;  %7622 = vrot.lane.b32.xlu0 %v17235_v5, %s9465_s10 }
 0x13f   :  { %v11408_v48 = vpop.permute.xlu1 %7347  ;;  %v11410_v27 = vpop.permute.xlu0 %7342 }
 0x140   :  { %17236 = vst [vmem:[#allocation112_spill] sm:$0xff] %v11408_v48  ;;  %17237 = vst [vmem:[#allocation87_spill] sm:$0xff] %v11410_v27  ;;  %v347_v27 = vld [vmem:[#allocation2 + $0x340] sm:$0x3] }
 0x141   :  { %7637 = vrot.lane.b32.xlu1 %v17238_v61, %s9465_s10  ;;  %7632 = vrot.lane.b32.xlu0 %v17239_v21, %s9465_s10 }
 0x143   :  { %v11416_v4 = vpop.permute.xlu1 %7357  ;;  %v11418_v13 = vpop.permute.xlu0 %7352 }
 0x144   :  { %17240 = vst [vmem:[#allocation124_spill] sm:$0xff] %v11416_v4  ;;  %17241 = vst [vmem:[#allocation111_spill] sm:$0xff] %v11418_v13  ;;  %v17247_v13 = vld [vmem:[#allocation129_spill] sm:$0xff]  ;;  %v16751_v4 = vmov 0  }
 0x145   :  { %7647 = vrot.lane.b32.xlu1 %v17242_v59, %s9465_s10  ;;  %7642 = vrot.lane.b32.xlu0 %v17243_v9, %s9465_s10 }
 0x146   :  { %2915 = vmatprep.subr.bf16.mxu0 %v16751_v4  ;;  %6125 = vmatprep.subr.bf16.mxu1 %v16751_v4 }
 0x147   :  { %v11424_v5 = vpop.permute.xlu1 %7367  ;;  %v11426_v48 = vpop.permute.xlu0 %7362  ;;  %2916 = vmatpush1.bf16.msra.mxu0 %v9301_v15 }
 0x148   :  { %17244 = vst [vmem:[#allocation131_spill] sm:$0xff] %v11424_v5  ;;  %17245 = vst [vmem:[#allocation123_spill] sm:$0xff] %v11426_v48  ;;  %v780_v48 = vrot.slane %v11307_v19, 1  ;;  %2917 = vmatprep.subr.bf16.mxu0 %v16751_v4  ;;  %v9302_v5 = vld [vmem:[%s16379_s1 + $0x30] sm:$0xff]   ;;  %v9303_v19 = vld [vmem:[%s16379_s1 + $0x28] sm:$0xff]  }
 0x149   :  { %7657 = vrot.lane.b32.xlu1 %v17246_v28, %s9465_s10  ;;  %7652 = vrot.lane.b32.xlu0 %v17247_v13, %s9465_s10  ;;  %v17251_v28 = vld [vmem:[#allocation136_spill] sm:$0xff] }
 0x14b   :  { %v11436_v33 = vpop.permute.xlu1 %7377  ;;  %v11438_v43 = vpop.permute.xlu0 %7372  ;;  %2918 = vmatpush1.bf16.msra.mxu0 %v9302_v5  ;;  %v9304_v5 = vld [vmem:[%s16379_s1 + $0x20] sm:$0xff]  }
 0x14c   :  { %17248 = vst [vmem:[#allocation129_spill] sm:$0xff] %v11436_v33  ;;  %17249 = vst [vmem:[#allocation237_spill] sm:$0xff] %v11438_v43  ;;  %v781_v33 = vrot.slane %v11309_v57, 1  ;;  %v783_v43 = vrot.slane %v347_v27, 1  ;;  %2919 = vmatprep.subr.bf16.mxu0 %v16751_v4 }
 0x14d   :  { %7667 = vrot.lane.b32.xlu1 %v17250_v22, %s9465_s10  ;;  %7662 = vrot.lane.b32.xlu0 %v17251_v28, %s9465_s10  ;;  %v17253_v22 = vld [vmem:[#allocation140_spill] sm:$0xff] }
 0x14e   :  { %v782_v57 = vsel %vm447_vm3, %v780_v48, %v781_v33  ;;  %v784_v27 = vsel %vm447_vm3, %v781_v33, %v783_v43 }
 0x14f   :  { %v11451_v15 = vpop.permute.xlu1 %7387  ;;  %v11453_v55 = vpop.permute.xlu0 %7382  ;;  %2920 = vmatpush1.bf16.msra.mxu0 %v9303_v19  ;;  %v11477_v48 = vpack.i.bf16 %v784_v27, %v782_v57  ;;  %v9305_v19 = vld [vmem:[%s16379_s1 + $0x18] sm:$0xff]   ;;  %v9306_v27 = vld [vmem:[%s16379_s1 + $0x10] sm:$0xff]  }
 0x150   :  { %17252 = vst [vmem:[#allocation238_spill] sm:$0xff] %v11451_v15  ;;  %2921 = vmatprep.subr.bf16.mxu0 %v16751_v4 }
 0x151   :  { %7677 = vrot.lane.b32.xlu1 %v10605_v14, %s9465_s10  ;;  %7672 = vrot.lane.b32.xlu0 %v17253_v22, %s9465_s10  ;;  %17254 = vst [vmem:[#allocation140_spill] sm:$0xff] %v11477_v48 }
 0x153   :  { %v11465_v28 = vpop.permute.xlu1 %7397  ;;  %v11467_v15 = vpop.permute.xlu0 %7392  ;;  %2922 = vmatpush1.bf16.msra.mxu0 %v9304_v5 }
 0x154   :  { %2923 = vmatprep.subr.bf16.mxu0 %v16751_v4 }
 0x155   :  { %7687 = vrot.lane.b32.xlu1 %v10622_v11, %s9465_s10  ;;  %7682 = vrot.lane.b32.xlu0 %v10603_v1, %s9465_s10 }
 0x157   :  { %v11479_v43 = vpop.permute.xlu1 %7407  ;;  %v11481_v33 = vpop.permute.xlu0 %7402  ;;  %2924 = vmatpush1.bf16.msra.mxu0 %v9305_v19  ;;  %v9307_v19 = vld [vmem:[%s16379_s1 + $0x8] sm:$0xff]  }
 0x158   :  { %17255 = vst [vmem:[#allocation239_spill] sm:$0xff] %v11479_v43  ;;  %17256 = vst [vmem:[#allocation240_spill] sm:$0xff] %v11481_v33  ;;  %2925 = vmatprep.subr.bf16.mxu0 %v16751_v4  ;;  %v17356_v43 = vld [vmem:[#allocation196_spill] sm:$0xff] }
 0x159   :  { %7697 = vrot.lane.b32.xlu1 %v11477_v48, %s9465_s10  ;;  %7692 = vrot.lane.b32.xlu0 %v10620_v2, %s9465_s10  ;;  %v17358_v33 = vld [vmem:[#allocation200_spill] sm:$0xff] }
 0x15b   :  { %v11491_v11 = vpop.permute.xlu1 %7417  ;;  %v11493_v57 = vpop.permute.xlu0 %7412  ;;  %2926 = vmatpush1.bf16.msra.mxu0 %v9306_v27  ;;  %v9308_v27 = vld [vmem:[%s16379_s1] sm:$0xff]  }
 0x15c   :  { %17257 = vst [vmem:[#allocation241_spill] sm:$0xff] %v11491_v11  ;;  %17258 = vst [vmem:[#allocation242_spill] sm:$0xff] %v11493_v57  ;;  %2927 = vmatprep.subr.bf16.mxu0 %v16751_v4  ;;  %v17273_v11 = vmov 0.0   ;;  %v17275_v57 = vld [vmem:[#allocation61_spill] sm:$0xff] }
 0x15d   :  { %7707 = vrot.lane.b32.xlu1 %v10676_v34, %s9467_s24  ;;  %7702 = vrot.lane.b32.xlu0 %v10406_v20, %s9467_s24 }
 0x15f   :  { %v11503_v5 = vpop.permute.xlu1 %7427  ;;  %v11505_v48 = vpop.permute.xlu0 %7422  ;;  %2928 = vmatpush1.bf16.msra.mxu0 %v9307_v19  ;;  %v9309_v19 = vld [vmem:[%s16379_s1 + $0x40] sm:$0xff]   ;;  %s9468_s1 = smov 96  }
 0x160   :  { %17259 = vst [vmem:[#allocation243_spill] sm:$0xff] %v11503_v5  ;;  %17260 = vst [vmem:[#allocation244_spill] sm:$0xff] %v11505_v48  ;;  %2929 = vmatprep.subr.bf16.mxu0 %v16751_v4  ;;  %v17263_v5 = vld [vmem:[#allocation33_spill] sm:$0xff]  ;;  %v17264_v48 = vld [vmem:[#allocation156_spill] sm:$0xff] }
 0x161   :  { %7717 = vrot.lane.b32.xlu1 %v10684_v46, %s9467_s24  ;;  %7712 = vrot.lane.b32.xlu0 %v10672_v63, %s9467_s24 }
 0x163   :  { %v11515_v34 = vpop.permute.xlu1 %7437  ;;  %v11517_v20 = vpop.permute.xlu0 %7432  ;;  %2930 = vmatpush1.bf16.msra.mxu0 %v9308_v27 }
 0x164   :  { %17261 = vst [vmem:[#allocation245_spill] sm:$0xff] %v11515_v34  ;;  %17262 = vst [vmem:[#allocation246_spill] sm:$0xff] %v11517_v20  ;;  %2945 = vmatprep.subr.bf16.mxu0 %v16751_v4  ;;  %v17267_v34 = vld [vmem:[#allocation62_spill] sm:$0xff]  ;;  %v17268_v20 = vld [vmem:[#allocation32_spill] sm:$0xff] }
 0x165   :  { %7727 = vrot.lane.b32.xlu1 %v17263_v5, %s9467_s24  ;;  %7722 = vrot.lane.b32.xlu0 %v17264_v48, %s9467_s24  ;;  %v17274_v4 = vld [vmem:[#allocation64_spill] sm:$0xff] }
 0x167   :  { %v11527_v46 = vpop.permute.xlu1 %7447  ;;  %v11529_v63 = vpop.permute.xlu0 %7442  ;;  %2946 = vmatpush2.bf16.msra.mxu0 %v9309_v19 }
 0x168   :  { %17265 = vst [vmem:[#allocation33_spill] sm:$0xff] %v11527_v46  ;;  %17266 = vst [vmem:[#allocation156_spill] sm:$0xff] %v11529_v63  ;;  %v17271_v46 = vld [vmem:[#allocation150_spill] sm:$0xff]  ;;  %v17272_v63 = vld [vmem:[#allocation151_spill] sm:$0xff]  ;;  %7038 = vmatprep.subr.mxu0 %v17273_v11 }
 0x169   :  { %7737 = vrot.lane.b32.xlu1 %v17267_v34, %s9467_s24  ;;  %7732 = vrot.lane.b32.xlu0 %v17268_v20, %s9467_s24  ;;  %v2684_v27 = vpack.c.bf16 %v17272_v63, %v17271_v46  ;;  %v17278_v46 = vld [vmem:[#allocation63_spill] sm:$0xff] }
 0x16b   :  { %v11539_v5 = vpop.permute.xlu1 %7457  ;;  %v11541_v48 = vpop.permute.xlu0 %7452  ;;  %6956 = vmatprep.mubr.msk.bf16.mxu0 %vm90_vm0, %v2684_v27 }
 0x16c   :  { %17269 = vst [vmem:[#allocation62_spill] sm:$0xff] %v11539_v5  ;;  %17270 = vst [vmem:[#allocation32_spill] sm:$0xff] %v11541_v48  ;;  %v17329_v48 = vld [vmem:[#allocation184_spill] sm:$0xff] }
 0x16d   :  { %7747 = vrot.lane.b32.xlu1 %v17274_v4, %s9467_s24  ;;  %7742 = vrot.lane.b32.xlu0 %v17275_v57, %s9467_s24 }
 0x16f   :  { %v11551_v34 = vpop.permute.xlu1 %7467  ;;  %v11553_v20 = vpop.permute.xlu0 %7462 }
 0x170   :  { %17276 = vst [vmem:[#allocation150_spill] sm:$0xff] %v11551_v34  ;;  %17277 = vst [vmem:[#allocation151_spill] sm:$0xff] %v11553_v20 }
 0x171   :  { %7757 = vrot.lane.b32.xlu1 %v11081_v49, %s9468_s1  ;;  %7752 = vrot.lane.b32.xlu0 %v17278_v46, %s9467_s24 }
 0x173   :  { %v11559_v63 = vpop.permute.xlu1 %7477  ;;  %v11561_v19 = vpop.permute.xlu0 %7472 }
 0x174   :  { %17279 = vst [vmem:[#allocation64_spill] sm:$0xff] %v11559_v63  ;;  %17280 = vst [vmem:[#allocation61_spill] sm:$0xff] %v11561_v19 }
 0x175   :  { %7767 = vrot.lane.b32.xlu1 %v11110_v45, %s9468_s1  ;;  %7762 = vrot.lane.b32.xlu0 %v17203_v16, %s9469_s7 }
 0x177   :  { %v11567_v4 = vpop.permute.xlu1 %7487  ;;  %v11569_v57 = vpop.permute.xlu0 %7482 }
 0x178   :  { %17281 = vst [vmem:[#allocation63_spill] sm:$0xff] %v11567_v4  ;;  %17282 = vst [vmem:[#allocation247_spill] sm:$0xff] %v11569_v57  ;;  %v295_v57 = vld [vmem:[#allocation2 + $0x1a0] sm:$0xff] }
 0x179   :  { %7777 = vrot.lane.b32.xlu1 %v11102_v18, %s9468_s1  ;;  %7772 = vrot.lane.b32.xlu0 %v17208_v3, %s9469_s7 }
 0x17b   :  { %v11575_v49 = vpop.permute.xlu1 %7497  ;;  %v11577_v27 = vpop.permute.xlu0 %7492 }
 0x17c   :  { %17283 = vst [vmem:[#allocation248_spill] sm:$0xff] %v11575_v49  ;;  %17284 = vst [vmem:[#allocation249_spill] sm:$0xff] %v11577_v27  ;;  %v788_v49 = vrot.slane %v11363_v10, 2  ;;  %v802_v10 = vrot.slane %v295_v57, 1 }
 0x17d   :  { %7787 = vrot.lane.b32.xlu1 %v11134_v29, %s9468_s1  ;;  %7782 = vrot.lane.b32.xlu0 %v17207_v44, %s9469_s7 }
 0x17f   :  { %v11583_v45 = vpop.permute.xlu1 %7507  ;;  %v11585_v16 = vpop.permute.xlu0 %7502 }
 0x180   :  { %17285 = vst [vmem:[#allocation250_spill] sm:$0xff] %v11583_v45  ;;  %17286 = vst [vmem:[#allocation251_spill] sm:$0xff] %v11585_v16  ;;  %v11683_v16 = vld [vmem:[#allocation2 + $0x170] sm:$0xff]  ;;  %v785_v45 = vrot.slane %v11219_v24, 2 }
 0x181   :  { %7797 = vrot.lane.b32.xlu1 %v11126_v7, %s9468_s1  ;;  %7792 = vrot.lane.b32.xlu0 %v17212_v23, %s9469_s7 }
 0x183   :  { %v11591_v18 = vpop.permute.xlu1 %7517  ;;  %v11593_v3 = vpop.permute.xlu0 %7512 }
 0x184   :  { %17287 = vst [vmem:[#allocation252_spill] sm:$0xff] %v11591_v18  ;;  %17288 = vst [vmem:[#allocation253_spill] sm:$0xff] %v11593_v3  ;;  %v11681_v18 = vld [vmem:[#allocation2 + $0x168] sm:$0xff] }
 0x185   :  { %7807 = vrot.lane.b32.xlu1 %v11158_v58, %s9468_s1  ;;  %7802 = vrot.lane.b32.xlu0 %v17211_v56, %s9469_s7 }
 0x187   :  { %v11599_v29 = vpop.permute.xlu1 %7527  ;;  %v11601_v44 = vpop.permute.xlu0 %7522 }
 0x188   :  { %17289 = vst [vmem:[#allocation254_spill] sm:$0xff] %v11599_v29  ;;  %17290 = vst [vmem:[#allocation255_spill] sm:$0xff] %v11601_v44  ;;  %v17302_v29 = vld [vmem:[#allocation68_spill] sm:$0xff] }
 0x189   :  { %7817 = vrot.lane.b32.xlu1 %v11150_v12, %s9468_s1  ;;  %7812 = vrot.lane.b32.xlu0 %v17216_v60, %s9469_s7 }
 0x18b   :  { %v11607_v7 = vpop.permute.xlu1 %7537  ;;  %v11609_v23 = vpop.permute.xlu0 %7532 }
 0x18c   :  { %17291 = vst [vmem:[#allocation256_spill] sm:$0xff] %v11607_v7  ;;  %17292 = vst [vmem:[#allocation257_spill] sm:$0xff] %v11609_v23 }
 0x18d   :  { %7827 = vrot.lane.b32.xlu1 %v11182_v35, %s9468_s1  ;;  %7822 = vrot.lane.b32.xlu0 %v17215_v26, %s9469_s7  ;;  %v11631_v35 = vld [vmem:[#allocation2 + $0x120] sm:$0xff]  ;;  %v11633_v26 = vld [vmem:[#allocation2 + $0x128] sm:$0xff] }
 0x18f   :  { %v11615_v58 = vpop.permute.xlu1 %7547  ;;  %v11617_v56 = vpop.permute.xlu0 %7542 }
 0x191   :  { %7837 = vrot.lane.b32.xlu1 %v11174_v50, %s9468_s1  ;;  %7832 = vrot.lane.b32.xlu0 %v17220_v42, %s9469_s7  ;;  %v7856_v50 = vpack.i.bf16 %v11633_v26, %v11631_v35 }
 0x193   :  { %v11623_v12 = vpop.permute.xlu1 %7557  ;;  %v11625_v60 = vpop.permute.xlu0 %7552 }
 0x195   :  { %7847 = vrot.lane.b32.xlu1 %v11200_v38, %s9468_s1  ;;  %7842 = vrot.lane.b32.xlu0 %v17219_v62, %s9469_s7  ;;  %v17297_v62 = vld [vmem:[#allocation69_spill] sm:$0xff] }
 0x197   :  { %v11637_v46 = vpop.permute.xlu1 %7567  ;;  %v11639_v42 = vpop.permute.xlu0 %7562 }
 0x198   :  { %17293 = vst [vmem:[#allocation258_spill] sm:$0xff] %v11637_v46  ;;  %17294 = vst [vmem:[#allocation259_spill] sm:$0xff] %v11639_v42 }
 0x199   :  { %7857 = vrot.lane.b32.xlu1 %v7856_v50, %s9468_s1  ;;  %7852 = vrot.lane.b32.xlu0 %v17224_v53, %s9469_s7  ;;  %v11660_v53 = vld [vmem:[#allocation2 + $0x150] sm:$0xff]  ;;  %v11662_v50 = vld [vmem:[#allocation2 + $0x158] sm:$0xff] }
 0x19b   :  { %v11644_v38 = vpop.permute.xlu1 %7577  ;;  %v11646_v11 = vpop.permute.xlu0 %7572 }
 0x19c   :  { %17295 = vst [vmem:[#allocation260_spill] sm:$0xff] %v11644_v38  ;;  %17296 = vst [vmem:[#allocation261_spill] sm:$0xff] %v11646_v11  ;;  %v17346_v11 = vld [vmem:[#allocation190_spill] sm:$0xff] }
 0x19d   :  { %7867 = vrot.lane.b32.xlu1 %v17297_v62, %s9467_s24  ;;  %7862 = vrot.lane.b32.xlu0 %v17223_v41, %s9469_s7  ;;  %v7886_v62 = vpack.i.bf16 %v11662_v50, %v11660_v53 }
 0x19f   :  { %v11652_v23 = vpop.permute.xlu1 %7587  ;;  %v11654_v7 = vpop.permute.xlu0 %7582 }
 0x1a0   :  { %17298 = vst [vmem:[#allocation69_spill] sm:$0xff] %v11652_v23  ;;  %17299 = vst [vmem:[#allocation262_spill] sm:$0xff] %v11654_v7 }
 0x1a1   :  { %7877 = vrot.lane.b32.xlu1 %v17228_v17, %s9469_s7  ;;  %7872 = vrot.lane.b32.xlu0 %v11217_v47, %s9468_s1  ;;  %v17305_v47 = vld [vmem:[#allocation48_spill] sm:$0xff] }
 0x1a3   :  { %v11666_v44 = vpop.permute.xlu1 %7597  ;;  %v11668_v41 = vpop.permute.xlu0 %7592 }
 0x1a4   :  { %17300 = vst [vmem:[#allocation263_spill] sm:$0xff] %v11666_v44  ;;  %17301 = vst [vmem:[#allocation264_spill] sm:$0xff] %v11668_v41 }
 0x1a5   :  { %7887 = vrot.lane.b32.xlu1 %v7886_v62, %s9468_s1  ;;  %7882 = vrot.lane.b32.xlu0 %v17302_v29, %s9467_s24  ;;  %v7901_v62 = vpack.i.bf16 %v11683_v16, %v11681_v18  ;;  %v786_v29 = vrot.slane %v11221_v37, 2 }
 0x1a7   :  { %v11673_v17 = vpop.permute.xlu1 %7607  ;;  %v11675_v3 = vpop.permute.xlu0 %7602  ;;  %v11698_v63 = vsel %vm608_vm4, %v785_v45, %v786_v29  ;;  %v11701_v24 = vsel %vm608_vm4, %v786_v29, %v788_v49 }
 0x1a8   :  { %17303 = vst [vmem:[#allocation68_spill] sm:$0xff] %v11673_v17  ;;  %17304 = vst [vmem:[#allocation265_spill] sm:$0xff] %v11675_v3  ;;  %v7926_v45 = vpack.i.bf16 %v11701_v24, %v11698_v63 }
 0x1a9   :  { %7897 = vrot.lane.b32.xlu1 %v17305_v47, %s9467_s24  ;;  %7892 = vrot.lane.b32.xlu0 %v17227_v6, %s9469_s7  ;;  %v294_v47 = vld [vmem:[#allocation2 + $0x198] sm:$0xff]  ;;  %v296_v6 = vld [vmem:[#allocation2 + $0x1a8] sm:$0x3]  ;;  %17308 = vst [vmem:[#allocation267_spill] sm:$0xff] %v11698_v63  ;;  %17309 = vst [vmem:[#allocation268_spill] sm:$0xff] %v11701_v24 }
 0x1aa   :  { %v801_v37 = vrot.slane %v294_v47, 1  ;;  %v804_v19 = vrot.slane %v296_v6, 1  ;;  %v9360_v63 = vld [vmem:[#allocation2] sm:$0xff] }
 0x1ab   :  { %v11690_v27 = vpop.permute.xlu1 %7617  ;;  %v11692_v4 = vpop.permute.xlu0 %7612 }
 0x1ac   :  { %17306 = vst [vmem:[#allocation48_spill] sm:$0xff] %v11690_v27  ;;  %17307 = vst [vmem:[#allocation266_spill] sm:$0xff] %v11692_v4  ;;  %v805_v49 = vsel %vm447_vm3, %v802_v10, %v804_v19  ;;  %v11728_v19 = vld [vmem:[#allocation2 + $0x1e0] sm:$0xff] }
 0x1ad   :  { %7907 = vrot.lane.b32.xlu1 %v17231_v39, %s9469_s7  ;;  %7902 = vrot.lane.b32.xlu0 %v7901_v62, %s9468_s1  ;;  %v17312_v39 = vld [vmem:[#allocation45_spill] sm:$0xff]  ;;  %v803_v62 = vsel %vm447_vm3, %v801_v37, %v802_v10 }
 0x1ae   :  { %v11730_v37 = vld [vmem:[#allocation2 + $0x1e8] sm:$0xff] }
 0x1af   :  { %v11703_v34 = vpop.permute.xlu1 %7627  ;;  %v11705_v20 = vpop.permute.xlu0 %7622  ;;  %v7946_v10 = vpack.i.bf16 %v11730_v37, %v11728_v19 }
 0x1b0   :  { %17310 = vst [vmem:[#allocation269_spill] sm:$0xff] %v11703_v34  ;;  %17311 = vst [vmem:[#allocation270_spill] sm:$0xff] %v11705_v20  ;;  %v7931_v34 = vpack.i.bf16 %v295_v57, %v294_v47  ;;  %v17319_v57 = vld [vmem:[#allocation161_spill] sm:$0xff] }
 0x1b1   :  { %7917 = vrot.lane.b32.xlu1 %v11232_v8, %s9468_s1  ;;  %7912 = vrot.lane.b32.xlu0 %v17312_v39, %s9467_s24  ;;  %v7936_v8 = vpack.i.bf16 %v805_v49, %v803_v62  ;;  %v11749_v49 = vld [vmem:[#allocation2 + $0x1f8] sm:$0xff] }
 0x1b3   :  { %v11715_v29 = vpop.permute.xlu1 %7637  ;;  %v11717_v6 = vpop.permute.xlu0 %7632 }
 0x1b4   :  { %17313 = vst [vmem:[#allocation45_spill] sm:$0xff] %v11715_v29  ;;  %17314 = vst [vmem:[#allocation271_spill] sm:$0xff] %v11717_v6  ;;  %v9359_v6 = vld [vmem:[#allocation2 + $0x8] sm:$0xff] }
 0x1b5   :  { %7927 = vrot.lane.b32.xlu1 %v7926_v45, %s9467_s24  ;;  %7922 = vrot.lane.b32.xlu0 %v11390_v30, %s9469_s7 }
 0x1b7   :  { %v11722_v20 = vpop.permute.xlu1 %7647  ;;  %v11724_v39 = vpop.permute.xlu0 %7642 }
 0x1b8   :  { %17315 = vst [vmem:[#allocation272_spill] sm:$0xff] %v11722_v20  ;;  %17316 = vst [vmem:[#allocation273_spill] sm:$0xff] %v11724_v39  ;;  %v7079_v20 = vunpack.i.l.bf16 %v11051_v54  ;;  %v11768_v39 = vld [vmem:[#allocation2 + $0x210] sm:$0xff] }
 0x1b9   :  { %7937 = vrot.lane.b32.xlu1 %v7936_v8, %s9469_s7  ;;  %7932 = vrot.lane.b32.xlu0 %v7931_v34, %s9468_s1  ;;  %v17322_v34 = vld [vmem:[#allocation81_spill] sm:$0xff]  ;;  %v11751_v8 = vld [vmem:[#allocation2 + $0x200] sm:$0xff] }
 0x1bb   :  { %v11734_v45 = vpop.permute.xlu1 %7657  ;;  %v11736_v30 = vpop.permute.xlu0 %7652 }
 0x1bc   :  { %17317 = vst [vmem:[#allocation274_spill] sm:$0xff] %v11734_v45  ;;  %17318 = vst [vmem:[#allocation275_spill] sm:$0xff] %v11736_v30  ;;  %v7065_v45 = vunpack.i.h.bf16 %v11017_v32  ;;  %v7074_v30 = vunpack.i.l.bf16 %v11025_v51 }
 0x1bd   :  { %7947 = vrot.lane.b32.xlu1 %v7946_v10, %s9468_s1  ;;  %7942 = vrot.lane.b32.xlu0 %v17319_v57, %s9467_s24  ;;  %v7961_v10 = vpack.i.bf16 %v11751_v8, %v11749_v49 }
 0x1be   :  { %v11777_v27 = vsel %vm90_vm0, %v9359_v6, %v7065_v45  ;;  %v17331_v45 = vld [vmem:[#allocation192_spill] sm:$0xff] }
 0x1bf   :  { %v11741_v47 = vpop.permute.xlu1 %7667  ;;  %v11743_v62 = vpop.permute.xlu0 %7662 }
 0x1c0   :  { %17320 = vst [vmem:[#allocation161_spill] sm:$0xff] %v11741_v47  ;;  %17321 = vst [vmem:[#allocation276_spill] sm:$0xff] %v11743_v62  ;;  %v7064_v62 = vunpack.i.l.bf16 %v11017_v32 }
 0x1c1   :  { %7957 = vrot.lane.b32.xlu1 %v17322_v34, %s9467_s24  ;;  %7952 = vrot.lane.b32.xlu0 %v17234_v31, %s9469_s7  ;;  %v7075_v34 = vunpack.i.h.bf16 %v11025_v51  ;;  %v7080_v31 = vunpack.i.h.bf16 %v11051_v54  ;;  %v17326_v54 = vld [vmem:[#allocation181_spill] sm:$0xff] }
 0x1c2   :  { %v7090_v5 = vunpack.i.h.bf16 %v17326_v54  ;;  %v11786_v4 = vsel %vm90_vm0, %v9360_v63, %v7064_v62  ;;  %v17334_v63 = vld [vmem:[#allocation80_spill] sm:$0xff] }
 0x1c3   :  { %v11756_v57 = vpop.permute.xlu1 %7677  ;;  %v11758_v47 = vpop.permute.xlu0 %7672  ;;  %v11790_v17 = vsel %vm90_vm0, %v17329_v48, %v7075_v34  ;;  %v11798_v3 = vsel %vm90_vm0, %v17331_v45, %v7080_v31  ;;  %v17335_v48 = vld [vmem:[#allocation186_spill] sm:$0xff] }
 0x1c4   :  { %17323 = vst [vmem:[#allocation81_spill] sm:$0xff] %v11756_v57  ;;  %17324 = vst [vmem:[#allocation277_spill] sm:$0xff] %v11758_v47  ;;  %v11770_v57 = vld [vmem:[#allocation2 + $0x218] sm:$0xff]  ;;  %v17325_v47 = vld [vmem:[#allocation178_spill] sm:$0xff] }
 0x1c5   :  { %7967 = vrot.lane.b32.xlu1 %v17239_v21, %s9469_s7  ;;  %7962 = vrot.lane.b32.xlu0 %v7961_v10, %s9468_s1  ;;  %v7976_v32 = vpack.i.bf16 %v11770_v57, %v11768_v39  ;;  %v7070_v29 = vunpack.i.h.bf16 %v17325_v47  ;;  %v7069_v51 = vunpack.i.l.bf16 %v17325_v47  ;;  %v7089_v21 = vunpack.i.l.bf16 %v17326_v54  ;;  %v17330_v47 = vld [vmem:[#allocation183_spill] sm:$0xff]  ;;  %v17338_v45 = vld [vmem:[#allocation198_spill] sm:$0xff] }
 0x1c6   :  { %v11794_v6 = vsel %vm90_vm0, %v17330_v47, %v7074_v30  ;;  %v17332_v54 = vld [vmem:[#allocation191_spill] sm:$0xff]  ;;  %v17336_v30 = vld [vmem:[#allocation185_spill] sm:$0xff] }
 0x1c7   :  { %v11781_v10 = vpop.permute.xlu1 %7687  ;;  %v11783_v24 = vpop.permute.xlu0 %7682  ;;  %v11810_v62 = vsel %vm90_vm0, %v17335_v48, %v7070_v29  ;;  %v11814_v34 = vsel %vm90_vm0, %v17336_v30, %v7069_v51  ;;  %v17337_v47 = vld [vmem:[#allocation187_spill] sm:$0xff]  ;;  %v17341_v29 = vld [vmem:[#allocation188_spill] sm:$0xff]  ;;  %v17344_v30 = vld [vmem:[#allocation193_spill] sm:$0xff] }
 0x1c8   :  { %17327 = vst [vmem:[#allocation178_spill] sm:$0xff] %v11781_v10  ;;  %17328 = vst [vmem:[#allocation181_spill] sm:$0xff] %v11783_v24  ;;  %v11802_v10 = vsel %vm90_vm0, %v17332_v54, %v7079_v20  ;;  %v17333_v24 = vld [vmem:[#allocation182_spill] sm:$0xff]  ;;  %v7100_v20 = vunpack.i.h.bf16 %v17337_v47  ;;  %v11820_v54 = vsel %vm90_vm0, %v17338_v45, %v7090_v5  ;;  %v7095_v48 = vunpack.i.h.bf16 %v17341_v29 }
 0x1c9   :  { %v7085_v44 = vunpack.i.h.bf16 %v17333_v24  ;;  %7977 = vrot.lane.b32.xlu1 %v7976_v32, %s9468_s1  ;;  %7972 = vrot.lane.b32.xlu0 %v17334_v63, %s9467_s24  ;;  %v7084_v31 = vunpack.i.l.bf16 %v17333_v24  ;;  %v17339_v32 = vld [vmem:[#allocation197_spill] sm:$0xff]  ;;  %v7099_v63 = vunpack.i.l.bf16 %v17337_v47  ;;  %v7094_v24 = vunpack.i.l.bf16 %v17341_v29  ;;  %v17345_v5 = vld [vmem:[#allocation194_spill] sm:$0xff] }
 0x1ca   :  { %v11824_v41 = vsel %vm90_vm0, %v17339_v32, %v7089_v21  ;;  %v7110_v7 = vunpack.i.h.bf16 %v17344_v30  ;;  %v7109_v38 = vunpack.i.l.bf16 %v17344_v30  ;;  %v7105_v45 = vunpack.i.h.bf16 %v17345_v5  ;;  %v17348_v32 = vld [vmem:[#allocation102_spill] sm:$0xff] }
 0x1cb   :  { %17340 = vst [vmem:[#allocation184_spill] sm:$0xff] %v11824_v41  ;;  %v11828_v23 = vpop.permute.xlu1 %7697  ;;  %v11830_v51 = vpop.permute.xlu0 %7692  ;;  %v11838_v21 = vsel %vm90_vm0, %v17346_v11, %v7085_v44  ;;  %v7104_v47 = vunpack.i.l.bf16 %v17345_v5  ;;  %v11847_v29 = vld [vmem:[#allocation2 + $0x230] sm:$0xff]  ;;  %v17351_v11 = vld [vmem:[#allocation204_spill] sm:$0xff]  ;;  %v17353_v5 = vld [vmem:[#allocation199_spill] sm:$0xff]  ;;  %v11867_v1 = vsel %vm90_vm0, %v17356_v43, %v7095_v48 }
 0x1cc   :  { %17342 = vst [vmem:[#allocation183_spill] sm:$0xff] %v11828_v23  ;;  %17343 = vst [vmem:[#allocation192_spill] sm:$0xff] %v11830_v51  ;;  %v11845_v51 = vld [vmem:[#allocation2 + $0x228] sm:$0xff]  ;;  %v11857_v44 = vsel %vm90_vm0, %v17351_v11, %v7100_v20  ;;  %v7119_v46 = vunpack.i.l.bf16 %v17353_v5  ;;  %v17359_v11 = vld [vmem:[#allocation195_spill] sm:$0xff] }
 0x1cd   :  { %17347 = vst [vmem:[#allocation191_spill] sm:$0xff] %v11838_v21  ;;  %7987 = vrot.lane.b32.xlu1 %v17348_v32, %s9467_s24  ;;  %7982 = vrot.lane.b32.xlu0 %v17238_v61, %s9469_s7  ;;  %v7991_v30 = vpack.i.bf16 %v11847_v29, %v11845_v51  ;;  %v17349_v23 = vld [vmem:[#allocation189_spill] sm:$0xff]  ;;  %17352 = vst [vmem:[#allocation80_spill] sm:$0xff] %v11857_v44  ;;  %v7120_v32 = vunpack.i.h.bf16 %v17353_v5  ;;  %v17354_v61 = vld [vmem:[#allocation203_spill] sm:$0xff]  ;;  %v7115_v21 = vunpack.i.h.bf16 %v17358_v33 }
 0x1ce   :  { %v11853_v2 = vsel %vm90_vm0, %v17349_v23, %v7084_v31  ;;  %v11863_v42 = vsel %vm90_vm0, %v17354_v61, %v7099_v63  ;;  %17357 = vst [vmem:[#allocation185_spill] sm:$0xff] %v11867_v1  ;;  %v7114_v23 = vunpack.i.l.bf16 %v17358_v33  ;;  %v11877_v44 = vsel %vm90_vm0, %v17359_v11, %v7094_v24  ;;  %v17361_v5 = vld [vmem:[#allocation210_spill] sm:$0xff]  ;;  %v17363_v61 = vld [vmem:[#allocation209_spill] sm:$0xff] }
 0x1cf   :  { %17350 = vst [vmem:[#allocation182_spill] sm:$0xff] %v11853_v2  ;;  %17355 = vst [vmem:[#allocation186_spill] sm:$0xff] %v11863_v42  ;;  %v11871_v31 = vpop.permute.xlu1 %7707  ;;  %v11873_v20 = vpop.permute.xlu0 %7702  ;;  %v11881_v63 = vsel %vm90_vm0, %v17361_v5, %v7110_v7  ;;  %v11885_v43 = vsel %vm90_vm0, %v17363_v61, %v7109_v38  ;;  %v17365_v48 = vld [vmem:[#allocation202_spill] sm:$0xff]  ;;  %v17367_v33 = vld [vmem:[#allocation201_spill] sm:$0xff] }
 0x1d0   :  { %17360 = vst [vmem:[#allocation187_spill] sm:$0xff] %v11877_v44  ;;  %17362 = vst [vmem:[#allocation198_spill] sm:$0xff] %v11881_v63  ;;  %v11889_v42 = vsel %vm90_vm0, %v17365_v48, %v7105_v45  ;;  %v11893_v1 = vsel %vm90_vm0, %v17367_v33, %v7104_v47  ;;  %v17369_v2 = vld [vmem:[#allocation205_spill] sm:$0xff]  ;;  %v11899_v7 = vld [vmem:[#allocation2 + $0x240] sm:$0xff] }
 0x1d1   :  { %17364 = vst [vmem:[#allocation197_spill] sm:$0xff] %v11885_v43  ;;  %17366 = vst [vmem:[#allocation188_spill] sm:$0xff] %v11889_v42  ;;  %v7130_v41 = vunpack.i.h.bf16 %v17369_v2  ;;  %7997 = vrot.lane.b32.xlu1 %v17243_v9, %s9469_s7  ;;  %7992 = vrot.lane.b32.xlu0 %v7991_v30, %s9468_s1  ;;  %v11901_v24 = vld [vmem:[#allocation2 + $0x248] sm:$0xff]  ;;  %v17370_v45 = vld [vmem:[#allocation214_spill] sm:$0xff]  ;;  %v7129_v61 = vunpack.i.l.bf16 %v17369_v2 }
 0x1d2   :  { %17368 = vst [vmem:[#allocation193_spill] sm:$0xff] %v11893_v1  ;;  %v8006_v38 = vpack.i.bf16 %v11901_v24, %v11899_v7  ;;  %v11907_v11 = vsel %vm90_vm0, %v17370_v45, %v7120_v32  ;;  %v17372_v47 = vld [vmem:[#allocation213_spill] sm:$0xff]  ;;  %v17374_v9 = vld [vmem:[#allocation206_spill] sm:$0xff]  ;;  %v17375_v30 = vld [vmem:[#allocation208_spill] sm:$0xff] }
 0x1d3   :  { %17371 = vst [vmem:[#allocation194_spill] sm:$0xff] %v11907_v11  ;;  %v11911_v5 = vsel %vm90_vm0, %v17372_v47, %v7119_v46  ;;  %v7125_v48 = vunpack.i.h.bf16 %v17374_v9  ;;  %v11917_v33 = vsel %vm90_vm0, %v17375_v30, %v7115_v21  ;;  %v17377_v43 = vld [vmem:[#allocation207_spill] sm:$0xff]  ;;  %v7124_v42 = vunpack.i.l.bf16 %v17374_v9  ;;  %v11925_v11 = vpop.permute.xlu1 %7717  ;;  %v11927_v46 = vpop.permute.xlu0 %7712  ;;  %v17380_v47 = vld [vmem:[#allocation212_spill] sm:$0xff]  ;;  %v17383_v9 = vld [vmem:[#allocation90_spill] sm:$0xff] }
 0x1d4   :  { %17373 = vst [vmem:[#allocation190_spill] sm:$0xff] %v11911_v5  ;;  %17376 = vst [vmem:[#allocation102_spill] sm:$0xff] %v11917_v33  ;;  %v11921_v63 = vsel %vm90_vm0, %v17377_v43, %v7114_v23  ;;  %v17379_v32 = vld [vmem:[#allocation211_spill] sm:$0xff]  ;;  %v7135_v5 = vunpack.i.h.bf16 %v17380_v47  ;;  %v7134_v1 = vunpack.i.l.bf16 %v17380_v47  ;;  %v17382_v33 = vld [vmem:[#allocation218_spill] sm:$0xff] }
 0x1d5   :  { %17378 = vst [vmem:[#allocation189_spill] sm:$0xff] %v11921_v63  ;;  %v7140_v45 = vunpack.i.h.bf16 %v17379_v32  ;;  %v7139_v2 = vunpack.i.l.bf16 %v17379_v32  ;;  %v17381_v21 = vld [vmem:[#allocation215_spill] sm:$0xff]  ;;  %v11935_v23 = vsel %vm90_vm0, %v17382_v33, %v7130_v41  ;;  %8007 = vrot.lane.b32.xlu1 %v8006_v38, %s9468_s1  ;;  %8002 = vrot.lane.b32.xlu0 %v17383_v9, %s9467_s24  ;;  %v17384_v63 = vld [vmem:[#allocation217_spill] sm:$0xff]  ;;  %v11947_v47 = vsel %vm90_vm0, %v11633_v26, %v7125_v48  ;;  %v17386_v44 = vld [vmem:[#allocation216_spill] sm:$0xff] }
 0x1d6   :  { %v7150_v30 = vunpack.i.h.bf16 %v17381_v21  ;;  %v7149_v43 = vunpack.i.l.bf16 %v17381_v21  ;;  %v11943_v32 = vsel %vm90_vm0, %v17384_v63, %v7129_v61  ;;  %v7145_v14 = vunpack.i.h.bf16 %v17386_v44  ;;  %v17388_v21 = vld [vmem:[#allocation219_spill] sm:$0xff] }
 0x1d7   :  { %17385 = vst [vmem:[#allocation204_spill] sm:$0xff] %v11943_v32  ;;  %v7144_v41 = vunpack.i.l.bf16 %v17386_v44  ;;  %v11953_v33 = vsel %vm90_vm0, %v11631_v35, %v7124_v42  ;;  %v11957_v38 = vsel %vm90_vm0, %v11683_v16, %v7140_v45  ;;  %v7160_v9 = vunpack.i.h.bf16 %v17388_v21  ;;  %v11961_v61 = vpop.permute.xlu1 %7727  ;;  %v11963_v26 = vpop.permute.xlu0 %7722  ;;  %v9365_v42 = vld [vmem:[#allocation2 + $0x1d0] sm:$0xff]  ;;  %v9366_v45 = vld [vmem:[#allocation2 + $0x1c8] sm:$0xff] }
 0x1d8   :  { %17387 = vst [vmem:[#allocation199_spill] sm:$0xff] %v11957_v38  ;;  %v7159_v63 = vunpack.i.l.bf16 %v17388_v21  ;;  %v11967_v44 = vsel %vm90_vm0, %v11681_v18, %v7139_v2  ;;  %v11971_v35 = vsel %vm90_vm0, %v11662_v50, %v7135_v5  ;;  %v11975_v16 = vsel %vm90_vm0, %v11660_v53, %v7134_v1  ;;  %v17391_v38 = vld [vmem:[#allocation220_spill] sm:$0xff]  ;;  %v17392_v18 = vld [vmem:[#allocation122_spill] sm:$0xff]  ;;  %v9367_v50 = vld [vmem:[#allocation2 + $0x258] sm:$0xff] }
 0x1d9   :  { %v11978_v48 = vsel %vm90_vm0, %v9365_v42, %v7150_v30  ;;  %v11981_v21 = vsel %vm90_vm0, %v9366_v45, %v7149_v43  ;;  %v7155_v32 = vunpack.i.h.bf16 %v17391_v38  ;;  %8017 = vrot.lane.b32.xlu1 %v17392_v18, %s9467_s24  ;;  %8012 = vrot.lane.b32.xlu0 %v17242_v59, %s9469_s7  ;;  %v9368_v5 = vld [vmem:[#allocation2 + $0x260] sm:$0xff]  ;;  %v9369_v53 = vld [vmem:[#allocation2 + $0x1b8] sm:$0xff]  ;;  %v9370_v30 = vld [vmem:[#allocation2 + $0x1b0] sm:$0xff]  ;;  %v7154_v43 = vunpack.i.l.bf16 %v17391_v38 }
 0x1da   :  { %17389 = vst [vmem:[#allocation203_spill] sm:$0xff] %v11978_v48  ;;  %17390 = vst [vmem:[#allocation196_spill] sm:$0xff] %v11981_v21  ;;  %v8021_v1 = vpack.i.bf16 %v9368_v5, %v9367_v50  ;;  %v11989_v2 = vsel %vm90_vm0, %v9369_v53, %v7145_v14  ;;  %v11992_v42 = vsel %vm90_vm0, %v9370_v30, %v7144_v41  ;;  %v7170_v45 = vunpack.i.h.bf16 %v11236_v36  ;;  %v17447_v48 = vld [vmem:[#allocation146_spill] sm:$0xff] }
 0x1db   :  { %17393 = vst [vmem:[#allocation200_spill] sm:$0xff] %v11989_v2  ;;  %17394 = vst [vmem:[#allocation195_spill] sm:$0xff] %v11992_v42  ;;  %v11998_v18 = vsel %vm90_vm0, %v11751_v8, %v7160_v9  ;;  %v12002_v59 = vsel %vm90_vm0, %v11749_v49, %v7159_v63  ;;  %v7169_v21 = vunpack.i.l.bf16 %v11236_v36  ;;  %v7165_v14 = vunpack.i.h.bf16 %v11238_v25  ;;  %v12006_v53 = vpop.permute.xlu1 %7737  ;;  %v12008_v41 = vpop.permute.xlu0 %7732  ;;  %v12022_v63 = vld [vmem:[#allocation2 + $0x270] sm:$0xff]  ;;  %v17450_v2 = vld [vmem:[#allocation185_spill] sm:$0xff] }
 0x1dc   :  { %17395 = vst [vmem:[#allocation210_spill] sm:$0xff] %v11998_v18  ;;  %17396 = vst [vmem:[#allocation209_spill] sm:$0xff] %v12002_v59  ;;  %v7164_v38 = vunpack.i.l.bf16 %v11238_v25  ;;  %v7180_v30 = vunpack.i.h.bf16 %v11247_v40  ;;  %v7179_v8 = vunpack.i.l.bf16 %v11247_v40  ;;  %v7175_v9 = vunpack.i.h.bf16 %v11249_v0  ;;  %v12024_v25 = vld [vmem:[#allocation2 + $0x278] sm:$0xff] }
 0x1dd   :  { %v12016_v49 = vsel %vm90_vm0, %v11730_v37, %v7155_v32  ;;  %v7174_v36 = vunpack.i.l.bf16 %v11249_v0  ;;  %8027 = vrot.lane.b32.xlu1 %v17247_v13, %s9469_s7  ;;  %8022 = vrot.lane.b32.xlu0 %v8021_v1, %s9468_s1  ;;  %v8036_v40 = vpack.i.bf16 %v12024_v25, %v12022_v63  ;;  %v12030_v59 = vsel %vm90_vm0, %v11728_v19, %v7154_v43 }
 0x1de   :  { %17397 = vst [vmem:[#allocation202_spill] sm:$0xff] %v12016_v49  ;;  %17398 = vst [vmem:[#allocation201_spill] sm:$0xff] %v12030_v59  ;;  %v12034_v37 = vsel %vm90_vm0, %v11847_v29, %v7170_v45  ;;  %v7230_v0 = vunpack.i.h.bf16 %v11297_v52  ;;  %v7229_v13 = vunpack.i.l.bf16 %v11297_v52  ;;  %v12040_v32 = vsel %vm90_vm0, %v11845_v51, %v7169_v21  ;;  %v17402_v49 = vld [vmem:[#allocation229_spill] sm:$0xff] }
 0x1df   :  { %17399 = vst [vmem:[#allocation205_spill] sm:$0xff] %v12034_v37  ;;  %17400 = vst [vmem:[#allocation214_spill] sm:$0xff] %v12040_v32  ;;  %v12044_v1 = vsel %vm90_vm0, %v11770_v57, %v7165_v14  ;;  %v7225_v18 = vunpack.i.h.bf16 %v17402_v49  ;;  %v7224_v19 = vunpack.i.l.bf16 %v17402_v49  ;;  %v12048_v43 = vpop.permute.xlu1 %7747  ;;  %v12050_v29 = vpop.permute.xlu0 %7742  ;;  %v12054_v45 = vsel %vm90_vm0, %v11768_v39, %v7164_v38  ;;  %v17408_v39 = vld [vmem:[#allocation121_spill] sm:$0xff]  ;;  %v17414_v32 = vld [vmem:[#allocation148_spill] sm:$0xff] }
 0x1e0   :  { %17401 = vst [vmem:[#allocation213_spill] sm:$0xff] %v12044_v1  ;;  %17403 = vst [vmem:[#allocation206_spill] sm:$0xff] %v12054_v45  ;;  %v12057_v52 = vsel %vm90_vm0, %v9368_v5, %v7180_v30  ;;  %v12060_v51 = vsel %vm90_vm0, %v9367_v50, %v7179_v8  ;;  %v12064_v57 = vsel %vm90_vm0, %v11901_v24, %v7175_v9  ;;  %v7385_v14 = vunpack.i.h.bf16 %v11453_v55 }
 0x1e1   :  { %17404 = vst [vmem:[#allocation208_spill] sm:$0xff] %v12057_v52  ;;  %17405 = vst [vmem:[#allocation207_spill] sm:$0xff] %v12060_v51  ;;  %v12068_v21 = vsel %vm90_vm0, %v11899_v7, %v7174_v36  ;;  %8037 = vrot.lane.b32.xlu1 %v8036_v40, %s9468_s1  ;;  %8032 = vrot.lane.b32.xlu0 %v17408_v39, %s9467_s24  ;;  %v2296_v5 = vsel %vm2293_vm5, %v11814_v34, %v7229_v13  ;;  %v7384_v24 = vunpack.i.l.bf16 %v11453_v55  ;;  %v17409_v34 = vld [vmem:[#allocation238_spill] sm:$0xff]  ;;  %v12107_v51 = vld [vmem:[#allocation2 + $0x2a8] sm:$0xff] }
 0x1e2   :  { %17406 = vst [vmem:[#allocation211_spill] sm:$0xff] %v12064_v57  ;;  %17407 = vst [vmem:[#allocation212_spill] sm:$0xff] %v12068_v21  ;;  %v2297_v50 = vsel %vm2293_vm5, %v11810_v62, %v7230_v0  ;;  %v2295_v7 = vsel %vm2293_vm5, %v11777_v27, %v7225_v18  ;;  %v2294_v38 = vsel %vm2293_vm5, %v11786_v4, %v7224_v19  ;;  %v7545_v30 = vunpack.i.h.bf16 %v11617_v56  ;;  %v17410_v27 = vld [vmem:[#allocation126_spill] sm:$0xff]  ;;  %v17411_v4 = vld [vmem:[#allocation137_spill] sm:$0xff] }
 0x1e3   :  { %v7544_v8 = vunpack.i.l.bf16 %v11617_v56  ;;  %v7758_v9 = vpop.permute.xlu1 %7757  ;;  %v12085_v49 = vpop.permute.xlu0 %7752  ;;  %v7390_v36 = vunpack.i.h.bf16 %v17409_v34  ;;  %v7705_v62 = vunpack.i.h.bf16 %v11873_v20  ;;  %v7704_v55 = vunpack.i.l.bf16 %v11873_v20  ;;  %v12094_v18 = vld [vmem:[#allocation2 + $0x288] sm:$0xff]  ;;  %v12096_v56 = vld [vmem:[#allocation2 + $0x290] sm:$0xff]  ;;  %v12105_v21 = vld [vmem:[#allocation2 + $0x2a0] sm:$0xff] }
 0x1e4   :  { %v7760_v40 = vunpack.i.h.bf16 %v7758_v9  ;;  %v7759_v0 = vunpack.i.l.bf16 %v7758_v9  ;;  %v8051_v13 = vpack.i.bf16 %v12096_v56, %v12094_v18  ;;  %v7389_v19 = vunpack.i.l.bf16 %v17409_v34 }
 0x1e5   :  { %8047 = vrot.lane.b32.xlu1 %v17410_v27, %s9467_s24  ;;  %8042 = vrot.lane.b32.xlu0 %v17411_v4, %s9469_s7  ;;  %v2359_v39 = vsel %vm2358_vm6, %v2294_v38, %v7384_v24  ;;  %v2360_v20 = vsel %vm2358_vm6, %v2295_v7, %v7385_v14  ;;  %v8066_v52 = vpack.i.bf16 %v12107_v51, %v12105_v21  ;;  %v17412_v38 = vld [vmem:[#allocation230_spill] sm:$0xff]  ;;  %v7550_v1 = vunpack.i.h.bf16 %v11615_v58 }
 0x1e6   :  { %v2424_v9 = vsel %vm2423_vm7, %v2359_v39, %v7544_v8  ;;  %v2425_v27 = vsel %vm2423_vm7, %v2360_v20, %v7545_v30  ;;  %v7240_v8 = vunpack.i.h.bf16 %v17412_v38  ;;  %v17413_v30 = vld [vmem:[#allocation136_spill] sm:$0xff]  ;;  %v7549_v45 = vunpack.i.l.bf16 %v11615_v58 }
 0x1e7   :  { %v7768_v57 = vpop.permute.xlu1 %7767  ;;  %v7763_v4 = vpop.permute.xlu0 %7762  ;;  %v2489_v34 = vsel %vm2488_vm8, %v2424_v9, %v7704_v55  ;;  %v2490_v24 = vsel %vm2488_vm8, %v2425_v27, %v7705_v62  ;;  %v7710_v9 = vunpack.i.h.bf16 %v11871_v31  ;;  %v7709_v27 = vunpack.i.l.bf16 %v11871_v31  ;;  %v17417_v31 = vld [vmem:[#allocation231_spill] sm:$0xff] }
 0x1e8   :  { %v7765_v14 = vunpack.i.h.bf16 %v7763_v4  ;;  %v7764_v7 = vunpack.i.l.bf16 %v7763_v4  ;;  %v2554_v39 = vsel %vm2553_vm9, %v2489_v34, %v7759_v0  ;;  %v2555_v20 = vsel %vm2553_vm9, %v2490_v24, %v7760_v40  ;;  %v17415_v0 = vld [vmem:[#allocation149_spill] sm:$0xff] }
 0x1e9   :  { %8057 = vrot.lane.b32.xlu1 %v17413_v30, %s9469_s7  ;;  %8052 = vrot.lane.b32.xlu0 %v8051_v13, %s9468_s1  ;;  %v2686_v34 = vpack.c.bf16 %v17415_v0, %v17414_v32  ;;  %v2361_v40 = vsel %vm2358_vm6, %v2296_v5, %v7389_v19  ;;  %v2362_v24 = vsel %vm2358_vm6, %v2297_v50, %v7390_v36  ;;  %v7770_v58 = vunpack.i.h.bf16 %v7768_v57 }
 0x1ea   :  { %v2619_v55 = vsel %vm2618_vm10, %v2554_v39, %v7764_v7  ;;  %v2620_v62 = vsel %vm2618_vm10, %v2555_v20, %v7765_v14  ;;  %v7769_v37 = vunpack.i.l.bf16 %v7768_v57  ;;  %v17416_v14 = vld [vmem:[#allocation125_spill] sm:$0xff]  ;;  %v7235_v20 = vunpack.i.h.bf16 %v17417_v31 }
 0x1eb   :  { %v12125_v4 = vpop.permute.xlu1 %7777  ;;  %v7773_v30 = vpop.permute.xlu0 %7772  ;;  %v2683_v13 = vpack.c.bf16 %v2620_v62, %v2619_v55  ;;  %v7234_v55 = vunpack.i.l.bf16 %v17417_v31  ;;  %v2426_v62 = vsel %vm2423_vm7, %v2361_v40, %v7549_v45  ;;  %v2427_v32 = vsel %vm2423_vm7, %v2362_v24, %v7550_v1 }
 0x1ec   :  { %v7775_v7 = vunpack.i.h.bf16 %v7773_v30  ;;  %v7774_v39 = vunpack.i.l.bf16 %v7773_v30  ;;  %v12140_v5 = vsel %vm2293_vm5, %v11798_v3, %v7240_v8  ;;  %v7394_v57 = vunpack.i.l.bf16 %v11467_v15  ;;  %v17418_v8 = vld [vmem:[#allocation133_spill] sm:$0xff] }
 0x1ed   :  { %8067 = vrot.lane.b32.xlu1 %v8066_v52, %s9468_s1  ;;  %8062 = vrot.lane.b32.xlu0 %v17416_v14, %s9467_s24  ;;  %v2491_v52 = vsel %vm2488_vm8, %v2426_v62, %v7709_v27  ;;  %v2492_v50 = vsel %vm2488_vm8, %v2427_v32, %v7710_v9  ;;  %v7395_v45 = vunpack.i.h.bf16 %v11467_v15  ;;  %v7239_v3 = vunpack.i.l.bf16 %v17412_v38  ;;  %v17419_v27 = vld [vmem:[#allocation141_spill] sm:$0xff]  ;;  %v12156_v9 = vld [vmem:[#allocation2 + $0x2b8] sm:$0xff] }
 0x1ee   :  { %2948 = vmatmul.mubr.bf16.vlgmr.msra.gmra.mxu0 %v2683_v13  ;;  %v2556_v1 = vsel %vm2553_vm9, %v2491_v52, %v7769_v37  ;;  %v2557_v30 = vsel %vm2553_vm9, %v2492_v50, %v7770_v58  ;;  %v12158_v13 = vld [vmem:[#allocation2 + $0x2c0] sm:$0xff]  ;;  %v2299_v38 = vsel %vm2293_vm5, %v11790_v17, %v7235_v20  ;;  %v7555_v40 = vunpack.i.h.bf16 %v11625_v60  ;;  %v17421_v32 = vld [vmem:[#allocation155_spill] sm:$0xff] }
 0x1ef   :  { %v12145_v36 = vpop.permute.xlu1 %7787  ;;  %v7783_v19 = vpop.permute.xlu0 %7782  ;;  %6957 = vmatprep.mubr.msk.bf16.mxu0 %vm90_vm0, %v2686_v34  ;;  %v8081_v0 = vpack.i.bf16 %v12158_v13, %v12156_v9  ;;  %v2621_v15 = vsel %vm2618_vm10, %v2556_v1, %v7774_v39  ;;  %v2622_v37 = vsel %vm2618_vm10, %v2557_v30, %v7775_v7  ;;  %v2298_v34 = vsel %vm2293_vm5, %v11794_v6, %v7234_v55  ;;  %v17420_v7 = vld [vmem:[#allocation154_spill] sm:$0xff]  ;;  %v12187_v50 = vld [vmem:[#allocation2 + $0x2d8] sm:$0xff]  ;;  %v17422_v30 = vld [vmem:[#allocation232_spill] sm:$0xff] }
 0x1f0   :  { %v7554_v24 = vunpack.i.l.bf16 %v11625_v60  ;;  %v2363_v58 = vsel %vm2358_vm6, %v2298_v34, %v7394_v57  ;;  %v7715_v14 = vunpack.i.h.bf16 %v11927_v46  ;;  %v7714_v31 = vunpack.i.l.bf16 %v11927_v46  ;;  %v12185_v46 = vld [vmem:[#allocation2 + $0x2d0] sm:$0xff]  ;;  %v17423_v34 = vld [vmem:[#allocation233_spill] sm:$0xff] }
 0x1f1   :  { %8077 = vrot.lane.b32.xlu1 %v17418_v8, %s9467_s24  ;;  %8072 = vrot.lane.b32.xlu0 %v17419_v27, %s9469_s7  ;;  %v2688_v17 = vpack.c.bf16 %v17421_v32, %v17420_v7  ;;  %v2364_v20 = vsel %vm2358_vm6, %v2299_v38, %v7395_v45  ;;  %v7780_v6 = vunpack.i.h.bf16 %v12125_v4  ;;  %v7779_v55 = vunpack.i.l.bf16 %v12125_v4 }
 0x1f2   :  { %v2685_v60 = vpack.c.bf16 %v2622_v37, %v2621_v15  ;;  %v7785_v52 = vunpack.i.h.bf16 %v7783_v19  ;;  %v7784_v57 = vunpack.i.l.bf16 %v7783_v19  ;;  %v8096_v1 = vpack.i.bf16 %v12187_v50, %v12185_v46 }
 0x1f3   :  { %v12173_v62 = vpop.permute.xlu1 %7797  ;;  %v12175_v39 = vpop.permute.xlu0 %7792  ;;  %v2300_v45 = vsel %vm2293_vm5, %v11802_v10, %v7239_v3  ;;  %v7250_v4 = vunpack.i.h.bf16 %v17422_v30  ;;  %v2428_v8 = vsel %vm2423_vm7, %v2363_v58, %v7554_v24  ;;  %v2429_v19 = vsel %vm2423_vm7, %v2364_v20, %v7555_v40  ;;  %v17424_v58 = vld [vmem:[#allocation132_spill] sm:$0xff] }
 0x1f4   :  { %v7399_v27 = vunpack.i.l.bf16 %v11465_v28  ;;  %v2494_v15 = vsel %vm2488_vm8, %v2429_v19, %v7715_v14  ;;  %v7400_v10 = vunpack.i.h.bf16 %v11465_v28  ;;  %v7245_v40 = vunpack.i.h.bf16 %v17423_v34  ;;  %v17427_v19 = vld [vmem:[#allocation173_spill] sm:$0xff] }
 0x1f5   :  { %8087 = vrot.lane.b32.xlu1 %v17253_v22, %s9469_s7  ;;  %8082 = vrot.lane.b32.xlu0 %v8081_v0, %s9468_s1  ;;  %v7249_v22 = vunpack.i.l.bf16 %v17422_v30  ;;  %v2493_v0 = vsel %vm2488_vm8, %v2428_v8, %v7714_v31  ;;  %v2559_v38 = vsel %vm2553_vm9, %v2494_v15, %v7780_v6  ;;  %v12216_v28 = vsel %vm2293_vm5, %v11820_v54, %v7250_v4 }
 0x1f6   :  { %2956 = vmatmul.mubr.bf16.gmra.mxu0 %v2685_v60  ;;  %v2558_v3 = vsel %vm2553_vm9, %v2493_v0, %v7779_v55  ;;  %v2624_v31 = vsel %vm2618_vm10, %v2559_v38, %v7785_v52  ;;  %v7244_v7 = vunpack.i.l.bf16 %v17423_v34  ;;  %v7560_v32 = vunpack.i.h.bf16 %v11623_v12  ;;  %v17425_v60 = vld [vmem:[#allocation152_spill] sm:$0xff]  ;;  %v17431_v34 = vld [vmem:[#allocation191_spill] sm:$0xff] }
 0x1f7   :  { %v12200_v37 = vpop.permute.xlu0 %7802  ;;  %6958 = vmatprep.mubr.msk.bf16.mxu0 %vm90_vm0, %v2688_v17  ;;  %v12207_v24 = vpop.permute.xlu1 %7807  ;;  %v2623_v14 = vsel %vm2618_vm10, %v2558_v3, %v7784_v57  ;;  %v7559_v17 = vunpack.i.l.bf16 %v11623_v12  ;;  %v2365_v20 = vsel %vm2358_vm6, %v2300_v45, %v7399_v27  ;;  %v7720_v6 = vunpack.i.h.bf16 %v11925_v11  ;;  %v17426_v57 = vld [vmem:[#allocation153_spill] sm:$0xff]  ;;  %v17429_v0 = vld [vmem:[#allocation184_spill] sm:$0xff] }
 0x1f8   :  { %v7719_v55 = vunpack.i.l.bf16 %v11925_v11  ;;  %v2366_v52 = vsel %vm2358_vm6, %v12140_v5, %v7400_v10  ;;  %v7790_v54 = vunpack.i.h.bf16 %v12145_v36  ;;  %v7789_v30 = vunpack.i.l.bf16 %v12145_v36  ;;  %v17428_v11 = vld [vmem:[#allocation145_spill] sm:$0xff]  ;;  %v12240_v5 = vld [vmem:[#allocation2 + $0x2f0] sm:$0xff] }
 0x1f9   :  { %8097 = vrot.lane.b32.xlu1 %v8096_v1, %s9468_s1  ;;  %8092 = vrot.lane.b32.xlu0 %v17424_v58, %s9467_s24  ;;  %v2690_v1 = vpack.c.bf16 %v17426_v57, %v17425_v60  ;;  %v2687_v8 = vpack.c.bf16 %v2624_v31, %v2623_v14  ;;  %v7795_v12 = vunpack.i.h.bf16 %v12175_v39  ;;  %v7794_v45 = vunpack.i.l.bf16 %v12175_v39  ;;  %v12238_v27 = vld [vmem:[#allocation2 + $0x2e8] sm:$0xff]  ;;  %v17430_v10 = vld [vmem:[#allocation182_spill] sm:$0xff]  ;;  %v17432_v14 = vld [vmem:[#allocation240_spill] sm:$0xff] }
 0x1fa   :  { %v8111_v36 = vpack.i.bf16 %v12240_v5, %v12238_v27  ;;  %v2304_v15 = vsel %vm2293_vm5, %v17429_v0, %v7249_v22  ;;  %v2302_v3 = vsel %vm2293_vm5, %v17430_v10, %v7244_v7  ;;  %v2430_v39 = vsel %vm2423_vm7, %v2365_v20, %v7559_v17  ;;  %v12259_v7 = vld [vmem:[#allocation2 + $0x300] sm:$0xff]  ;;  %v12261_v17 = vld [vmem:[#allocation2 + $0x308] sm:$0xff]  ;;  %v17435_v0 = vld [vmem:[#allocation239_spill] sm:$0xff] }
 0x1fb   :  { %v12230_v4 = vpop.permute.xlu0 %7812  ;;  %v2431_v38 = vsel %vm2423_vm7, %v2366_v52, %v7560_v32  ;;  %v2303_v58 = vsel %vm2293_vm5, %v17431_v34, %v7245_v40  ;;  %v7404_v31 = vunpack.i.l.bf16 %v17432_v14  ;;  %v2495_v60 = vsel %vm2488_vm8, %v2430_v39, %v7719_v55  ;;  %v17433_v55 = vld [vmem:[#allocation235_spill] sm:$0xff] }
 0x1fc   :  { %v2496_v57 = vsel %vm2488_vm8, %v2431_v38, %v7720_v6  ;;  %v7405_v22 = vunpack.i.h.bf16 %v17432_v14  ;;  %v8126_v32 = vpack.i.bf16 %v12261_v17, %v12259_v7  ;;  %v2560_v40 = vsel %vm2553_vm9, %v2495_v60, %v7789_v30  ;;  %v17434_v6 = vld [vmem:[#allocation144_spill] sm:$0xff]  ;;  %v17436_v39 = vld [vmem:[#allocation259_spill] sm:$0xff] }
 0x1fd   :  { %8107 = vrot.lane.b32.xlu1 %v17427_v19, %s9467_s24  ;;  %8102 = vrot.lane.b32.xlu0 %v17428_v11, %s9469_s7  ;;  %v12255_v19 = vpop.permute.xlu1 %7817  ;;  %v2561_v20 = vsel %vm2553_vm9, %v2496_v57, %v7790_v54  ;;  %v7254_v11 = vunpack.i.l.bf16 %v17433_v55  ;;  %v7409_v10 = vunpack.i.l.bf16 %v17435_v0  ;;  %v7565_v38 = vunpack.i.h.bf16 %v17436_v39  ;;  %v17437_v60 = vld [vmem:[#allocation159_spill] sm:$0xff] }
 0x1fe   :  { %2964 = vmatmul.mubr.bf16.gmra.mxu0 %v2687_v8  ;;  %v2626_v8 = vsel %vm2618_vm10, %v2561_v20, %v7795_v12  ;;  %v7564_v30 = vunpack.i.l.bf16 %v17436_v39  ;;  %v2367_v34 = vsel %vm2358_vm6, %v2302_v3, %v7404_v31  ;;  %v7725_v14 = vunpack.i.h.bf16 %v11963_v26  ;;  %v17440_v3 = vld [vmem:[#allocation187_spill] sm:$0xff] }
 0x1ff   :  { %6959 = vmatprep.mubr.msk.bf16.mxu0 %vm90_vm0, %v2690_v1  ;;  %v2625_v1 = vsel %vm2618_vm10, %v2560_v40, %v7794_v45  ;;  %v12277_v54 = vpop.permute.xlu0 %7822  ;;  %v17438_v45 = vld [vmem:[#allocation160_spill] sm:$0xff]  ;;  %v2368_v12 = vsel %vm2358_vm6, %v2303_v58, %v7405_v22  ;;  %v7800_v40 = vunpack.i.h.bf16 %v12173_v62  ;;  %v7799_v20 = vunpack.i.l.bf16 %v12173_v62 }
 0x200   :  { %v2692_v57 = vpack.c.bf16 %v17438_v45, %v17437_v60  ;;  %v7805_v39 = vunpack.i.h.bf16 %v12200_v37  ;;  %v7804_v52 = vunpack.i.l.bf16 %v12200_v37  ;;  %v12296_v31 = vsel %vm2293_vm5, %v17440_v3, %v7254_v11 }
 0x201   :  { %8117 = vrot.lane.b32.xlu1 %v17434_v6, %s9469_s7  ;;  %8112 = vrot.lane.b32.xlu0 %v8111_v36, %s9468_s1  ;;  %v7724_v36 = vunpack.i.l.bf16 %v11963_v26  ;;  %v2689_v6 = vpack.c.bf16 %v2626_v8, %v2625_v1  ;;  %v12289_v59 = vpop.permute.xlu1 %7827  ;;  %v17439_v26 = vld [vmem:[#allocation139_spill] sm:$0xff]  ;;  %v7410_v58 = vunpack.i.h.bf16 %v17435_v0  ;;  %v2432_v62 = vsel %vm2423_vm7, %v2367_v34, %v7564_v30  ;;  %v9385_v0 = vld [vmem:[#allocation2 + $0x330] sm:$0xff] }
 0x202   :  { %v2433_v22 = vsel %vm2423_vm7, %v2368_v12, %v7565_v38  ;;  %v2369_v37 = vsel %vm2358_vm6, %v2304_v15, %v7409_v10  ;;  %v790_v45 = vrot.slane %v9385_v0, 2  ;;  %v9386_v30 = vld [vmem:[#allocation2 + $0x338] sm:$0xff]  ;;  %v17441_v38 = vld [vmem:[#allocation180_spill] sm:$0xff] }
 0x203   :  { %v2497_v1 = vsel %vm2488_vm8, %v2432_v62, %v7724_v36  ;;  %v12305_v8 = vpop.permute.xlu0 %7832  ;;  %v791_v34 = vrot.slane %v9386_v30, 2  ;;  %v17442_v15 = vld [vmem:[#allocation147_spill] sm:$0xff] }
 0x204   :  { %v2562_v11 = vsel %vm2553_vm9, %v2497_v1, %v7799_v20  ;;  %v12313_v10 = vld [vmem:[#allocation2 + $0x318] sm:$0xff]  ;;  %v12325_v1 = vld [vmem:[#allocation2 + $0x350] sm:$0xff] }
 0x205   :  { %8127 = vrot.lane.b32.xlu1 %v8126_v32, %s9468_s1  ;;  %8122 = vrot.lane.b32.xlu0 %v17439_v26, %s9467_s24  ;;  %v2498_v32 = vsel %vm2488_vm8, %v2433_v22, %v7725_v14  ;;  %v12315_v14 = vld [vmem:[#allocation2 + $0x320] sm:$0xff]  ;;  %v17443_v26 = vld [vmem:[#allocation258_spill] sm:$0xff]  ;;  %v8156_v22 = vpack.i.bf16 %v9386_v30, %v9385_v0  ;;  %v12340_v30 = vsel %vm608_vm4, %v790_v45, %v791_v34 }
 0x206   :  { %2972 = vmatmul.mubr.bf16.gmra.mxu0 %v2689_v6  ;;  %v2563_v60 = vsel %vm2553_vm9, %v2498_v32, %v7800_v40  ;;  %v8141_v36 = vpack.i.bf16 %v12315_v14, %v12313_v10  ;;  %v9389_v40 = vld [vmem:[#allocation2 + $0x340] sm:$0x3]  ;;  %v2370_v6 = vsel %vm2358_vm6, %v12216_v28, %v7410_v58  ;;  %v7570_v3 = vunpack.i.h.bf16 %v17443_v26  ;;  %17446 = vst [vmem:[#allocation215_spill] sm:$0xff] %v12340_v30 }
 0x207   :  { %6960 = vmatprep.mubr.msk.bf16.mxu0 %vm90_vm0, %v2692_v57  ;;  %v2627_v57 = vsel %vm2618_vm10, %v2562_v11, %v7804_v52  ;;  %v2628_v12 = vsel %vm2618_vm10, %v2563_v60, %v7805_v39  ;;  %v793_v20 = vrot.slane %v9389_v40, 2  ;;  %v7569_v62 = vunpack.i.l.bf16 %v17443_v26  ;;  %v17444_v52 = vld [vmem:[#allocation157_spill] sm:$0xff]  ;;  %v17445_v39 = vld [vmem:[#allocation158_spill] sm:$0xff]  ;;  %v12335_v40 = vld [vmem:[#allocation2 + $0x358] sm:$0x3]  ;;  %v12353_v45 = vpop.permute.xlu0 %7842 }
 0x208   :  { %v7730_v32 = vunpack.i.h.bf16 %v11961_v61  ;;  %v2694_v11 = vpack.c.bf16 %v17445_v39, %v17444_v52  ;;  %v12333_v60 = vld [vmem:[#allocation2 + $0x348] sm:$0xff]  ;;  %v7810_v28 = vunpack.i.h.bf16 %v12207_v24  ;;  %v7809_v58 = vunpack.i.l.bf16 %v12207_v24 }
 0x209   :  { %8137 = vrot.lane.b32.xlu1 %v17441_v38, %s9467_s24  ;;  %8132 = vrot.lane.b32.xlu0 %v17442_v15, %s9469_s7  ;;  %v7729_v38 = vunpack.i.l.bf16 %v11961_v61  ;;  %v12329_v15 = vpop.permute.xlu1 %7837  ;;  %v2691_v0 = vpack.c.bf16 %v2628_v12, %v2627_v57  ;;  %v7815_v26 = vunpack.i.h.bf16 %v12230_v4  ;;  %v7814_v61 = vunpack.i.l.bf16 %v12230_v4 }
 0x20a   :  { %v12348_v52 = vsel %vm608_vm4, %v791_v34, %v793_v20  ;;  %v807_v39 = vrot.slane %v12325_v1, 1  ;;  %v2434_v24 = vsel %vm2423_vm7, %v2369_v37, %v7569_v62  ;;  %v2435_v57 = vsel %vm2423_vm7, %v2370_v6, %v7570_v3  ;;  %v17451_v34 = vld [vmem:[#allocation242_spill] sm:$0xff] }
 0x20b   :  { %17448 = vst [vmem:[#allocation218_spill] sm:$0xff] %v12348_v52  ;;  %v806_v12 = vrot.slane %v12333_v60, 1  ;;  %v809_v4 = vrot.slane %v12335_v40, 1  ;;  %v7414_v20 = vunpack.i.l.bf16 %v17451_v34  ;;  %v2499_v42 = vsel %vm2488_vm8, %v2434_v24, %v7729_v38 }
 0x20c   :  { %v2500_v37 = vsel %vm2488_vm8, %v2435_v57, %v7730_v32  ;;  %v7415_v6 = vunpack.i.h.bf16 %v17451_v34  ;;  %v2564_v3 = vsel %vm2553_vm9, %v2499_v42, %v7809_v58  ;;  %v7735_v57 = vunpack.i.h.bf16 %v12008_v41  ;;  %v17454_v34 = vld [vmem:[#allocation163_spill] sm:$0xff] }
 0x20d   :  { %8147 = vrot.lane.b32.xlu1 %v17447_v48, %s9469_s7  ;;  %8142 = vrot.lane.b32.xlu0 %v8141_v36, %s9468_s1  ;;  %v17449_v48 = vunpack.i.h.bf16 %v17433_v55  ;;  %v2565_v62 = vsel %vm2553_vm9, %v2500_v37, %v7810_v28  ;;  %v8166_v55 = vpack.i.bf16 %v12348_v52, %v12340_v30  ;;  %v2629_v32 = vsel %vm2618_vm10, %v2564_v3, %v7814_v61  ;;  %v17455_v37 = vld [vmem:[#allocation164_spill] sm:$0xff] }
 0x20e   :  { %2980 = vmatmul.mubr.bf16.gmra.mxu0 %v2691_v0  ;;  %v12368_v0 = vpop.permute.xlu1 %7847  ;;  %v2630_v38 = vsel %vm2618_vm10, %v2565_v62, %v7815_v26  ;;  %v808_v28 = vsel %vm447_vm3, %v806_v12, %v807_v39  ;;  %v810_v58 = vsel %vm447_vm3, %v807_v39, %v809_v4  ;;  %v2696_v61 = vpack.c.bf16 %v17455_v37, %v17454_v34  ;;  %v17459_v34 = vld [vmem:[#allocation234_spill] sm:$0xff] }
 0x20f   :  { %v2307_v36 = vsel %vm2293_vm5, %v17450_v2, %v17449_v48  ;;  %6961 = vmatprep.mubr.msk.bf16.mxu0 %vm90_vm0, %v2694_v11  ;;  %v17452_v2 = vld [vmem:[#allocation179_spill] sm:$0xff]  ;;  %v17453_v11 = vld [vmem:[#allocation261_spill] sm:$0xff]  ;;  %v7734_v48 = vunpack.i.l.bf16 %v12008_v41  ;;  %v7820_v3 = vunpack.i.h.bf16 %v12255_v19  ;;  %v7819_v62 = vunpack.i.l.bf16 %v12255_v19  ;;  %v17456_v41 = vld [vmem:[#allocation140_spill] sm:$0xff] }
 0x210   :  { %v7575_v24 = vunpack.i.h.bf16 %v17453_v11  ;;  %v7574_v42 = vunpack.i.l.bf16 %v17453_v11  ;;  %v2372_v26 = vsel %vm2358_vm6, %v2307_v36, %v7415_v6  ;;  %v2693_v12 = vpack.c.bf16 %v2630_v38, %v2629_v32  ;;  %v17458_v38 = vld [vmem:[#allocation222_spill] sm:$0xff] }
 0x211   :  { %8157 = vrot.lane.b32.xlu1 %v8156_v22, %s9468_s1  ;;  %8152 = vrot.lane.b32.xlu0 %v17452_v2, %s9467_s24  ;;  %v2371_v22 = vsel %vm2358_vm6, %v12296_v31, %v7414_v20  ;;  %v12390_v2 = vpop.permute.xlu0 %7852  ;;  %v7825_v39 = vunpack.i.h.bf16 %v12277_v54  ;;  %v7824_v31 = vunpack.i.l.bf16 %v12277_v54  ;;  %v8171_v4 = vpack.i.bf16 %v12325_v1, %v12333_v60  ;;  %v17457_v20 = vld [vmem:[#allocation221_spill] sm:$0xff] }
 0x212   :  { %v8176_v36 = vpack.i.bf16 %v810_v58, %v808_v28  ;;  %v7190_v6 = vunpack.i.h.bf16 %v17457_v20  ;;  %v7189_v19 = vunpack.i.l.bf16 %v17457_v20  ;;  %v2436_v11 = vsel %vm2423_vm7, %v2371_v22, %v7574_v42  ;;  %v12407_v52 = vpop.permute.xlu1 %7857  ;;  %v17460_v22 = vld [vmem:[#allocation241_spill] sm:$0xff] }
 0x213   :  { %v2437_v32 = vsel %vm2423_vm7, %v2372_v26, %v7575_v24  ;;  %v7185_v54 = vunpack.i.h.bf16 %v17458_v38  ;;  %v2501_v37 = vsel %vm2488_vm8, %v2436_v11, %v7734_v48  ;;  %v7184_v28 = vunpack.i.l.bf16 %v17458_v38  ;;  %v17463_v38 = vld [vmem:[#allocation34_spill] sm:$0xff] }
 0x214   :  { %v7259_v58 = vunpack.i.l.bf16 %v17459_v34  ;;  %v2566_v42 = vsel %vm2553_vm9, %v2501_v37, %v7819_v62  ;;  %v7420_v26 = vunpack.i.h.bf16 %v17460_v22  ;;  %v12426_v62 = vsel %vm90_vm0, %v12094_v18, %v7189_v19 }
 0x215   :  { %8167 = vrot.lane.b32.xlu1 %v8166_v55, %s9467_s24  ;;  %8162 = vrot.lane.b32.xlu0 %v17456_v41, %s9469_s7  ;;  %v7260_v55 = vunpack.i.h.bf16 %v17459_v34  ;;  %v2502_v41 = vsel %vm2488_vm8, %v2437_v32, %v7735_v57  ;;  %v2631_v57 = vsel %vm2618_vm10, %v2566_v42, %v7824_v31  ;;  %v12430_v32 = vpop.permute.xlu0 %7862  ;;  %v7740_v31 = vunpack.i.h.bf16 %v12006_v53  ;;  %v17465_v34 = vld [vmem:[#allocation186_spill] sm:$0xff] }
 0x216   :  { %2988 = vmatmul.mubr.bf16.gmra.mxu0 %v2693_v12  ;;  %v2567_v24 = vsel %vm2553_vm9, %v2502_v41, %v7820_v3  ;;  %v7419_v12 = vunpack.i.l.bf16 %v17460_v22  ;;  %v17461_v3 = vld [vmem:[#allocation260_spill] sm:$0xff]  ;;  %v2308_v18 = vsel %vm2293_vm5, %v17465_v34, %v7259_v58  ;;  %v7830_v19 = vunpack.i.h.bf16 %v12289_v59 }
 0x217   :  { %6962 = vmatprep.mubr.msk.bf16.mxu0 %vm90_vm0, %v2696_v61  ;;  %v2632_v48 = vsel %vm2618_vm10, %v2567_v24, %v7825_v39  ;;  %v12422_v61 = vsel %vm90_vm0, %v12096_v56, %v7190_v6  ;;  %v7580_v20 = vunpack.i.h.bf16 %v17461_v3  ;;  %v7579_v11 = vunpack.i.l.bf16 %v17461_v3  ;;  %v17464_v56 = vld [vmem:[#allocation162_spill] sm:$0xff]  ;;  %v17470_v34 = vld [vmem:[#allocation224_spill] sm:$0xff] }
 0x218   :  { %v7739_v39 = vunpack.i.l.bf16 %v12006_v53  ;;  %v2698_v6 = vpack.c.bf16 %v17464_v56, %v17463_v38  ;;  %v7829_v37 = vunpack.i.l.bf16 %v12289_v59  ;;  %v2695_v41 = vpack.c.bf16 %v2632_v48, %v2631_v57  ;;  %v12446_v53 = vpop.permute.xlu1 %7867  ;;  %v17468_v48 = vld [vmem:[#allocation29_spill] sm:$0xff] }
 0x219   :  { %8172 = vrot.lane.b32.xlu0 %v8171_v4, %s9468_s1  ;;  %8177 = vrot.lane.b32.xlu1 %v8176_v36, %s9469_s7  ;;  %v17462_v4 = vld [vmem:[#allocation80_spill] sm:$0xff]  ;;  %v2373_v42 = vsel %vm2358_vm6, %v2308_v18, %v7419_v12  ;;  %v7834_v22 = vunpack.i.l.bf16 %v12305_v8  ;;  %v12450_v3 = vsel %vm90_vm0, %v12024_v25, %v7185_v54  ;;  %v12454_v58 = vsel %vm90_vm0, %v12022_v63, %v7184_v28  ;;  %v12465_v54 = vpop.permute.xlu0 %7872  ;;  %v17471_v18 = vld [vmem:[#allocation27_spill] sm:$0xff] }
 0x21a   :  { %v2309_v36 = vsel %vm2293_vm5, %v17462_v4, %v7260_v55  ;;  %v7835_v55 = vunpack.i.h.bf16 %v12305_v8  ;;  %17466 = vst [vmem:[#allocation90_spill] sm:$0xff] %v12450_v3  ;;  %v2438_v59 = vsel %vm2423_vm7, %v2373_v42, %v7579_v11  ;;  %v7264_v4 = vunpack.i.l.bf16 %v17468_v48  ;;  %v17469_v11 = vld [vmem:[#allocation244_spill] sm:$0xff]  ;;  %v17472_v42 = vld [vmem:[#allocation262_spill] sm:$0xff] }
 0x21b   :  { %v2374_v24 = vsel %vm2358_vm6, %v2309_v36, %v7420_v26  ;;  %v17467_v26 = vld [vmem:[#allocation223_spill] sm:$0xff]  ;;  %v2503_v8 = vsel %vm2488_vm8, %v2438_v59, %v7739_v39  ;;  %v7265_v63 = vunpack.i.h.bf16 %v17468_v48  ;;  %v7425_v38 = vunpack.i.h.bf16 %v17469_v11 }
 0x21c   :  { %v2439_v12 = vsel %vm2423_vm7, %v2374_v24, %v7580_v20  ;;  %v7200_v57 = vunpack.i.h.bf16 %v17467_v26  ;;  %v7199_v25 = vunpack.i.l.bf16 %v17467_v26  ;;  %v2568_v28 = vsel %vm2553_vm9, %v2503_v8, %v7829_v37  ;;  %v12481_v48 = vpop.permute.xlu1 %7877  ;;  %v17475_v8 = vld [vmem:[#allocation60_spill] sm:$0xff] }
 0x21d   :  { %v2504_v36 = vsel %vm2488_vm8, %v2439_v12, %v7740_v31  ;;  %v7424_v56 = vunpack.i.l.bf16 %v17469_v11  ;;  %v2633_v39 = vsel %vm2618_vm10, %v2568_v28, %v7834_v22  ;;  %v7585_v24 = vunpack.i.h.bf16 %v17472_v42  ;;  %v17473_v12 = vld [vmem:[#allocation193_spill] sm:$0xff]  ;;  %v17474_v22 = vld [vmem:[#allocation38_spill] sm:$0xff] }
 0x21e   :  { %2996 = vmatmul.mubr.bf16.gmra.mxu0 %v2695_v41  ;;  %v2569_v20 = vsel %vm2553_vm9, %v2504_v36, %v7830_v19  ;;  %v7270_v41 = vunpack.i.h.bf16 %v17471_v18  ;;  %v7584_v59 = vunpack.i.l.bf16 %v17472_v42  ;;  %v2310_v37 = vsel %vm2293_vm5, %v17473_v12, %v7264_v4  ;;  %v17476_v36 = vld [vmem:[#allocation188_spill] sm:$0xff] }
 0x21f   :  { %6963 = vmatprep.mubr.msk.bf16.mxu0 %vm90_vm0, %v2698_v6  ;;  %v2634_v31 = vsel %vm2618_vm10, %v2569_v20, %v7835_v55  ;;  %v7195_v6 = vunpack.i.h.bf16 %v17470_v34  ;;  %v7745_v19 = vunpack.i.h.bf16 %v12050_v29  ;;  %v7744_v26 = vunpack.i.l.bf16 %v12050_v29 }
 0x220   :  { %v2700_v55 = vpack.c.bf16 %v17475_v8, %v17474_v22  ;;  %v2311_v28 = vsel %vm2293_vm5, %v17476_v36, %v7265_v63  ;;  %v7840_v20 = vunpack.i.h.bf16 %v12329_v15  ;;  %v7839_v11 = vunpack.i.l.bf16 %v12329_v15  ;;  %v12497_v36 = vpop.permute.xlu0 %7882 }
 0x221   :  { %v2697_v42 = vpack.c.bf16 %v2634_v31, %v2633_v39  ;;  %v2375_v30 = vsel %vm2358_vm6, %v2310_v37, %v7424_v56  ;;  %v2376_v4 = vsel %vm2358_vm6, %v2311_v28, %v7425_v38  ;;  %v7845_v12 = vunpack.i.h.bf16 %v12353_v45  ;;  %v17478_v39 = vld [vmem:[#allocation198_spill] sm:$0xff] }
 0x222   :  { %v7844_v29 = vunpack.i.l.bf16 %v12353_v45  ;;  %v7269_v22 = vunpack.i.l.bf16 %v17471_v18  ;;  %v2440_v8 = vsel %vm2423_vm7, %v2375_v30, %v7584_v59  ;;  %v2441_v63 = vsel %vm2423_vm7, %v2376_v4, %v7585_v24  ;;  %v17479_v18 = vld [vmem:[#allocation243_spill] sm:$0xff]  ;;  %v12520_v24 = vpop.permute.xlu1 %7887  ;;  %v17483_v4 = vld [vmem:[#allocation165_spill] sm:$0xff] }
 0x223   :  { %v12501_v15 = vsel %vm90_vm0, %v12158_v13, %v7200_v57  ;;  %v12505_v38 = vsel %vm90_vm0, %v12156_v9, %v7199_v25  ;;  %v2505_v45 = vsel %vm2488_vm8, %v2440_v8, %v7744_v26  ;;  %v2506_v56 = vsel %vm2488_vm8, %v2441_v63, %v7745_v19  ;;  %v17480_v19 = vld [vmem:[#allocation197_spill] sm:$0xff]  ;;  %v17484_v8 = vld [vmem:[#allocation166_spill] sm:$0xff]  ;;  %v17485_v63 = vld [vmem:[#allocation28_spill] sm:$0xff] }
 0x224   :  { %v12512_v30 = vsel %vm90_vm0, %v12107_v51, %v7195_v6  ;;  %v2313_v31 = vsel %vm2293_vm5, %v17478_v39, %v7270_v41  ;;  %v2570_v13 = vsel %vm2553_vm9, %v2505_v45, %v7839_v11  ;;  %v2571_v57 = vsel %vm2553_vm9, %v2506_v56, %v7840_v20  ;;  %v17481_v6 = vld [vmem:[#allocation31_spill] sm:$0xff]  ;;  %v17482_v41 = vld [vmem:[#allocation69_spill] sm:$0xff]  ;;  %v12537_v56 = vpop.permute.xlu0 %7892 }
 0x225   :  { %17477 = vst [vmem:[#allocation217_spill] sm:$0xff] %v12512_v30  ;;  %v7430_v9 = vunpack.i.h.bf16 %v17479_v18  ;;  %v7429_v25 = vunpack.i.l.bf16 %v17479_v18  ;;  %v2635_v59 = vsel %vm2618_vm10, %v2570_v13, %v7844_v29  ;;  %v2636_v37 = vsel %vm2618_vm10, %v2571_v57, %v7845_v12 }
 0x226   :  { %3004 = vmatmul.mubr.bf16.gmra.mxu0 %v2697_v42  ;;  %v2312_v51 = vsel %vm2293_vm5, %v17480_v19, %v7269_v22  ;;  %v7280_v26 = vunpack.i.h.bf16 %v17481_v6  ;;  %v7589_v28 = vunpack.i.l.bf16 %v17482_v41  ;;  %v7279_v20 = vunpack.i.l.bf16 %v17481_v6  ;;  %v17486_v19 = vld [vmem:[#allocation194_spill] sm:$0xff] }
 0x227   :  { %6964 = vmatprep.mubr.msk.bf16.mxu0 %vm90_vm0, %v2700_v55  ;;  %v7590_v55 = vunpack.i.h.bf16 %v17482_v41  ;;  %v7750_v11 = vunpack.i.h.bf16 %v12048_v43  ;;  %v7749_v42 = vunpack.i.l.bf16 %v12048_v43  ;;  %v2702_v29 = vpack.c.bf16 %v17484_v8, %v17483_v4 }
 0x228   :  { %v7274_v12 = vunpack.i.l.bf16 %v17485_v63  ;;  %v7850_v45 = vunpack.i.h.bf16 %v12368_v0  ;;  %v7849_v22 = vunpack.i.l.bf16 %v12368_v0  ;;  %v2699_v39 = vpack.c.bf16 %v2636_v37, %v2635_v59  ;;  %v17487_v59 = vld [vmem:[#allocation190_spill] sm:$0xff] }
 0x229   :  { %v2377_v13 = vsel %vm2358_vm6, %v2312_v51, %v7429_v25  ;;  %v2378_v57 = vsel %vm2358_vm6, %v2313_v31, %v7430_v9  ;;  %v7855_v18 = vunpack.i.h.bf16 %v12390_v2  ;;  %v7854_v43 = vunpack.i.l.bf16 %v12390_v2  ;;  %v17488_v37 = vld [vmem:[#allocation246_spill] sm:$0xff]  ;;  %v12555_v51 = vpop.permute.xlu1 %7897 }
 0x22a   :  { %v12545_v6 = vsel %vm2293_vm5, %v17486_v19, %v7280_v26  ;;  %v7275_v41 = vunpack.i.h.bf16 %v17485_v63  ;;  %v2442_v4 = vsel %vm2423_vm7, %v2377_v13, %v7589_v28  ;;  %v2443_v0 = vsel %vm2423_vm7, %v2378_v57, %v7590_v55  ;;  %v17489_v26 = vld [vmem:[#allocation189_spill] sm:$0xff]  ;;  %v17491_v57 = vld [vmem:[#allocation102_spill] sm:$0xff] }
 0x22b   :  { %v2316_v25 = vsel %vm2293_vm5, %v17487_v59, %v7279_v20  ;;  %v7434_v31 = vunpack.i.l.bf16 %v17488_v37  ;;  %v2507_v9 = vsel %vm2488_vm8, %v2442_v4, %v7749_v42  ;;  %v2508_v2 = vsel %vm2488_vm8, %v2443_v0, %v7750_v11  ;;  %v17490_v20 = vld [vmem:[#allocation264_spill] sm:$0xff]  ;;  %v17492_v19 = vld [vmem:[#allocation30_spill] sm:$0xff]  ;;  %v17496_v4 = vld [vmem:[#allocation263_spill] sm:$0xff] }
 0x22c   :  { %v2314_v8 = vsel %vm2293_vm5, %v17489_v26, %v7274_v12  ;;  %v7435_v28 = vunpack.i.h.bf16 %v17488_v37  ;;  %v2572_v55 = vsel %vm2553_vm9, %v2507_v9, %v7849_v22  ;;  %v2573_v63 = vsel %vm2553_vm9, %v2508_v2, %v7850_v45  ;;  %v12572_v22 = vpop.permute.xlu0 %7902  ;;  %v17493_v45 = vld [vmem:[#allocation245_spill] sm:$0xff]  ;;  %v17495_v2 = vld [vmem:[#allocation67_spill] sm:$0xff] }
 0x22d   :  { %v7594_v13 = vunpack.i.l.bf16 %v17490_v20  ;;  %v2637_v42 = vsel %vm2618_vm10, %v2572_v55, %v7854_v43  ;;  %v2638_v11 = vsel %vm2618_vm10, %v2573_v63, %v7855_v18  ;;  %v7755_v12 = vunpack.i.h.bf16 %v12085_v49  ;;  %v17494_v43 = vld [vmem:[#allocation169_spill] sm:$0xff] }
 0x22e   :  { %3012 = vmatmul.mubr.bf16.gmra.mxu0 %v2699_v39  ;;  %v7595_v39 = vunpack.i.h.bf16 %v17490_v20  ;;  %v7754_v0 = vunpack.i.l.bf16 %v12085_v49  ;;  %v7440_v59 = vunpack.i.h.bf16 %v17493_v45  ;;  %v2379_v37 = vsel %vm2358_vm6, %v2314_v8, %v7434_v31  ;;  %v12586_v8 = vpop.permute.xlu1 %7907 }
 0x22f   :  { %6965 = vmatprep.mubr.msk.bf16.mxu0 %vm90_vm0, %v2702_v29  ;;  %v2315_v29 = vsel %vm2293_vm5, %v17491_v57, %v7275_v41  ;;  %v7859_v9 = vunpack.i.l.bf16 %v12407_v52  ;;  %v2704_v18 = vpack.c.bf16 %v17495_v2, %v17494_v43  ;;  %v7860_v41 = vunpack.i.h.bf16 %v12407_v52 }
 0x230   :  { %v2380_v26 = vsel %vm2358_vm6, %v2315_v29, %v7435_v28  ;;  %v7864_v55 = vunpack.i.l.bf16 %v12430_v32  ;;  %v2701_v63 = vpack.c.bf16 %v2638_v11, %v2637_v42  ;;  %v7439_v49 = vunpack.i.l.bf16 %v17493_v45  ;;  %v3461_v42 = vld [vmem:[#allocation2] sm:$0xff]  ;;  %v3462_v11 = vld [vmem:[#allocation2 + $0x8] sm:$0xff]  ;;  %v3463_v29 = vld [vmem:[#allocation2 + $0x10] sm:$0x3] }
 0x231   :  { %v2444_v20 = vsel %vm2423_vm7, %v2379_v37, %v7594_v13  ;;  %v2445_v57 = vsel %vm2423_vm7, %v2380_v26, %v7595_v39  ;;  %v7865_v31 = vunpack.i.h.bf16 %v12430_v32  ;;  %v7600_v3 = vunpack.i.h.bf16 %v17496_v4 }
 0x232   :  { %v7599_v43 = vunpack.i.l.bf16 %v17496_v4  ;;  %v2509_v28 = vsel %vm2488_vm8, %v2444_v20, %v7754_v0  ;;  %v2510_v52 = vsel %vm2488_vm8, %v2445_v57, %v7755_v12  ;;  %v3665_v13 = vrot.slane %v3461_v42, 1  ;;  %v12596_v4 = vpop.permute.xlu0 %7912 }
 0x233   :  { %v2574_v39 = vsel %vm2553_vm9, %v2509_v28, %v7859_v9  ;;  %v3666_v32 = vrot.slane %v3462_v11, 1  ;;  %v3668_v45 = vrot.slane %v3463_v29, 1  ;;  %v7870_v37 = vunpack.i.h.bf16 %v12446_v53 }
 0x234   :  { %v7869_v2 = vunpack.i.l.bf16 %v12446_v53  ;;  %v2575_v0 = vsel %vm2553_vm9, %v2510_v52, %v7860_v41  ;;  %v2639_v12 = vsel %vm2618_vm10, %v2574_v39, %v7864_v55  ;;  %v7874_v26 = vunpack.i.l.bf16 %v12465_v54  ;;  %v12609_v55 = vpop.permute.xlu1 %7917  ;;  %v17497_v52 = vld [vmem:[#allocation167_spill] sm:$0xff]  ;;  %v17498_v39 = vld [vmem:[#allocation168_spill] sm:$0xff] }
 0x235   :  { %v3669_v9 = vsel %vm447_vm3, %v3666_v32, %v3668_v45  ;;  %v2381_v20 = vsel %vm2358_vm6, %v2316_v25, %v7439_v49  ;;  %v7875_v57 = vunpack.i.h.bf16 %v12465_v54  ;;  %v3825_v53 = vrot.slane %v3461_v42, 2  ;;  %v17499_v45 = vld [vmem:[#allocation156_spill] sm:$0xff] }
 0x236   :  { %3020 = vmatmul.mubr.bf16.gmra.mxu0 %v2701_v63  ;;  %v2640_v63 = vsel %vm2618_vm10, %v2575_v0, %v7865_v31  ;;  %v2382_v30 = vsel %vm2358_vm6, %v12545_v6, %v7440_v59  ;;  %v2446_v41 = vsel %vm2423_vm7, %v2381_v20, %v7599_v43  ;;  %v2706_v31 = vpack.c.bf16 %v17498_v39, %v17497_v52 }
 0x237   :  { %6966 = vmatprep.mubr.msk.bf16.mxu0 %vm90_vm0, %v2704_v18  ;;  %v3667_v18 = vsel %vm447_vm3, %v3665_v13, %v3666_v32  ;;  %v3826_v0 = vrot.slane %v3462_v11, 2  ;;  %v2447_v13 = vsel %vm2423_vm7, %v2382_v30, %v7600_v3  ;;  %v2511_v32 = vsel %vm2488_vm8, %v2446_v41, %v7869_v2 }
 0x238   :  { %v8181_v28 = vpack.i.bf16 %v3669_v9, %v3667_v18  ;;  %v7879_v25 = vunpack.i.l.bf16 %v12481_v48  ;;  %v2703_v54 = vpack.c.bf16 %v2640_v63, %v2639_v12  ;;  %v2512_v49 = vsel %vm2488_vm8, %v2447_v13, %v7870_v37  ;;  %v12622_v18 = vpop.permute.xlu0 %7922  ;;  %v17502_v63 = vld [vmem:[#allocation225_spill] sm:$0xff]  ;;  %v12645_v41 = vpop.permute.xlu1 %7927 }
 0x239   :  { %v7880_v6 = vunpack.i.h.bf16 %v12481_v48  ;;  %v2576_v59 = vsel %vm2553_vm9, %v2511_v32, %v7874_v26  ;;  %v3828_v43 = vrot.slane %v3463_v29, 2  ;;  %v7285_v42 = vunpack.i.h.bf16 %v17492_v19  ;;  %v17501_v29 = vld [vmem:[#allocation265_spill] sm:$0xff]  ;;  %v17505_v32 = vld [vmem:[#allocation42_spill] sm:$0xff] }
 0x23a   :  { %8182 = vrot.lane.b32.xlu0 %v8181_v28, %s9462_s19  ;;  %v7444_v11 = vunpack.i.l.bf16 %v17499_v45  ;;  %v2577_v3 = vsel %vm2553_vm9, %v2512_v49, %v7875_v57  ;;  %v3827_v30 = vsel %vm608_vm4, %v3825_v53, %v3826_v0  ;;  %v17500_v2 = vunpack.i.l.bf16 %v17470_v34  ;;  %v17506_v49 = vld [vmem:[#allocation72_spill] sm:$0xff] }
 0x23b   :  { %v7445_v48 = vunpack.i.h.bf16 %v17499_v45  ;;  %v7604_v12 = vunpack.i.l.bf16 %v17501_v29  ;;  %v3829_v26 = vsel %vm608_vm4, %v3826_v0, %v3828_v43  ;;  %v7210_v9 = vunpack.i.h.bf16 %v17502_v63  ;;  %v17504_v0 = vld [vmem:[#allocation226_spill] sm:$0xff] }
 0x23c   :  { %v12630_v37 = vsel %vm90_vm0, %v12105_v21, %v17500_v2  ;;  %v17503_v20 = vunpack.i.l.bf16 %v17492_v19  ;;  %v7605_v34 = vunpack.i.h.bf16 %v17501_v29  ;;  %v2641_v21 = vsel %vm2618_vm10, %v2576_v59, %v7879_v25  ;;  %v17507_v59 = vld [vmem:[#allocation170_spill] sm:$0xff] }
 0x23d   :  { %v7885_v28 = vunpack.i.h.bf16 %v12497_v36  ;;  %v7884_v53 = vunpack.i.l.bf16 %v12497_v36  ;;  %v2642_v52 = vsel %vm2618_vm10, %v2577_v3, %v7880_v6  ;;  %v8186_v39 = vpack.i.bf16 %v3829_v26, %v3827_v30 }
 0x23e   :  { %3028 = vmatmul.mubr.bf16.gmra.mxu0 %v2703_v54  ;;  %v2318_v57 = vsel %vm2293_vm5, %v11953_v33, %v17503_v20  ;;  %v7205_v19 = vunpack.i.h.bf16 %v17504_v0  ;;  %v2319_v33 = vsel %vm2293_vm5, %v11947_v47, %v7285_v42  ;;  %v7290_v25 = vunpack.i.h.bf16 %v17505_v32  ;;  %v12662_v47 = vpop.permute.xlu0 %7932  ;;  %v17508_v20 = vld [vmem:[#allocation33_spill] sm:$0xff] }
 0x23f   :  { %6967 = vmatprep.mubr.msk.bf16.mxu0 %vm90_vm0, %v2706_v31  ;;  %v7209_v31 = vunpack.i.l.bf16 %v17502_v63  ;;  %v2383_v13 = vsel %vm2358_vm6, %v2318_v57, %v7444_v11  ;;  %v2384_v54 = vsel %vm2358_vm6, %v2319_v33, %v7445_v48  ;;  %v2708_v43 = vpack.c.bf16 %v17507_v59, %v17506_v49  ;;  %8187 = vrot.lane.b32.xlu1 %v8186_v39, %s9463_s0  ;;  %v17512_v49 = vld [vmem:[#allocation70_spill] sm:$0xff]  ;;  %v17513_v59 = vld [vmem:[#allocation71_spill] sm:$0xff] }
 0x240   :  { %v2448_v36 = vsel %vm2423_vm7, %v2383_v13, %v7604_v12  ;;  %v2449_v6 = vsel %vm2423_vm7, %v2384_v54, %v7605_v34  ;;  %v7890_v45 = vunpack.i.h.bf16 %v12520_v24  ;;  %v7889_v3 = vunpack.i.l.bf16 %v12520_v24 }
 0x241   :  { %v2705_v42 = vpack.c.bf16 %v2642_v52, %v2641_v21  ;;  %v2513_v11 = vsel %vm2488_vm8, %v2448_v36, %v7884_v53  ;;  %v2514_v30 = vsel %vm2488_vm8, %v2449_v6, %v7885_v28  ;;  %v7895_v2 = vunpack.i.h.bf16 %v12537_v56  ;;  %v17514_v6 = vld [vmem:[#allocation32_spill] sm:$0xff] }
 0x242   :  { %v7894_v48 = vunpack.i.l.bf16 %v12537_v56  ;;  %v12670_v29 = vsel %vm90_vm0, %v12240_v5, %v7210_v9  ;;  %v12674_v12 = vsel %vm90_vm0, %v12238_v27, %v7209_v31  ;;  %v7204_v24 = vunpack.i.l.bf16 %v17504_v0  ;;  %v12686_v9 = vpop.permute.xlu1 %7937  ;;  %v17509_v27 = vld [vmem:[#allocation68_spill] sm:$0xff] }
 0x243   :  { %v7289_v26 = vunpack.i.l.bf16 %v17505_v32  ;;  %v12680_v63 = vsel %vm90_vm0, %v12187_v50, %v7205_v19  ;;  %v2321_v56 = vsel %vm2293_vm5, %v11935_v23, %v7290_v25  ;;  %v7450_v57 = vunpack.i.h.bf16 %v17508_v20  ;;  %v17510_v31 = vld [vmem:[#allocation204_spill] sm:$0xff]  ;;  %v17511_v19 = vld [vmem:[#allocation37_spill] sm:$0xff]  ;;  %v12702_v25 = vpop.permute.xlu0 %7942 }
 0x244   :  { %v7449_v5 = vunpack.i.l.bf16 %v17508_v20  ;;  %v7610_v34 = vunpack.i.h.bf16 %v17509_v27  ;;  %v7609_v21 = vunpack.i.l.bf16 %v17509_v27  ;;  %v2578_v28 = vsel %vm2553_vm9, %v2513_v11, %v7889_v3  ;;  %v17515_v20 = vld [vmem:[#allocation266_spill] sm:$0xff] }
 0x245   :  { %v2579_v50 = vsel %vm2553_vm9, %v2514_v30, %v7890_v45  ;;  %v7900_v53 = vunpack.i.h.bf16 %v12555_v51  ;;  %v7899_v23 = vunpack.i.l.bf16 %v12555_v51  ;;  %v2643_v52 = vsel %vm2618_vm10, %v2578_v28, %v7894_v48 }
 0x246   :  { %3036 = vmatmul.mubr.bf16.gmra.mxu0 %v2705_v42  ;;  %v2644_v39 = vsel %vm2618_vm10, %v2579_v50, %v7895_v2  ;;  %v2320_v0 = vsel %vm2293_vm5, %v17510_v31, %v7289_v26  ;;  %v7295_v33 = vunpack.i.h.bf16 %v17511_v19  ;;  %v7905_v13 = vunpack.i.h.bf16 %v12572_v22  ;;  %v12716_v26 = vpop.permute.xlu1 %7947 }
 0x247   :  { %6968 = vmatprep.mubr.msk.bf16.mxu0 %vm90_vm0, %v2708_v43  ;;  %v7904_v32 = vunpack.i.l.bf16 %v12572_v22  ;;  %v7294_v54 = vunpack.i.l.bf16 %v17511_v19  ;;  %v2385_v36 = vsel %vm2358_vm6, %v2320_v0, %v7449_v5  ;;  %v2386_v51 = vsel %vm2358_vm6, %v2321_v56, %v7450_v57 }
 0x248   :  { %v2710_v43 = vpack.c.bf16 %v17513_v59, %v17512_v49  ;;  %v7454_v45 = vunpack.i.l.bf16 %v17514_v6  ;;  %v2450_v3 = vsel %vm2423_vm7, %v2385_v36, %v7609_v21  ;;  %v2451_v42 = vsel %vm2423_vm7, %v2386_v51, %v7610_v34  ;;  %v17516_v21 = vld [vmem:[#allocation227_spill] sm:$0xff]  ;;  %v17520_v59 = vld [vmem:[#allocation268_spill] sm:$0xff] }
 0x249   :  { %v2707_v11 = vpack.c.bf16 %v2644_v39, %v2643_v52  ;;  %v2515_v22 = vsel %vm2488_vm8, %v2450_v3, %v7899_v23  ;;  %v2516_v30 = vsel %vm2488_vm8, %v2451_v42, %v7900_v53  ;;  %v7910_v2 = vunpack.i.h.bf16 %v12586_v8  ;;  %v17517_v23 = vld [vmem:[#allocation228_spill] sm:$0xff]  ;;  %v17519_v49 = vld [vmem:[#allocation267_spill] sm:$0xff] }
 0x24a   :  { %v7909_v48 = vunpack.i.l.bf16 %v12586_v8  ;;  %v7455_v56 = vunpack.i.h.bf16 %v17514_v6  ;;  %v7614_v57 = vunpack.i.l.bf16 %v17515_v20  ;;  %v2580_v5 = vsel %vm2553_vm9, %v2515_v22, %v7904_v32  ;;  %v17518_v32 = vld [vmem:[#allocation51_spill] sm:$0xff]  ;;  %v12747_v51 = vpop.permute.xlu1 %7957 }
 0x24b   :  { %v2581_v27 = vsel %vm2553_vm9, %v2516_v30, %v7905_v13  ;;  %v12724_v34 = vsel %vm90_vm0, %v12185_v46, %v7204_v24  ;;  %v7220_v28 = vunpack.i.h.bf16 %v17516_v21  ;;  %v2322_v8 = vsel %vm2293_vm5, %v11975_v16, %v7294_v54  ;;  %v12736_v46 = vpop.permute.xlu0 %7952  ;;  %v9392_v30 = vld [vmem:[#allocation2 + $0x1a8] sm:$0x3] }
 0x24c   :  { %v7615_v50 = vunpack.i.h.bf16 %v17515_v20  ;;  %v7219_v53 = vunpack.i.l.bf16 %v17516_v21  ;;  %v7215_v52 = vunpack.i.h.bf16 %v17517_v23  ;;  %v2323_v39 = vsel %vm2293_vm5, %v11971_v35, %v7295_v33 }
 0x24d   :  { %v2387_v31 = vsel %vm2358_vm6, %v2322_v8, %v7454_v45  ;;  %v7915_v24 = vunpack.i.h.bf16 %v12596_v4  ;;  %v7914_v0 = vunpack.i.l.bf16 %v12596_v4  ;;  %v2645_v16 = vsel %vm2618_vm10, %v2580_v5, %v7909_v48  ;;  %v9390_v4 = vld [vmem:[#allocation2 + $0x198] sm:$0xff]  ;;  %v9391_v45 = vld [vmem:[#allocation2 + $0x1a0] sm:$0xff] }
 0x24e   :  { %3044 = vmatmul.mubr.bf16.gmra.mxu0 %v2707_v11  ;;  %v2646_v19 = vsel %vm2618_vm10, %v2581_v27, %v7910_v2  ;;  %v7214_v13 = vunpack.i.l.bf16 %v17517_v23  ;;  %v7300_v54 = vunpack.i.h.bf16 %v17518_v32  ;;  %v2388_v36 = vsel %vm2358_vm6, %v2323_v39, %v7455_v56  ;;  %v17522_v39 = vld [vmem:[#allocation62_spill] sm:$0xff] }
 0x24f   :  { %6969 = vmatprep.mubr.msk.bf16.mxu0 %vm90_vm0, %v2710_v43  ;;  %v2452_v35 = vsel %vm2423_vm7, %v2387_v31, %v7614_v57  ;;  %v2453_v33 = vsel %vm2423_vm7, %v2388_v36, %v7615_v50  ;;  %v2712_v43 = vpack.c.bf16 %v17520_v59, %v17519_v49  ;;  %v811_v6 = vrot.slane %v9390_v4, 2  ;;  %v12768_v50 = vpop.permute.xlu0 %7962  ;;  %v17524_v49 = vld [vmem:[#allocation50_spill] sm:$0xff] }
 0x250   :  { %v812_v3 = vrot.slane %v9391_v45, 2  ;;  %v7920_v42 = vunpack.i.h.bf16 %v12609_v55  ;;  %v7919_v11 = vunpack.i.l.bf16 %v12609_v55  ;;  %v2709_v22 = vpack.c.bf16 %v2646_v19, %v2645_v16  ;;  %v17521_v55 = vld [vmem:[#allocation199_spill] sm:$0xff] }
 0x251   :  { %v814_v2 = vrot.slane %v9392_v30, 2  ;;  %v2517_v48 = vsel %vm2488_vm8, %v2452_v35, %v7914_v0  ;;  %v2518_v56 = vsel %vm2488_vm8, %v2453_v33, %v7915_v24  ;;  %v7925_v20 = vunpack.i.h.bf16 %v12622_v18  ;;  %v17523_v24 = vld [vmem:[#allocation48_spill] sm:$0xff] }
 0x252   :  { %v7924_v57 = vunpack.i.l.bf16 %v12622_v18  ;;  %v12759_v5 = vsel %vm90_vm0, %v12315_v14, %v7220_v28  ;;  %v12763_v27 = vsel %vm90_vm0, %v12313_v10, %v7219_v53  ;;  %v2325_v21 = vsel %vm2293_vm5, %v17521_v55, %v7300_v54  ;;  %v12781_v54 = vpop.permute.xlu1 %7967  ;;  %v17526_v55 = vld [vmem:[#allocation270_spill] sm:$0xff] }
 0x253   :  { %v7299_v8 = vunpack.i.l.bf16 %v17518_v32  ;;  %v7460_v31 = vunpack.i.h.bf16 %v17522_v39  ;;  %v7459_v18 = vunpack.i.l.bf16 %v17522_v39  ;;  %v7620_v0 = vunpack.i.h.bf16 %v17523_v24 }
 0x254   :  { %v7619_v14 = vunpack.i.l.bf16 %v17523_v24  ;;  %v2582_v10 = vsel %vm2553_vm9, %v2517_v48, %v7919_v11  ;;  %v2583_v28 = vsel %vm2553_vm9, %v2518_v56, %v7920_v42  ;;  %v813_v53 = vsel %vm608_vm4, %v811_v6, %v812_v3  ;;  %v17525_v42 = vld [vmem:[#allocation151_spill] sm:$0xff] }
 0x255   :  { %v815_v16 = vsel %vm608_vm4, %v812_v3, %v814_v2  ;;  %v7930_v19 = vunpack.i.h.bf16 %v12645_v41  ;;  %v7929_v32 = vunpack.i.l.bf16 %v12645_v41  ;;  %v2647_v36 = vsel %vm2618_vm10, %v2582_v10, %v7924_v57  ;;  %v17528_v10 = vld [vmem:[#allocation200_spill] sm:$0xff] }
 0x256   :  { %3052 = vmatmul.mubr.bf16.gmra.mxu0 %v2709_v22  ;;  %v2648_v35 = vsel %vm2618_vm10, %v2583_v28, %v7925_v20  ;;  %v2324_v33 = vsel %vm2293_vm5, %v11967_v44, %v7299_v8  ;;  %v7305_v59 = vunpack.i.h.bf16 %v17524_v49  ;;  %v7934_v4 = vunpack.i.l.bf16 %v12662_v47  ;;  %v12796_v44 = vpop.permute.xlu0 %7972 }
 0x257   :  { %6970 = vmatprep.mubr.msk.bf16.mxu0 %vm90_vm0, %v2712_v43  ;;  %v7935_v43 = vunpack.i.h.bf16 %v12662_v47  ;;  %v7304_v6 = vunpack.i.l.bf16 %v17524_v49  ;;  %v2389_v45 = vsel %vm2358_vm6, %v2324_v33, %v7459_v18  ;;  %v2390_v41 = vsel %vm2358_vm6, %v2325_v21, %v7460_v31  ;;  %v17527_v18 = vld [vmem:[#allocation195_spill] sm:$0xff] }
 0x258   :  { %v2714_v3 = vpack.c.bf16 %v815_v16, %v813_v53  ;;  %v7464_v11 = vunpack.i.l.bf16 %v17525_v42  ;;  %v2454_v22 = vsel %vm2423_vm7, %v2389_v45, %v7619_v14  ;;  %v2455_v30 = vsel %vm2423_vm7, %v2390_v41, %v7620_v0  ;;  %v12821_v14 = vpop.permute.xlu1 %7977 }
 0x259   :  { %v2711_v2 = vpack.c.bf16 %v2648_v35, %v2647_v36  ;;  %v2519_v48 = vsel %vm2488_vm8, %v2454_v22, %v7929_v32  ;;  %v2520_v47 = vsel %vm2488_vm8, %v2455_v30, %v7930_v19  ;;  %v7940_v56 = vunpack.i.h.bf16 %v12686_v9  ;;  %v17529_v19 = vld [vmem:[#allocation66_spill] sm:$0xff] }
 0x25a   :  { %v7939_v20 = vunpack.i.l.bf16 %v12686_v9  ;;  %v7465_v57 = vunpack.i.h.bf16 %v17525_v42  ;;  %v7624_v21 = vunpack.i.l.bf16 %v17526_v55  ;;  %v2584_v8 = vsel %vm2553_vm9, %v2519_v48, %v7934_v4  ;;  %v12837_v49 = vpop.permute.xlu0 %7982  ;;  %v17533_v48 = vld [vmem:[#allocation196_spill] sm:$0xff] }
 0x25b   :  { %v2585_v39 = vsel %vm2553_vm9, %v2520_v47, %v7935_v43  ;;  %v12810_v31 = vsel %vm90_vm0, %v12261_v17, %v7215_v52  ;;  %v12816_v9 = vsel %vm90_vm0, %v12259_v7, %v7214_v13  ;;  %v2326_v24 = vsel %vm2293_vm5, %v17527_v18, %v7304_v6 }
 0x25c   :  { %v7625_v0 = vunpack.i.h.bf16 %v17526_v55  ;;  %v2327_v28 = vsel %vm2293_vm5, %v17528_v10, %v7305_v59  ;;  %v2391_v17 = vsel %vm2358_vm6, %v2326_v24, %v7464_v11  ;;  %v7945_v23 = vunpack.i.h.bf16 %v12702_v25  ;;  %v17530_v59 = vld [vmem:[#allocation77_spill] sm:$0xff]  ;;  %v12849_v22 = vpop.permute.xlu1 %7987 }
 0x25d   :  { %v7944_v52 = vunpack.i.l.bf16 %v12702_v25  ;;  %v817_v7 = vrot.slane %v12325_v1, 2  ;;  %v816_v13 = vrot.slane %v12333_v60, 2  ;;  %v2649_v53 = vsel %vm2618_vm10, %v2584_v8, %v7939_v20  ;;  %v17531_v60 = vld [vmem:[#allocation78_spill] sm:$0xff]  ;;  %v17537_v24 = vld [vmem:[#allocation269_spill] sm:$0xff] }
 0x25e   :  { %3060 = vmatmul.mubr.bf16.gmra.mxu0 %v2711_v2  ;;  %v2650_v16 = vsel %vm2618_vm10, %v2585_v39, %v7940_v56  ;;  %v7310_v32 = vunpack.i.h.bf16 %v17529_v19  ;;  %v7309_v36 = vunpack.i.l.bf16 %v17529_v19  ;;  %v2392_v35 = vsel %vm2358_vm6, %v2327_v28, %v7465_v57  ;;  %v17534_v56 = vld [vmem:[#allocation74_spill] sm:$0xff]  ;;  %v12871_v28 = vpop.permute.xlu0 %7992 }
 0x25f   :  { %6971 = vmatprep.mubr.msk.bf16.mxu0 %vm90_vm0, %v2714_v3  ;;  %v2456_v33 = vsel %vm2423_vm7, %v2391_v17, %v7624_v21  ;;  %v2457_v25 = vsel %vm2423_vm7, %v2392_v35, %v7625_v0  ;;  %v7950_v1 = vunpack.i.h.bf16 %v12716_v26  ;;  %v2716_v43 = vpack.c.bf16 %v17531_v60, %v17530_v59  ;;  %v17536_v21 = vld [vmem:[#allocation150_spill] sm:$0xff]  ;;  %v17540_v60 = vld [vmem:[#allocation75_spill] sm:$0xff] }
 0x260   :  { %v819_v4 = vrot.slane %v12335_v40, 2  ;;  %v7949_v6 = vunpack.i.l.bf16 %v12716_v26  ;;  %v2521_v45 = vsel %vm2488_vm8, %v2456_v33, %v7944_v52  ;;  %v2522_v41 = vsel %vm2488_vm8, %v2457_v25, %v7945_v23  ;;  %v17532_v40 = vld [vmem:[#allocation203_spill] sm:$0xff]  ;;  %v17539_v33 = vld [vmem:[#allocation209_spill] sm:$0xff]  ;;  %v12892_v59 = vpop.permute.xlu1 %7997 }
 0x261   :  { %v2713_v3 = vpack.c.bf16 %v2650_v16, %v2649_v53  ;;  %v7955_v42 = vunpack.i.h.bf16 %v12736_v46  ;;  %v7954_v11 = vunpack.i.l.bf16 %v12736_v46  ;;  %v12852_v30 = vsel %vm608_vm4, %v816_v13, %v817_v7  ;;  %v17535_v46 = vld [vmem:[#allocation65_spill] sm:$0xff]  ;;  %v17538_v16 = vld [vmem:[#allocation210_spill] sm:$0xff] }
 0x262   :  { %v12855_v2 = vsel %vm608_vm4, %v817_v7, %v819_v4  ;;  %v2329_v26 = vsel %vm2293_vm5, %v17532_v40, %v7310_v32  ;;  %v2328_v47 = vsel %vm2293_vm5, %v17533_v48, %v7309_v36  ;;  %v7320_v20 = vunpack.i.h.bf16 %v17534_v56 }
 0x263   :  { %v7319_v57 = vunpack.i.l.bf16 %v17534_v56  ;;  %v7315_v55 = vunpack.i.h.bf16 %v17535_v46  ;;  %v7470_v8 = vunpack.i.h.bf16 %v17536_v21  ;;  %v7469_v39 = vunpack.i.l.bf16 %v17536_v21  ;;  %v17544_v21 = vld [vmem:[#allocation201_spill] sm:$0xff] }
 0x264   :  { %v2746_v18 = vpack.c.bf16 %v12855_v2, %v12852_v30  ;;  %v7630_v0 = vunpack.i.h.bf16 %v17537_v24  ;;  %v7629_v10 = vunpack.i.l.bf16 %v17537_v24  ;;  %v2586_v17 = vsel %vm2553_vm9, %v2521_v45, %v7949_v6  ;;  %v17542_v6 = vld [vmem:[#allocation86_spill] sm:$0xff] }
 0x265   :  { %v2587_v23 = vsel %vm2553_vm9, %v2522_v41, %v7950_v1  ;;  %v7960_v52 = vunpack.i.h.bf16 %v12747_v51  ;;  %v7959_v7 = vunpack.i.l.bf16 %v12747_v51  ;;  %v2651_v13 = vsel %vm2618_vm10, %v2586_v17, %v7954_v11  ;;  %v17547_v17 = vld [vmem:[#allocation205_spill] sm:$0xff] }
 0x266   :  { %3068 = vmatmul.mubr.bf16.gmra.mxu0 %v2713_v3  ;;  %v2652_v53 = vsel %vm2618_vm10, %v2587_v23, %v7955_v42  ;;  %v12881_v19 = vsel %vm2293_vm5, %v17538_v16, %v7320_v20  ;;  %v7314_v32 = vunpack.i.l.bf16 %v17535_v46  ;;  %v7965_v36 = vunpack.i.h.bf16 %v12768_v50  ;;  %v12905_v20 = vpop.permute.xlu0 %8002 }
 0x267   :  { %6972 = vmatprep.mubr.msk.bf16.mxu0 %vm90_vm0, %v2716_v43  ;;  %v7964_v35 = vunpack.i.l.bf16 %v12768_v50  ;;  %v12888_v25 = vsel %vm2293_vm5, %v17539_v33, %v7319_v57  ;;  %v2393_v51 = vsel %vm2358_vm6, %v2328_v47, %v7469_v39  ;;  %v2394_v1 = vsel %vm2358_vm6, %v2329_v26, %v7470_v8  ;;  %v17541_v43 = vld [vmem:[#allocation76_spill] sm:$0xff]  ;;  %v17543_v47 = vld [vmem:[#allocation61_spill] sm:$0xff]  ;;  %v17545_v39 = vld [vmem:[#allocation202_spill] sm:$0xff] }
 0x268   :  { %v2718_v4 = vpack.c.bf16 %v17541_v43, %v17540_v60  ;;  %v7330_v45 = vunpack.i.h.bf16 %v17542_v6  ;;  %v2458_v41 = vsel %vm2423_vm7, %v2393_v51, %v7629_v10  ;;  %v2459_v3 = vsel %vm2423_vm7, %v2394_v1, %v7630_v0  ;;  %v17549_v33 = vld [vmem:[#allocation214_spill] sm:$0xff]  ;;  %v17550_v1 = vld [vmem:[#allocation79_spill] sm:$0xff] }
 0x269   :  { %v2715_v50 = vpack.c.bf16 %v2652_v53, %v2651_v13  ;;  %v2523_v42 = vsel %vm2488_vm8, %v2458_v41, %v7959_v7  ;;  %v2524_v11 = vsel %vm2488_vm8, %v2459_v3, %v7960_v52  ;;  %v7970_v40 = vunpack.i.h.bf16 %v12781_v54  ;;  %v17548_v52 = vld [vmem:[#allocation73_spill] sm:$0xff]  ;;  %v17552_v3 = vld [vmem:[#allocation88_spill] sm:$0xff] }
 0x26a   :  { %v7969_v26 = vunpack.i.l.bf16 %v12781_v54  ;;  %v7329_v48 = vunpack.i.l.bf16 %v17542_v6  ;;  %v7474_v56 = vunpack.i.l.bf16 %v17543_v47  ;;  %v2588_v57 = vsel %vm2553_vm9, %v2523_v42, %v7964_v35  ;;  %v17546_v54 = vld [vmem:[#allocation271_spill] sm:$0xff]  ;;  %v17551_v6 = vld [vmem:[#allocation236_spill] sm:$0xff] }
 0x26b   :  { %v2589_v46 = vsel %vm2553_vm9, %v2524_v11, %v7965_v36  ;;  %v2330_v8 = vsel %vm2293_vm5, %v17544_v21, %v7314_v32  ;;  %v2331_v24 = vsel %vm2293_vm5, %v17545_v39, %v7315_v55  ;;  %v7475_v0 = vunpack.i.h.bf16 %v17543_v47  ;;  %v12925_v32 = vpop.permute.xlu1 %8007 }
 0x26c   :  { %v7634_v10 = vunpack.i.l.bf16 %v17546_v54  ;;  %v12918_v23 = vsel %vm2293_vm5, %v17547_v17, %v7330_v45  ;;  %v7325_v7 = vunpack.i.h.bf16 %v17548_v52  ;;  %v7324_v13 = vunpack.i.l.bf16 %v17548_v52  ;;  %v17557_v17 = vld [vmem:[#allocation207_spill] sm:$0xff] }
 0x26d   :  { %v7635_v53 = vunpack.i.h.bf16 %v17546_v54  ;;  %v7975_v16 = vunpack.i.h.bf16 %v12796_v44  ;;  %v7974_v55 = vunpack.i.l.bf16 %v12796_v44  ;;  %v2653_v36 = vsel %vm2618_vm10, %v2588_v57, %v7969_v26  ;;  %v17556_v54 = vld [vmem:[#allocation208_spill] sm:$0xff] }
 0x26e   :  { %3076 = vmatmul.mubr.bf16.gmra.mxu0 %v2715_v50  ;;  %v2654_v35 = vsel %vm2618_vm10, %v2589_v46, %v7970_v40  ;;  %v12931_v51 = vsel %vm2293_vm5, %v17549_v33, %v7329_v48  ;;  %v7340_v60 = vunpack.i.h.bf16 %v17550_v1  ;;  %v7339_v43 = vunpack.i.l.bf16 %v17550_v1  ;;  %v17553_v50 = vld [vmem:[#allocation89_spill] sm:$0xff]  ;;  %v12944_v48 = vpop.permute.xlu0 %8012 }
 0x26f   :  { %6973 = vmatprep.mubr.msk.bf16.mxu0 %vm90_vm0, %v2718_v4  ;;  %v2395_v4 = vsel %vm2358_vm6, %v2330_v8, %v7474_v56  ;;  %v7334_v45 = vunpack.i.l.bf16 %v17551_v6  ;;  %v2396_v44 = vsel %vm2358_vm6, %v2331_v24, %v7475_v0  ;;  %v2720_v42 = vpack.c.bf16 %v17553_v50, %v17552_v3  ;;  %v17554_v8 = vld [vmem:[#allocation206_spill] sm:$0xff]  ;;  %v17555_v24 = vld [vmem:[#allocation213_spill] sm:$0xff] }
 0x270   :  { %v2460_v41 = vsel %vm2423_vm7, %v2395_v4, %v7634_v10  ;;  %v2461_v11 = vsel %vm2423_vm7, %v2396_v44, %v7635_v53  ;;  %v7980_v40 = vunpack.i.h.bf16 %v12821_v14  ;;  %v7979_v26 = vunpack.i.l.bf16 %v12821_v14  ;;  %v17558_v53 = vld [vmem:[#allocation212_spill] sm:$0xff] }
 0x271   :  { %v2717_v47 = vpack.c.bf16 %v2654_v35, %v2653_v36  ;;  %v2525_v56 = vsel %vm2488_vm8, %v2460_v41, %v7974_v55  ;;  %v2526_v57 = vsel %vm2488_vm8, %v2461_v11, %v7975_v16  ;;  %v7985_v46 = vunpack.i.h.bf16 %v12837_v49  ;;  %v17559_v16 = vld [vmem:[#allocation64_spill] sm:$0xff]  ;;  %v17560_v36 = vld [vmem:[#allocation45_spill] sm:$0xff] }
 0x272   :  { %v7984_v21 = vunpack.i.l.bf16 %v12837_v49  ;;  %v2334_v39 = vsel %vm2293_vm5, %v17554_v8, %v7324_v13  ;;  %v2335_v0 = vsel %vm2293_vm5, %v17555_v24, %v7325_v7  ;;  %v12956_v14 = vsel %vm2293_vm5, %v17556_v54, %v7340_v60  ;;  %v12969_v7 = vpop.permute.xlu1 %8017  ;;  %v17561_v44 = vld [vmem:[#allocation112_spill] sm:$0xff]  ;;  %v12984_v11 = vpop.permute.xlu0 %8022 }
 0x273   :  { %v7335_v10 = vunpack.i.h.bf16 %v17551_v6  ;;  %v12961_v52 = vsel %vm2293_vm5, %v17557_v17, %v7339_v43  ;;  %v12965_v49 = vsel %vm2293_vm5, %v17558_v53, %v7334_v45  ;;  %v7480_v13 = vunpack.i.h.bf16 %v17559_v16 }
 0x274   :  { %v7479_v55 = vunpack.i.l.bf16 %v17559_v16  ;;  %v7640_v35 = vunpack.i.h.bf16 %v17560_v36  ;;  %v7639_v33 = vunpack.i.l.bf16 %v17560_v36  ;;  %v2590_v1 = vsel %vm2553_vm9, %v2525_v56, %v7979_v26  ;;  %v17562_v26 = vld [vmem:[#allocation87_spill] sm:$0xff]  ;;  %v17563_v56 = vld [vmem:[#allocation82_spill] sm:$0xff] }
 0x275   :  { %v2591_v60 = vsel %vm2553_vm9, %v2526_v57, %v7980_v40  ;;  %v7990_v43 = vunpack.i.h.bf16 %v12849_v22  ;;  %v7989_v4 = vunpack.i.l.bf16 %v12849_v22  ;;  %v2655_v6 = vsel %vm2618_vm10, %v2590_v1, %v7984_v21  ;;  %v17564_v57 = vld [vmem:[#allocation83_spill] sm:$0xff] }
 0x276   :  { %3084 = vmatmul.mubr.bf16.gmra.mxu0 %v2717_v47  ;;  %v2656_v45 = vsel %vm2618_vm10, %v2591_v60, %v7985_v46  ;;  %v7350_v41 = vunpack.i.h.bf16 %v17561_v44  ;;  %v7349_v3 = vunpack.i.l.bf16 %v17561_v44  ;;  %v7995_v50 = vunpack.i.h.bf16 %v12871_v28  ;;  %v13000_v16 = vpop.permute.xlu1 %8027  ;;  %v17567_v60 = vld [vmem:[#allocation124_spill] sm:$0xff]  ;;  %v17569_v44 = vld [vmem:[#allocation90_spill] sm:$0xff] }
 0x277   :  { %6974 = vmatprep.mubr.msk.bf16.mxu0 %vm90_vm0, %v2720_v42  ;;  %v7994_v42 = vunpack.i.l.bf16 %v12871_v28  ;;  %v7345_v40 = vunpack.i.h.bf16 %v17562_v26  ;;  %v2397_v47 = vsel %vm2358_vm6, %v12888_v25, %v7479_v55  ;;  %v2398_v22 = vsel %vm2358_vm6, %v12881_v19, %v7480_v13  ;;  %v17565_v19 = vld [vmem:[#allocation211_spill] sm:$0xff] }
 0x278   :  { %v2722_v46 = vpack.c.bf16 %v17564_v57, %v17563_v56  ;;  %v7344_v21 = vunpack.i.l.bf16 %v17562_v26  ;;  %v2462_v8 = vsel %vm2423_vm7, %v2397_v47, %v7639_v33  ;;  %v2463_v24 = vsel %vm2423_vm7, %v2398_v22, %v7640_v35  ;;  %v17566_v55 = vld [vmem:[#allocation247_spill] sm:$0xff] }
 0x279   :  { %v2719_v28 = vpack.c.bf16 %v2656_v45, %v2655_v6  ;;  %v2527_v54 = vsel %vm2488_vm8, %v2462_v8, %v7989_v4  ;;  %v2528_v17 = vsel %vm2488_vm8, %v2463_v24, %v7990_v43  ;;  %v8000_v53 = vunpack.i.h.bf16 %v12892_v59  ;;  %v17568_v4 = vld [vmem:[#allocation273_spill] sm:$0xff]  ;;  %v17571_v8 = vld [vmem:[#allocation115_spill] sm:$0xff]  ;;  %v17572_v24 = vld [vmem:[#allocation116_spill] sm:$0xff] }
 0x27a   :  { %v7999_v25 = vunpack.i.l.bf16 %v12892_v59  ;;  %v13004_v13 = vsel %vm2293_vm5, %v17565_v19, %v7335_v10  ;;  %v7484_v36 = vunpack.i.l.bf16 %v17566_v55  ;;  %v2592_v35 = vsel %vm2553_vm9, %v2527_v54, %v7994_v42 }
 0x27b   :  { %v2593_v33 = vsel %vm2553_vm9, %v2528_v17, %v7995_v50  ;;  %v13011_v1 = vsel %vm2293_vm5, %v12422_v61, %v7350_v41  ;;  %v7360_v43 = vunpack.i.h.bf16 %v17567_v60  ;;  %v7485_v59 = vunpack.i.h.bf16 %v17566_v55  ;;  %v13030_v50 = vpop.permute.xlu0 %8032 }
 0x27c   :  { %v7644_v6 = vunpack.i.l.bf16 %v17568_v4  ;;  %v13019_v10 = vsel %vm2293_vm5, %v12426_v62, %v7349_v3  ;;  %v13023_v45 = vsel %vm2293_vm5, %v12454_v58, %v7344_v21  ;;  %v13027_v61 = vsel %vm2293_vm5, %v17569_v44, %v7345_v40  ;;  %v17570_v58 = vld [vmem:[#allocation111_spill] sm:$0xff]  ;;  %v13046_v21 = vpop.permute.xlu1 %8037 }
 0x27d   :  { %v7645_v41 = vunpack.i.h.bf16 %v17568_v4  ;;  %v8005_v42 = vunpack.i.h.bf16 %v12905_v20  ;;  %v8004_v26 = vunpack.i.l.bf16 %v12905_v20  ;;  %v2657_v47 = vsel %vm2618_vm10, %v2592_v35, %v7999_v25  ;;  %v17573_v35 = vld [vmem:[#allocation217_spill] sm:$0xff] }
 0x27e   :  { %3092 = vmatmul.mubr.bf16.gmra.mxu0 %v2719_v28  ;;  %v2658_v62 = vsel %vm2618_vm10, %v2593_v33, %v8000_v53  ;;  %v7359_v3 = vunpack.i.l.bf16 %v17567_v60  ;;  %v7355_v22 = vunpack.i.h.bf16 %v17570_v58  ;;  %v7354_v56 = vunpack.i.l.bf16 %v17570_v58  ;;  %v17574_v33 = vld [vmem:[#allocation131_spill] sm:$0xff] }
 0x27f   :  { %6975 = vmatprep.mubr.msk.bf16.mxu0 %vm90_vm0, %v2722_v46  ;;  %v2399_v40 = vsel %vm2358_vm6, %v2334_v39, %v7484_v36  ;;  %v13042_v57 = vsel %vm2293_vm5, %v12501_v15, %v7360_v43  ;;  %v2400_v46 = vsel %vm2358_vm6, %v2335_v0, %v7485_v59  ;;  %v2724_v28 = vpack.c.bf16 %v17572_v24, %v17571_v8  ;;  %v13070_v43 = vpop.permute.xlu0 %8042 }
 0x280   :  { %v2464_v20 = vsel %vm2423_vm7, %v2399_v40, %v7644_v6  ;;  %v2465_v54 = vsel %vm2423_vm7, %v2400_v46, %v7645_v41  ;;  %v8010_v17 = vunpack.i.h.bf16 %v12925_v32  ;;  %v8009_v53 = vunpack.i.l.bf16 %v12925_v32  ;;  %v17576_v6 = vld [vmem:[#allocation63_spill] sm:$0xff]  ;;  %v13083_v58 = vpop.permute.xlu1 %8047 }
 0x281   :  { %v2721_v39 = vpack.c.bf16 %v2658_v62, %v2657_v47  ;;  %v2529_v25 = vsel %vm2488_vm8, %v2464_v20, %v8004_v26  ;;  %v2530_v15 = vsel %vm2488_vm8, %v2465_v54, %v8005_v42  ;;  %v8015_v0 = vunpack.i.h.bf16 %v12944_v48  ;;  %v17578_v54 = vld [vmem:[#allocation113_spill] sm:$0xff] }
 0x282   :  { %v8014_v19 = vunpack.i.l.bf16 %v12944_v48  ;;  %v13059_v55 = vsel %vm2293_vm5, %v12505_v38, %v7359_v3  ;;  %v13063_v36 = vsel %vm2293_vm5, %v12630_v37, %v7354_v56  ;;  %v13067_v32 = vsel %vm2293_vm5, %v17573_v35, %v7355_v22  ;;  %v17575_v48 = vld [vmem:[#allocation123_spill] sm:$0xff]  ;;  %v17577_v37 = vld [vmem:[#allocation272_spill] sm:$0xff] }
 0x283   :  { %v7370_v60 = vunpack.i.h.bf16 %v17574_v33  ;;  %v7369_v59 = vunpack.i.l.bf16 %v17574_v33  ;;  %v7365_v4 = vunpack.i.h.bf16 %v17575_v48  ;;  %v7490_v38 = vunpack.i.h.bf16 %v17576_v6  ;;  %v17581_v33 = vld [vmem:[#allocation249_spill] sm:$0xff] }
 0x284   :  { %v7489_v44 = vunpack.i.l.bf16 %v17576_v6  ;;  %v7650_v41 = vunpack.i.h.bf16 %v17577_v37  ;;  %v7649_v42 = vunpack.i.l.bf16 %v17577_v37  ;;  %v2594_v26 = vsel %vm2553_vm9, %v2529_v25, %v8009_v53  ;;  %v17580_v53 = vld [vmem:[#allocation129_spill] sm:$0xff] }
 0x285   :  { %v2595_v47 = vsel %vm2553_vm9, %v2530_v15, %v8010_v17  ;;  %v8020_v62 = vunpack.i.h.bf16 %v12969_v7  ;;  %v8019_v3 = vunpack.i.l.bf16 %v12969_v7  ;;  %v2659_v22 = vsel %vm2618_vm10, %v2594_v26, %v8014_v19  ;;  %v17579_v17 = vld [vmem:[#allocation114_spill] sm:$0xff]  ;;  %v17583_v26 = vld [vmem:[#allocation237_spill] sm:$0xff] }
 0x286   :  { %3100 = vmatmul.mubr.bf16.gmra.mxu0 %v2721_v39  ;;  %v2660_v56 = vsel %vm2618_vm10, %v2595_v47, %v8015_v0  ;;  %v13089_v40 = vsel %vm2293_vm5, %v12670_v29, %v7370_v60  ;;  %v7364_v46 = vunpack.i.l.bf16 %v17575_v48  ;;  %v8025_v20 = vunpack.i.h.bf16 %v12984_v11 }
 0x287   :  { %6976 = vmatprep.mubr.msk.bf16.mxu0 %vm90_vm0, %v2724_v28  ;;  %v8024_v8 = vunpack.i.l.bf16 %v12984_v11  ;;  %v13096_v24 = vsel %vm2293_vm5, %v12674_v12, %v7369_v59  ;;  %v2401_v7 = vsel %vm2358_vm6, %v12931_v51, %v7489_v44  ;;  %v2402_v28 = vsel %vm2358_vm6, %v12918_v23, %v7490_v38  ;;  %v13107_v11 = vpop.permute.xlu0 %8052 }
 0x288   :  { %v2726_v29 = vpack.c.bf16 %v17579_v17, %v17578_v54  ;;  %v7380_v39 = vunpack.i.h.bf16 %v17580_v53  ;;  %v2466_v25 = vsel %vm2423_vm7, %v2401_v7, %v7649_v42  ;;  %v2467_v15 = vsel %vm2423_vm7, %v2402_v28, %v7650_v41  ;;  %v13127_v41 = vpop.permute.xlu1 %8057  ;;  %v17585_v28 = vld [vmem:[#allocation250_spill] sm:$0xff] }
 0x289   :  { %v2723_v0 = vpack.c.bf16 %v2660_v56, %v2659_v22  ;;  %v2531_v12 = vsel %vm2488_vm8, %v2466_v25, %v8019_v3  ;;  %v2532_v19 = vsel %vm2488_vm8, %v2467_v15, %v8020_v62  ;;  %v8030_v51 = vunpack.i.h.bf16 %v13000_v16 }
 0x28a   :  { %v8029_v23 = vunpack.i.l.bf16 %v13000_v16  ;;  %v7379_v35 = vunpack.i.l.bf16 %v17580_v53  ;;  %v7494_v60 = vunpack.i.l.bf16 %v17581_v33  ;;  %v2596_v59 = vsel %vm2553_vm9, %v2531_v12, %v8024_v8  ;;  %v17582_v16 = vld [vmem:[#allocation275_spill] sm:$0xff]  ;;  %v17587_v53 = vld [vmem:[#allocation120_spill] sm:$0xff] }
 0x28b   :  { %v2597_v48 = vsel %vm2553_vm9, %v2532_v19, %v8025_v20  ;;  %v13119_v6 = vsel %vm2293_vm5, %v12724_v34, %v7364_v46  ;;  %v13123_v38 = vsel %vm2293_vm5, %v12680_v63, %v7365_v4  ;;  %v7495_v44 = vunpack.i.h.bf16 %v17581_v33  ;;  %v13149_v7 = vpop.permute.xlu0 %8062  ;;  %v17588_v33 = vld [vmem:[#allocation251_spill] sm:$0xff] }
 0x28c   :  { %v7654_v37 = vunpack.i.l.bf16 %v17582_v16  ;;  %v13132_v42 = vsel %vm2293_vm5, %v12759_v5, %v7380_v39  ;;  %v7375_v47 = vunpack.i.h.bf16 %v17583_v26  ;;  %v7374_v34 = vunpack.i.l.bf16 %v17583_v26  ;;  %v17584_v5 = vld [vmem:[#allocation248_spill] sm:$0xff] }
 0x28d   :  { %v7655_v62 = vunpack.i.h.bf16 %v17582_v16  ;;  %v8035_v63 = vunpack.i.h.bf16 %v13030_v50  ;;  %v8034_v4 = vunpack.i.l.bf16 %v13030_v50  ;;  %v2661_v3 = vsel %vm2618_vm10, %v2596_v59, %v8029_v23 }
 0x28e   :  { %3108 = vmatmul.mubr.bf16.gmra.mxu0 %v2723_v0  ;;  %v2662_v22 = vsel %vm2618_vm10, %v2597_v48, %v8030_v51  ;;  %v13143_v56 = vsel %vm2293_vm5, %v12763_v27, %v7379_v35  ;;  %v7500_v46 = vunpack.i.h.bf16 %v17584_v5  ;;  %v7499_v20 = vunpack.i.l.bf16 %v17584_v5  ;;  %v13164_v51 = vpop.permute.xlu1 %8067 }
 0x28f   :  { %6977 = vmatprep.mubr.msk.bf16.mxu0 %vm90_vm0, %v2726_v29  ;;  %v2403_v8 = vsel %vm2358_vm6, %v12965_v49, %v7494_v60  ;;  %v2404_v50 = vsel %vm2358_vm6, %v13004_v13, %v7495_v44  ;;  %v7509_v54 = vunpack.i.l.bf16 %v17585_v28  ;;  %v17586_v29 = vld [vmem:[#allocation119_spill] sm:$0xff]  ;;  %v8040_v25 = vunpack.i.h.bf16 %v13046_v21 }
 0x290   :  { %v2468_v17 = vsel %vm2423_vm7, %v2403_v8, %v7654_v37  ;;  %v2728_v27 = vpack.c.bf16 %v17587_v53, %v17586_v29  ;;  %v2469_v39 = vsel %vm2423_vm7, %v2404_v50, %v7655_v62  ;;  %v8039_v15 = vunpack.i.l.bf16 %v13046_v21  ;;  %v13188_v37 = vpop.permute.xlu0 %8072  ;;  %v17592_v50 = vld [vmem:[#allocation117_spill] sm:$0xff] }
 0x291   :  { %v2725_v0 = vpack.c.bf16 %v2662_v22, %v2661_v3  ;;  %v2533_v49 = vsel %vm2488_vm8, %v2468_v17, %v8034_v4  ;;  %v2534_v12 = vsel %vm2488_vm8, %v2469_v39, %v8035_v63  ;;  %v8045_v13 = vunpack.i.h.bf16 %v13070_v43  ;;  %v17590_v22 = vld [vmem:[#allocation252_spill] sm:$0xff] }
 0x292   :  { %v8044_v19 = vunpack.i.l.bf16 %v13070_v43  ;;  %v13168_v23 = vsel %vm2293_vm5, %v12816_v9, %v7374_v34  ;;  %v13172_v35 = vsel %vm2293_vm5, %v12810_v31, %v7375_v47  ;;  %v7510_v21 = vunpack.i.h.bf16 %v17585_v28  ;;  %v17589_v31 = vld [vmem:[#allocation274_spill] sm:$0xff]  ;;  %v13207_v8 = vpop.permute.xlu1 %8077 }
 0x293   :  { %v7504_v60 = vunpack.i.l.bf16 %v17588_v33  ;;  %v2405_v59 = vsel %vm2358_vm6, %v12961_v52, %v7499_v20  ;;  %v2406_v43 = vsel %vm2358_vm6, %v12956_v14, %v7500_v46  ;;  %v13182_v48 = vsel %vm2358_vm6, %v13019_v10, %v7509_v54  ;;  %v17593_v28 = vld [vmem:[#allocation118_spill] sm:$0xff] }
 0x294   :  { %v7505_v9 = vunpack.i.h.bf16 %v17588_v33  ;;  %v7660_v44 = vunpack.i.h.bf16 %v17589_v31  ;;  %v7659_v16 = vunpack.i.l.bf16 %v17589_v31  ;;  %v2598_v26 = vsel %vm2553_vm9, %v2533_v49, %v8039_v15  ;;  %v13220_v49 = vpop.permute.xlu0 %8082  ;;  %v17595_v33 = vld [vmem:[#allocation276_spill] sm:$0xff] }
 0x295   :  { %v2599_v52 = vsel %vm2553_vm9, %v2534_v12, %v8040_v25  ;;  %v8050_v14 = vunpack.i.h.bf16 %v13083_v58  ;;  %v8049_v47 = vunpack.i.l.bf16 %v13083_v58  ;;  %v2663_v10 = vsel %vm2618_vm10, %v2598_v26, %v8044_v19  ;;  %v17591_v58 = vld [vmem:[#allocation253_spill] sm:$0xff]  ;;  %v17594_v25 = vld [vmem:[#allocation254_spill] sm:$0xff] }
 0x296   :  { %3116 = vmatmul.mubr.bf16.gmra.mxu0 %v2725_v0  ;;  %v2664_v34 = vsel %vm2618_vm10, %v2599_v52, %v8045_v13  ;;  %v13198_v62 = vsel %vm2358_vm6, %v13011_v1, %v7510_v21  ;;  %v2407_v63 = vsel %vm2358_vm6, %v13023_v45, %v7504_v60  ;;  %v8055_v4 = vunpack.i.h.bf16 %v13107_v11 }
 0x297   :  { %6978 = vmatprep.mubr.msk.bf16.mxu0 %vm90_vm0, %v2728_v27  ;;  %v8054_v3 = vunpack.i.l.bf16 %v13107_v11  ;;  %v7520_v5 = vunpack.i.h.bf16 %v17590_v22  ;;  %v7519_v46 = vunpack.i.l.bf16 %v17590_v22  ;;  %v7515_v20 = vunpack.i.h.bf16 %v17591_v58  ;;  %v17599_v22 = vld [vmem:[#allocation171_spill] sm:$0xff] }
 0x298   :  { %v2730_v54 = vpack.c.bf16 %v17593_v28, %v17592_v50  ;;  %v7514_v1 = vunpack.i.l.bf16 %v17591_v58  ;;  %v2470_v17 = vsel %vm2423_vm7, %v2405_v59, %v7659_v16  ;;  %v2471_v45 = vsel %vm2423_vm7, %v2406_v43, %v7660_v44  ;;  %v13248_v44 = vpop.permute.xlu1 %8087 }
 0x299   :  { %v2727_v29 = vpack.c.bf16 %v2664_v34, %v2663_v10  ;;  %v2535_v11 = vsel %vm2488_vm8, %v2470_v17, %v8049_v47  ;;  %v2536_v53 = vsel %vm2488_vm8, %v2471_v45, %v8050_v14  ;;  %v8060_v27 = vunpack.i.h.bf16 %v13127_v41  ;;  %v17597_v14 = vld [vmem:[#allocation256_spill] sm:$0xff]  ;;  %v17598_v10 = vld [vmem:[#allocation257_spill] sm:$0xff]  ;;  %v9311_v45 = vld [vmem:[%s16380_s2 + $0x30] sm:$0xff]  }
 0x29a   :  { %v8059_v39 = vunpack.i.l.bf16 %v13127_v41  ;;  %v7530_v15 = vunpack.i.h.bf16 %v17594_v25  ;;  %v7529_v0 = vunpack.i.l.bf16 %v17594_v25  ;;  %v2600_v12 = vsel %vm2553_vm9, %v2535_v11, %v8054_v3  ;;  %v17602_v11 = vld [vmem:[#allocation161_spill] sm:$0xff] }
 0x29b   :  { %v2601_v13 = vsel %vm2553_vm9, %v2536_v53, %v8055_v4  ;;  %v2408_v19 = vsel %vm2358_vm6, %v13027_v61, %v7505_v9  ;;  %v13228_v21 = vsel %vm2358_vm6, %v13059_v55, %v7519_v46  ;;  %v13232_v41 = vsel %vm2358_vm6, %v13042_v57, %v7520_v5  ;;  %v17596_v61 = vld [vmem:[#allocation255_spill] sm:$0xff]  ;;  %v17600_v5 = vld [vmem:[#allocation130_spill] sm:$0xff] }
 0x29c   :  { %v7664_v60 = vunpack.i.l.bf16 %v17595_v33  ;;  %v13238_v59 = vsel %vm2358_vm6, %v13063_v36, %v7514_v1  ;;  %v13242_v43 = vsel %vm2358_vm6, %v13067_v32, %v7515_v20  ;;  %v7525_v9 = vunpack.i.h.bf16 %v17596_v61  ;;  %v9310_v36 = vld [vmem:[%s16380_s2 + $0x38] sm:$0xff]   ;;  %v13273_v20 = vpop.permute.xlu0 %8092 }
 0x29d   :  { %v7665_v55 = vunpack.i.h.bf16 %v17595_v33  ;;  %v8065_v31 = vunpack.i.h.bf16 %v13149_v7  ;;  %v8064_v57 = vunpack.i.l.bf16 %v13149_v7  ;;  %v2665_v16 = vsel %vm2618_vm10, %v2600_v12, %v8059_v39  ;;  %6126 = vmatpush1.bf16.msra.mxu1 %v9310_v36 }
 0x29e   :  { %3124 = vmatmul.mubr.bf16.gmra.mxu0 %v2727_v29  ;;  %v2666_v26 = vsel %vm2618_vm10, %v2601_v13, %v8060_v27  ;;  %v13257_v32 = vsel %vm2358_vm6, %v13096_v24, %v7529_v0  ;;  %v13261_v52 = vsel %vm2358_vm6, %v13089_v40, %v7530_v15  ;;  %v7524_v7 = vunpack.i.l.bf16 %v17596_v61  ;;  %v13303_v0 = vpop.permute.xlu1 %8097 }
 0x29f   :  { %6979 = vmatprep.mubr.msk.bf16.mxu0 %vm90_vm0, %v2730_v54  ;;  %v7539_v47 = vunpack.i.l.bf16 %v17597_v14  ;;  %v7535_v34 = vunpack.i.h.bf16 %v17598_v10  ;;  %v7534_v4 = vunpack.i.l.bf16 %v17598_v10  ;;  %v2472_v3 = vsel %vm2423_vm7, %v2407_v63, %v7664_v60  ;;  %v17607_v10 = vld [vmem:[#allocation178_spill] sm:$0xff] }
 0x2a0   :  { %v2732_v46 = vpack.c.bf16 %v17600_v5, %v17599_v22  ;;  %v2473_v24 = vsel %vm2423_vm7, %v2408_v19, %v7665_v55  ;;  %v8070_v58 = vunpack.i.h.bf16 %v13164_v51  ;;  %v8069_v40 = vunpack.i.l.bf16 %v13164_v51 }
 0x2a1   :  { %v2729_v50 = vpack.c.bf16 %v2666_v26, %v2665_v16  ;;  %v17601_v28 = vmov 0   ;;  %v2537_v54 = vsel %vm2488_vm8, %v2472_v3, %v8064_v57  ;;  %v2538_v1 = vsel %vm2488_vm8, %v2473_v24, %v8065_v31  ;;  %v13327_v57 = vpop.permute.xlu0 %8102  ;;  %v17604_v16 = vld [vmem:[#allocation277_spill] sm:$0xff] }
 0x2a2   :  { %6127 = vmatprep.subr.bf16.mxu1 %v17601_v28  ;;  %v8075_v63 = vunpack.i.h.bf16 %v13188_v37  ;;  %v8074_v17 = vunpack.i.l.bf16 %v13188_v37  ;;  %v13285_v51 = vsel %vm2358_vm6, %v13119_v6, %v7524_v7  ;;  %v13289_v29 = vsel %vm2358_vm6, %v13123_v38, %v7525_v9  ;;  %v17603_v6 = vld [vmem:[#allocation81_spill] sm:$0xff]  ;;  %v17605_v7 = vld [vmem:[#allocation127_spill] sm:$0xff] }
 0x2a3   :  { %v7670_v53 = vunpack.i.h.bf16 %v17602_v11  ;;  %v7669_v27 = vunpack.i.l.bf16 %v17602_v11  ;;  %v7540_v39 = vunpack.i.h.bf16 %v17597_v14  ;;  %v13296_v37 = vsel %vm2358_vm6, %v13143_v56, %v7539_v47  ;;  %6128 = vmatpush1.bf16.msra.mxu1 %v9311_v45  ;;  %v17606_v47 = vld [vmem:[#allocation128_spill] sm:$0xff]  ;;  %v17608_v45 = vld [vmem:[#allocation181_spill] sm:$0xff] }
 0x2a4   :  { %v13300_v25 = vsel %vm2358_vm6, %v13168_v23, %v7534_v4  ;;  %v7679_v15 = vunpack.i.l.bf16 %v17603_v6  ;;  %v13308_v38 = vsel %vm2358_vm6, %v13172_v35, %v7535_v34  ;;  %v7680_v12 = vunpack.i.h.bf16 %v17603_v6  ;;  %6129 = vmatprep.subr.bf16.mxu1 %v17601_v28  ;;  %v9312_v35 = vld [vmem:[%s16380_s2 + $0x28] sm:$0xff]  }
 0x2a5   :  { %v2602_v56 = vsel %vm2553_vm9, %v2537_v54, %v8069_v40  ;;  %v2603_v13 = vsel %vm2553_vm9, %v2538_v1, %v8070_v58  ;;  %v8080_v23 = vunpack.i.h.bf16 %v13207_v8  ;;  %v8079_v19 = vunpack.i.l.bf16 %v13207_v8 }
 0x2a6   :  { %3132 = vmatmul.mubr.bf16.gmra.mxu0 %v2729_v50  ;;  %v2667_v33 = vsel %vm2618_vm10, %v2602_v56, %v8074_v17  ;;  %v2668_v60 = vsel %vm2618_vm10, %v2603_v13, %v8075_v63  ;;  %v2474_v61 = vsel %vm2423_vm7, %v13182_v48, %v7669_v27  ;;  %v2475_v9 = vsel %vm2423_vm7, %v13198_v62, %v7670_v53  ;;  %v17610_v56 = vld [vmem:[#allocation172_spill] sm:$0xff] }
 0x2a7   :  { %6980 = vmatprep.mubr.msk.bf16.mxu0 %vm90_vm0, %v2732_v46  ;;  %v8085_v55 = vunpack.i.h.bf16 %v13220_v49  ;;  %v8084_v31 = vunpack.i.l.bf16 %v13220_v49  ;;  %v13331_v8 = vsel %vm2423_vm7, %v13228_v21, %v7679_v15  ;;  %v7675_v26 = vunpack.i.h.bf16 %v17604_v16  ;;  %6130 = vmatpush1.bf16.msra.mxu1 %v9312_v35  ;;  %v9313_v46 = vld [vmem:[%s16380_s2 + $0x20] sm:$0xff]  }
 0x2a8   :  { %v7674_v36 = vunpack.i.l.bf16 %v17604_v16  ;;  %v2734_v48 = vpack.c.bf16 %v17606_v47, %v17605_v7  ;;  %v13339_v62 = vsel %vm2423_vm7, %v13232_v41, %v7680_v12  ;;  %v7689_v49 = vunpack.i.l.bf16 %v17607_v10  ;;  %6131 = vmatprep.subr.bf16.mxu1 %v17601_v28  ;;  %v8108_v41 = vpop.permute.xlu1 %8107  ;;  %v17609_v12 = vld [vmem:[#allocation138_spill] sm:$0xff] }
 0x2a9   :  { %v13345_v34 = vstv %s16381_s3  ;;  %v2731_v21 = vpack.c.bf16 %v2668_v60, %v2667_v33  ;;  %v2539_v4 = vsel %vm2488_vm8, %v2474_v61, %v8079_v19  ;;  %v2540_v3 = vsel %vm2488_vm8, %v2475_v9, %v8080_v23 }
 0x2aa   :  { %v8090_v22 = vunpack.i.h.bf16 %v13248_v44  ;;  %v8089_v5 = vunpack.i.l.bf16 %v13248_v44  ;;  %v8095_v24 = vunpack.i.h.bf16 %v13273_v20  ;;  %v8094_v58 = vunpack.i.l.bf16 %v13273_v20 }
 0x2ab   :  { %v2604_v50 = vsel %vm2553_vm9, %v2539_v4, %v8084_v31  ;;  %v2605_v54 = vsel %vm2553_vm9, %v2540_v3, %v8085_v55  ;;  %v2476_v1 = vsel %vm2423_vm7, %v13238_v59, %v7674_v36  ;;  %v2477_v44 = vsel %vm2423_vm7, %v13242_v43, %v7675_v26  ;;  %6132 = vmatpush1.bf16.msra.mxu1 %v9313_v46  ;;  %v8113_v59 = vpop.permute.xlu0 %8112  ;;  %v17611_v4 = vld [vmem:[#allocation183_spill] sm:$0xff] }
 0x2ac   :  { %v7690_v20 = vunpack.i.h.bf16 %v17607_v10  ;;  %v13368_v17 = vsel %vm2423_vm7, %v13257_v32, %v7689_v49  ;;  %v7685_v11 = vunpack.i.h.bf16 %v17608_v45  ;;  %v7684_v53 = vunpack.i.l.bf16 %v17608_v45  ;;  %6133 = vmatprep.subr.bf16.mxu1 %v17601_v28  ;;  %v9314_v32 = vld [vmem:[%s16380_s2 + $0x18] sm:$0xff]   ;;  %v8118_v55 = vpop.permute.xlu1 %8117 }
 0x2ad   :  { %v2669_v6 = vsel %vm2618_vm10, %v2604_v50, %v8089_v5  ;;  %v2670_v15 = vsel %vm2618_vm10, %v2605_v54, %v8090_v22  ;;  %v2736_v13 = vpack.c.bf16 %v17610_v56, %v17609_v12  ;;  %v8100_v23 = vunpack.i.h.bf16 %v13303_v0 }
 0x2ae   :  { %v2949_v40 = vpop.f32.mrf.mxu0  ;;  %3140 = vmatmul.mubr.bf16.gmra.mxu0 %v2731_v21  ;;  %v8099_v19 = vunpack.i.l.bf16 %v13303_v0  ;;  %v2541_v33 = vsel %vm2488_vm8, %v2476_v1, %v8094_v58  ;;  %v2542_v60 = vsel %vm2488_vm8, %v2477_v44, %v8095_v24  ;;  %v8110_v61 = vunpack.i.h.bf16 %v8108_v41  ;;  %v9315_v21 = vld [vmem:[%s16380_s2 + $0x10] sm:$0xff]  }
 0x2af   :  { %vm3204_vm11 = vcmp.gt.f32.partialorder %v2949_v40, 0.0  ;;  %v3269_v63 = vmul.f32 %v13345_v34, %v2949_v40  ;;  %6981 = vmatprep.mubr.msk.bf16.mxu0 %vm90_vm0, %v2734_v48  ;;  %v8109_v9 = vunpack.i.l.bf16 %v8108_v41  ;;  %6134 = vmatpush1.bf16.msra.mxu1 %v9314_v32  ;;  %v13388_v16 = vsel %vm2423_vm7, %v13261_v52, %v7690_v20  ;;  %v9316_v20 = vld [vmem:[%s16380_s2 + $0x8] sm:$0xff]  }
 0x2b0   :  { %v2951_v27 = vpop.f32.mrf.mxu0  ;;  %v8105_v0 = vunpack.i.h.bf16 %v13327_v57  ;;  %v8104_v26 = vunpack.i.l.bf16 %v13327_v57  ;;  %v2733_v7 = vpack.c.bf16 %v2670_v15, %v2669_v6  ;;  %6135 = vmatprep.subr.bf16.mxu1 %v17601_v28  ;;  %v2480_v47 = vsel %vm2423_vm7, %v13285_v51, %v7684_v53  ;;  %v8123_v57 = vpop.permute.xlu0 %8122  ;;  %v17613_v6 = vld [vmem:[#allocation134_spill] sm:$0xff]  ;;  %v17614_v15 = vld [vmem:[#allocation135_spill] sm:$0xff] }
 0x2b1   :  { %v3333_v43 = vsel %vm3204_vm11, %v2949_v40, %v3269_v63  ;;  %v8115_v48 = vunpack.i.h.bf16 %v8113_v59  ;;  %v8114_v10 = vunpack.i.l.bf16 %v8113_v59  ;;  %v2481_v52 = vsel %vm2423_vm7, %v13289_v29, %v7685_v11  ;;  %v13413_v1 = vpop.permute.xlu1 %8127  ;;  %v17612_v11 = vld [vmem:[#allocation192_spill] sm:$0xff] }
 0x2b2   :  { %3397 = vst.msk [vmem:[#allocation2 + $0x19] sm:$0xff] %vm90_vm0, %v3333_v43  ;;  %v2952_v35 = vpop.f32.mrf.mxu0  ;;  %v7700_v3 = vunpack.i.h.bf16 %v17611_v4  ;;  %v2606_v5 = vsel %vm2553_vm9, %v2541_v33, %v8099_v19  ;;  %v2607_v51 = vsel %vm2553_vm9, %v2542_v60, %v8100_v23  ;;  %v2543_v41 = vsel %vm2488_vm8, %v13331_v8, %v8109_v9 }
 0x2b3   :  { %vm3205_vm12 = vcmp.gt.f32.partialorder %v2952_v35, 0.0  ;;  %v3270_v31 = vmul.f32 %v13345_v34, %v2952_v35  ;;  %v2544_v46 = vsel %vm2488_vm8, %v13339_v62, %v8110_v61  ;;  %6136 = vmatpush1.bf16.msra.mxu1 %v9315_v21  ;;  %v8120_v24 = vunpack.i.h.bf16 %v8118_v55 }
 0x2b4   :  { %v2954_v36 = vpop.f32.mrf.mxu0  ;;  %v8119_v58 = vunpack.i.l.bf16 %v8118_v55  ;;  %v2671_v50 = vsel %vm2618_vm10, %v2606_v5, %v8104_v26  ;;  %v2672_v54 = vsel %vm2618_vm10, %v2607_v51, %v8105_v0  ;;  %6137 = vmatprep.subr.bf16.mxu1 %v17601_v28  ;;  %v8124_v8 = vunpack.i.l.bf16 %v8123_v57  ;;  %v8133_v9 = vpop.permute.xlu0 %8132 }
 0x2b5   :  { %v3334_v49 = vsel %vm3205_vm12, %v2952_v35, %v3270_v31  ;;  %v2608_v62 = vsel %vm2553_vm9, %v2543_v41, %v8114_v10  ;;  %v2609_v63 = vsel %vm2553_vm9, %v2544_v46, %v8115_v48  ;;  %v7699_v45 = vunpack.i.l.bf16 %v17611_v4  ;;  %v13444_v51 = vpop.permute.xlu1 %8137 }
 0x2b6   :  { %3398 = vst.msk [vmem:[#allocation2 + $0x21] sm:$0xff] %vm90_vm0, %v3334_v49  ;;  %v2957_v22 = vpop.f32.mrf.mxu0  ;;  %3148 = vmatmul.mubr.bf16.gmra.mxu0 %v2733_v7  ;;  %v7695_v53 = vunpack.i.h.bf16 %v17612_v11  ;;  %v7694_v59 = vunpack.i.l.bf16 %v17612_v11  ;;  %v2738_v12 = vpack.c.bf16 %v17614_v15, %v17613_v6  ;;  %v8125_v56 = vunpack.i.h.bf16 %v8123_v57  ;;  %v9317_v7 = vld [vmem:[%s16380_s2] sm:$0xff]   ;;  %v17616_v11 = vld [vmem:[#allocation177_spill] sm:$0xff] }
 0x2b7   :  { %vm3206_vm13 = vcmp.gt.f32.partialorder %v2957_v22, 0.0  ;;  %v3271_v29 = vmul.f32 %v13345_v34, %v2957_v22  ;;  %6982 = vmatprep.mubr.msk.bf16.mxu0 %vm90_vm0, %v2736_v13  ;;  %v2735_v32 = vpack.c.bf16 %v2672_v54, %v2671_v50  ;;  %6138 = vmatpush1.bf16.msra.mxu1 %v9316_v20  ;;  %v8130_v23 = vunpack.i.h.bf16 %v13413_v1  ;;  %v17615_v20 = vld [vmem:[#allocation176_spill] sm:$0xff] }
 0x2b8   :  { %v2959_v40 = vpop.f32.mrf.mxu0  ;;  %v8129_v19 = vunpack.i.l.bf16 %v13413_v1  ;;  %v13430_v60 = vsel %vm2618_vm10, %v2608_v62, %v8119_v58  ;;  %v13433_v35 = vsel %vm2618_vm10, %v2609_v63, %v8120_v24  ;;  %6139 = vmatprep.subr.bf16.mxu1 %v17601_v28  ;;  %v2545_v61 = vsel %vm2488_vm8, %v2480_v47, %v8124_v8  ;;  %v9318_v1 = vld [vmem:[%s16380_s2 + $0x40] sm:$0xff]  }
 0x2b9   :  { %v3335_v44 = vsel %vm3206_vm13, %v2957_v22, %v3271_v29  ;;  %v3464_v43 = vld [vmem:[#allocation2 + $0x18] sm:$0xff]  ;;  %v2546_v47 = vsel %vm2488_vm8, %v2481_v52, %v8125_v56  ;;  %v8135_v41 = vunpack.i.h.bf16 %v8133_v9  ;;  %v8134_v52 = vunpack.i.l.bf16 %v8133_v9 }
 0x2ba   :  { %3399 = vst.msk [vmem:[#allocation2 + $0x31] sm:$0xff] %vm90_vm0, %v3335_v44  ;;  %v2960_v27 = vpop.f32.mrf.mxu0  ;;  %v3670_v26 = vrot.slane %v3464_v43, 1  ;;  %v3830_v36 = vrot.slane %v3464_v43, 2  ;;  %v13459_v8 = vsel %vm2423_vm7, %v13300_v25, %v7694_v59  ;;  %v13463_v44 = vsel %vm2423_vm7, %v13308_v38, %v7695_v53  ;;  %v17617_v38 = vld [vmem:[#allocation174_spill] sm:$0xff]  ;;  %v17618_v53 = vld [vmem:[#allocation175_spill] sm:$0xff] }
 0x2bb   :  { %vm3207_vm14 = vcmp.gt.f32.partialorder %v2960_v27, 0.0  ;;  %v3272_v13 = vmul.f32 %v13345_v34, %v2960_v27  ;;  %6140 = vmatpush1.bf16.msra.mxu1 %v9317_v7  ;;  %v2737_v25 = vpack.c.bf16 %v13433_v35, %v13430_v60  ;;  %v2742_v59 = vpack.c.bf16 %v17618_v53, %v17617_v38 }
 0x2bc   :  { %v2962_v33 = vpop.f32.mrf.mxu0  ;;  %6155 = vmatprep.subr.bf16.mxu1 %v17601_v28  ;;  %v8140_v6 = vunpack.i.h.bf16 %v13444_v51  ;;  %v8139_v15 = vunpack.i.l.bf16 %v13444_v51  ;;  %v2611_v56 = vsel %vm2553_vm9, %v2546_v47, %v8130_v23 }
 0x2bd   :  { %v3336_v55 = vsel %vm3207_vm14, %v2960_v27, %v3272_v13  ;;  %v3465_v31 = vld [vmem:[#allocation2 + $0x20] sm:$0xff]  ;;  %v3466_v0 = vld [vmem:[#allocation2 + $0x28] sm:$0x3]  ;;  %v2740_v27 = vpack.c.bf16 %v17616_v11, %v17615_v20  ;;  %v8143_v13 = vpop.permute.xlu0 %8142  ;;  %v17619_v33 = vmov 0.0   ;;  %v2676_v35 = vsel %vm2618_vm10, %v2611_v56, %v8135_v41 }
 0x2be   :  { %3400 = vst.msk [vmem:[#allocation2 + $0x39] sm:$0xff] %vm90_vm0, %v3336_v55  ;;  %v2965_v48 = vpop.f32.mrf.mxu0  ;;  %3156 = vmatmul.mubr.bf16.gmra.mxu0 %v2735_v32  ;;  %v8191_v10 = vpack.i.bf16 %v3465_v31, %v3464_v43  ;;  %v3671_v49 = vrot.slane %v3465_v31, 1  ;;  %v3673_v21 = vrot.slane %v3466_v0, 1  ;;  %v3831_v57 = vrot.slane %v3465_v31, 2 }
 0x2bf   :  { %vm3208_vm15 = vcmp.gt.f32.partialorder %v2965_v48, 0.0  ;;  %v3273_v22 = vmul.f32 %v13345_v34, %v2965_v48  ;;  %v3833_v5 = vrot.slane %v3466_v0, 2  ;;  %6983 = vmatprep.mubr.msk.bf16.mxu0 %vm90_vm0, %v2738_v12  ;;  %6156 = vmatpush2.bf16.msra.mxu1 %v9318_v1  ;;  %v2610_v12 = vsel %vm2553_vm9, %v2545_v61, %v8129_v19 }
 0x2c0   :  { %8192 = vrot.lane.b32.xlu0 %v8191_v10, %s9464_s9  ;;  %v2967_v46 = vpop.f32.mrf.mxu0  ;;  %v3672_v29 = vsel %vm447_vm3, %v3670_v26, %v3671_v49  ;;  %v3674_v24 = vsel %vm447_vm3, %v3671_v49, %v3673_v21  ;;  %v3832_v58 = vsel %vm608_vm4, %v3830_v36, %v3831_v57  ;;  %7045 = vmatprep.subr.mxu1 %v17619_v33  ;;  %v13487_v26 = vpop.permute.xlu1 %8147  ;;  %v8144_v21 = vunpack.i.l.bf16 %v8143_v13 }
 0x2c1   :  { %v3337_v40 = vsel %vm3208_vm15, %v2965_v48, %v3273_v22  ;;  %v13451_v50 = vpack.i.bf16 %v3674_v24, %v3672_v29  ;;  %v3834_v54 = vsel %vm608_vm4, %v3831_v57, %v3833_v5  ;;  %v3467_v63 = vld [vmem:[#allocation2 + $0x30] sm:$0xff]  ;;  %v2675_v60 = vsel %vm2618_vm10, %v2610_v12, %v8134_v52  ;;  %v17620_v29 = vld [vmem:[#allocation215_spill] sm:$0xff] }
 0x2c2   :  { %3401 = vst.msk [vmem:[#allocation2 + $0x49] sm:$0xff] %vm90_vm0, %v3337_v40  ;;  %v2968_v28 = vpop.f32.mrf.mxu0  ;;  %v13466_v62 = vpack.i.bf16 %v3834_v54, %v3832_v58  ;;  %v3835_v0 = vrot.slane %v3467_v63, 2  ;;  %v8145_v48 = vunpack.i.h.bf16 %v8143_v13  ;;  %v3675_v5 = vrot.slane %v3467_v63, 1  ;;  %v17621_v24 = vld [vmem:[#allocation218_spill] sm:$0xff]  ;;  %v8153_v40 = vpop.permute.xlu0 %8152 }
 0x2c3   :  { %vm3209_vm1 = vcmp.gt.f32.partialorder %v2968_v28, 0.0  ;;  %v3274_v43 = vmul.f32 %v13345_v34, %v2968_v28  ;;  %8197 = vrot.lane.b32.xlu1 %v13451_v50, %s9465_s10  ;;  %v2547_v51 = vsel %vm2488_vm8, %v13368_v17, %v8139_v15  ;;  %v2744_v58 = vpack.c.bf16 %v17621_v24, %v17620_v29 }
 0x2c4   :  { %8202 = vrot.lane.b32.xlu0 %v13466_v62, %s9467_s24  ;;  %v2970_v32 = vpop.f32.mrf.mxu0  ;;  %v2548_v52 = vsel %vm2488_vm8, %v13388_v16, %v8140_v6  ;;  %v2739_v20 = vpack.c.bf16 %v2676_v35, %v2675_v60  ;;  %v8150_v16 = vunpack.i.h.bf16 %v13487_v26  ;;  %v8158_v6 = vpop.permute.xlu1 %8157  ;;  %v8155_v12 = vunpack.i.h.bf16 %v8153_v40 }
 0x2c5   :  { %v3338_v9 = vsel %vm3209_vm1, %v2968_v28, %v3274_v43  ;;  %v3468_v55 = vld [vmem:[#allocation2 + $0x38] sm:$0xff]  ;;  %v3469_v31 = vld [vmem:[#allocation2 + $0x40] sm:$0x3]  ;;  %v2613_v43 = vsel %vm2553_vm9, %v2548_v52, %v8145_v48  ;;  %v8154_v56 = vunpack.i.l.bf16 %v8153_v40 }
 0x2c6   :  { %3402 = vst.msk [vmem:[#allocation2 + $0x51] sm:$0xff] %vm90_vm0, %v3338_v9  ;;  %v2973_v23 = vpop.f32.mrf.mxu0  ;;  %3164 = vmatmul.mubr.bf16.gmra.mxu0 %v2737_v25  ;;  %v8206_v19 = vpack.i.bf16 %v3468_v55, %v3467_v63  ;;  %v3678_v61 = vrot.slane %v3469_v31, 1  ;;  %v3836_v36 = vrot.slane %v3468_v55, 2  ;;  %v3838_v7 = vrot.slane %v3469_v31, 2 }
 0x2c7   :  { %vm3210_vm2 = vcmp.gt.f32.partialorder %v2973_v23, 0.0  ;;  %v3275_v10 = vmul.f32 %v13345_v34, %v2973_v23  ;;  %v3676_v49 = vrot.slane %v3468_v55, 1  ;;  %6984 = vmatprep.mubr.msk.bf16.mxu0 %vm90_vm0, %v2740_v27  ;;  %v8149_v27 = vunpack.i.l.bf16 %v13487_v26 }
 0x2c8   :  { %8207 = vrot.lane.b32.xlu1 %v8206_v19, %s9468_s1  ;;  %v2975_v57 = vpop.f32.mrf.mxu0  ;;  %v3837_v47 = vsel %vm608_vm4, %v3835_v0, %v3836_v36  ;;  %v3839_v22 = vsel %vm608_vm4, %v3836_v36, %v3838_v7  ;;  %v2612_v25 = vsel %vm2553_vm9, %v2547_v51, %v8144_v21  ;;  %v8163_v36 = vpop.permute.xlu0 %8162 }
 0x2c9   :  { %v3339_v41 = vsel %vm3210_vm2, %v2973_v23, %v3275_v10  ;;  %v5894_v46 = vpack.c.bf16 %v3839_v22, %v3837_v47  ;;  %v3677_v1 = vsel %vm447_vm3, %v3675_v5, %v3676_v49  ;;  %v3679_v28 = vsel %vm447_vm3, %v3676_v49, %v3678_v61  ;;  %v13508_v11 = vld [vmem:[#allocation2 + $0x48] sm:$0xff] }
 0x2ca   :  { %3403 = vst.msk [vmem:[#allocation2 + $0x61] sm:$0xff] %vm90_vm0, %v3339_v41  ;;  %v2976_v54 = vpop.f32.mrf.mxu0  ;;  %v13506_v17 = vpack.i.bf16 %v3679_v28, %v3677_v1  ;;  %v3840_v31 = vrot.slane %v13508_v11, 2  ;;  %v8160_v23 = vunpack.i.h.bf16 %v8158_v6  ;;  %v8159_v61 = vunpack.i.l.bf16 %v8158_v6 }
 0x2cb   :  { %vm3211_vm11 = vcmp.gt.f32.partialorder %v2976_v54, 0.0  ;;  %v3276_v63 = vmul.f32 %v13345_v34, %v2976_v54  ;;  %6997 = vmatprep.mubr.msk.bf16.mxu1 %vm90_vm0, %v5894_v46  ;;  %v2677_v48 = vsel %vm2618_vm10, %v2612_v25, %v8149_v27  ;;  %v2678_v10 = vsel %vm2618_vm10, %v2613_v43, %v8150_v16 }
 0x2cc   :  { %8217 = vrot.lane.b32.xlu1 %v13451_v50, %s9462_s19  ;;  %v2978_v15 = vpop.f32.mrf.mxu0  ;;  %8212 = vrot.lane.b32.xlu0 %v13506_v17, %s9469_s7  ;;  %v2549_v49 = vsel %vm2488_vm8, %v13459_v8, %v8154_v56  ;;  %v3680_v38 = vrot.slane %v13508_v11, 1  ;;  %v8236_v57 = vpack.i.bf16 %v3839_v22, %v3837_v47  ;;  %v8165_v52 = vunpack.i.h.bf16 %v8163_v36  ;;  %v8173_v43 = vpop.permute.xlu0 %8172 }
 0x2cd   :  { %v3340_v13 = vsel %vm3211_vm11, %v2976_v54, %v3276_v63  ;;  %v3471_v32 = vld [vmem:[#allocation2 + $0x50] sm:$0xff]  ;;  %v3472_v60 = vld [vmem:[#allocation2 + $0x58] sm:$0x3]  ;;  %v8164_v40 = vunpack.i.l.bf16 %v8163_v36  ;;  %v2741_v47 = vpack.c.bf16 %v2678_v10, %v2677_v48  ;;  %v2614_v1 = vsel %vm2553_vm9, %v2549_v49, %v8159_v61 }
 0x2ce   :  { %3404 = vst.msk [vmem:[#allocation2 + $0x69] sm:$0xff] %vm90_vm0, %v3340_v13  ;;  %v2981_v35 = vpop.f32.mrf.mxu0  ;;  %3172 = vmatmul.mubr.bf16.gmra.mxu0 %v2739_v20  ;;  %v3681_v9 = vrot.slane %v3471_v32, 1  ;;  %v3683_v55 = vrot.slane %v3472_v60, 1  ;;  %v3841_v0 = vrot.slane %v3471_v32, 2  ;;  %v3843_v26 = vrot.slane %v3472_v60, 2 }
 0x2cf   :  { %vm3212_vm12 = vcmp.gt.f32.partialorder %v2981_v35, 0.0  ;;  %v3277_v50 = vmul.f32 %v13345_v34, %v2981_v35  ;;  %6985 = vmatprep.mubr.msk.bf16.mxu0 %vm90_vm0, %v2742_v59  ;;  %v2550_v59 = vsel %vm2488_vm8, %v13463_v44, %v8155_v12  ;;  %v8241_v6 = vpack.i.bf16 %v3471_v32, %v13508_v11 }
 0x2d0   :  { %8227 = vrot.lane.b32.xlu1 %v8206_v19, %s9464_s9  ;;  %v2983_v7 = vpop.f32.mrf.mxu0  ;;  %8222 = vrot.lane.b32.xlu0 %v13466_v62, %s9463_s0  ;;  %v13534_v53 = vsel %vm608_vm4, %v3840_v31, %v3841_v0  ;;  %v8168_v19 = vpop.permute.xlu1 %8167  ;;  %v13540_v51 = vsel %vm608_vm4, %v3841_v0, %v3843_v26  ;;  %v3682_v62 = vsel %vm447_vm3, %v3680_v38, %v3681_v9 }
 0x2d1   :  { %v3341_v21 = vsel %vm3212_vm12, %v2981_v35, %v3277_v50  ;;  %v3684_v41 = vsel %vm447_vm3, %v3681_v9, %v3683_v55  ;;  %v13545_v46 = vld [vmem:[#allocation2 + $0x60] sm:$0xff]  ;;  %v8170_v54 = vunpack.i.h.bf16 %v8168_v19  ;;  %v2615_v28 = vsel %vm2553_vm9, %v2550_v59, %v8160_v23 }
 0x2d2   :  { %3405 = vst.msk [vmem:[#allocation2 + $0x79] sm:$0xff] %vm90_vm0, %v3341_v21  ;;  %v2984_v5 = vpop.f32.mrf.mxu0  ;;  %v8169_v27 = vunpack.i.l.bf16 %v8168_v19  ;;  %v13560_v15 = vpack.i.bf16 %v3684_v41, %v3682_v62  ;;  %v3845_v12 = vrot.slane %v13545_v46, 2  ;;  %v2422_v11 = vsel %vm2358_vm6, %v13132_v42, %v7540_v39 }
 0x2d3   :  { %vm3213_vm13 = vcmp.gt.f32.partialorder %v2984_v5, 0.0  ;;  %v3278_v8 = vmul.f32 %v13345_v34, %v2984_v5  ;;  %v2486_v32 = vsel %vm2423_vm7, %v13296_v37, %v7699_v45  ;;  %v2679_v35 = vsel %vm2618_vm10, %v2614_v1, %v8164_v40 }
 0x2d4   :  { %8237 = vrot.lane.b32.xlu1 %v8236_v57, %s9467_s24  ;;  %v2986_v44 = vpop.f32.mrf.mxu0  ;;  %8232 = vrot.lane.b32.xlu0 %v13506_v17, %s9465_s10  ;;  %v2680_v29 = vsel %vm2618_vm10, %v2615_v28, %v8165_v52  ;;  %v8174_v9 = vunpack.i.l.bf16 %v8173_v43  ;;  %v8178_v55 = vpop.permute.xlu1 %8177  ;;  %v2487_v39 = vsel %vm2423_vm7, %v2422_v11, %v7700_v3  ;;  %v2551_v37 = vsel %vm2488_vm8, %v2486_v32, %v8169_v27 }
 0x2d5   :  { %v3342_v63 = vsel %vm3213_vm13, %v2984_v5, %v3278_v8  ;;  %v13554_v20 = vld [vmem:[#allocation2 + $0x68] sm:$0xff]  ;;  %v13556_v16 = vld [vmem:[#allocation2 + $0x70] sm:$0x3]  ;;  %v2552_v50 = vsel %vm2488_vm8, %v2487_v39, %v8170_v54  ;;  %v8180_v23 = vunpack.i.h.bf16 %v8178_v55  ;;  %v8179_v61 = vunpack.i.l.bf16 %v8178_v55 }
 0x2d6   :  { %3406 = vst.msk [vmem:[#allocation2 + $0x81] sm:$0xff] %vm90_vm0, %v3342_v63  ;;  %v2989_v25 = vpop.f32.mrf.mxu0  ;;  %3180 = vmatmul.mubr.bf16.gmra.mxu0 %v2741_v47  ;;  %v3846_v13 = vrot.slane %v13554_v20, 2  ;;  %v3848_v60 = vrot.slane %v13556_v16, 2  ;;  %v2743_v3 = vpack.c.bf16 %v2680_v29, %v2679_v35  ;;  %v2616_v48 = vsel %vm2553_vm9, %v2551_v37, %v8174_v9 }
 0x2d7   :  { %vm3214_vm14 = vcmp.gt.f32.partialorder %v2989_v25, 0.0  ;;  %v3279_v56 = vmul.f32 %v13345_v34, %v2989_v25  ;;  %6986 = vmatprep.mubr.msk.bf16.mxu0 %vm90_vm0, %v2744_v58  ;;  %v8175_v58 = vunpack.i.h.bf16 %v8173_v43  ;;  %v3686_v59 = vrot.slane %v13554_v20, 1 }
 0x2d8   :  { %8247 = vrot.lane.b32.xlu1 %v13560_v15, %s9469_s7  ;;  %v2991_v24 = vpop.f32.mrf.mxu0  ;;  %8242 = vrot.lane.b32.xlu0 %v8241_v6, %s9468_s1  ;;  %v13584_v42 = vsel %vm608_vm4, %v3845_v12, %v3846_v13  ;;  %v13592_v31 = vsel %vm608_vm4, %v3846_v13, %v3848_v60  ;;  %v3688_v19 = vrot.slane %v13556_v16, 1  ;;  %v2681_v62 = vsel %vm2618_vm10, %v2616_v48, %v8179_v61 }
 0x2d9   :  { %v3343_v14 = vsel %vm3214_vm14, %v2989_v25, %v3279_v56  ;;  %v13596_v26 = vld [vmem:[#allocation2 + $0x78] sm:$0xff]  ;;  %v2617_v7 = vsel %vm2553_vm9, %v2552_v50, %v8175_v58  ;;  %v3685_v44 = vrot.slane %v13545_v46, 1  ;;  %v8276_v47 = vpack.i.bf16 %v13554_v20, %v13545_v46 }
 0x2da   :  { %3407 = vst.msk [vmem:[#allocation2 + $0x91] sm:$0xff] %vm90_vm0, %v3343_v14  ;;  %v2992_v45 = vpop.f32.mrf.mxu0  ;;  %v2682_v52 = vsel %vm2618_vm10, %v2617_v7, %v8180_v23  ;;  %v3689_v63 = vsel %vm447_vm3, %v3686_v59, %v3688_v19 }
 0x2db   :  { %vm3215_vm15 = vcmp.gt.f32.partialorder %v2992_v45, 0.0  ;;  %v3280_v0 = vmul.f32 %v13345_v34, %v2992_v45  ;;  %v3687_v28 = vsel %vm447_vm3, %v3685_v44, %v3686_v59  ;;  %v2745_v43 = vpack.c.bf16 %v2682_v52, %v2681_v62 }
 0x2dc   :  { %8257 = vrot.lane.b32.xlu1 %v8236_v57, %s9463_s0  ;;  %v2994_v4 = vpop.f32.mrf.mxu0  ;;  %8252 = vrot.lane.b32.xlu0 %v13506_v17, %s9462_s19  ;;  %v3850_v57 = vrot.slane %v13596_v26, 2  ;;  %v13651_v56 = vpack.i.bf16 %v3689_v63, %v3687_v28 }
 0x2dd   :  { %v3344_v10 = vsel %vm3215_vm15, %v2992_v45, %v3280_v0  ;;  %v13605_v49 = vld [vmem:[#allocation2 + $0x80] sm:$0xff]  ;;  %v13607_v21 = vld [vmem:[#allocation2 + $0x88] sm:$0x3]  ;;  %v3690_v45 = vrot.slane %v13596_v26, 1 }
 0x2de   :  { %3408 = vst.msk [vmem:[#allocation2 + $0x99] sm:$0xff] %vm90_vm0, %v3344_v10  ;;  %v2997_v38 = vpop.f32.mrf.mxu0  ;;  %3188 = vmatmul.mubr.bf16.gmra.mxu0 %v2743_v3  ;;  %v3851_v17 = vrot.slane %v13605_v49, 2  ;;  %v3853_v8 = vrot.slane %v13607_v21, 2  ;;  %v3691_v9 = vrot.slane %v13605_v49, 1  ;;  %v3693_v55 = vrot.slane %v13607_v21, 1 }
 0x2df   :  { %vm3216_vm1 = vcmp.gt.f32.partialorder %v2997_v38, 0.0  ;;  %v3281_v5 = vmul.f32 %v13345_v34, %v2997_v38  ;;  %6987 = vmatprep.mubr.msk.bf16.mxu0 %vm90_vm0, %v2746_v18  ;;  %v8271_v18 = vpack.i.bf16 %v13540_v51, %v13534_v53  ;;  %v8306_v3 = vpack.i.bf16 %v13592_v31, %v13584_v42 }
 0x2e0   :  { %8267 = vrot.lane.b32.xlu1 %v13560_v15, %s9465_s10  ;;  %v2999_v41 = vpop.f32.mrf.mxu0  ;;  %8262 = vrot.lane.b32.xlu0 %v8241_v6, %s9464_s9  ;;  %v13627_v30 = vsel %vm608_vm4, %v3850_v57, %v3851_v17  ;;  %v13635_v54 = vsel %vm608_vm4, %v3851_v17, %v3853_v8  ;;  %v3692_v7 = vsel %vm447_vm3, %v3690_v45, %v3691_v9 }
 0x2e1   :  { %v3345_v40 = vsel %vm3216_vm1, %v2997_v38, %v3281_v5  ;;  %v13640_v16 = vld [vmem:[#allocation2 + $0x90] sm:$0xff]  ;;  %v3694_v48 = vsel %vm447_vm3, %v3691_v9, %v3693_v55  ;;  %v8311_v52 = vpack.i.bf16 %v13605_v49, %v13596_v26  ;;  %v8341_v45 = vpack.i.bf16 %v13635_v54, %v13627_v30 }
 0x2e2   :  { %3409 = vst.msk [vmem:[#allocation2 + $0xa9] sm:$0xff] %vm90_vm0, %v3345_v40  ;;  %v3000_v2 = vpop.f32.mrf.mxu0  ;;  %v3855_v13 = vrot.slane %v13640_v16, 2  ;;  %v13698_v8 = vpack.i.bf16 %v3694_v48, %v3692_v7 }
 0x2e3   :  { %vm3217_vm2 = vcmp.gt.f32.partialorder %v3000_v2, 0.0  ;;  %v3282_v1 = vmul.f32 %v13345_v34, %v3000_v2 }
 0x2e4   :  { %8277 = vrot.lane.b32.xlu1 %v8276_v47, %s9468_s1  ;;  %v3002_v27 = vpop.f32.mrf.mxu0  ;;  %8272 = vrot.lane.b32.xlu0 %v8271_v18, %s9467_s24 }
 0x2e5   :  { %v3346_v46 = vsel %vm3217_vm2, %v3000_v2, %v3282_v1  ;;  %v13646_v20 = vld [vmem:[#allocation2 + $0x98] sm:$0xff]  ;;  %v13648_v6 = vld [vmem:[#allocation2 + $0xa0] sm:$0x3] }
 0x2e6   :  { %3410 = vst.msk [vmem:[#allocation2 + $0xb1] sm:$0xff] %vm90_vm0, %v3346_v46  ;;  %v3005_v12 = vpop.f32.mrf.mxu0  ;;  %3196 = vmatmul.mubr.bf16.gmra.mxu0 %v2745_v43  ;;  %v3856_v11 = vrot.slane %v13646_v20, 2  ;;  %v3858_v32 = vrot.slane %v13648_v6, 2 }
 0x2e7   :  { %vm3218_vm11 = vcmp.gt.f32.partialorder %v3005_v12, 0.0  ;;  %v3283_v60 = vmul.f32 %v13345_v34, %v3005_v12 }
 0x2e8   :  { %8287 = vrot.lane.b32.xlu1 %v13560_v15, %s9462_s19  ;;  %v3007_v35 = vpop.f32.mrf.mxu0  ;;  %8282 = vrot.lane.b32.xlu0 %v13651_v56, %s9469_s7  ;;  %v13662_v24 = vsel %vm608_vm4, %v3855_v13, %v3856_v11  ;;  %v13668_v14 = vsel %vm608_vm4, %v3856_v11, %v3858_v32 }
 0x2e9   :  { %v3347_v29 = vsel %vm3218_vm11, %v3005_v12, %v3283_v60  ;;  %v13671_v39 = vld [vmem:[#allocation2 + $0xa8] sm:$0xff] }
 0x2ea   :  { %3411 = vst.msk [vmem:[#allocation2 + $0xc1] sm:$0xff] %vm90_vm0, %v3347_v29  ;;  %v3008_v58 = vpop.f32.mrf.mxu0  ;;  %v3860_v10 = vrot.slane %v13671_v39, 2  ;;  %v3698_v29 = vrot.slane %v13648_v6, 1  ;;  %v3695_v6 = vrot.slane %v13640_v16, 1 }
 0x2eb   :  { %vm3219_vm12 = vcmp.gt.f32.partialorder %v3008_v58, 0.0  ;;  %v3284_v15 = vmul.f32 %v13345_v34, %v3008_v58 }
 0x2ec   :  { %8297 = vrot.lane.b32.xlu1 %v8276_v47, %s9464_s9  ;;  %v3010_v37 = vpop.f32.mrf.mxu0  ;;  %8292 = vrot.lane.b32.xlu0 %v8271_v18, %s9463_s0 }
 0x2ed   :  { %v3348_v0 = vsel %vm3219_vm12, %v3008_v58, %v3284_v15  ;;  %v13678_v23 = vld [vmem:[#allocation2 + $0xb0] sm:$0xff]  ;;  %v13680_v61 = vld [vmem:[#allocation2 + $0xb8] sm:$0x3] }
 0x2ee   :  { %3412 = vst.msk [vmem:[#allocation2 + $0xc9] sm:$0xff] %vm90_vm0, %v3348_v0  ;;  %v3013_v4 = vpop.f32.mrf.mxu0  ;;  %v3861_v38 = vrot.slane %v13678_v23, 2  ;;  %v3863_v59 = vrot.slane %v13680_v61, 2  ;;  %v8346_v0 = vpack.i.bf16 %v13646_v20, %v13640_v16 }
 0x2ef   :  { %vm3220_vm13 = vcmp.gt.f32.partialorder %v3013_v4, 0.0  ;;  %v3285_v21 = vmul.f32 %v13345_v34, %v3013_v4 }
 0x2f0   :  { %8307 = vrot.lane.b32.xlu1 %v8306_v3, %s9467_s24  ;;  %v3015_v19 = vpop.f32.mrf.mxu0  ;;  %8302 = vrot.lane.b32.xlu0 %v13651_v56, %s9465_s10  ;;  %v13695_v5 = vsel %vm608_vm4, %v3860_v10, %v3861_v38  ;;  %v13701_v62 = vsel %vm608_vm4, %v3861_v38, %v3863_v59 }
 0x2f1   :  { %v3349_v57 = vsel %vm3220_vm13, %v3013_v4, %v3285_v21  ;;  %v13706_v40 = vld [vmem:[#allocation2 + $0xc0] sm:$0xff] }
 0x2f2   :  { %3413 = vst.msk [vmem:[#allocation2 + $0xd9] sm:$0xff] %vm90_vm0, %v3349_v57  ;;  %v3016_v17 = vpop.f32.mrf.mxu0  ;;  %v3865_v26 = vrot.slane %v13706_v40, 2 }
 0x2f3   :  { %vm3221_vm14 = vcmp.gt.f32.partialorder %v3016_v17, 0.0  ;;  %v3286_v41 = vmul.f32 %v13345_v34, %v3016_v17 }
 0x2f4   :  { %8317 = vrot.lane.b32.xlu1 %v13698_v8, %s9469_s7  ;;  %v3018_v44 = vpop.f32.mrf.mxu0  ;;  %8312 = vrot.lane.b32.xlu0 %v8311_v52, %s9468_s1 }
 0x2f5   :  { %v3350_v18 = vsel %vm3221_vm14, %v3016_v17, %v3286_v41  ;;  %v13713_v47 = vld [vmem:[#allocation2 + $0xc8] sm:$0xff]  ;;  %v13715_v1 = vld [vmem:[#allocation2 + $0xd0] sm:$0x3] }
 0x2f6   :  { %3414 = vst.msk [vmem:[#allocation2 + $0xe1] sm:$0xff] %vm90_vm0, %v3350_v18  ;;  %v3021_v28 = vpop.f32.mrf.mxu0  ;;  %v3866_v63 = vrot.slane %v13713_v47, 2  ;;  %v3868_v27 = vrot.slane %v13715_v1, 2 }
 0x2f7   :  { %vm3222_vm15 = vcmp.gt.f32.partialorder %v3021_v28, 0.0  ;;  %v3287_v49 = vmul.f32 %v13345_v34, %v3021_v28 }
 0x2f8   :  { %8327 = vrot.lane.b32.xlu1 %v8306_v3, %s9463_s0  ;;  %v3023_v43 = vpop.f32.mrf.mxu0  ;;  %8322 = vrot.lane.b32.xlu0 %v13651_v56, %s9462_s19  ;;  %v13726_v12 = vsel %vm608_vm4, %v3865_v26, %v3866_v63  ;;  %v13730_v60 = vsel %vm608_vm4, %v3866_v63, %v3868_v27  ;;  %v3696_v56 = vrot.slane %v13646_v20, 1  ;;  %v3701_v63 = vrot.slane %v13678_v23, 1 }
 0x2f9   :  { %v3351_v46 = vsel %vm3222_vm15, %v3021_v28, %v3287_v49  ;;  %17622 = vst [vmem:[#allocation216_spill] sm:$0xff] %v13726_v12  ;;  %17623 = vst [vmem:[#allocation219_spill] sm:$0xff] %v13730_v60  ;;  %v13733_v32 = vld [vmem:[#allocation2 + $0xd8] sm:$0xff]  ;;  %v3703_v27 = vrot.slane %v13680_v61, 1 }
 0x2fa   :  { %3415 = vst.msk [vmem:[#allocation2 + $0xf1] sm:$0xff] %vm90_vm0, %v3351_v46  ;;  %v3024_v13 = vpop.f32.mrf.mxu0  ;;  %v3870_v4 = vrot.slane %v13733_v32, 2  ;;  %v3697_v21 = vsel %vm447_vm3, %v3695_v6, %v3696_v56  ;;  %v3699_v38 = vsel %vm447_vm3, %v3696_v56, %v3698_v29  ;;  %v3700_v56 = vrot.slane %v13671_v39, 1 }
 0x2fb   :  { %vm3223_vm1 = vcmp.gt.f32.partialorder %v3024_v13, 0.0  ;;  %v3288_v11 = vmul.f32 %v13345_v34, %v3024_v13  ;;  %v13768_v17 = vpack.i.bf16 %v3699_v38, %v3697_v21 }
 0x2fc   :  { %8337 = vrot.lane.b32.xlu1 %v13698_v8, %s9465_s10  ;;  %v3026_v35 = vpop.f32.mrf.mxu0  ;;  %8332 = vrot.lane.b32.xlu0 %v8311_v52, %s9464_s9  ;;  %v3702_v6 = vsel %vm447_vm3, %v3700_v56, %v3701_v63 }
 0x2fd   :  { %v3352_v9 = vsel %vm3223_vm1, %v3024_v13, %v3288_v11  ;;  %v13742_v55 = vld [vmem:[#allocation2 + $0xe0] sm:$0xff]  ;;  %v13744_v15 = vld [vmem:[#allocation2 + $0xe8] sm:$0x3] }
 0x2fe   :  { %3416 = vst.msk [vmem:[#allocation2 + $0xf9] sm:$0xff] %vm90_vm0, %v3352_v9  ;;  %v3029_v37 = vpop.f32.mrf.mxu0  ;;  %v3871_v7 = vrot.slane %v13742_v55, 2  ;;  %v3873_v48 = vrot.slane %v13744_v15, 2  ;;  %v8376_v9 = vpack.i.bf16 %v13668_v14, %v13662_v24 }
 0x2ff   :  { %vm3224_vm2 = vcmp.gt.f32.partialorder %v3029_v37, 0.0  ;;  %v3289_v3 = vmul.f32 %v13345_v34, %v3029_v37 }
 0x300   :  { %8347 = vrot.lane.b32.xlu1 %v8346_v0, %s9468_s1  ;;  %v3031_v10 = vpop.f32.mrf.mxu0  ;;  %8342 = vrot.lane.b32.xlu0 %v8341_v45, %s9467_s24  ;;  %v13761_v16 = vsel %vm608_vm4, %v3870_v4, %v3871_v7  ;;  %v13765_v19 = vsel %vm608_vm4, %v3871_v7, %v3873_v48 }
 0x301   :  { %v3353_v59 = vsel %vm3224_vm2, %v3029_v37, %v3289_v3  ;;  %17624 = vst [vmem:[#allocation220_spill] sm:$0xff] %v13761_v16  ;;  %17625 = vst [vmem:[#allocation122_spill] sm:$0xff] %v13765_v19  ;;  %v13770_v41 = vld [vmem:[#allocation2 + $0xf0] sm:$0xff] }
 0x302   :  { %3417 = vst.msk [vmem:[#allocation2 + $0x109] sm:$0xff] %vm90_vm0, %v3353_v59  ;;  %v3032_v20 = vpop.f32.mrf.mxu0  ;;  %v8381_v59 = vpack.i.bf16 %v13678_v23, %v13671_v39 }
 0x303   :  { %vm3225_vm11 = vcmp.gt.f32.partialorder %v3032_v20, 0.0  ;;  %v3290_v57 = vmul.f32 %v13345_v34, %v3032_v20 }
 0x304   :  { %8357 = vrot.lane.b32.xlu1 %v13698_v8, %s9462_s19  ;;  %v3034_v52 = vpop.f32.mrf.mxu0  ;;  %8352 = vrot.lane.b32.xlu0 %v13768_v17, %s9469_s7  ;;  %v3875_v8 = vrot.slane %v13770_v41, 2 }
 0x305   :  { %v3354_v18 = vsel %vm3225_vm11, %v3032_v20, %v3290_v57  ;;  %v13778_v28 = vld [vmem:[#allocation2 + $0xf8] sm:$0xff]  ;;  %v13780_v26 = vld [vmem:[#allocation2 + $0x100] sm:$0x3] }
 0x306   :  { %3418 = vst.msk [vmem:[#allocation2 + $0x111] sm:$0xff] %vm90_vm0, %v3354_v18  ;;  %v3037_v49 = vpop.f32.mrf.mxu0  ;;  %v3876_v46 = vrot.slane %v13778_v28, 2  ;;  %v3878_v13 = vrot.slane %v13780_v26, 2  ;;  %v3716_v36 = vrot.slane %v13778_v28, 1 }
 0x307   :  { %vm3226_vm12 = vcmp.gt.f32.partialorder %v3037_v49, 0.0  ;;  %v3291_v43 = vmul.f32 %v13345_v34, %v3037_v49 }
 0x308   :  { %8367 = vrot.lane.b32.xlu1 %v8346_v0, %s9464_s9  ;;  %v3039_v11 = vpop.f32.mrf.mxu0  ;;  %8362 = vrot.lane.b32.xlu0 %v8341_v45, %s9463_s0  ;;  %v13793_v29 = vsel %vm608_vm4, %v3875_v8, %v3876_v46  ;;  %v13799_v37 = vsel %vm608_vm4, %v3876_v46, %v3878_v13  ;;  %v3704_v45 = vsel %vm447_vm3, %v3701_v63, %v3703_v27 }
 0x309   :  { %v3355_v35 = vsel %vm3226_vm12, %v3037_v49, %v3291_v43  ;;  %v13804_v4 = vld [vmem:[#allocation2 + $0x108] sm:$0xff]  ;;  %v8386_v20 = vpack.i.bf16 %v3704_v45, %v3702_v6 }
 0x30a   :  { %3419 = vst.msk [vmem:[#allocation2 + $0x121] sm:$0xff] %vm90_vm0, %v3355_v35  ;;  %v3040_v61 = vpop.f32.mrf.mxu0  ;;  %v3880_v57 = vrot.slane %v13804_v4, 2 }
 0x30b   :  { %vm3227_vm13 = vcmp.gt.f32.partialorder %v3040_v61, 0.0  ;;  %v3292_v0 = vmul.f32 %v13345_v34, %v3040_v61 }
 0x30c   :  { %8377 = vrot.lane.b32.xlu1 %v8376_v9, %s9467_s24  ;;  %v3042_v3 = vpop.f32.mrf.mxu0  ;;  %8372 = vrot.lane.b32.xlu0 %v13768_v17, %s9465_s10 }
 0x30d   :  { %v3356_v48 = vsel %vm3227_vm13, %v3040_v61, %v3292_v0  ;;  %v13811_v10 = vld [vmem:[#allocation2 + $0x110] sm:$0xff]  ;;  %v13813_v21 = vld [vmem:[#allocation2 + $0x118] sm:$0x3] }
 0x30e   :  { %3420 = vst.msk [vmem:[#allocation2 + $0x129] sm:$0xff] %vm90_vm0, %v3356_v48  ;;  %v3045_v38 = vpop.f32.mrf.mxu0  ;;  %v3881_v18 = vrot.slane %v13811_v10, 2  ;;  %v3883_v49 = vrot.slane %v13813_v21, 2 }
 0x30f   :  { %vm3228_vm14 = vcmp.gt.f32.partialorder %v3045_v38, 0.0  ;;  %v3293_v52 = vmul.f32 %v13345_v34, %v3045_v38 }
 0x310   :  { %8387 = vrot.lane.b32.xlu1 %v8386_v20, %s9469_s7  ;;  %v3047_v63 = vpop.f32.mrf.mxu0  ;;  %8382 = vrot.lane.b32.xlu0 %v8381_v59, %s9468_s1  ;;  %v13825_v8 = vsel %vm608_vm4, %v3880_v57, %v3881_v18  ;;  %v13829_v23 = vsel %vm608_vm4, %v3881_v18, %v3883_v49  ;;  %v8416_v49 = vpack.i.bf16 %v13713_v47, %v13706_v40 }
 0x311   :  { %v3357_v27 = vsel %vm3228_vm14, %v3045_v38, %v3293_v52  ;;  %v13832_v46 = vld [vmem:[#allocation2 + $0x120] sm:$0xff]  ;;  %v3708_v38 = vrot.slane %v13715_v1, 1  ;;  %v3705_v63 = vrot.slane %v13706_v40, 1 }
 0x312   :  { %3421 = vst.msk [vmem:[#allocation2 + $0x139] sm:$0xff] %vm90_vm0, %v3357_v27  ;;  %v3048_v39 = vpop.f32.mrf.mxu0  ;;  %v3885_v6 = vrot.slane %v13832_v46, 2 }
 0x313   :  { %vm3229_vm15 = vcmp.gt.f32.partialorder %v3048_v39, 0.0  ;;  %v3294_v43 = vmul.f32 %v13345_v34, %v3048_v39 }
 0x314   :  { %8397 = vrot.lane.b32.xlu1 %v8376_v9, %s9463_s0  ;;  %v3050_v13 = vpop.f32.mrf.mxu0  ;;  %8392 = vrot.lane.b32.xlu0 %v13768_v17, %s9462_s19  ;;  %v3706_v17 = vrot.slane %v13713_v47, 1 }
 0x315   :  { %v3358_v35 = vsel %vm3229_vm15, %v3048_v39, %v3294_v43  ;;  %v13839_v56 = vld [vmem:[#allocation2 + $0x128] sm:$0xff]  ;;  %v13841_v61 = vld [vmem:[#allocation2 + $0x130] sm:$0x3] }
 0x316   :  { %3422 = vst.msk [vmem:[#allocation2 + $0x141] sm:$0xff] %vm90_vm0, %v3358_v35  ;;  %v3053_v0 = vpop.f32.mrf.mxu0  ;;  %v3886_v45 = vrot.slane %v13839_v56, 2  ;;  %v3888_v3 = vrot.slane %v13841_v61, 2  ;;  %v3707_v43 = vsel %vm447_vm3, %v3705_v63, %v3706_v17  ;;  %v3709_v13 = vsel %vm447_vm3, %v3706_v17, %v3708_v38 }
 0x317   :  { %vm3230_vm1 = vcmp.gt.f32.partialorder %v3053_v0, 0.0  ;;  %v3295_v9 = vmul.f32 %v13345_v34, %v3053_v0  ;;  %v3713_v17 = vrot.slane %v13744_v15, 1 }
 0x318   :  { %8407 = vrot.lane.b32.xlu1 %v8386_v20, %s9465_s10  ;;  %v3055_v48 = vpop.f32.mrf.mxu0  ;;  %8402 = vrot.lane.b32.xlu0 %v8381_v59, %s9464_s9  ;;  %v13853_v52 = vsel %vm608_vm4, %v3885_v6, %v3886_v45  ;;  %v13860_v27 = vsel %vm608_vm4, %v3886_v45, %v3888_v3  ;;  %v8411_v59 = vpack.i.bf16 %v13701_v62, %v13695_v5 }
 0x319   :  { %v3359_v57 = vsel %vm3230_vm1, %v3053_v0, %v3295_v9  ;;  %v13873_v6 = vpack.i.bf16 %v3709_v13, %v3707_v43  ;;  %v3711_v48 = vrot.slane %v13742_v55, 1 }
 0x31a   :  { %3423 = vst.msk [vmem:[#allocation2 + $0x151] sm:$0xff] %vm90_vm0, %v3359_v57  ;;  %v3056_v18 = vpop.f32.mrf.mxu0 }
 0x31b   :  { %vm3231_vm2 = vcmp.gt.f32.partialorder %v3056_v18, 0.0  ;;  %v3296_v1 = vmul.f32 %v13345_v34, %v3056_v18 }
 0x31c   :  { %8417 = vrot.lane.b32.xlu1 %v8416_v49, %s9468_s1  ;;  %v3058_v39 = vpop.f32.mrf.mxu0  ;;  %8412 = vrot.lane.b32.xlu0 %v8411_v59, %s9467_s24 }
 0x31d   :  { %v3360_v40 = vsel %vm3231_vm2, %v3056_v18, %v3296_v1  ;;  %v13881_v38 = vld [vmem:[#allocation2 + $0x140] sm:$0xff]  ;;  %v13883_v57 = vld [vmem:[#allocation2 + $0x148] sm:$0x3]  ;;  %v3710_v1 = vrot.slane %v13733_v32, 1 }
 0x31e   :  { %3424 = vst.msk [vmem:[#allocation2 + $0x159] sm:$0xff] %vm90_vm0, %v3360_v40  ;;  %v3061_v35 = vpop.f32.mrf.mxu0  ;;  %v3891_v43 = vrot.slane %v13881_v38, 2  ;;  %v3893_v15 = vrot.slane %v13883_v57, 2 }
 0x31f   :  { %vm3232_vm11 = vcmp.gt.f32.partialorder %v3061_v35, 0.0  ;;  %v3297_v0 = vmul.f32 %v13345_v34, %v3061_v35 }
 0x320   :  { %8427 = vrot.lane.b32.xlu1 %v8386_v20, %s9462_s19  ;;  %v3063_v9 = vpop.f32.mrf.mxu0  ;;  %8422 = vrot.lane.b32.xlu0 %v13873_v6, %s9469_s7  ;;  %v13886_v20 = vld [vmem:[#allocation2 + $0x138] sm:$0xff] }
 0x321   :  { %v3361_v45 = vsel %vm3232_vm11, %v3061_v35, %v3297_v0  ;;  %v13893_v13 = vld [vmem:[#allocation2 + $0x150] sm:$0xff]  ;;  %v3712_v9 = vsel %vm447_vm3, %v3710_v1, %v3711_v48 }
 0x322   :  { %3425 = vst.msk [vmem:[#allocation2 + $0x169] sm:$0xff] %vm90_vm0, %v3361_v45  ;;  %v3064_v3 = vpop.f32.mrf.mxu0  ;;  %v3890_v45 = vrot.slane %v13886_v20, 2  ;;  %v3895_v47 = vrot.slane %v13893_v13, 2 }
 0x323   :  { %vm3233_vm12 = vcmp.gt.f32.partialorder %v3064_v3, 0.0  ;;  %v3298_v18 = vmul.f32 %v13345_v34, %v3064_v3 }
 0x324   :  { %8437 = vrot.lane.b32.xlu1 %v8416_v49, %s9464_s9  ;;  %v3066_v63 = vpop.f32.mrf.mxu0  ;;  %8432 = vrot.lane.b32.xlu0 %v8411_v59, %s9463_s0  ;;  %v8446_v49 = vpack.i.bf16 %v13730_v60, %v13726_v12  ;;  %v3714_v59 = vsel %vm447_vm3, %v3711_v48, %v3713_v17  ;;  %v13913_v48 = vsel %vm608_vm4, %v3890_v45, %v3891_v43  ;;  %v9394_v12 = vld [vmem:[#allocation2 + $0x8] sm:$0xff] }
 0x325   :  { %v3362_v39 = vsel %vm3233_vm12, %v3064_v3, %v3298_v18  ;;  %v13895_v40 = vld [vmem:[#allocation2 + $0x158] sm:$0xff]  ;;  %v13897_v35 = vld [vmem:[#allocation2 + $0x160] sm:$0x3]  ;;  %v13916_v17 = vsel %vm608_vm4, %v3891_v43, %v3893_v15  ;;  %v13919_v7 = vpack.i.bf16 %v3714_v59, %v3712_v9  ;;  %v8451_v45 = vpack.i.bf16 %v13742_v55, %v13733_v32  ;;  %v8183_v43 = vpop.permute.xlu0 %8182 }
 0x326   :  { %3426 = vst.msk [vmem:[#allocation2 + $0x171] sm:$0xff] %vm90_vm0, %v3362_v39  ;;  %v3069_v0 = vpop.f32.mrf.mxu0  ;;  %v3896_v18 = vrot.slane %v13895_v40, 2  ;;  %v3898_v63 = vrot.slane %v13897_v35, 2  ;;  %v8184_v58 = vunpack.i.l.bf16 %v8183_v43  ;;  %v8185_v32 = vunpack.i.h.bf16 %v8183_v43 }
 0x327   :  { %vm3234_vm13 = vcmp.gt.f32.partialorder %v3069_v0, 0.0  ;;  %v3299_v3 = vmul.f32 %v13345_v34, %v3069_v0  ;;  %v3715_v43 = vrot.slane %v13770_v41, 1 }
 0x328   :  { %8447 = vrot.lane.b32.xlu1 %v8446_v49, %s9467_s24  ;;  %v3071_v39 = vpop.f32.mrf.mxu0  ;;  %8442 = vrot.lane.b32.xlu0 %v13873_v6, %s9465_s10  ;;  %v13922_v44 = vsel %vm608_vm4, %v3895_v47, %v3896_v18 }
 0x329   :  { %v3363_v11 = vsel %vm3234_vm13, %v3069_v0, %v3299_v3  ;;  %v13925_v39 = vsel %vm608_vm4, %v3896_v18, %v3898_v63  ;;  %v13930_v3 = vld [vmem:[#allocation2 + $0x168] sm:$0xff] }
 0x32a   :  { %3427 = vst.msk [vmem:[#allocation2 + $0x181] sm:$0xff] %vm90_vm0, %v3363_v11  ;;  %v3072_v1 = vpop.f32.mrf.mxu0  ;;  %v3900_v18 = vrot.slane %v13930_v3, 2 }
 0x32b   :  { %vm3235_vm14 = vcmp.gt.f32.partialorder %v3072_v1, 0.0  ;;  %v3300_v0 = vmul.f32 %v13345_v34, %v3072_v1 }
 0x32c   :  { %8457 = vrot.lane.b32.xlu1 %v13919_v7, %s9469_s7  ;;  %v3074_v11 = vpop.f32.mrf.mxu0  ;;  %8452 = vrot.lane.b32.xlu0 %v8451_v45, %s9468_s1 }
 0x32d   :  { %v3364_v15 = vsel %vm3235_vm14, %v3072_v1, %v3300_v0  ;;  %v13937_v9 = vld [vmem:[#allocation2 + $0x170] sm:$0xff]  ;;  %v13939_v59 = vld [vmem:[#allocation2 + $0x178] sm:$0x3]  ;;  %v8188_v11 = vpop.permute.xlu1 %8187 }
 0x32e   :  { %3428 = vst.msk [vmem:[#allocation2 + $0x189] sm:$0xff] %vm90_vm0, %v3364_v15  ;;  %v3077_v55 = vpop.f32.mrf.mxu0  ;;  %v3901_v1 = vrot.slane %v13937_v9, 2  ;;  %v3903_v0 = vrot.slane %v13939_v59, 2 }
 0x32f   :  { %vm3236_vm15 = vcmp.gt.f32.partialorder %v3077_v55, 0.0  ;;  %v3301_v63 = vmul.f32 %v13345_v34, %v3077_v55 }
 0x330   :  { %8467 = vrot.lane.b32.xlu1 %v8446_v49, %s9463_s0  ;;  %v3079_v47 = vpop.f32.mrf.mxu0  ;;  %8462 = vrot.lane.b32.xlu0 %v13873_v6, %s9462_s19  ;;  %v13952_v15 = vsel %vm608_vm4, %v3900_v18, %v3901_v1  ;;  %v13957_v22 = vsel %vm608_vm4, %v3901_v1, %v3903_v0  ;;  %v9393_v18 = vld [vmem:[#allocation2] sm:$0xff]  ;;  %v8190_v1 = vunpack.i.h.bf16 %v8188_v11 }
 0x331   :  { %v3365_v2 = vsel %vm3236_vm15, %v3077_v55, %v3301_v63  ;;  %17626 = vst [vmem:[#allocation229_spill] sm:$0xff] %v13957_v22  ;;  %v3718_v47 = vrot.slane %v13780_v26, 1  ;;  %v8189_v55 = vunpack.i.l.bf16 %v8188_v11  ;;  %v5445_v63 = vsel %vm90_vm0, %v9393_v18, %v8184_v58 }
 0x332   :  { %3429 = vst.msk [vmem:[#allocation2 + $0x1c9] sm:$0xff] %vm90_vm0, %v3365_v2  ;;  %v8193_v50 = vpop.permute.xlu0 %8192  ;;  %v3080_v25 = vpop.f32.mrf.mxu0  ;;  %v5446_v26 = vsel %vm90_vm0, %v9394_v12, %v8185_v32  ;;  %v8486_v2 = vpack.i.bf16 %v13778_v28, %v13770_v41  ;;  %v3717_v22 = vsel %vm447_vm3, %v3715_v43, %v3716_v36 }
 0x333   :  { %vm3237_vm1 = vcmp.gt.f32.partialorder %v3080_v25, 0.0  ;;  %v3302_v49 = vmul.f32 %v13345_v34, %v3080_v25  ;;  %v8194_v58 = vunpack.i.l.bf16 %v8193_v50  ;;  %v5509_v11 = vsel %vm2293_vm5, %v5445_v63, %v8189_v55 }
 0x334   :  { %8477 = vrot.lane.b32.xlu1 %v13919_v7, %s9465_s10  ;;  %v3082_v6 = vpop.f32.mrf.mxu0  ;;  %8472 = vrot.lane.b32.xlu0 %v8451_v45, %s9464_s9  ;;  %v3719_v45 = vsel %vm447_vm3, %v3716_v36, %v3718_v47  ;;  %v8195_v12 = vunpack.i.h.bf16 %v8193_v50 }
 0x335   :  { %v3366_v0 = vsel %vm3237_vm1, %v3080_v25, %v3302_v49  ;;  %v8198_v33 = vpop.permute.xlu1 %8197  ;;  %v8481_v6 = vpack.i.bf16 %v13765_v19, %v13761_v16  ;;  %v13982_v19 = vpack.i.bf16 %v3719_v45, %v3717_v22  ;;  %v5573_v36 = vsel %vm2358_vm6, %v5509_v11, %v8194_v58 }
 0x336   :  { %3430 = vst.msk [vmem:[#allocation2 + $0x1d1] sm:$0xff] %vm90_vm0, %v3366_v0  ;;  %v3085_v60 = vpop.f32.mrf.mxu0  ;;  %v8199_v32 = vunpack.i.l.bf16 %v8198_v33  ;;  %v8203_v49 = vpop.permute.xlu0 %8202  ;;  %v5510_v0 = vsel %vm2293_vm5, %v5446_v26, %v8190_v1  ;;  %v8200_v16 = vunpack.i.h.bf16 %v8198_v33  ;;  %v3720_v11 = vrot.slane %v13804_v4, 1 }
 0x337   :  { %vm3238_vm2 = vcmp.gt.f32.partialorder %v3085_v60, 0.0  ;;  %v3303_v25 = vmul.f32 %v13345_v34, %v3085_v60  ;;  %v8204_v50 = vunpack.i.l.bf16 %v8203_v49  ;;  %v5574_v55 = vsel %vm2358_vm6, %v5510_v0, %v8195_v12 }
 0x338   :  { %8487 = vrot.lane.b32.xlu1 %v8486_v2, %s9468_s1  ;;  %v3087_v18 = vpop.f32.mrf.mxu0  ;;  %8482 = vrot.lane.b32.xlu0 %v8481_v6, %s9467_s24  ;;  %v5637_v63 = vsel %vm2423_vm7, %v5573_v36, %v8199_v32  ;;  %v8205_v33 = vunpack.i.h.bf16 %v8203_v49  ;;  %v5638_v1 = vsel %vm2423_vm7, %v5574_v55, %v8200_v16  ;;  %v3721_v12 = vrot.slane %v13811_v10, 1 }
 0x339   :  { %v3367_v41 = vsel %vm3238_vm2, %v3085_v60, %v3303_v25  ;;  %v5701_v32 = vsel %vm2488_vm8, %v5637_v63, %v8204_v50  ;;  %v3723_v49 = vrot.slane %v13813_v21, 1 }
 0x33a   :  { %3431 = vst.msk [vmem:[#allocation2 + $0x1e1] sm:$0xff] %vm90_vm0, %v3367_v41  ;;  %v8208_v28 = vpop.permute.xlu1 %8207  ;;  %v3088_v43 = vpop.f32.mrf.mxu0  ;;  %v5702_v18 = vsel %vm2488_vm8, %v5638_v1, %v8205_v33 }
 0x33b   :  { %vm3239_vm11 = vcmp.gt.f32.partialorder %v3088_v43, 0.0  ;;  %v3304_v47 = vmul.f32 %v13345_v34, %v3088_v43  ;;  %v8210_v26 = vunpack.i.h.bf16 %v8208_v28  ;;  %v8209_v22 = vunpack.i.l.bf16 %v8208_v28 }
 0x33c   :  { %8497 = vrot.lane.b32.xlu1 %v13919_v7, %s9462_s19  ;;  %v3090_v60 = vpop.f32.mrf.mxu0  ;;  %8492 = vrot.lane.b32.xlu0 %v13982_v19, %s9469_s7 }
 0x33d   :  { %v3368_v25 = vsel %vm3239_vm11, %v3088_v43, %v3304_v47  ;;  %v5765_v50 = vsel %vm2553_vm9, %v5701_v32, %v8209_v22  ;;  %v5766_v55 = vsel %vm2553_vm9, %v5702_v18, %v8210_v26  ;;  %v3724_v22 = vsel %vm447_vm3, %v3721_v12, %v3723_v49  ;;  %v9395_v26 = vld [vmem:[#allocation2 + $0x20] sm:$0xff]  ;;  %v9396_v18 = vld [vmem:[#allocation2 + $0x18] sm:$0xff] }
 0x33e   :  { %3432 = vst.msk [vmem:[#allocation2 + $0x1e9] sm:$0xff] %vm90_vm0, %v3368_v25  ;;  %v8218_v58 = vpop.permute.xlu1 %8217  ;;  %v3093_v45 = vpop.f32.mrf.mxu0 }
 0x33f   :  { %v8213_v7 = vpop.permute.xlu0 %8212  ;;  %vm3240_vm12 = vcmp.gt.f32.partialorder %v3093_v45, 0.0  ;;  %v3305_v16 = vmul.f32 %v13345_v34, %v3093_v45  ;;  %v8220_v28 = vunpack.i.h.bf16 %v8218_v58  ;;  %v8219_v36 = vunpack.i.l.bf16 %v8218_v58 }
 0x340   :  { %v8215_v0 = vunpack.i.h.bf16 %v8213_v7  ;;  %v8214_v41 = vunpack.i.l.bf16 %v8213_v7  ;;  %8507 = vrot.lane.b32.xlu1 %v8486_v2, %s9464_s9  ;;  %v3095_v43 = vpop.f32.mrf.mxu0  ;;  %8502 = vrot.lane.b32.xlu0 %v8481_v6, %s9463_s0  ;;  %v8516_v2 = vpack.i.bf16 %v13799_v37, %v13793_v29  ;;  %v3722_v6 = vsel %vm447_vm3, %v3720_v11, %v3721_v12 }
 0x341   :  { %v3369_v47 = vsel %vm3240_vm12, %v3093_v45, %v3305_v16  ;;  %v5448_v58 = vsel %vm90_vm0, %v9395_v26, %v8220_v28 }
 0x342   :  { %3433 = vst.msk [vmem:[#allocation2 + $0x1f9] sm:$0xff] %vm90_vm0, %v3369_v47  ;;  %v8228_v63 = vpop.permute.xlu1 %8227  ;;  %v3096_v21 = vpop.f32.mrf.mxu0  ;;  %v5829_v33 = vsel %vm2618_vm10, %v5765_v50, %v8214_v41  ;;  %v5830_v60 = vsel %vm2618_vm10, %v5766_v55, %v8215_v0  ;;  %v5447_v0 = vsel %vm90_vm0, %v9396_v18, %v8219_v36  ;;  %v14020_v50 = vpack.i.bf16 %v3724_v22, %v3722_v6 }
 0x343   :  { %v8223_v1 = vpop.permute.xlu0 %8222  ;;  %vm3241_vm13 = vcmp.gt.f32.partialorder %v3096_v21, 0.0  ;;  %v3306_v25 = vmul.f32 %v13345_v34, %v3096_v21  ;;  %v5893_v7 = vpack.c.bf16 %v5830_v60, %v5829_v33  ;;  %v8230_v41 = vunpack.i.h.bf16 %v8228_v63 }
 0x344   :  { %v8225_v45 = vunpack.i.h.bf16 %v8223_v1  ;;  %v8224_v32 = vunpack.i.l.bf16 %v8223_v1  ;;  %8517 = vrot.lane.b32.xlu1 %v8516_v2, %s9467_s24  ;;  %v3098_v16 = vpop.f32.mrf.mxu0  ;;  %v8229_v43 = vunpack.i.l.bf16 %v8228_v63  ;;  %8512 = vrot.lane.b32.xlu0 %v13982_v19, %s9465_s10  ;;  %v17627_v36 = vpack.c.bf16 %v13540_v51, %v13534_v53 }
 0x345   :  { %v3370_v47 = vsel %vm3241_vm13, %v3096_v21, %v3306_v25  ;;  %6158 = vmatmul.mubr.bf16.vlgmr.msra.gmra.mxu1 %v5893_v7  ;;  %v8521_v63 = vpack.i.bf16 %v13811_v10, %v13804_v4 }
 0x346   :  { %v5512_v11 = vsel %vm2293_vm5, %v5448_v58, %v8225_v45  ;;  %v5511_v12 = vsel %vm2293_vm5, %v5447_v0, %v8224_v32  ;;  %3434 = vst.msk [vmem:[#allocation2 + $0x201] sm:$0xff] %vm90_vm0, %v3370_v47  ;;  %v8238_v49 = vpop.permute.xlu1 %8237  ;;  %v3101_v28 = vpop.f32.mrf.mxu0  ;;  %6998 = vmatprep.mubr.msk.bf16.mxu1 %vm90_vm0, %v17627_v36 }
 0x347   :  { %v8233_v55 = vpop.permute.xlu0 %8232  ;;  %vm3242_vm14 = vcmp.gt.f32.partialorder %v3101_v28, 0.0  ;;  %v3307_v60 = vmul.f32 %v13345_v34, %v3101_v28  ;;  %v5575_v25 = vsel %vm2358_vm6, %v5511_v12, %v8229_v43  ;;  %v5576_v6 = vsel %vm2358_vm6, %v5512_v11, %v8230_v41 }
 0x348   :  { %v8235_v21 = vunpack.i.h.bf16 %v8233_v55  ;;  %v8234_v33 = vunpack.i.l.bf16 %v8233_v55  ;;  %8527 = vrot.lane.b32.xlu1 %v14020_v50, %s9469_s7  ;;  %v3103_v1 = vpop.f32.mrf.mxu0  ;;  %v8240_v53 = vunpack.i.h.bf16 %v8238_v49  ;;  %v8239_v51 = vunpack.i.l.bf16 %v8238_v49  ;;  %8522 = vrot.lane.b32.xlu0 %v8521_v63, %s9468_s1 }
 0x349   :  { %v3371_v10 = vsel %vm3242_vm14, %v3101_v28, %v3307_v60  ;;  %v3725_v11 = vrot.slane %v13832_v46, 1  ;;  %v3728_v60 = vrot.slane %v13841_v61, 1  ;;  %v9398_v61 = vld [vmem:[#allocation2 + $0x30] sm:$0xff] }
 0x34a   :  { %v5639_v22 = vsel %vm2423_vm7, %v5575_v25, %v8234_v33  ;;  %v5640_v4 = vsel %vm2423_vm7, %v5576_v6, %v8235_v21  ;;  %v8248_v26 = vpop.permute.xlu1 %8247  ;;  %v3104_v58 = vpop.f32.mrf.mxu0  ;;  %3435 = vst.msk [vmem:[#allocation2 + $0x211] sm:$0xff] %vm90_vm0, %v3371_v10  ;;  %v3726_v33 = vrot.slane %v13839_v56, 1 }
 0x34b   :  { %v8243_v45 = vpop.permute.xlu0 %8242  ;;  %v8250_v32 = vunpack.i.h.bf16 %v8248_v26  ;;  %v8249_v7 = vunpack.i.l.bf16 %v8248_v26  ;;  %vm3243_vm15 = vcmp.gt.f32.partialorder %v3104_v58, 0.0  ;;  %v3308_v0 = vmul.f32 %v13345_v34, %v3104_v58  ;;  %v9397_v26 = vld [vmem:[#allocation2 + $0x38] sm:$0xff] }
 0x34c   :  { %v8245_v16 = vunpack.i.h.bf16 %v8243_v45  ;;  %v8244_v18 = vunpack.i.l.bf16 %v8243_v45  ;;  %8537 = vrot.lane.b32.xlu1 %v8516_v2, %s9463_s0  ;;  %v3106_v41 = vpop.f32.mrf.mxu0  ;;  %v5703_v43 = vsel %vm2488_vm8, %v5639_v22, %v8239_v51  ;;  %v5704_v47 = vsel %vm2488_vm8, %v5640_v4, %v8240_v53  ;;  %8532 = vrot.lane.b32.xlu0 %v13982_v19, %s9462_s19 }
 0x34d   :  { %v3372_v12 = vsel %vm3243_vm15, %v3104_v58, %v3308_v0  ;;  %v3729_v41 = vsel %vm447_vm3, %v3726_v33, %v3728_v60 }
 0x34e   :  { %v8258_v49 = vpop.permute.xlu1 %8257  ;;  %v3109_v28 = vpop.f32.mrf.mxu0  ;;  %v5767_v36 = vsel %vm2553_vm9, %v5703_v43, %v8244_v18  ;;  %v5768_v55 = vsel %vm2553_vm9, %v5704_v47, %v8245_v16  ;;  %3436 = vst.msk [vmem:[#allocation2 + $0x219] sm:$0xff] %vm90_vm0, %v3372_v12  ;;  %v8551_v16 = vpack.i.bf16 %v13829_v23, %v13825_v8  ;;  %v8556_v18 = vpack.i.bf16 %v13839_v56, %v13832_v46 }
 0x34f   :  { %v8253_v2 = vpop.permute.xlu0 %8252  ;;  %vm3244_vm1 = vcmp.gt.f32.partialorder %v3109_v28, 0.0  ;;  %v3309_v21 = vmul.f32 %v13345_v34, %v3109_v28  ;;  %v5831_v25 = vsel %vm2618_vm10, %v5767_v36, %v8249_v7  ;;  %v5832_v6 = vsel %vm2618_vm10, %v5768_v55, %v8250_v32 }
 0x350   :  { %v8255_v19 = vunpack.i.h.bf16 %v8253_v2  ;;  %v8254_v1 = vunpack.i.l.bf16 %v8253_v2  ;;  %8547 = vrot.lane.b32.xlu1 %v14020_v50, %s9465_s10  ;;  %v3111_v53 = vpop.f32.mrf.mxu0  ;;  %v8260_v51 = vunpack.i.h.bf16 %v8258_v49  ;;  %v8259_v22 = vunpack.i.l.bf16 %v8258_v49  ;;  %8542 = vrot.lane.b32.xlu0 %v8521_v63, %s9464_s9 }
 0x351   :  { %v3373_v4 = vsel %vm3244_vm1, %v3109_v28, %v3309_v21  ;;  %v5895_v10 = vpack.c.bf16 %v5832_v6, %v5831_v25  ;;  %v3727_v63 = vsel %vm447_vm3, %v3725_v11, %v3726_v33  ;;  %v17628_v12 = vpack.c.bf16 %v13592_v31, %v13584_v42 }
 0x352   :  { %v5450_v58 = vsel %vm90_vm0, %v9397_v26, %v8255_v19  ;;  %v5449_v45 = vsel %vm90_vm0, %v9398_v61, %v8254_v1  ;;  %3437 = vst.msk [vmem:[#allocation2 + $0x229] sm:$0xff] %vm90_vm0, %v3373_v4  ;;  %v8268_v7 = vpop.permute.xlu1 %8267  ;;  %v3112_v32 = vpop.f32.mrf.mxu0  ;;  %v14075_v33 = vpack.i.bf16 %v3729_v41, %v3727_v63  ;;  %v14080_v19 = vpack.i.bf16 %v13860_v27, %v13853_v52 }
 0x353   :  { %6166 = vmatmul.mubr.bf16.gmra.mxu1 %v5895_v10  ;;  %v8263_v0 = vpop.permute.xlu0 %8262  ;;  %vm3245_vm2 = vcmp.gt.f32.partialorder %v3112_v32, 0.0  ;;  %v3310_v49 = vmul.f32 %v13345_v34, %v3112_v32  ;;  %v5514_v46 = vsel %vm2293_vm5, %v5450_v58, %v8260_v51  ;;  %v5513_v56 = vsel %vm2293_vm5, %v5449_v45, %v8259_v22  ;;  %v14090_v58 = vld [vmem:[#allocation2 + $0x1a0] sm:$0xff] }
 0x354   :  { %v8265_v43 = vunpack.i.h.bf16 %v8263_v0  ;;  %v8264_v47 = vunpack.i.l.bf16 %v8263_v0  ;;  %6999 = vmatprep.mubr.msk.bf16.mxu1 %vm90_vm0, %v17628_v12  ;;  %8557 = vrot.lane.b32.xlu1 %v8556_v18, %s9468_s1  ;;  %v3114_v28 = vpop.f32.mrf.mxu0  ;;  %v8270_v11 = vunpack.i.h.bf16 %v8268_v7  ;;  %v8269_v36 = vunpack.i.l.bf16 %v8268_v7  ;;  %v14100_v12 = vld [vmem:[#allocation2 + $0x1a8] sm:$0x3] }
 0x355   :  { %8552 = vrot.lane.b32.xlu0 %v8551_v16, %s9467_s24  ;;  %v3374_v31 = vsel %vm3245_vm2, %v3112_v32, %v3310_v49  ;;  %v3730_v1 = vrot.slane %v13886_v20, 1  ;;  %v3731_v41 = vrot.slane %v13881_v38, 1 }
 0x356   :  { %v5577_v55 = vsel %vm2358_vm6, %v5513_v56, %v8264_v47  ;;  %v5578_v42 = vsel %vm2358_vm6, %v5514_v46, %v8265_v43  ;;  %v8278_v2 = vpop.permute.xlu1 %8277  ;;  %v3117_v21 = vpop.f32.mrf.mxu0  ;;  %3438 = vst.msk [vmem:[#allocation2 + $0x231] sm:$0xff] %vm90_vm0, %v3374_v31  ;;  %v3733_v43 = vrot.slane %v13883_v57, 1  ;;  %v14098_v47 = vld [vmem:[#allocation2 + $0x198] sm:$0xff] }
 0x357   :  { %v8273_v60 = vpop.permute.xlu0 %8272  ;;  %vm3246_vm11 = vcmp.gt.f32.partialorder %v3117_v21, 0.0  ;;  %v3311_v53 = vmul.f32 %v13345_v34, %v3117_v21  ;;  %v5641_v22 = vsel %vm2423_vm7, %v5577_v55, %v8269_v36  ;;  %v5642_v4 = vsel %vm2423_vm7, %v5578_v42, %v8270_v11 }
 0x358   :  { %v8275_v25 = vunpack.i.h.bf16 %v8273_v60  ;;  %v8274_v6 = vunpack.i.l.bf16 %v8273_v60  ;;  %8567 = vrot.lane.b32.xlu1 %v14020_v50, %s9462_s19  ;;  %v3119_v51 = vpop.f32.mrf.mxu0  ;;  %v8280_v10 = vunpack.i.h.bf16 %v8278_v2  ;;  %v8279_v26 = vunpack.i.l.bf16 %v8278_v2 }
 0x359   :  { %8562 = vrot.lane.b32.xlu0 %v14075_v33, %s9469_s7  ;;  %v3375_v7 = vsel %vm3246_vm11, %v3117_v21, %v3311_v53  ;;  %v4018_v11 = vrot.slane %v14090_v58, 1  ;;  %v3732_v53 = vsel %vm447_vm3, %v3730_v1, %v3731_v41  ;;  %v3734_v51 = vsel %vm447_vm3, %v3731_v41, %v3733_v43 }
 0x35a   :  { %v5705_v61 = vsel %vm2488_vm8, %v5641_v22, %v8274_v6  ;;  %v5706_v45 = vsel %vm2488_vm8, %v5642_v4, %v8275_v25  ;;  %v8288_v32 = vpop.permute.xlu1 %8287  ;;  %v3120_v0 = vpop.f32.mrf.mxu0  ;;  %3439 = vst.msk [vmem:[#allocation2 + $0x241] sm:$0xff] %vm90_vm0, %v3375_v7  ;;  %v4020_v25 = vrot.slane %v14100_v12, 1  ;;  %v9399_v22 = vld [vmem:[#allocation2 + $0x50] sm:$0xff]  ;;  %v9400_v7 = vld [vmem:[#allocation2 + $0x48] sm:$0xff] }
 0x35b   :  { %v8283_v50 = vpop.permute.xlu0 %8282  ;;  %vm3247_vm12 = vcmp.gt.f32.partialorder %v3120_v0, 0.0  ;;  %v3312_v63 = vmul.f32 %v13345_v34, %v3120_v0  ;;  %v8290_v46 = vunpack.i.h.bf16 %v8288_v32  ;;  %v8289_v36 = vunpack.i.l.bf16 %v8288_v32 }
 0x35c   :  { %v8285_v49 = vunpack.i.h.bf16 %v8283_v50  ;;  %v8284_v28 = vunpack.i.l.bf16 %v8283_v50  ;;  %8577 = vrot.lane.b32.xlu1 %v8556_v18, %s9464_s9  ;;  %v3122_v56 = vpop.f32.mrf.mxu0  ;;  %v5769_v42 = vsel %vm2553_vm9, %v5705_v61, %v8279_v26  ;;  %v5770_v57 = vsel %vm2553_vm9, %v5706_v45, %v8280_v10 }
 0x35d   :  { %v3376_v55 = vsel %vm3247_vm12, %v3120_v0, %v3312_v63  ;;  %8572 = vrot.lane.b32.xlu0 %v8551_v16, %s9463_s0  ;;  %v4017_v18 = vrot.slane %v14098_v47, 1  ;;  %v5452_v4 = vsel %vm90_vm0, %v9399_v22, %v8290_v46  ;;  %v5451_v32 = vsel %vm90_vm0, %v9400_v7, %v8289_v36 }
 0x35e   :  { %3440 = vst.msk [vmem:[#allocation2 + $0x249] sm:$0xff] %vm90_vm0, %v3376_v55  ;;  %v8298_v31 = vpop.permute.xlu1 %8297  ;;  %v3125_v2 = vpop.f32.mrf.mxu0  ;;  %v5833_v21 = vsel %vm2618_vm10, %v5769_v42, %v8284_v28  ;;  %v5834_v60 = vsel %vm2618_vm10, %v5770_v57, %v8285_v49  ;;  %v14124_v28 = vpack.i.bf16 %v3734_v51, %v3732_v53  ;;  %v8731_v46 = vpack.i.bf16 %v14090_v58, %v14098_v47 }
 0x35f   :  { %v8293_v6 = vpop.permute.xlu0 %8292  ;;  %vm3248_vm13 = vcmp.gt.f32.partialorder %v3125_v2, 0.0  ;;  %v3313_v16 = vmul.f32 %v13345_v34, %v3125_v2  ;;  %v5897_v61 = vpack.c.bf16 %v5834_v60, %v5833_v21  ;;  %v8300_v0 = vunpack.i.h.bf16 %v8298_v31 }
 0x360   :  { %v8295_v10 = vunpack.i.h.bf16 %v8293_v6  ;;  %v8294_v26 = vunpack.i.l.bf16 %v8293_v6  ;;  %8587 = vrot.lane.b32.xlu1 %v14080_v19, %s9467_s24  ;;  %v3127_v45 = vpop.f32.mrf.mxu0  ;;  %v8299_v50 = vunpack.i.l.bf16 %v8298_v31  ;;  %v17629_v56 = vpack.c.bf16 %v13635_v54, %v13627_v30 }
 0x361   :  { %v3377_v63 = vsel %vm3248_vm13, %v3125_v2, %v3313_v16  ;;  %8582 = vrot.lane.b32.xlu0 %v14075_v33, %s9465_s10  ;;  %6174 = vmatmul.mubr.bf16.gmra.mxu1 %v5897_v61  ;;  %v8591_v55 = vpack.i.bf16 %v13881_v38, %v13886_v20  ;;  %v4028_v42 = vrot.slane %v14090_v58, 2  ;;  %v4027_v57 = vrot.slane %v14098_v47, 2  ;;  %v9412_v47 = vld [vmem:[#allocation2 + $0xe0] sm:$0xff] }
 0x362   :  { %v5516_v1 = vsel %vm2293_vm5, %v5452_v4, %v8295_v10  ;;  %v5515_v41 = vsel %vm2293_vm5, %v5451_v32, %v8294_v26  ;;  %3441 = vst.msk [vmem:[#allocation2 + $0x259] sm:$0xff] %vm90_vm0, %v3377_v63  ;;  %v8308_v43 = vpop.permute.xlu1 %8307  ;;  %v3128_v49 = vpop.f32.mrf.mxu0  ;;  %7000 = vmatprep.mubr.msk.bf16.mxu1 %vm90_vm0, %v17629_v56  ;;  %v3735_v61 = vrot.slane %v13893_v13, 1 }
 0x363   :  { %v8303_v36 = vpop.permute.xlu0 %8302  ;;  %vm3249_vm14 = vcmp.gt.f32.partialorder %v3128_v49, 0.0  ;;  %v3314_v21 = vmul.f32 %v13345_v34, %v3128_v49  ;;  %v5579_v30 = vsel %vm2358_vm6, %v5515_v41, %v8299_v50  ;;  %v5580_v54 = vsel %vm2358_vm6, %v5516_v1, %v8300_v0 }
 0x364   :  { %v8305_v31 = vunpack.i.h.bf16 %v8303_v36  ;;  %v8304_v2 = vunpack.i.l.bf16 %v8303_v36  ;;  %8597 = vrot.lane.b32.xlu1 %v14124_v28, %s9469_s7  ;;  %v3130_v60 = vpop.f32.mrf.mxu0  ;;  %v8310_v6 = vunpack.i.h.bf16 %v8308_v43  ;;  %v8309_v16 = vunpack.i.l.bf16 %v8308_v43 }
 0x365   :  { %8592 = vrot.lane.b32.xlu0 %v8591_v55, %s9468_s1  ;;  %v3378_v53 = vsel %vm3249_vm14, %v3128_v49, %v3314_v21  ;;  %v14155_v1 = vpack.i.bf16 %v13916_v17, %v13913_v48  ;;  %v3738_v21 = vrot.slane %v13897_v35, 1 }
 0x366   :  { %v5643_v38 = vsel %vm2423_vm7, %v5579_v30, %v8304_v2  ;;  %v5644_v20 = vsel %vm2423_vm7, %v5580_v54, %v8305_v31  ;;  %v8318_v51 = vpop.permute.xlu1 %8317  ;;  %v3133_v22 = vpop.f32.mrf.mxu0  ;;  %3442 = vst.msk [vmem:[#allocation2 + $0x261] sm:$0xff] %vm90_vm0, %v3378_v53  ;;  %v3736_v2 = vrot.slane %v13895_v40, 1 }
 0x367   :  { %v8313_v4 = vpop.permute.xlu0 %8312  ;;  %v8320_v10 = vunpack.i.h.bf16 %v8318_v51  ;;  %v8319_v26 = vunpack.i.l.bf16 %v8318_v51  ;;  %vm3250_vm15 = vcmp.gt.f32.partialorder %v3133_v22, 0.0  ;;  %v3315_v32 = vmul.f32 %v13345_v34, %v3133_v22 }
 0x368   :  { %v8315_v45 = vunpack.i.h.bf16 %v8313_v4  ;;  %v8314_v7 = vunpack.i.l.bf16 %v8313_v4  ;;  %8607 = vrot.lane.b32.xlu1 %v14080_v19, %s9463_s0  ;;  %v3135_v0 = vpop.f32.mrf.mxu0  ;;  %v5707_v50 = vsel %vm2488_vm8, %v5643_v38, %v8309_v16  ;;  %v5708_v63 = vsel %vm2488_vm8, %v5644_v20, %v8310_v6  ;;  %v14174_v16 = vld [vmem:[#allocation2 + $0x1b0] sm:$0xff]  ;;  %v14176_v38 = vld [vmem:[#allocation2 + $0x1b8] sm:$0xff] }
 0x369   :  { %8602 = vrot.lane.b32.xlu0 %v14075_v33, %s9462_s19  ;;  %v3379_v41 = vsel %vm3250_vm15, %v3133_v22, %v3315_v32  ;;  %v14164_v19 = vsel %vm447_vm3, %v4017_v18, %v4018_v11  ;;  %v9401_v22 = vld [vmem:[#allocation2 + $0x68] sm:$0xff]  ;;  %v8626_v32 = vpack.i.bf16 %v13895_v40, %v13893_v13  ;;  %v17630_v13 = vpack.c.bf16 %v13668_v14, %v13662_v24 }
 0x36a   :  { %v8328_v43 = vpop.permute.xlu1 %8327  ;;  %v3136_v49 = vpop.f32.mrf.mxu0  ;;  %v5771_v56 = vsel %vm2553_vm9, %v5707_v50, %v8314_v7  ;;  %v5772_v36 = vsel %vm2553_vm9, %v5708_v63, %v8315_v45  ;;  %3443 = vst.msk [vmem:[#allocation2 + $0x271] sm:$0xff] %vm90_vm0, %v3379_v41  ;;  %v3737_v50 = vsel %vm447_vm3, %v3735_v61, %v3736_v2  ;;  %v3739_v63 = vsel %vm447_vm3, %v3736_v2, %v3738_v21 }
 0x36b   :  { %v8323_v33 = vpop.permute.xlu0 %8322  ;;  %vm3251_vm1 = vcmp.gt.f32.partialorder %v3136_v49, 0.0  ;;  %v3316_v31 = vmul.f32 %v13345_v34, %v3136_v49  ;;  %v5835_v54 = vsel %vm2618_vm10, %v5771_v56, %v8319_v26  ;;  %v5836_v6 = vsel %vm2618_vm10, %v5772_v36, %v8320_v10  ;;  %v9402_v26 = vld [vmem:[#allocation2 + $0x60] sm:$0xff] }
 0x36c   :  { %v8325_v60 = vunpack.i.h.bf16 %v8323_v33  ;;  %v8324_v30 = vunpack.i.l.bf16 %v8323_v33  ;;  %8617 = vrot.lane.b32.xlu1 %v14124_v28, %s9465_s10  ;;  %v3138_v18 = vpop.f32.mrf.mxu0  ;;  %v8330_v20 = vunpack.i.h.bf16 %v8328_v43  ;;  %v8329_v53 = vunpack.i.l.bf16 %v8328_v43 }
 0x36d   :  { %v3380_v51 = vsel %vm3251_vm1, %v3136_v49, %v3316_v31  ;;  %8612 = vrot.lane.b32.xlu0 %v8591_v55, %s9464_s9  ;;  %v5899_v35 = vpack.c.bf16 %v5836_v6, %v5835_v54  ;;  %v14189_v55 = vsel %vm447_vm3, %v4018_v11, %v4020_v25  ;;  %v3745_v41 = vrot.slane %v14174_v16, 1  ;;  %v14201_v11 = vld [vmem:[#allocation2 + $0x1c0] sm:$0x3] }
 0x36e   :  { %v5454_v4 = vsel %vm90_vm0, %v9401_v22, %v8325_v60  ;;  %v5453_v10 = vsel %vm90_vm0, %v9402_v26, %v8324_v30  ;;  %3444 = vst.msk [vmem:[#allocation2 + $0x279] sm:$0xff] %vm90_vm0, %v3380_v51  ;;  %v8338_v45 = vpop.permute.xlu1 %8337  ;;  %v3141_v7 = vpop.f32.mrf.mxu0  ;;  %v3746_v43 = vrot.slane %v14176_v38, 1  ;;  %v8736_v60 = vpack.i.bf16 %v14189_v55, %v14164_v19 }
 0x36f   :  { %6182 = vmatmul.mubr.bf16.gmra.mxu1 %v5899_v35  ;;  %v8333_v0 = vpop.permute.xlu0 %8332  ;;  %vm3252_vm2 = vcmp.gt.f32.partialorder %v3141_v7, 0.0  ;;  %v3317_v40 = vmul.f32 %v13345_v34, %v3141_v7  ;;  %v5518_v25 = vsel %vm2293_vm5, %v5454_v4, %v8330_v20  ;;  %v5517_v61 = vsel %vm2293_vm5, %v5453_v10, %v8329_v53 }
 0x370   :  { %v8335_v49 = vunpack.i.h.bf16 %v8333_v0  ;;  %v8334_v56 = vunpack.i.l.bf16 %v8333_v0  ;;  %7001 = vmatprep.mubr.msk.bf16.mxu1 %vm90_vm0, %v17630_v13  ;;  %8627 = vrot.lane.b32.xlu1 %v8626_v32, %s9468_s1  ;;  %v3143_v12 = vpop.f32.mrf.mxu0  ;;  %v8340_v36 = vunpack.i.h.bf16 %v8338_v45  ;;  %v8339_v33 = vunpack.i.l.bf16 %v8338_v45 }
 0x371   :  { %8622 = vrot.lane.b32.xlu0 %v14155_v1, %s9467_s24  ;;  %v3381_v31 = vsel %vm3252_vm2, %v3141_v7, %v3317_v40  ;;  %v14212_v54 = vpack.i.bf16 %v3739_v63, %v3737_v50  ;;  %v3748_v6 = vrot.slane %v14201_v11, 1  ;;  %v3905_v18 = vrot.slane %v14174_v16, 2 }
 0x372   :  { %v5581_v24 = vsel %vm2358_vm6, %v5517_v61, %v8334_v56  ;;  %v5582_v14 = vsel %vm2358_vm6, %v5518_v25, %v8335_v49  ;;  %v8348_v2 = vpop.permute.xlu1 %8347  ;;  %v3144_v21 = vpop.f32.mrf.mxu0  ;;  %3445 = vst.msk [vmem:[#allocation2 + $0x289] sm:$0xff] %vm90_vm0, %v3381_v31  ;;  %v3741_v13 = vrot.slane %v13937_v9, 1  ;;  %v3743_v40 = vrot.slane %v13939_v59, 1 }
 0x373   :  { %v8343_v30 = vpop.permute.xlu0 %8342  ;;  %vm3253_vm11 = vcmp.gt.f32.partialorder %v3144_v21, 0.0  ;;  %v3318_v51 = vmul.f32 %v13345_v34, %v3144_v21  ;;  %v5645_v22 = vsel %vm2423_vm7, %v5581_v24, %v8339_v33  ;;  %v5646_v4 = vsel %vm2423_vm7, %v5582_v14, %v8340_v36 }
 0x374   :  { %v8345_v20 = vunpack.i.h.bf16 %v8343_v30  ;;  %v8344_v53 = vunpack.i.l.bf16 %v8343_v30  ;;  %8637 = vrot.lane.b32.xlu1 %v14124_v28, %s9462_s19  ;;  %v3146_v35 = vpop.f32.mrf.mxu0  ;;  %v8350_v26 = vunpack.i.h.bf16 %v8348_v2  ;;  %v8349_v10 = vunpack.i.l.bf16 %v8348_v2 }
 0x375   :  { %8632 = vrot.lane.b32.xlu0 %v14212_v54, %s9469_s7  ;;  %v3382_v0 = vsel %vm3253_vm11, %v3144_v21, %v3318_v51  ;;  %v14228_v28 = vsel %vm447_vm3, %v3745_v41, %v3746_v43  ;;  %v3740_v33 = vrot.slane %v13930_v3, 1  ;;  %v8656_v30 = vpack.i.bf16 %v13925_v39, %v13922_v44  ;;  %v9403_v35 = vld [vmem:[#allocation2 + $0x80] sm:$0xff] }
 0x376   :  { %v5709_v45 = vsel %vm2488_vm8, %v5645_v22, %v8344_v53  ;;  %v5710_v7 = vsel %vm2488_vm8, %v5646_v4, %v8345_v20  ;;  %v8358_v50 = vpop.permute.xlu1 %8357  ;;  %v3149_v63 = vpop.f32.mrf.mxu0  ;;  %3446 = vst.msk [vmem:[#allocation2 + $0x291] sm:$0xff] %vm90_vm0, %v3382_v0  ;;  %v3744_v51 = vsel %vm447_vm3, %v3741_v13, %v3743_v40 }
 0x377   :  { %v8353_v49 = vpop.permute.xlu0 %8352  ;;  %vm3254_vm12 = vcmp.gt.f32.partialorder %v3149_v63, 0.0  ;;  %v3319_v56 = vmul.f32 %v13345_v34, %v3149_v63  ;;  %v8360_v61 = vunpack.i.h.bf16 %v8358_v50  ;;  %v8359_v41 = vunpack.i.l.bf16 %v8358_v50 }
 0x378   :  { %v8355_v12 = vunpack.i.h.bf16 %v8353_v49  ;;  %v8354_v25 = vunpack.i.l.bf16 %v8353_v49  ;;  %8647 = vrot.lane.b32.xlu1 %v8626_v32, %s9464_s9  ;;  %v3151_v36 = vpop.f32.mrf.mxu0  ;;  %v5773_v14 = vsel %vm2553_vm9, %v5709_v45, %v8349_v10  ;;  %v5774_v31 = vsel %vm2553_vm9, %v5710_v7, %v8350_v26  ;;  %v9404_v7 = vld [vmem:[#allocation2 + $0x78] sm:$0xff] }
 0x379   :  { %v3383_v24 = vsel %vm3254_vm12, %v3149_v63, %v3319_v56  ;;  %8642 = vrot.lane.b32.xlu0 %v14155_v1, %s9463_s0  ;;  %v3742_v1 = vsel %vm447_vm3, %v3740_v33, %v3741_v13  ;;  %v5456_v22 = vsel %vm90_vm0, %v9403_v35, %v8360_v61  ;;  %v5455_v0 = vsel %vm90_vm0, %v9404_v7, %v8359_v41 }
 0x37a   :  { %3447 = vst.msk [vmem:[#allocation2 + $0x2a1] sm:$0xff] %vm90_vm0, %v3383_v24  ;;  %v8368_v59 = vpop.permute.xlu1 %8367  ;;  %v3152_v2 = vpop.f32.mrf.mxu0  ;;  %v5837_v21 = vsel %vm2618_vm10, %v5773_v14, %v8354_v25  ;;  %v5838_v32 = vsel %vm2618_vm10, %v5774_v31, %v8355_v12  ;;  %v14256_v25 = vpack.i.bf16 %v3744_v51, %v3742_v1  ;;  %v14263_v61 = vsel %vm447_vm3, %v3746_v43, %v3748_v6 }
 0x37b   :  { %v8363_v20 = vpop.permute.xlu0 %8362  ;;  %vm3255_vm13 = vcmp.gt.f32.partialorder %v3152_v2, 0.0  ;;  %v3320_v53 = vmul.f32 %v13345_v34, %v3152_v2  ;;  %v5901_v10 = vpack.c.bf16 %v5838_v32, %v5837_v21  ;;  %v8370_v50 = vunpack.i.h.bf16 %v8368_v59 }
 0x37c   :  { %v8365_v4 = vunpack.i.h.bf16 %v8363_v20  ;;  %v8364_v26 = vunpack.i.l.bf16 %v8363_v20  ;;  %8657 = vrot.lane.b32.xlu1 %v8656_v30, %s9467_s24  ;;  %v3154_v45 = vpop.f32.mrf.mxu0  ;;  %v8369_v63 = vunpack.i.l.bf16 %v8368_v59  ;;  %v17631_v36 = vpack.c.bf16 %v13701_v62, %v13695_v5 }
 0x37d   :  { %v3384_v49 = vsel %vm3255_vm13, %v3152_v2, %v3320_v53  ;;  %8652 = vrot.lane.b32.xlu0 %v14212_v54, %s9465_s10  ;;  %6190 = vmatmul.mubr.bf16.gmra.mxu1 %v5901_v10  ;;  %v8661_v41 = vpack.i.bf16 %v13937_v9, %v13930_v3  ;;  %v3906_v24 = vrot.slane %v14176_v38, 2  ;;  %v8741_v53 = vpack.i.bf16 %v14263_v61, %v14228_v28 }
 0x37e   :  { %v5520_v56 = vsel %vm2293_vm5, %v5456_v22, %v8365_v4  ;;  %v5519_v13 = vsel %vm2293_vm5, %v5455_v0, %v8364_v26  ;;  %3448 = vst.msk [vmem:[#allocation2 + $0x2a9] sm:$0xff] %vm90_vm0, %v3384_v49  ;;  %v8378_v40 = vpop.permute.xlu1 %8377  ;;  %v3157_v12 = vpop.f32.mrf.mxu0  ;;  %7002 = vmatprep.mubr.msk.bf16.mxu1 %vm90_vm0, %v17631_v36  ;;  %v14283_v22 = vld [vmem:[#allocation2 + $0x180] sm:$0xff]  ;;  %v3908_v4 = vrot.slane %v14201_v11, 2  ;;  %v14288_v0 = vld [vmem:[#allocation2 + $0x188] sm:$0xff] }
 0x37f   :  { %v8373_v33 = vpop.permute.xlu0 %8372  ;;  %vm3256_vm14 = vcmp.gt.f32.partialorder %v3157_v12, 0.0  ;;  %v3321_v59 = vmul.f32 %v13345_v34, %v3157_v12  ;;  %v5583_v6 = vsel %vm2358_vm6, %v5519_v13, %v8369_v63  ;;  %v5584_v5 = vsel %vm2358_vm6, %v5520_v56, %v8370_v50  ;;  %v14290_v50 = vld [vmem:[#allocation2 + $0x190] sm:$0x3] }
 0x380   :  { %v8375_v14 = vunpack.i.h.bf16 %v8373_v33  ;;  %v8374_v31 = vunpack.i.l.bf16 %v8373_v33  ;;  %8667 = vrot.lane.b32.xlu1 %v14256_v25, %s9469_s7  ;;  %v3159_v43 = vpop.f32.mrf.mxu0  ;;  %v8380_v62 = vunpack.i.h.bf16 %v8378_v40  ;;  %v8379_v2 = vunpack.i.l.bf16 %v8378_v40 }
 0x381   :  { %8662 = vrot.lane.b32.xlu0 %v8661_v41, %s9468_s1  ;;  %v3385_v21 = vsel %vm3256_vm14, %v3157_v12, %v3321_v59  ;;  %v14301_v11 = vsel %vm608_vm4, %v3905_v18, %v3906_v24  ;;  %v3991_v36 = vrot.slane %v14283_v22, 1  ;;  %v3992_v16 = vrot.slane %v14288_v0, 1 }
 0x382   :  { %v5647_v3 = vsel %vm2423_vm7, %v5583_v6, %v8374_v31  ;;  %v5648_v9 = vsel %vm2423_vm7, %v5584_v5, %v8375_v14  ;;  %v8388_v32 = vpop.permute.xlu1 %8387  ;;  %v3160_v20 = vpop.f32.mrf.mxu0  ;;  %3449 = vst.msk [vmem:[#allocation2 + $0x2b9] sm:$0xff] %vm90_vm0, %v3385_v21  ;;  %v3994_v18 = vrot.slane %v14290_v50, 1 }
 0x383   :  { %v8383_v1 = vpop.permute.xlu0 %8382  ;;  %v8390_v51 = vunpack.i.h.bf16 %v8388_v32  ;;  %v8389_v35 = vunpack.i.l.bf16 %v8388_v32  ;;  %vm3257_vm15 = vcmp.gt.f32.partialorder %v3160_v20, 0.0  ;;  %v3322_v45 = vmul.f32 %v13345_v34, %v3160_v20  ;;  %v9406_v32 = vld [vmem:[#allocation2 + $0x90] sm:$0xff] }
 0x384   :  { %v8385_v26 = vunpack.i.h.bf16 %v8383_v1  ;;  %v8384_v10 = vunpack.i.l.bf16 %v8383_v1  ;;  %8677 = vrot.lane.b32.xlu1 %v8656_v30, %s9463_s0  ;;  %v3162_v7 = vpop.f32.mrf.mxu0  ;;  %v5711_v63 = vsel %vm2488_vm8, %v5647_v3, %v8379_v2  ;;  %v5712_v49 = vsel %vm2488_vm8, %v5648_v9, %v8380_v62  ;;  %v9405_v9 = vld [vmem:[#allocation2 + $0x98] sm:$0xff] }
 0x385   :  { %8672 = vrot.lane.b32.xlu0 %v14212_v54, %s9462_s19  ;;  %v3386_v30 = vsel %vm3257_vm15, %v3160_v20, %v3322_v45  ;;  %v3993_v7 = vsel %vm447_vm3, %v3991_v36, %v3992_v16 }
 0x386   :  { %v8398_v56 = vpop.permute.xlu1 %8397  ;;  %v3165_v13 = vpop.f32.mrf.mxu0  ;;  %v5775_v40 = vsel %vm2553_vm9, %v5711_v63, %v8384_v10  ;;  %v5776_v12 = vsel %vm2553_vm9, %v5712_v49, %v8385_v26  ;;  %3450 = vst.msk [vmem:[#allocation2 + $0x2c1] sm:$0xff] %vm90_vm0, %v3386_v30  ;;  %v14323_v26 = vsel %vm608_vm4, %v3906_v24, %v3908_v4  ;;  %v17632_v10 = vld [vmem:[#allocation229_spill] sm:$0xff]  ;;  %v3995_v63 = vsel %vm447_vm3, %v3992_v16, %v3994_v18 }
 0x387   :  { %v8393_v33 = vpop.permute.xlu0 %8392  ;;  %vm3258_vm1 = vcmp.gt.f32.partialorder %v3165_v13, 0.0  ;;  %v3323_v54 = vmul.f32 %v13345_v34, %v3165_v13  ;;  %v5839_v59 = vsel %vm2618_vm10, %v5775_v40, %v8389_v35  ;;  %v5840_v43 = vsel %vm2618_vm10, %v5776_v12, %v8390_v51 }
 0x388   :  { %v8395_v14 = vunpack.i.h.bf16 %v8393_v33  ;;  %v8394_v31 = vunpack.i.l.bf16 %v8393_v33  ;;  %8687 = vrot.lane.b32.xlu1 %v14256_v25, %s9465_s10  ;;  %v3167_v6 = vpop.f32.mrf.mxu0  ;;  %v8400_v5 = vunpack.i.h.bf16 %v8398_v56  ;;  %v8399_v62 = vunpack.i.l.bf16 %v8398_v56  ;;  %v17633_v56 = vld [vmem:[#allocation219_spill] sm:$0xff] }
 0x389   :  { %v3387_v2 = vsel %vm3258_vm1, %v3165_v13, %v3323_v54  ;;  %8682 = vrot.lane.b32.xlu0 %v8661_v41, %s9464_s9  ;;  %v5903_v3 = vpack.c.bf16 %v5840_v43, %v5839_v59  ;;  %v8696_v35 = vpack.i.bf16 %v14288_v0, %v14283_v22  ;;  %v8691_v45 = vpack.i.bf16 %v17632_v10, %v13952_v15  ;;  %v17634_v13 = vld [vmem:[#allocation216_spill] sm:$0xff] }
 0x38a   :  { %v5458_v21 = vsel %vm90_vm0, %v9405_v9, %v8395_v14  ;;  %v5457_v20 = vsel %vm90_vm0, %v9406_v32, %v8394_v31  ;;  %3451 = vst.msk [vmem:[#allocation2 + $0x2d1] sm:$0xff] %vm90_vm0, %v3387_v2  ;;  %v8408_v1 = vpop.permute.xlu1 %8407  ;;  %v3168_v51 = vpop.f32.mrf.mxu0  ;;  %v17635_v40 = vpack.c.bf16 %v17633_v56, %v17634_v13  ;;  %v4001_v59 = vrot.slane %v14283_v22, 2 }
 0x38b   :  { %6198 = vmatmul.mubr.bf16.gmra.mxu1 %v5903_v3  ;;  %v8403_v41 = vpop.permute.xlu0 %8402  ;;  %vm3259_vm2 = vcmp.gt.f32.partialorder %v3168_v51, 0.0  ;;  %v3324_v38 = vmul.f32 %v13345_v34, %v3168_v51  ;;  %v5522_v4 = vsel %vm2293_vm5, %v5458_v21, %v8400_v5  ;;  %v5521_v12 = vsel %vm2293_vm5, %v5457_v20, %v8399_v62 }
 0x38c   :  { %v8405_v49 = vunpack.i.h.bf16 %v8403_v41  ;;  %v8404_v30 = vunpack.i.l.bf16 %v8403_v41  ;;  %7003 = vmatprep.mubr.msk.bf16.mxu1 %vm90_vm0, %v17635_v40  ;;  %8697 = vrot.lane.b32.xlu1 %v8696_v35, %s9468_s1  ;;  %v3170_v24 = vpop.f32.mrf.mxu0  ;;  %v8410_v36 = vunpack.i.h.bf16 %v8408_v1  ;;  %v8409_v33 = vunpack.i.l.bf16 %v8408_v1 }
 0x38d   :  { %8692 = vrot.lane.b32.xlu0 %v8691_v45, %s9467_s24  ;;  %v3388_v18 = vsel %vm3259_vm2, %v3168_v51, %v3324_v38  ;;  %v14342_v6 = vpack.i.bf16 %v3995_v63, %v3993_v7  ;;  %v4002_v5 = vrot.slane %v14288_v0, 2  ;;  %v4004_v62 = vrot.slane %v14290_v50, 2  ;;  %v14353_v0 = vld [vmem:[#allocation2 + $0x1c8] sm:$0xff] }
 0x38e   :  { %v5585_v54 = vsel %vm2358_vm6, %v5521_v12, %v8404_v30  ;;  %v5586_v16 = vsel %vm2358_vm6, %v5522_v4, %v8405_v49  ;;  %v8418_v14 = vpop.permute.xlu1 %8417  ;;  %v3173_v31 = vpop.f32.mrf.mxu0  ;;  %3452 = vst.msk [vmem:[#allocation2 + $0x2d9] sm:$0xff] %vm90_vm0, %v3388_v18  ;;  %v14366_v4 = vld [vmem:[#allocation2 + $0x1d0] sm:$0xff]  ;;  %v14368_v12 = vld [vmem:[#allocation2 + $0x1d8] sm:$0x3] }
 0x38f   :  { %v8413_v43 = vpop.permute.xlu0 %8412  ;;  %vm3260_vm11 = vcmp.gt.f32.partialorder %v3173_v31, 0.0  ;;  %v3325_v9 = vmul.f32 %v13345_v34, %v3173_v31  ;;  %v5649_v22 = vsel %vm2423_vm7, %v5585_v54, %v8409_v33  ;;  %v5650_v32 = vsel %vm2423_vm7, %v5586_v16, %v8410_v36 }
 0x390   :  { %v8415_v2 = vunpack.i.h.bf16 %v8413_v43  ;;  %v8414_v3 = vunpack.i.l.bf16 %v8413_v43  ;;  %8707 = vrot.lane.b32.xlu1 %v14256_v25, %s9462_s19  ;;  %v3175_v21 = vpop.f32.mrf.mxu0  ;;  %v8420_v20 = vunpack.i.h.bf16 %v8418_v14  ;;  %v8419_v1 = vunpack.i.l.bf16 %v8418_v14 }
 0x391   :  { %8702 = vrot.lane.b32.xlu0 %v14342_v6, %s9469_s7  ;;  %v3389_v41 = vsel %vm3260_vm11, %v3173_v31, %v3325_v9  ;;  %v14360_v30 = vsel %vm608_vm4, %v4001_v59, %v4002_v5  ;;  %v14363_v56 = vsel %vm608_vm4, %v4002_v5, %v4004_v62  ;;  %v3750_v36 = vrot.slane %v14353_v0, 1 }
 0x392   :  { %v5713_v50 = vsel %vm2488_vm8, %v5649_v22, %v8414_v3  ;;  %v5714_v51 = vsel %vm2488_vm8, %v5650_v32, %v8415_v2  ;;  %v8428_v7 = vpop.permute.xlu1 %8427  ;;  %v3176_v63 = vpop.f32.mrf.mxu0  ;;  %3453 = vst.msk [vmem:[#allocation2 + $0x2e9] sm:$0xff] %vm90_vm0, %v3389_v41  ;;  %v8726_v43 = vpack.i.bf16 %v14363_v56, %v14360_v30  ;;  %v3753_v2 = vrot.slane %v14368_v12, 1  ;;  %v9407_v3 = vld [vmem:[#allocation2 + $0xb0] sm:$0xff] }
 0x393   :  { %v8423_v25 = vpop.permute.xlu0 %8422  ;;  %vm3261_vm12 = vcmp.gt.f32.partialorder %v3176_v63, 0.0  ;;  %v3326_v49 = vmul.f32 %v13345_v34, %v3176_v63  ;;  %v8430_v38 = vunpack.i.h.bf16 %v8428_v7  ;;  %v8429_v33 = vunpack.i.l.bf16 %v8428_v7 }
 0x394   :  { %v8425_v13 = vunpack.i.h.bf16 %v8423_v25  ;;  %v8424_v40 = vunpack.i.l.bf16 %v8423_v25  ;;  %8717 = vrot.lane.b32.xlu1 %v8696_v35, %s9464_s9  ;;  %v3178_v24 = vpop.f32.mrf.mxu0  ;;  %v5777_v16 = vsel %vm2553_vm9, %v5713_v50, %v8419_v1  ;;  %v5778_v18 = vsel %vm2553_vm9, %v5714_v51, %v8420_v20  ;;  %v9408_v1 = vld [vmem:[#allocation2 + $0xa8] sm:$0xff] }
 0x395   :  { %v3390_v54 = vsel %vm3261_vm12, %v3176_v63, %v3326_v49  ;;  %8712 = vrot.lane.b32.xlu0 %v8691_v45, %s9463_s0  ;;  %v3751_v45 = vrot.slane %v14366_v4, 1  ;;  %v5460_v9 = vsel %vm90_vm0, %v9407_v3, %v8430_v38  ;;  %v5459_v50 = vsel %vm90_vm0, %v9408_v1, %v8429_v33  ;;  %v17636_v24 = vld [vmem:[#allocation122_spill] sm:$0xff]  ;;  %v17637_v33 = vld [vmem:[#allocation220_spill] sm:$0xff] }
 0x396   :  { %3454 = vst.msk [vmem:[#allocation2 + $0x2f1] sm:$0xff] %vm90_vm0, %v3390_v54  ;;  %v8438_v14 = vpop.permute.xlu1 %8437  ;;  %v3181_v31 = vpop.f32.mrf.mxu0  ;;  %v5841_v35 = vsel %vm2618_vm10, %v5777_v16, %v8424_v40  ;;  %v5842_v59 = vsel %vm2618_vm10, %v5778_v18, %v8425_v13  ;;  %v8746_v40 = vpack.i.bf16 %v14323_v26, %v14301_v11  ;;  %v3910_v38 = vrot.slane %v14353_v0, 2 }
 0x397   :  { %v8433_v5 = vpop.permute.xlu0 %8432  ;;  %vm3262_vm13 = vcmp.gt.f32.partialorder %v3181_v31, 0.0  ;;  %v3327_v62 = vmul.f32 %v13345_v34, %v3181_v31  ;;  %v5905_v32 = vpack.c.bf16 %v5842_v59, %v5841_v35  ;;  %v8440_v51 = vunpack.i.h.bf16 %v8438_v14 }
 0x398   :  { %v8435_v21 = vunpack.i.h.bf16 %v8433_v5  ;;  %v8434_v22 = vunpack.i.l.bf16 %v8433_v5  ;;  %8727 = vrot.lane.b32.xlu1 %v8726_v43, %s9467_s24  ;;  %v3183_v20 = vpop.f32.mrf.mxu0  ;;  %v8439_v41 = vunpack.i.l.bf16 %v8438_v14  ;;  %v17638_v54 = vpack.c.bf16 %v17636_v24, %v17637_v33 }
 0x399   :  { %v3391_v7 = vsel %vm3262_vm13, %v3181_v31, %v3327_v62  ;;  %8722 = vrot.lane.b32.xlu0 %v14342_v6, %s9465_s10  ;;  %6206 = vmatmul.mubr.bf16.gmra.mxu1 %v5905_v32  ;;  %v3752_v16 = vsel %vm447_vm3, %v3750_v36, %v3751_v45  ;;  %v3754_v18 = vsel %vm447_vm3, %v3751_v45, %v3753_v2  ;;  %v3911_v14 = vrot.slane %v14366_v4, 2 }
 0x39a   :  { %v5524_v63 = vsel %vm2293_vm5, %v5460_v9, %v8435_v21  ;;  %v5523_v25 = vsel %vm2293_vm5, %v5459_v50, %v8434_v22  ;;  %3455 = vst.msk [vmem:[#allocation2 + $0x301] sm:$0xff] %vm90_vm0, %v3391_v7  ;;  %v8448_v49 = vpop.permute.xlu1 %8447  ;;  %v3184_v13 = vpop.f32.mrf.mxu0  ;;  %7004 = vmatprep.mubr.msk.bf16.mxu1 %vm90_vm0, %v17638_v54  ;;  %v3913_v31 = vrot.slane %v14368_v12, 2  ;;  %v8751_v55 = vpack.i.bf16 %v14366_v4, %v14353_v0  ;;  %v14424_v0 = vld [vmem:[#allocation2 + $0x1e8] sm:$0xff]  ;;  %v14426_v4 = vld [vmem:[#allocation2 + $0x1f0] sm:$0x3] }
 0x39b   :  { %v8443_v6 = vpop.permute.xlu0 %8442  ;;  %vm3263_vm14 = vcmp.gt.f32.partialorder %v3184_v13, 0.0  ;;  %v3328_v11 = vmul.f32 %v13345_v34, %v3184_v13  ;;  %v5587_v43 = vsel %vm2358_vm6, %v5523_v25, %v8439_v41  ;;  %v5588_v36 = vsel %vm2358_vm6, %v5524_v63, %v8440_v51 }
 0x39c   :  { %v8445_v35 = vunpack.i.h.bf16 %v8443_v6  ;;  %v8444_v59 = vunpack.i.l.bf16 %v8443_v6  ;;  %8737 = vrot.lane.b32.xlu1 %v8736_v60, %s9469_s7  ;;  %v3186_v26 = vpop.f32.mrf.mxu0  ;;  %v8450_v5 = vunpack.i.h.bf16 %v8448_v49  ;;  %v8449_v62 = vunpack.i.l.bf16 %v8448_v49  ;;  %v14416_v60 = vld [vmem:[#allocation2 + $0x1e0] sm:$0xff] }
 0x39d   :  { %8732 = vrot.lane.b32.xlu0 %v8731_v46, %s9468_s1  ;;  %v3392_v2 = vsel %vm3263_vm14, %v3184_v13, %v3328_v11  ;;  %v14419_v32 = vpack.i.bf16 %v3754_v18, %v3752_v16  ;;  %v3912_v46 = vsel %vm608_vm4, %v3910_v38, %v3911_v14  ;;  %v3914_v63 = vsel %vm608_vm4, %v3911_v14, %v3913_v31  ;;  %v9409_v26 = vld [vmem:[#allocation2 + $0xc8] sm:$0xff] }
 0x39e   :  { %v5651_v12 = vsel %vm2423_vm7, %v5587_v43, %v8444_v59  ;;  %v5652_v45 = vsel %vm2423_vm7, %v5588_v36, %v8445_v35  ;;  %v8458_v3 = vpop.permute.xlu1 %8457  ;;  %v3189_v19 = vpop.f32.mrf.mxu0  ;;  %3456 = vst.msk [vmem:[#allocation2 + $0x309] sm:$0xff] %vm90_vm0, %v3392_v2  ;;  %v3755_v25 = vrot.slane %v14416_v60, 1  ;;  %v3756_v28 = vrot.slane %v14424_v0, 1  ;;  %v9410_v36 = vld [vmem:[#allocation2 + $0xc0] sm:$0xff] }
 0x39f   :  { %v8453_v9 = vpop.permute.xlu0 %8452  ;;  %v8460_v21 = vunpack.i.h.bf16 %v8458_v3  ;;  %v8459_v22 = vunpack.i.l.bf16 %v8458_v3  ;;  %vm3264_vm15 = vcmp.gt.f32.partialorder %v3189_v19, 0.0  ;;  %v3329_v50 = vmul.f32 %v13345_v34, %v3189_v19 }
 0x3a0   :  { %v8455_v20 = vunpack.i.h.bf16 %v8453_v9  ;;  %v8454_v1 = vunpack.i.l.bf16 %v8453_v9  ;;  %8747 = vrot.lane.b32.xlu1 %v8746_v40, %s9463_s0  ;;  %v3191_v51 = vpop.f32.mrf.mxu0  ;;  %v5715_v41 = vsel %vm2488_vm8, %v5651_v12, %v8449_v62  ;;  %v5716_v7 = vsel %vm2488_vm8, %v5652_v45, %v8450_v5 }
 0x3a1   :  { %8742 = vrot.lane.b32.xlu0 %v8741_v53, %s9462_s19  ;;  %v3393_v49 = vsel %vm3264_vm15, %v3189_v19, %v3329_v50  ;;  %v3758_v61 = vrot.slane %v14426_v4, 1  ;;  %v8761_v45 = vpack.i.bf16 %v3914_v63, %v3912_v46  ;;  %v8766_v2 = vpack.i.bf16 %v14424_v0, %v14416_v60 }
 0x3a2   :  { %v8468_v13 = vpop.permute.xlu1 %8467  ;;  %v3192_v40 = vpop.f32.mrf.mxu0  ;;  %v5779_v38 = vsel %vm2553_vm9, %v5715_v41, %v8454_v1  ;;  %v5780_v24 = vsel %vm2553_vm9, %v5716_v7, %v8455_v20  ;;  %3457 = vst.msk [vmem:[#allocation2 + $0x319] sm:$0xff] %vm90_vm0, %v3393_v49  ;;  %v3757_v19 = vsel %vm447_vm3, %v3755_v25, %v3756_v28  ;;  %v3916_v49 = vrot.slane %v14424_v0, 2  ;;  %v14476_v0 = vld [vmem:[#allocation2 + $0x208] sm:$0x3] }
 0x3a3   :  { %v8463_v33 = vpop.permute.xlu0 %8462  ;;  %vm3265_vm1 = vcmp.gt.f32.partialorder %v3192_v40, 0.0  ;;  %v3330_v54 = vmul.f32 %v13345_v34, %v3192_v40  ;;  %v5843_v16 = vsel %vm2618_vm10, %v5779_v38, %v8459_v22  ;;  %v5844_v18 = vsel %vm2618_vm10, %v5780_v24, %v8460_v21 }
 0x3a4   :  { %v8465_v53 = vunpack.i.h.bf16 %v8463_v33  ;;  %v8464_v6 = vunpack.i.l.bf16 %v8463_v33  ;;  %8757 = vrot.lane.b32.xlu1 %v14419_v32, %s9465_s10  ;;  %v3194_v14 = vpop.f32.mrf.mxu0  ;;  %v8470_v31 = vunpack.i.h.bf16 %v8468_v13  ;;  %v8469_v35 = vunpack.i.l.bf16 %v8468_v13 }
 0x3a5   :  { %v3394_v59 = vsel %vm3265_vm1, %v3192_v40, %v3330_v54  ;;  %8752 = vrot.lane.b32.xlu0 %v8751_v55, %s9464_s9  ;;  %v5907_v11 = vpack.c.bf16 %v5844_v18, %v5843_v16  ;;  %v3759_v55 = vsel %vm447_vm3, %v3756_v28, %v3758_v61  ;;  %v17639_v22 = vpack.c.bf16 %v13799_v37, %v13793_v29 }
 0x3a6   :  { %v5462_v43 = vsel %vm90_vm0, %v9409_v26, %v8465_v53  ;;  %v5461_v5 = vsel %vm90_vm0, %v9410_v36, %v8464_v6  ;;  %3458 = vst.msk [vmem:[#allocation2 + $0x321] sm:$0xff] %vm90_vm0, %v3394_v59  ;;  %v8478_v62 = vpop.permute.xlu1 %8477  ;;  %v3197_v12 = vpop.f32.mrf.mxu0  ;;  %v14467_v40 = vpack.i.bf16 %v3759_v55, %v3757_v19  ;;  %v3915_v38 = vrot.slane %v14416_v60, 2  ;;  %v14474_v53 = vld [vmem:[#allocation2 + $0x200] sm:$0xff] }
 0x3a7   :  { %6214 = vmatmul.mubr.bf16.gmra.mxu1 %v5907_v11  ;;  %v8473_v3 = vpop.permute.xlu0 %8472  ;;  %vm3266_vm2 = vcmp.gt.f32.partialorder %v3197_v12, 0.0  ;;  %v3331_v20 = vmul.f32 %v13345_v34, %v3197_v12  ;;  %v5526_v1 = vsel %vm2293_vm5, %v5462_v43, %v8470_v31  ;;  %v5525_v50 = vsel %vm2293_vm5, %v5461_v5, %v8469_v35 }
 0x3a8   :  { %v8475_v9 = vunpack.i.h.bf16 %v8473_v3  ;;  %v8474_v21 = vunpack.i.l.bf16 %v8473_v3  ;;  %7005 = vmatprep.mubr.msk.bf16.mxu1 %vm90_vm0, %v17639_v22  ;;  %8767 = vrot.lane.b32.xlu1 %v8766_v2, %s9468_s1  ;;  %v3199_v46 = vpop.f32.mrf.mxu0  ;;  %v8480_v51 = vunpack.i.h.bf16 %v8478_v62  ;;  %v8479_v41 = vunpack.i.l.bf16 %v8478_v62 }
 0x3a9   :  { %8762 = vrot.lane.b32.xlu0 %v8761_v45, %s9467_s24  ;;  %v3395_v37 = vsel %vm3266_vm2, %v3197_v12, %v3331_v20  ;;  %v3918_v24 = vrot.slane %v14426_v4, 2  ;;  %v14482_v4 = vld [vmem:[#allocation2 + $0x1f8] sm:$0xff]  ;;  %v14487_v35 = vsel %vm608_vm4, %v3915_v38, %v3916_v49  ;;  %v3761_v43 = vrot.slane %v14474_v53, 1 }
 0x3aa   :  { %v5589_v7 = vsel %vm2358_vm6, %v5525_v50, %v8474_v21  ;;  %v5590_v29 = vsel %vm2358_vm6, %v5526_v1, %v8475_v9  ;;  %v8488_v63 = vpop.permute.xlu1 %8487  ;;  %v3200_v25 = vpop.f32.mrf.mxu0  ;;  %3459 = vst.msk [vmem:[#allocation2 + $0x331] sm:$0xff] %vm90_vm0, %v3395_v37  ;;  %v14495_v26 = vpack.i.bf16 %v14474_v53, %v14482_v4  ;;  %v3763_v36 = vrot.slane %v14476_v0, 1 }
 0x3ab   :  { %v8483_v13 = vpop.permute.xlu0 %8482  ;;  %vm3267_vm11 = vcmp.gt.f32.partialorder %v3200_v25, 0.0  ;;  %v3332_v28 = vmul.f32 %v13345_v34, %v3200_v25  ;;  %v5653_v6 = vsel %vm2423_vm7, %v5589_v7, %v8479_v41  ;;  %v5654_v16 = vsel %vm2423_vm7, %v5590_v29, %v8480_v51 }
 0x3ac   :  { %v8485_v33 = vunpack.i.h.bf16 %v8483_v13  ;;  %v8484_v54 = vunpack.i.l.bf16 %v8483_v13  ;;  %8777 = vrot.lane.b32.xlu1 %v14419_v32, %s9462_s19  ;;  %v3202_v61 = vpop.f32.mrf.mxu0  ;;  %v8490_v60 = vunpack.i.h.bf16 %v8488_v63  ;;  %v8489_v18 = vunpack.i.l.bf16 %v8488_v63 }
 0x3ad   :  { %8772 = vrot.lane.b32.xlu0 %v14467_v40, %s9469_s7  ;;  %v3396_v14 = vsel %vm3267_vm11, %v3200_v25, %v3332_v28  ;;  %v14491_v11 = vsel %vm608_vm4, %v3916_v49, %v3918_v24  ;;  %v3760_v3 = vrot.slane %v14482_v4, 1  ;;  %v14509_v21 = vsel %vm608_vm4, %v4027_v57, %v4028_v42  ;;  %v9413_v25 = vld [vmem:[#allocation2 + $0xd8] sm:$0xff] }
 0x3ae   :  { %v5717_v34 = vsel %vm2488_vm8, %v5653_v6, %v8484_v54  ;;  %v5718_v32 = vsel %vm2488_vm8, %v5654_v16, %v8485_v33  ;;  %v8498_v31 = vpop.permute.xlu1 %8497  ;;  %3460 = vst.msk [vmem:[#allocation2 + $0x339] sm:$0xff] %vm90_vm0, %v3396_v14  ;;  %v8796_v46 = vpack.i.bf16 %v14491_v11, %v14487_v35  ;;  %v3764_v7 = vsel %vm447_vm3, %v3761_v43, %v3763_v36  ;;  %v14527_v24 = vld [vmem:[#allocation2 + $0x218] sm:$0xff]  ;;  %v14529_v33 = vld [vmem:[#allocation2 + $0x220] sm:$0x3] }
 0x3af   :  { %v8493_v59 = vpop.permute.xlu0 %8492  ;;  %v8500_v12 = vunpack.i.h.bf16 %v8498_v31  ;;  %v8499_v19 = vunpack.i.l.bf16 %v8498_v31  ;;  %v5781_v55 = vsel %vm2553_vm9, %v5717_v34, %v8489_v18  ;;  %v5782_v9 = vsel %vm2553_vm9, %v5718_v32, %v8490_v60  ;;  %v14544_v32 = vld [vmem:[#allocation2 + $0x210] sm:$0xff] }
 0x3b0   :  { %v8495_v5 = vunpack.i.h.bf16 %v8493_v59  ;;  %v8494_v62 = vunpack.i.l.bf16 %v8493_v59  ;;  %8787 = vrot.lane.b32.xlu1 %v8766_v2, %s9464_s9  ;;  %v3762_v41 = vsel %vm447_vm3, %v3760_v3, %v3761_v43  ;;  %v17640_v28 = vpack.c.bf16 %v13829_v23, %v13825_v8 }
 0x3b1   :  { %8782 = vrot.lane.b32.xlu0 %v8761_v45, %s9463_s0  ;;  %v9411_v45 = vld [vmem:[#allocation2 + $0x1a8] sm:$0x3]  ;;  %v5464_v57 = vsel %vm90_vm0, %v9412_v47, %v8500_v12  ;;  %v5463_v49 = vsel %vm90_vm0, %v9413_v25, %v8499_v19  ;;  %v14539_v6 = vpack.i.bf16 %v3764_v7, %v3762_v41  ;;  %v3920_v60 = vrot.slane %v14482_v4, 2  ;;  %v14576_v7 = vld [vmem:[#allocation2 + $0x238] sm:$0x3] }
 0x3b2   :  { %v8508_v22 = vpop.permute.xlu1 %8507  ;;  %v5845_v20 = vsel %vm2618_vm10, %v5781_v55, %v8494_v62  ;;  %v5846_v2 = vsel %vm2618_vm10, %v5782_v9, %v8495_v5  ;;  %v4030_v1 = vrot.slane %v9411_v45, 2  ;;  %v3921_v18 = vrot.slane %v14474_v53, 2 }
 0x3b3   :  { %v8503_v50 = vpop.permute.xlu0 %8502  ;;  %v5909_v51 = vpack.c.bf16 %v5846_v2, %v5845_v20  ;;  %v8510_v13 = vunpack.i.h.bf16 %v8508_v22  ;;  %v8509_v38 = vunpack.i.l.bf16 %v8508_v22  ;;  %v3923_v34 = vrot.slane %v14476_v0, 2 }
 0x3b4   :  { %v8505_v29 = vunpack.i.h.bf16 %v8503_v50  ;;  %v8504_v37 = vunpack.i.l.bf16 %v8503_v50  ;;  %8797 = vrot.lane.b32.xlu1 %v8796_v46, %s9467_s24  ;;  %v14522_v63 = vsel %vm608_vm4, %v4028_v42, %v4030_v1  ;;  %v3766_v8 = vrot.slane %v14527_v24, 1  ;;  %v14569_v1 = vld [vmem:[#allocation2 + $0x230] sm:$0xff] }
 0x3b5   :  { %6222 = vmatmul.mubr.bf16.gmra.mxu1 %v5909_v51  ;;  %8792 = vrot.lane.b32.xlu0 %v14467_v40, %s9465_s10  ;;  %v3768_v23 = vrot.slane %v14529_v33, 1  ;;  %v3765_v62 = vrot.slane %v14544_v32, 1  ;;  %v14558_v55 = vsel %vm608_vm4, %v3920_v60, %v3921_v18  ;;  %v14561_v9 = vsel %vm608_vm4, %v3921_v18, %v3923_v34  ;;  %v9414_v34 = vld [vmem:[#allocation2 + $0xf8] sm:$0xff] }
 0x3b6   :  { %v5528_v58 = vsel %vm2293_vm5, %v5464_v57, %v8505_v29  ;;  %v5527_v42 = vsel %vm2293_vm5, %v5463_v49, %v8504_v37  ;;  %7006 = vmatprep.mubr.msk.bf16.mxu1 %vm90_vm0, %v17640_v28  ;;  %v8518_v61 = vpop.permute.xlu1 %8517  ;;  %17641 = vst [vmem:[#allocation121_spill] sm:$0xff] %v14561_v9  ;;  %v14566_v2 = vpack.i.bf16 %v14527_v24, %v14544_v32  ;;  %v3926_v37 = vrot.slane %v14527_v24, 2 }
 0x3b7   :  { %v8513_v16 = vpop.permute.xlu0 %8512  ;;  %v5591_v59 = vsel %vm2358_vm6, %v5527_v42, %v8509_v38  ;;  %v5592_v43 = vsel %vm2358_vm6, %v5528_v58, %v8510_v13  ;;  %v8520_v4 = vunpack.i.h.bf16 %v8518_v61  ;;  %v8519_v36 = vunpack.i.l.bf16 %v8518_v61  ;;  %v14588_v38 = vld [vmem:[#allocation2 + $0x228] sm:$0xff] }
 0x3b8   :  { %v8515_v14 = vunpack.i.h.bf16 %v8513_v16  ;;  %v8514_v31 = vunpack.i.l.bf16 %v8513_v16  ;;  %8807 = vrot.lane.b32.xlu1 %v14539_v6, %s9469_s7  ;;  %v3767_v45 = vsel %vm447_vm3, %v3765_v62, %v3766_v8  ;;  %v3769_v41 = vsel %vm447_vm3, %v3766_v8, %v3768_v23 }
 0x3b9   :  { %8802 = vrot.lane.b32.xlu0 %v14495_v26, %s9468_s1  ;;  %v14582_v29 = vpack.i.bf16 %v14561_v9, %v14558_v55  ;;  %v3928_v13 = vrot.slane %v14529_v33, 2  ;;  %v3771_v58 = vrot.slane %v14569_v1, 1  ;;  %v3773_v16 = vrot.slane %v14576_v7, 1 }
 0x3ba   :  { %v5655_v53 = vsel %vm2423_vm7, %v5591_v59, %v8514_v31  ;;  %v5656_v0 = vsel %vm2423_vm7, %v5592_v43, %v8515_v14  ;;  %v8528_v5 = vpop.permute.xlu1 %8527  ;;  %v14596_v18 = vpack.i.bf16 %v3769_v41, %v3767_v45  ;;  %v3925_v33 = vrot.slane %v14544_v32, 2  ;;  %v9415_v31 = vld [vmem:[#allocation2 + $0xf0] sm:$0xff]  ;;  %v14632_v41 = vld [vmem:[#allocation2 + $0x248] sm:$0xff] }
 0x3bb   :  { %v8523_v12 = vpop.permute.xlu0 %8522  ;;  %v8530_v3 = vunpack.i.h.bf16 %v8528_v5  ;;  %v8529_v19 = vunpack.i.l.bf16 %v8528_v5  ;;  %v5719_v50 = vsel %vm2488_vm8, %v5655_v53, %v8519_v36  ;;  %v5720_v51 = vsel %vm2488_vm8, %v5656_v0, %v8520_v4 }
 0x3bc   :  { %v8525_v22 = vunpack.i.h.bf16 %v8523_v12  ;;  %v8524_v20 = vunpack.i.l.bf16 %v8523_v12  ;;  %8817 = vrot.lane.b32.xlu1 %v8796_v46, %s9463_s0  ;;  %v3770_v59 = vrot.slane %v14588_v38, 1  ;;  %v17642_v4 = vpack.c.bf16 %v13860_v27, %v13853_v52 }
 0x3bd   :  { %8812 = vrot.lane.b32.xlu0 %v14467_v40, %s9462_s19  ;;  %v14610_v32 = vsel %vm608_vm4, %v3926_v37, %v3928_v13  ;;  %v3774_v5 = vsel %vm447_vm3, %v3771_v58, %v3773_v16  ;;  %v14628_v45 = vpack.i.bf16 %v14569_v1, %v14588_v38 }
 0x3be   :  { %v8538_v46 = vpop.permute.xlu1 %8537  ;;  %v5783_v47 = vsel %vm2553_vm9, %v5719_v50, %v8524_v20  ;;  %v5784_v57 = vsel %vm2553_vm9, %v5720_v51, %v8525_v22  ;;  %17644 = vst [vmem:[#allocation126_spill] sm:$0xff] %v14610_v32  ;;  %v3772_v0 = vsel %vm447_vm3, %v3770_v59, %v3771_v58 }
 0x3bf   :  { %v8533_v25 = vpop.permute.xlu0 %8532  ;;  %v5847_v49 = vsel %vm2618_vm10, %v5783_v47, %v8529_v19  ;;  %v5848_v40 = vsel %vm2618_vm10, %v5784_v57, %v8530_v3  ;;  %v8540_v24 = vunpack.i.h.bf16 %v8538_v46  ;;  %v8539_v60 = vunpack.i.l.bf16 %v8538_v46 }
 0x3c0   :  { %v8535_v42 = vunpack.i.h.bf16 %v8533_v25  ;;  %v8534_v28 = vunpack.i.l.bf16 %v8533_v25  ;;  %v5911_v61 = vpack.c.bf16 %v5848_v40, %v5847_v49  ;;  %8827 = vrot.lane.b32.xlu1 %v14539_v6, %s9465_s10  ;;  %v14630_v51 = vpack.i.bf16 %v3774_v5, %v3772_v0  ;;  %v3533_v25 = vld [vmem:[#allocation2 + $0x240] sm:$0xff]  ;;  %v14638_v49 = vld [vmem:[#allocation2 + $0x250] sm:$0x3] }
 0x3c1   :  { %8822 = vrot.lane.b32.xlu0 %v14495_v26, %s9464_s9  ;;  %v14607_v26 = vsel %vm608_vm4, %v3925_v33, %v3926_v37  ;;  %v3931_v57 = vrot.slane %v14569_v1, 2  ;;  %v3933_v37 = vrot.slane %v14576_v7, 2  ;;  %v3930_v1 = vrot.slane %v14588_v38, 2 }
 0x3c2   :  { %v5466_v14 = vsel %vm90_vm0, %v9414_v34, %v8535_v42  ;;  %v5465_v8 = vsel %vm90_vm0, %v9415_v31, %v8534_v28  ;;  %6230 = vmatmul.mubr.bf16.gmra.mxu1 %v5911_v61  ;;  %v8548_v23 = vpop.permute.xlu1 %8547  ;;  %17643 = vst [vmem:[#allocation238_spill] sm:$0xff] %v14607_v26  ;;  %v14624_v20 = vpack.i.bf16 %v14610_v32, %v14607_v26  ;;  %v3776_v7 = vrot.slane %v14632_v41, 1 }
 0x3c3   :  { %v8543_v43 = vpop.permute.xlu0 %8542  ;;  %7007 = vmatprep.mubr.msk.bf16.mxu1 %vm90_vm0, %v17642_v4  ;;  %v5530_v62 = vsel %vm2293_vm5, %v5466_v14, %v8540_v24  ;;  %v5529_v52 = vsel %vm2293_vm5, %v5465_v8, %v8539_v60  ;;  %v8550_v27 = vunpack.i.h.bf16 %v8548_v23  ;;  %v8549_v12 = vunpack.i.l.bf16 %v8548_v23 }
 0x3c4   :  { %v8545_v36 = vunpack.i.h.bf16 %v8543_v43  ;;  %v8544_v53 = vunpack.i.l.bf16 %v8543_v43  ;;  %8837 = vrot.lane.b32.xlu1 %v14566_v2, %s9468_s1  ;;  %v14649_v24 = vpack.i.bf16 %v14632_v41, %v3533_v25  ;;  %v3775_v60 = vrot.slane %v3533_v25, 1 }
 0x3c5   :  { %8832 = vrot.lane.b32.xlu0 %v14582_v29, %s9467_s24  ;;  %v3778_v33 = vrot.slane %v14638_v49, 1  ;;  %v14655_v31 = vsel %vm608_vm4, %v3930_v1, %v3931_v57  ;;  %v14658_v8 = vsel %vm608_vm4, %v3931_v57, %v3933_v37  ;;  %v9417_v57 = vld [vmem:[#allocation2 + $0x108] sm:$0xff] }
 0x3c6   :  { %v5593_v3 = vsel %vm2358_vm6, %v5529_v52, %v8544_v53  ;;  %v5594_v19 = vsel %vm2358_vm6, %v5530_v62, %v8545_v36  ;;  %v8558_v22 = vpop.permute.xlu1 %8557  ;;  %17645 = vst [vmem:[#allocation137_spill] sm:$0xff] %v14655_v31  ;;  %17646 = vst [vmem:[#allocation230_spill] sm:$0xff] %v14658_v8  ;;  %v3777_v53 = vsel %vm447_vm3, %v3775_v60, %v3776_v7 }
 0x3c7   :  { %v8553_v50 = vpop.permute.xlu0 %8552  ;;  %v5657_v40 = vsel %vm2423_vm7, %v5593_v3, %v8549_v12  ;;  %v5658_v13 = vsel %vm2423_vm7, %v5594_v19, %v8550_v27  ;;  %v8560_v58 = vunpack.i.h.bf16 %v8558_v22  ;;  %v8559_v42 = vunpack.i.l.bf16 %v8558_v22  ;;  %v14676_v22 = vld [vmem:[#allocation2 + $0x260] sm:$0xff] }
 0x3c8   :  { %v8555_v46 = vunpack.i.h.bf16 %v8553_v50  ;;  %v8554_v47 = vunpack.i.l.bf16 %v8553_v50  ;;  %8847 = vrot.lane.b32.xlu1 %v14539_v6, %s9462_s19  ;;  %v14669_v62 = vpack.i.bf16 %v14658_v8, %v14655_v31  ;;  %v3779_v52 = vsel %vm447_vm3, %v3776_v7, %v3778_v33  ;;  %v14678_v50 = vld [vmem:[#allocation2 + $0x268] sm:$0x3] }
 0x3c9   :  { %8842 = vrot.lane.b32.xlu0 %v14596_v18, %s9469_s7  ;;  %v3935_v3 = vrot.slane %v3533_v25, 2  ;;  %v3938_v19 = vrot.slane %v14638_v49, 2  ;;  %v3781_v1 = vrot.slane %v14676_v22, 1  ;;  %v3783_v7 = vrot.slane %v14678_v50, 1 }
 0x3ca   :  { %v5721_v28 = vsel %vm2488_vm8, %v5657_v40, %v8554_v47  ;;  %v5722_v6 = vsel %vm2488_vm8, %v5658_v13, %v8555_v46  ;;  %v8568_v61 = vpop.permute.xlu1 %8567  ;;  %v9416_v46 = vld [vmem:[#allocation2 + $0x110] sm:$0xff]  ;;  %v14684_v13 = vld [vmem:[#allocation2 + $0x258] sm:$0xff] }
 0x3cb   :  { %v8563_v16 = vpop.permute.xlu0 %8562  ;;  %v8570_v38 = vunpack.i.h.bf16 %v8568_v61  ;;  %v8569_v23 = vunpack.i.l.bf16 %v8568_v61  ;;  %v5785_v59 = vsel %vm2553_vm9, %v5721_v28, %v8559_v42  ;;  %v5786_v43 = vsel %vm2553_vm9, %v5722_v6, %v8560_v58 }
 0x3cc   :  { %v8565_v34 = vunpack.i.h.bf16 %v8563_v16  ;;  %v8564_v14 = vunpack.i.l.bf16 %v8563_v16  ;;  %8857 = vrot.lane.b32.xlu1 %v14566_v2, %s9464_s9  ;;  %v17647_v58 = vpack.c.bf16 %v13916_v17, %v13913_v48  ;;  %v14692_v6 = vpack.i.bf16 %v3779_v52, %v3777_v53 }
 0x3cd   :  { %8852 = vrot.lane.b32.xlu0 %v14582_v29, %s9463_s0  ;;  %v3936_v29 = vrot.slane %v14632_v41, 2  ;;  %v5468_v47 = vsel %vm90_vm0, %v9416_v46, %v8570_v38  ;;  %v5467_v37 = vsel %vm90_vm0, %v9417_v57, %v8569_v23  ;;  %v3780_v17 = vrot.slane %v14684_v13, 1 }
 0x3ce   :  { %v8578_v4 = vpop.permute.xlu1 %8577  ;;  %v5849_v36 = vsel %vm2618_vm10, %v5785_v59, %v8564_v14  ;;  %v5850_v2 = vsel %vm2618_vm10, %v5786_v43, %v8565_v34 }
 0x3cf   :  { %v8573_v0 = vpop.permute.xlu0 %8572  ;;  %v5913_v5 = vpack.c.bf16 %v5850_v2, %v5849_v36  ;;  %v8580_v40 = vunpack.i.h.bf16 %v8578_v4  ;;  %v8579_v41 = vunpack.i.l.bf16 %v8578_v4  ;;  %v14695_v61 = vsel %vm608_vm4, %v3935_v3, %v3936_v29 }
 0x3d0   :  { %v8575_v27 = vunpack.i.h.bf16 %v8573_v0  ;;  %v8574_v12 = vunpack.i.l.bf16 %v8573_v0  ;;  %8867 = vrot.lane.b32.xlu1 %v14624_v20, %s9467_s24  ;;  %17648 = vst [vmem:[#allocation136_spill] sm:$0xff] %v14695_v61  ;;  %v14702_v48 = vsel %vm608_vm4, %v3936_v29, %v3938_v19  ;;  %v14713_v4 = vpack.i.bf16 %v14676_v22, %v14684_v13 }
 0x3d1   :  { %6238 = vmatmul.mubr.bf16.gmra.mxu1 %v5913_v5  ;;  %8862 = vrot.lane.b32.xlu0 %v14596_v18, %s9465_s10  ;;  %17649 = vst [vmem:[#allocation148_spill] sm:$0xff] %v14702_v48  ;;  %v3782_v0 = vsel %vm447_vm3, %v3780_v17, %v3781_v1  ;;  %v3784_v5 = vsel %vm447_vm3, %v3781_v1, %v3783_v7  ;;  %v14743_v1 = vld [vmem:[#allocation2 + $0x280] sm:$0x3]  ;;  %v14745_v7 = vld [vmem:[#allocation2 + $0x290] sm:$0xff]  ;;  %v3943_v17 = vrot.slane %v14678_v50, 2 }
 0x3d2   :  { %v5532_v25 = vsel %vm2293_vm5, %v5468_v47, %v8575_v27  ;;  %v5531_v49 = vsel %vm2293_vm5, %v5467_v37, %v8574_v12  ;;  %7008 = vmatprep.mubr.msk.bf16.mxu1 %vm90_vm0, %v17647_v58  ;;  %v8588_v42 = vpop.permute.xlu1 %8587  ;;  %v14721_v27 = vpack.i.bf16 %v14702_v48, %v14695_v61  ;;  %v14729_v57 = vpack.i.bf16 %v3784_v5, %v3782_v0  ;;  %v14732_v37 = vld [vmem:[#allocation2 + $0x278] sm:$0xff] }
 0x3d3   :  { %v8583_v28 = vpop.permute.xlu0 %8582  ;;  %v5595_v33 = vsel %vm2358_vm6, %v5531_v49, %v8579_v41  ;;  %v5596_v34 = vsel %vm2358_vm6, %v5532_v25, %v8580_v40  ;;  %v8590_v14 = vunpack.i.h.bf16 %v8588_v42  ;;  %v8589_v38 = vunpack.i.l.bf16 %v8588_v42 }
 0x3d4   :  { %v8585_v16 = vunpack.i.h.bf16 %v8583_v28  ;;  %v8584_v60 = vunpack.i.l.bf16 %v8583_v28  ;;  %8877 = vrot.lane.b32.xlu1 %v14630_v51, %s9469_s7  ;;  %v3946_v0 = vrot.slane %v14732_v37, 2  ;;  %v3948_v5 = vrot.slane %v14743_v1, 2 }
 0x3d5   :  { %8872 = vrot.lane.b32.xlu0 %v14628_v45, %s9468_s1 }
 0x3d6   :  { %v5659_v23 = vsel %vm2423_vm7, %v5595_v33, %v8584_v60  ;;  %v5660_v59 = vsel %vm2423_vm7, %v5596_v34, %v8585_v16  ;;  %v8598_v43 = vpop.permute.xlu1 %8597  ;;  %v14754_v34 = vld [vmem:[#allocation2 + $0x288] sm:$0xff] }
 0x3d7   :  { %v8593_v36 = vpop.permute.xlu0 %8592  ;;  %v8600_v2 = vunpack.i.h.bf16 %v8598_v43  ;;  %v8599_v53 = vunpack.i.l.bf16 %v8598_v43  ;;  %v5723_v12 = vsel %vm2488_vm8, %v5659_v23, %v8589_v38  ;;  %v5724_v3 = vsel %vm2488_vm8, %v5660_v59, %v8590_v14  ;;  %v14756_v14 = vld [vmem:[#allocation2 + $0x298] sm:$0x3]  ;;  %v9419_v23 = vld [vmem:[#allocation2 + $0x120] sm:$0xff] }
 0x3d8   :  { %v8595_v52 = vunpack.i.h.bf16 %v8593_v36  ;;  %v8594_v29 = vunpack.i.l.bf16 %v8593_v36  ;;  %8887 = vrot.lane.b32.xlu1 %v14624_v20, %s9463_s0  ;;  %v3941_v20 = vrot.slane %v14676_v22, 2  ;;  %v3940_v22 = vrot.slane %v14684_v13, 2  ;;  %v9418_v13 = vld [vmem:[#allocation2 + $0x128] sm:$0xff] }
 0x3d9   :  { %8882 = vrot.lane.b32.xlu0 %v14596_v18, %s9462_s19  ;;  %v14738_v18 = vld [vmem:[#allocation2 + $0x270] sm:$0xff] }
 0x3da   :  { %v8608_v19 = vpop.permute.xlu1 %8607  ;;  %v5787_v46 = vsel %vm2553_vm9, %v5723_v12, %v8594_v29  ;;  %v5788_v47 = vsel %vm2553_vm9, %v5724_v3, %v8595_v52  ;;  %v14752_v33 = vpack.i.bf16 %v14732_v37, %v14738_v18  ;;  %v3951_v52 = vrot.slane %v14745_v7, 2 }
 0x3db   :  { %v8603_v40 = vpop.permute.xlu0 %8602  ;;  %v5851_v41 = vsel %vm2618_vm10, %v5787_v46, %v8599_v53  ;;  %v5852_v25 = vsel %vm2618_vm10, %v5788_v47, %v8600_v2  ;;  %v8610_v16 = vunpack.i.h.bf16 %v8608_v19  ;;  %v8609_v60 = vunpack.i.l.bf16 %v8608_v19 }
 0x3dc   :  { %v8605_v58 = vunpack.i.h.bf16 %v8603_v40  ;;  %v8604_v42 = vunpack.i.l.bf16 %v8603_v40  ;;  %v5915_v28 = vpack.c.bf16 %v5852_v25, %v5851_v41  ;;  %8897 = vrot.lane.b32.xlu1 %v14630_v51, %s9465_s10  ;;  %v17650_v2 = vpack.c.bf16 %v13925_v39, %v13922_v44  ;;  %v14780_v40 = vld [vmem:[#allocation2 + $0x2a0] sm:$0xff] }
 0x3dd   :  { %8892 = vrot.lane.b32.xlu0 %v14628_v45, %s9464_s9  ;;  %v14761_v45 = vsel %vm608_vm4, %v3940_v22, %v3941_v20  ;;  %v3945_v53 = vrot.slane %v14738_v18, 2  ;;  %v3950_v3 = vrot.slane %v14754_v34, 2  ;;  %v3953_v19 = vrot.slane %v14756_v14, 2 }
 0x3de   :  { %v5470_v38 = vsel %vm90_vm0, %v9418_v13, %v8605_v58  ;;  %v5469_v59 = vsel %vm90_vm0, %v9419_v23, %v8604_v42  ;;  %6246 = vmatmul.mubr.bf16.gmra.mxu1 %v5915_v28  ;;  %v8618_v43 = vpop.permute.xlu1 %8617  ;;  %v14785_v42 = vsel %vm608_vm4, %v3941_v20, %v3943_v17  ;;  %v14793_v13 = vsel %vm608_vm4, %v3946_v0, %v3948_v5  ;;  %v14798_v23 = vld [vmem:[#allocation2 + $0x2a8] sm:$0xff]  ;;  %v14802_v20 = vld [vmem:[#allocation2 + $0x2b8] sm:$0xff] }
 0x3df   :  { %v8613_v36 = vpop.permute.xlu0 %8612  ;;  %7009 = vmatprep.mubr.msk.bf16.mxu1 %vm90_vm0, %v17650_v2  ;;  %v5534_v44 = vsel %vm2293_vm5, %v5470_v38, %v8610_v16  ;;  %v5533_v39 = vsel %vm2293_vm5, %v5469_v59, %v8609_v60  ;;  %v8620_v46 = vunpack.i.h.bf16 %v8618_v43  ;;  %v8619_v47 = vunpack.i.l.bf16 %v8618_v43  ;;  %v14800_v59 = vld [vmem:[#allocation2 + $0x2b0] sm:$0x3]  ;;  %v14814_v5 = vld [vmem:[#allocation2 + $0x2d8] sm:$0xff] }
 0x3e0   :  { %v8615_v29 = vunpack.i.h.bf16 %v8613_v36  ;;  %v8614_v12 = vunpack.i.l.bf16 %v8613_v36  ;;  %8907 = vrot.lane.b32.xlu1 %v14649_v24, %s9468_s1  ;;  %v14790_v60 = vsel %vm608_vm4, %v3945_v53, %v3946_v0  ;;  %v14796_v38 = vsel %vm608_vm4, %v3950_v3, %v3951_v52  ;;  %v14810_v53 = vld [vmem:[#allocation2 + $0x2c0] sm:$0xff]  ;;  %v14812_v0 = vld [vmem:[#allocation2 + $0x2c8] sm:$0x3]  ;;  %17651 = vst [vmem:[#allocation149_spill] sm:$0xff] %v14814_v5  ;;  %v14826_v16 = vld [vmem:[#allocation2 + $0x2d0] sm:$0xff] }
 0x3e1   :  { %8902 = vrot.lane.b32.xlu0 %v14669_v62, %s9467_s24  ;;  %v14807_v36 = vsel %vm608_vm4, %v3951_v52, %v3953_v19  ;;  %v3955_v2 = vrot.slane %v14780_v40, 2  ;;  %v3958_v54 = vrot.slane %v14800_v59, 2  ;;  %17653 = vst [vmem:[#allocation231_spill] sm:$0xff] %v14826_v16  ;;  %v3965_v48 = vrot.slane %v14826_v16, 2 }
 0x3e2   :  { %v5597_v41 = vsel %vm2358_vm6, %v5533_v39, %v8614_v12  ;;  %v5598_v25 = vsel %vm2358_vm6, %v5534_v44, %v8615_v29  ;;  %v8628_v58 = vpop.permute.xlu1 %8627 }
 0x3e3   :  { %v8623_v22 = vpop.permute.xlu0 %8622  ;;  %v5661_v29 = vsel %vm2423_vm7, %v5597_v41, %v8619_v47  ;;  %v5662_v12 = vsel %vm2423_vm7, %v5598_v25, %v8620_v46  ;;  %v8630_v3 = vunpack.i.h.bf16 %v8628_v58  ;;  %v8629_v44 = vunpack.i.l.bf16 %v8628_v58 }
 0x3e4   :  { %v8625_v17 = vunpack.i.h.bf16 %v8623_v22  ;;  %v8624_v43 = vunpack.i.l.bf16 %v8623_v22  ;;  %8917 = vrot.lane.b32.xlu1 %v14630_v51, %s9462_s19  ;;  %v14820_v51 = vld [vmem:[#allocation2 + $0x2e0] sm:$0x3]  ;;  %v3956_v22 = vrot.slane %v14798_v23, 2  ;;  %v3960_v46 = vrot.slane %v14802_v20, 2 }
 0x3e5   :  { %8912 = vrot.lane.b32.xlu0 %v14692_v6, %s9469_s7  ;;  %17652 = vst [vmem:[#allocation125_spill] sm:$0xff] %v14820_v51  ;;  %v3961_v41 = vrot.slane %v14810_v53, 2  ;;  %v3963_v25 = vrot.slane %v14812_v0, 2  ;;  %v3966_v58 = vrot.slane %v14814_v5, 2 }
 0x3e6   :  { %v5725_v52 = vsel %vm2488_vm8, %v5661_v29, %v8624_v43  ;;  %v5726_v19 = vsel %vm2488_vm8, %v5662_v12, %v8625_v17  ;;  %v8638_v39 = vpop.permute.xlu1 %8637  ;;  %v3968_v17 = vrot.slane %v14820_v51, 2  ;;  %v14843_v31 = vsel %vm608_vm4, %v3955_v2, %v3956_v22  ;;  %v9420_v2 = vld [vmem:[#allocation2 + $0x140] sm:$0xff] }
 0x3e7   :  { %v8633_v47 = vpop.permute.xlu0 %8632  ;;  %v8640_v29 = vunpack.i.h.bf16 %v8638_v39  ;;  %v8639_v12 = vunpack.i.l.bf16 %v8638_v39  ;;  %v5789_v28 = vsel %vm2553_vm9, %v5725_v52, %v8629_v44  ;;  %v5790_v49 = vsel %vm2553_vm9, %v5726_v19, %v8630_v3 }
 0x3e8   :  { %v8635_v50 = vunpack.i.h.bf16 %v8633_v47  ;;  %v8634_v43 = vunpack.i.l.bf16 %v8633_v47  ;;  %8927 = vrot.lane.b32.xlu1 %v14649_v24, %s9464_s9  ;;  %v14846_v24 = vsel %vm608_vm4, %v3956_v22, %v3958_v54  ;;  %v14852_v3 = vsel %vm608_vm4, %v3961_v41, %v3963_v25  ;;  %v14869_v22 = vld [vmem:[#allocation2 + $0x300] sm:$0xff] }
 0x3e9   :  { %8922 = vrot.lane.b32.xlu0 %v14669_v62, %s9463_s0  ;;  %v14849_v62 = vsel %vm608_vm4, %v3960_v46, %v3961_v41  ;;  %v14855_v44 = vsel %vm608_vm4, %v3965_v48, %v3966_v58  ;;  %v5472_v54 = vsel %vm90_vm0, %v9420_v2, %v8640_v29  ;;  %v14867_v19 = vsel %vm608_vm4, %v3966_v58, %v3968_v17  ;;  %v14871_v48 = vld [vmem:[#allocation2 + $0x308] sm:$0xff]  ;;  %v14873_v46 = vld [vmem:[#allocation2 + $0x310] sm:$0x3]  ;;  %v9421_v41 = vld [vmem:[#allocation2 + $0x138] sm:$0xff] }
 0x3ea   :  { %v8648_v61 = vpop.permute.xlu1 %8647  ;;  %v5853_v8 = vsel %vm2618_vm10, %v5789_v28, %v8634_v43  ;;  %v5854_v47 = vsel %vm2618_vm10, %v5790_v49, %v8635_v50  ;;  %v14857_v28 = vld [vmem:[#allocation2 + $0x2e8] sm:$0xff]  ;;  %v14859_v49 = vld [vmem:[#allocation2 + $0x2f0] sm:$0xff]  ;;  %v14861_v50 = vld [vmem:[#allocation2 + $0x2f8] sm:$0x3]  ;;  %17657 = vst [vmem:[#allocation155_spill] sm:$0xff] %v14869_v22  ;;  %v5471_v25 = vsel %vm90_vm0, %v9421_v41, %v8639_v12  ;;  %v17662_v12 = vpack.c.bf16 %v17632_v10, %v13952_v15 }
 0x3eb   :  { %v8643_v39 = vpop.permute.xlu0 %8642  ;;  %v5917_v32 = vpack.c.bf16 %v5854_v47, %v5853_v8  ;;  %17654 = vst [vmem:[#allocation133_spill] sm:$0xff] %v14857_v28  ;;  %17655 = vst [vmem:[#allocation141_spill] sm:$0xff] %v14859_v49  ;;  %v8650_v43 = vunpack.i.h.bf16 %v8648_v61  ;;  %v8649_v47 = vunpack.i.l.bf16 %v8648_v61  ;;  %v14878_v29 = vld [vmem:[#allocation2 + $0x320] sm:$0xff]  ;;  %v3970_v61 = vrot.slane %v14857_v28, 2 }
 0x3ec   :  { %17656 = vst [vmem:[#allocation154_spill] sm:$0xff] %v14861_v50  ;;  %v8645_v52 = vunpack.i.h.bf16 %v8643_v39  ;;  %v8644_v8 = vunpack.i.l.bf16 %v8643_v39  ;;  %8937 = vrot.lane.b32.xlu1 %v14721_v27, %s9467_s24  ;;  %17658 = vst [vmem:[#allocation232_spill] sm:$0xff] %v14871_v48  ;;  %v14880_v39 = vld [vmem:[#allocation2 + $0x328] sm:$0x3]  ;;  %v3971_v41 = vrot.slane %v14859_v49, 2  ;;  %v3973_v26 = vrot.slane %v14861_v50, 2 }
 0x3ed   :  { %17659 = vst [vmem:[#allocation233_spill] sm:$0xff] %v14873_v46  ;;  %6254 = vmatmul.mubr.bf16.gmra.mxu1 %v5917_v32  ;;  %8932 = vrot.lane.b32.xlu0 %v14692_v6, %s9465_s10  ;;  %17660 = vst [vmem:[#allocation132_spill] sm:$0xff] %v14878_v29  ;;  %v3975_v51 = vrot.slane %v14869_v22, 2  ;;  %v3976_v58 = vrot.slane %v14871_v48, 2  ;;  %v3981_v10 = vrot.slane %v14878_v29, 2 }
 0x3ee   :  { %17661 = vst [vmem:[#allocation152_spill] sm:$0xff] %v14880_v39  ;;  %v5536_v17 = vsel %vm2293_vm5, %v5472_v54, %v8645_v52  ;;  %v5535_v2 = vsel %vm2293_vm5, %v5471_v25, %v8644_v8  ;;  %7010 = vmatprep.mubr.msk.bf16.mxu1 %vm90_vm0, %v17662_v12  ;;  %v8658_v32 = vpop.permute.xlu1 %8657  ;;  %v3978_v54 = vrot.slane %v14873_v46, 2  ;;  %v14896_v52 = vld [vmem:[#allocation2 + $0x318] sm:$0xff]  ;;  %v3983_v25 = vrot.slane %v14880_v39, 2 }
 0x3ef   :  { %v8653_v16 = vpop.permute.xlu0 %8652  ;;  %17663 = vst [vmem:[#allocation153_spill] sm:$0xff] %v14896_v52  ;;  %v5599_v12 = vsel %vm2358_vm6, %v5535_v2, %v8649_v47  ;;  %v5600_v28 = vsel %vm2358_vm6, %v5536_v17, %v8650_v43  ;;  %v8660_v22 = vunpack.i.h.bf16 %v8658_v32  ;;  %v8659_v50 = vunpack.i.l.bf16 %v8658_v32  ;;  %v3564_v2 = vld [vmem:[#allocation2 + $0x338] sm:$0xff]  ;;  %v3565_v32 = vld [vmem:[#allocation2 + $0x340] sm:$0x3] }
 0x3f0   :  { %v8655_v8 = vunpack.i.h.bf16 %v8653_v16  ;;  %v8654_v15 = vunpack.i.l.bf16 %v8653_v16  ;;  %8947 = vrot.lane.b32.xlu1 %v14729_v57, %s9469_s7  ;;  %v14909_v49 = vsel %vm608_vm4, %v3970_v61, %v3971_v41  ;;  %v3980_v29 = vrot.slane %v14896_v52, 2 }
 0x3f1   :  { %8942 = vrot.lane.b32.xlu0 %v14713_v4, %s9468_s1  ;;  %v14913_v43 = vsel %vm608_vm4, %v3971_v41, %v3973_v26  ;;  %v14916_v17 = vsel %vm608_vm4, %v3975_v51, %v3976_v58  ;;  %v14931_v51 = vsel %vm608_vm4, %v3981_v10, %v3983_v25 }
 0x3f2   :  { %v5663_v46 = vsel %vm2423_vm7, %v5599_v12, %v8654_v15  ;;  %v5664_v16 = vsel %vm2423_vm7, %v5600_v28, %v8655_v8  ;;  %v8668_v48 = vpop.permute.xlu1 %8667  ;;  %v14921_v28 = vsel %vm608_vm4, %v3976_v58, %v3978_v54  ;;  %v14924_v61 = vsel %vm608_vm4, %v3980_v29, %v3981_v10 }
 0x3f3   :  { %v8663_v39 = vpop.permute.xlu0 %8662  ;;  %v8670_v5 = vunpack.i.h.bf16 %v8668_v48  ;;  %v8669_v47 = vunpack.i.l.bf16 %v8668_v48  ;;  %v3563_v48 = vld [vmem:[#allocation2 + $0x330] sm:$0xff]  ;;  %v5727_v26 = vsel %vm2488_vm8, %v5663_v46, %v8659_v50  ;;  %v5728_v41 = vsel %vm2488_vm8, %v5664_v16, %v8660_v22 }
 0x3f4   :  { %v8665_v15 = vunpack.i.h.bf16 %v8663_v39  ;;  %v8664_v12 = vunpack.i.l.bf16 %v8663_v39  ;;  %8957 = vrot.lane.b32.xlu1 %v14721_v27, %s9463_s0  ;;  %v4007_v54 = vrot.slane %v3564_v2, 2  ;;  %v4009_v8 = vrot.slane %v3565_v32, 2 }
 0x3f5   :  { %8952 = vrot.lane.b32.xlu0 %v14692_v6, %s9462_s19  ;;  %v4006_v6 = vrot.slane %v3563_v48, 2 }
 0x3f6   :  { %v8678_v39 = vpop.permute.xlu1 %8677  ;;  %v5791_v58 = vsel %vm2553_vm9, %v5727_v26, %v8664_v12  ;;  %v5792_v29 = vsel %vm2553_vm9, %v5728_v41, %v8665_v15  ;;  %v9423_v12 = vld [vmem:[#allocation2 + $0x150] sm:$0xff]  ;;  %v14955_v26 = vsel %vm608_vm4, %v4007_v54, %v4009_v8  ;;  %v17667_v8 = vrot.slane %v14743_v1, 1 }
 0x3f7   :  { %v8673_v52 = vpop.permute.xlu0 %8672  ;;  %v8680_v50 = vunpack.i.h.bf16 %v8678_v39  ;;  %v5855_v22 = vsel %vm2618_vm10, %v5791_v58, %v8669_v47  ;;  %v5856_v46 = vsel %vm2618_vm10, %v5792_v29, %v8670_v5  ;;  %v8679_v25 = vunpack.i.l.bf16 %v8678_v39  ;;  %v9422_v47 = vld [vmem:[#allocation2 + $0x158] sm:$0xff] }
 0x3f8   :  { %v8675_v16 = vunpack.i.h.bf16 %v8673_v52  ;;  %v8674_v10 = vunpack.i.l.bf16 %v8673_v52  ;;  %v5919_v9 = vpack.c.bf16 %v5856_v46, %v5855_v22  ;;  %8967 = vrot.lane.b32.xlu1 %v14729_v57, %s9465_s10  ;;  %v14944_v2 = vsel %vm608_vm4, %v4006_v6, %v4007_v54 }
 0x3f9   :  { %8962 = vrot.lane.b32.xlu0 %v14713_v4, %s9464_s9  ;;  %v17664_v29 = vpack.c.bf16 %v14363_v56, %v14360_v30  ;;  %v8971_v22 = vpack.i.bf16 %v14785_v42, %v14761_v45  ;;  %v17666_v46 = vrot.slane %v14738_v18, 1 }
 0x3fa   :  { %v5474_v15 = vsel %vm90_vm0, %v9422_v47, %v8675_v16  ;;  %v5473_v48 = vsel %vm90_vm0, %v9423_v12, %v8674_v10  ;;  %6262 = vmatmul.mubr.bf16.gmra.mxu1 %v5919_v9  ;;  %v8688_v4 = vpop.permute.xlu1 %8687  ;;  %v17665_v9 = vrot.slane %v14732_v37, 1 }
 0x3fb   :  { %v5538_v39 = vsel %vm2293_vm5, %v5474_v15, %v8680_v50  ;;  %v8683_v58 = vpop.permute.xlu0 %8682  ;;  %7011 = vmatprep.mubr.msk.bf16.mxu1 %vm90_vm0, %v17664_v29  ;;  %v5537_v18 = vsel %vm2293_vm5, %v5473_v48, %v8679_v25  ;;  %v8690_v47 = vunpack.i.h.bf16 %v8688_v4  ;;  %v8689_v15 = vunpack.i.l.bf16 %v8688_v4 }
 0x3fc   :  { %v3787_v54 = vsel %vm447_vm3, %v17666_v46, %v17665_v9  ;;  %v17668_v6 = vmov %v17665_v9  ;;  %v8685_v16 = vunpack.i.h.bf16 %v8683_v58  ;;  %v8684_v10 = vunpack.i.l.bf16 %v8683_v58  ;;  %8977 = vrot.lane.b32.xlu1 %v14752_v33, %s9468_s1 }
 0x3fd   :  { %v3789_v50 = vsel %vm447_vm3, %v17668_v6, %v17667_v8  ;;  %8972 = vrot.lane.b32.xlu0 %v8971_v22, %s9467_s24 }
 0x3fe   :  { %v5601_v1 = vsel %vm2358_vm6, %v5537_v18, %v8684_v10  ;;  %v5602_v12 = vsel %vm2358_vm6, %v5538_v39, %v8685_v16  ;;  %v8698_v58 = vpop.permute.xlu1 %8697  ;;  %v14988_v9 = vpack.i.bf16 %v3789_v50, %v3787_v54  ;;  %v3791_v10 = vrot.slane %v14745_v7, 1 }
 0x3ff   :  { %v8693_v29 = vpop.permute.xlu0 %8692  ;;  %v5665_v25 = vsel %vm2423_vm7, %v5601_v1, %v8689_v15  ;;  %v5666_v48 = vsel %vm2423_vm7, %v5602_v12, %v8690_v47  ;;  %v8700_v4 = vunpack.i.h.bf16 %v8698_v58  ;;  %v8699_v6 = vunpack.i.l.bf16 %v8698_v58 }
 0x400   :  { %v8695_v46 = vunpack.i.h.bf16 %v8693_v29  ;;  %v8694_v8 = vunpack.i.l.bf16 %v8693_v29  ;;  %8987 = vrot.lane.b32.xlu1 %v14729_v57, %s9462_s19  ;;  %v3793_v18 = vrot.slane %v14756_v14, 1  ;;  %v3790_v47 = vrot.slane %v14754_v34, 1 }
 0x401   :  { %8982 = vrot.lane.b32.xlu0 %v14988_v9, %s9469_s7 }
 0x402   :  { %v5729_v39 = vsel %vm2488_vm8, %v5665_v25, %v8694_v8  ;;  %v5730_v16 = vsel %vm2488_vm8, %v5666_v48, %v8695_v46  ;;  %v8708_v54 = vpop.permute.xlu1 %8707 }
 0x403   :  { %v8703_v50 = vpop.permute.xlu0 %8702  ;;  %v8710_v15 = vunpack.i.h.bf16 %v8708_v54  ;;  %v8709_v1 = vunpack.i.l.bf16 %v8708_v54  ;;  %v5793_v12 = vsel %vm2553_vm9, %v5729_v39, %v8699_v6  ;;  %v5794_v58 = vsel %vm2553_vm9, %v5730_v16, %v8700_v4  ;;  %v9424_v4 = vld [vmem:[#allocation2 + $0x170] sm:$0xff] }
 0x404   :  { %v8705_v57 = vunpack.i.h.bf16 %v8703_v50  ;;  %v8704_v29 = vunpack.i.l.bf16 %v8703_v50  ;;  %8997 = vrot.lane.b32.xlu1 %v14752_v33, %s9464_s9  ;;  %v9006_v33 = vpack.i.bf16 %v14793_v13, %v14790_v60  ;;  %v3792_v54 = vsel %vm447_vm3, %v3790_v47, %v3791_v10 }
 0x405   :  { %8992 = vrot.lane.b32.xlu0 %v8971_v22, %s9463_s0  ;;  %v15006_v46 = vpop.f32.mrf.mxu1  ;;  %v3794_v22 = vsel %vm447_vm3, %v3791_v10, %v3793_v18  ;;  %v5476_v16 = vsel %vm90_vm0, %v9424_v4, %v8710_v15  ;;  %v17670_v15 = vpack.c.bf16 %v14522_v63, %v14509_v21 }
 0x406   :  { %v8718_v8 = vpop.permute.xlu1 %8717  ;;  %v5857_v14 = vsel %vm2618_vm10, %v5793_v12, %v8704_v29  ;;  %v5858_v25 = vsel %vm2618_vm10, %v5794_v58, %v8705_v57  ;;  %v9425_v29 = vld [vmem:[#allocation2 + $0x168] sm:$0xff] }
 0x407   :  { %v8713_v48 = vpop.permute.xlu0 %8712  ;;  %v5921_v50 = vpack.c.bf16 %v5858_v25, %v5857_v14  ;;  %v6161_v37 = vpop.f32.mrf.mxu1  ;;  %v5475_v57 = vsel %vm90_vm0, %v9425_v29, %v8709_v1  ;;  %v8720_v12 = vunpack.i.h.bf16 %v8718_v8  ;;  %v8719_v58 = vunpack.i.l.bf16 %v8718_v8 }
 0x408   :  { %v8715_v6 = vunpack.i.h.bf16 %v8713_v48  ;;  %v8714_v39 = vunpack.i.l.bf16 %v8713_v48  ;;  %9007 = vrot.lane.b32.xlu1 %v9006_v33, %s9467_s24  ;;  %v15023_v14 = vpack.i.bf16 %v3794_v22, %v3792_v54  ;;  %v9011_v8 = vpack.i.bf16 %v14745_v7, %v14754_v34 }
 0x409   :  { %6270 = vmatmul.mubr.bf16.gmra.mxu1 %v5921_v50  ;;  %9002 = vrot.lane.b32.xlu0 %v14988_v9, %s9465_s10  ;;  %v15021_v10 = vpop.f32.mrf.mxu1 }
 0x40a   :  { %v5540_v47 = vsel %vm2293_vm5, %v5476_v16, %v8715_v6  ;;  %v5539_v37 = vsel %vm2293_vm5, %v5475_v57, %v8714_v39  ;;  %17669 = vst [vmem:[#allocation173_spill] sm:$0xff] %v15021_v10  ;;  %v8728_v18 = vpop.permute.xlu1 %8727  ;;  %7012 = vmatprep.mubr.msk.bf16.mxu1 %vm90_vm0, %v17670_v15 }
 0x40b   :  { %v8723_v1 = vpop.permute.xlu0 %8722  ;;  %v6164_v25 = vpop.f32.mrf.mxu1  ;;  %v5603_v6 = vsel %vm2358_vm6, %v5539_v37, %v8719_v58  ;;  %v5604_v54 = vsel %vm2358_vm6, %v5540_v47, %v8720_v12  ;;  %v8730_v22 = vunpack.i.h.bf16 %v8728_v18  ;;  %v8729_v39 = vunpack.i.l.bf16 %v8728_v18 }
 0x40c   :  { %v8725_v48 = vunpack.i.h.bf16 %v8723_v1  ;;  %v8724_v50 = vunpack.i.l.bf16 %v8723_v1  ;;  %9017 = vrot.lane.b32.xlu1 %v15023_v14, %s9469_s7 }
 0x40d   :  { %9012 = vrot.lane.b32.xlu0 %v9011_v8, %s9468_s1 }
 0x40e   :  { %v5667_v21 = vsel %vm2423_vm7, %v5603_v6, %v8724_v50  ;;  %v5668_v63 = vsel %vm2423_vm7, %v5604_v54, %v8725_v48  ;;  %v8738_v4 = vpop.permute.xlu1 %8737 }
 0x40f   :  { %v8733_v7 = vpop.permute.xlu0 %8732  ;;  %v8740_v34 = vunpack.i.h.bf16 %v8738_v4  ;;  %v8739_v16 = vunpack.i.l.bf16 %v8738_v4  ;;  %v5731_v58 = vsel %vm2488_vm8, %v5667_v21, %v8729_v39  ;;  %v5732_v12 = vsel %vm2488_vm8, %v5668_v63, %v8730_v22  ;;  %v9426_v4 = vld [vmem:[#allocation2 + $0x1b8] sm:$0xff] }
 0x410   :  { %v8735_v29 = vunpack.i.h.bf16 %v8733_v7  ;;  %v8734_v57 = vunpack.i.l.bf16 %v8733_v7  ;;  %9027 = vrot.lane.b32.xlu1 %v9006_v33, %s9463_s0  ;;  %v3796_v33 = vrot.slane %v14798_v23, 1  ;;  %v5926_v63 = vpack.c.bf16 %v14491_v11, %v14487_v35 }
 0x411   :  { %9022 = vrot.lane.b32.xlu0 %v14988_v9, %s9462_s19  ;;  %v3798_v9 = vrot.slane %v14800_v59, 1  ;;  %v3795_v59 = vrot.slane %v14780_v40, 1  ;;  %v9041_v35 = vpack.i.bf16 %v14807_v36, %v14796_v38 }
 0x412   :  { %v8748_v47 = vpop.permute.xlu1 %8747  ;;  %v5795_v37 = vsel %vm2553_vm9, %v5731_v58, %v8734_v57  ;;  %v5796_v18 = vsel %vm2553_vm9, %v5732_v12, %v8735_v29  ;;  %v9046_v57 = vpack.i.bf16 %v14798_v23, %v14780_v40 }
 0x413   :  { %v15045_v15 = vpop.f32.mrf.mxu1  ;;  %v8743_v1 = vpop.permute.xlu0 %8742  ;;  %v5859_v25 = vsel %vm2618_vm10, %v5795_v37, %v8739_v16  ;;  %v5860_v48 = vsel %vm2618_vm10, %v5796_v18, %v8740_v34  ;;  %v8750_v39 = vunpack.i.h.bf16 %v8748_v47  ;;  %v8749_v21 = vunpack.i.l.bf16 %v8748_v47  ;;  %v9427_v34 = vld [vmem:[#allocation2 + $0x1b0] sm:$0xff] }
 0x414   :  { %17671 = vst [vmem:[#allocation145_spill] sm:$0xff] %v15045_v15  ;;  %v8745_v50 = vunpack.i.h.bf16 %v8743_v1  ;;  %v8744_v6 = vunpack.i.l.bf16 %v8743_v1  ;;  %v5923_v54 = vpack.c.bf16 %v5860_v48, %v5859_v25  ;;  %9037 = vrot.lane.b32.xlu1 %v15023_v14, %s9465_s10  ;;  %v3797_v47 = vsel %vm447_vm3, %v3795_v59, %v3796_v33 }
 0x415   :  { %v6169_v22 = vpop.f32.mrf.mxu1  ;;  %9032 = vrot.lane.b32.xlu0 %v9011_v8, %s9464_s9  ;;  %v3799_v37 = vsel %vm447_vm3, %v3796_v33, %v3798_v9  ;;  %v3801_v59 = vrot.slane %v14810_v53, 1 }
 0x416   :  { %v5478_v7 = vsel %vm90_vm0, %v9426_v4, %v8745_v50  ;;  %v5477_v16 = vsel %vm90_vm0, %v9427_v34, %v8744_v6  ;;  %6278 = vmatmul.mubr.bf16.gmra.mxu1 %v5923_v54  ;;  %v8758_v29 = vpop.permute.xlu1 %8757  ;;  %v15074_v22 = vpack.i.bf16 %v3799_v37, %v3797_v47 }
 0x417   :  { %v15061_v58 = vpop.f32.mrf.mxu1  ;;  %v8753_v12 = vpop.permute.xlu0 %8752  ;;  %7013 = vmatprep.mubr.msk.bf16.mxu1 %vm90_vm0, %v5926_v63  ;;  %v5541_v23 = vsel %vm2293_vm5, %v5477_v16, %v8749_v21  ;;  %v5542_v40 = vsel %vm2293_vm5, %v5478_v7, %v8750_v39  ;;  %v8760_v1 = vunpack.i.h.bf16 %v8758_v29  ;;  %v8759_v25 = vunpack.i.l.bf16 %v8758_v29 }
 0x418   :  { %v8755_v11 = vunpack.i.h.bf16 %v8753_v12  ;;  %v8754_v8 = vunpack.i.l.bf16 %v8753_v12  ;;  %9047 = vrot.lane.b32.xlu1 %v9046_v57, %s9468_s1  ;;  %v3803_v12 = vrot.slane %v14812_v0, 1 }
 0x419   :  { %v6172_v18 = vpop.f32.mrf.mxu1  ;;  %9042 = vrot.lane.b32.xlu0 %v9041_v35, %s9467_s24 }
 0x41a   :  { %v5606_v48 = vsel %vm2358_vm6, %v5542_v40, %v8755_v11  ;;  %v5605_v50 = vsel %vm2358_vm6, %v5541_v23, %v8754_v8  ;;  %v8768_v6 = vpop.permute.xlu1 %8767  ;;  %v3800_v8 = vrot.slane %v14802_v20, 1 }
 0x41b   :  { %v8763_v54 = vpop.permute.xlu0 %8762  ;;  %v5670_v33 = vsel %vm2423_vm7, %v5606_v48, %v8760_v1  ;;  %v5669_v9 = vsel %vm2423_vm7, %v5605_v50, %v8759_v25  ;;  %v8770_v39 = vunpack.i.h.bf16 %v8768_v6  ;;  %v8769_v21 = vunpack.i.l.bf16 %v8768_v6 }
 0x41c   :  { %v8765_v63 = vunpack.i.h.bf16 %v8763_v54  ;;  %v8764_v4 = vunpack.i.l.bf16 %v8763_v54  ;;  %9057 = vrot.lane.b32.xlu1 %v15023_v14, %s9462_s19  ;;  %v3802_v6 = vsel %vm447_vm3, %v3800_v8, %v3801_v59 }
 0x41d   :  { %9052 = vrot.lane.b32.xlu0 %v15074_v22, %s9469_s7 }
 0x41e   :  { %v5733_v7 = vsel %vm2488_vm8, %v5669_v9, %v8764_v4  ;;  %v5734_v34 = vsel %vm2488_vm8, %v5670_v33, %v8765_v63  ;;  %v8778_v16 = vpop.permute.xlu1 %8777  ;;  %v17672_v33 = vld [vmem:[#allocation121_spill] sm:$0xff] }
 0x41f   :  { %v8773_v29 = vpop.permute.xlu0 %8772  ;;  %v8780_v47 = vunpack.i.h.bf16 %v8778_v16  ;;  %v8779_v37 = vunpack.i.l.bf16 %v8778_v16  ;;  %v5797_v23 = vsel %vm2553_vm9, %v5733_v7, %v8769_v21  ;;  %v5798_v40 = vsel %vm2553_vm9, %v5734_v34, %v8770_v39  ;;  %v9428_v39 = vld [vmem:[#allocation2 + $0x1d0] sm:$0xff]  ;;  %v9429_v7 = vld [vmem:[#allocation2 + $0x1c8] sm:$0xff] }
 0x420   :  { %v8775_v14 = vunpack.i.h.bf16 %v8773_v29  ;;  %v8774_v11 = vunpack.i.l.bf16 %v8773_v29  ;;  %9067 = vrot.lane.b32.xlu1 %v9046_v57, %s9464_s9  ;;  %v9076_v57 = vpack.i.bf16 %v14846_v24, %v14843_v31  ;;  %v5928_v9 = vpack.c.bf16 %v17672_v33, %v14558_v55 }
 0x421   :  { %9062 = vrot.lane.b32.xlu0 %v9041_v35, %s9463_s0  ;;  %v15091_v18 = vpop.f32.mrf.mxu1  ;;  %v3804_v35 = vsel %vm447_vm3, %v3801_v59, %v3803_v12  ;;  %v5480_v21 = vsel %vm90_vm0, %v9428_v39, %v8780_v47  ;;  %v5479_v34 = vsel %vm90_vm0, %v9429_v7, %v8779_v37  ;;  %v9081_v47 = vpack.i.bf16 %v14810_v53, %v14802_v20 }
 0x422   :  { %v8788_v1 = vpop.permute.xlu1 %8787  ;;  %v5861_v25 = vsel %vm2618_vm10, %v5797_v23, %v8774_v11  ;;  %v5862_v0 = vsel %vm2618_vm10, %v5798_v40, %v8775_v14  ;;  %v15111_v11 = vpack.i.bf16 %v3804_v35, %v3802_v6 }
 0x423   :  { %v8783_v48 = vpop.permute.xlu0 %8782  ;;  %v5925_v50 = vpack.c.bf16 %v5862_v0, %v5861_v25  ;;  %v6177_v54 = vpop.f32.mrf.mxu1  ;;  %v8790_v16 = vunpack.i.h.bf16 %v8788_v1  ;;  %v8789_v29 = vunpack.i.l.bf16 %v8788_v1 }
 0x424   :  { %v8785_v63 = vunpack.i.h.bf16 %v8783_v48  ;;  %v8784_v4 = vunpack.i.l.bf16 %v8783_v48  ;;  %9077 = vrot.lane.b32.xlu1 %v9076_v57, %s9467_s24 }
 0x425   :  { %6286 = vmatmul.mubr.bf16.gmra.mxu1 %v5925_v50  ;;  %9072 = vrot.lane.b32.xlu0 %v15074_v22, %s9465_s10  ;;  %v15108_v14 = vpop.f32.mrf.mxu1 }
 0x426   :  { %v5544_v59 = vsel %vm2293_vm5, %v5480_v21, %v8785_v63  ;;  %v5543_v12 = vsel %vm2293_vm5, %v5479_v34, %v8784_v4  ;;  %7014 = vmatprep.mubr.msk.bf16.mxu1 %vm90_vm0, %v5928_v9  ;;  %v8798_v55 = vpop.permute.xlu1 %8797 }
 0x427   :  { %v8793_v8 = vpop.permute.xlu0 %8792  ;;  %v6180_v37 = vpop.f32.mrf.mxu1  ;;  %v5607_v1 = vsel %vm2358_vm6, %v5543_v12, %v8789_v29  ;;  %v5608_v25 = vsel %vm2358_vm6, %v5544_v59, %v8790_v16  ;;  %v8800_v0 = vunpack.i.h.bf16 %v8798_v55  ;;  %v8799_v48 = vunpack.i.l.bf16 %v8798_v55 }
 0x428   :  { %v8795_v23 = vunpack.i.h.bf16 %v8793_v8  ;;  %v8794_v40 = vunpack.i.l.bf16 %v8793_v8  ;;  %9087 = vrot.lane.b32.xlu1 %v15111_v11, %s9469_s7 }
 0x429   :  { %9082 = vrot.lane.b32.xlu0 %v9081_v47, %s9468_s1 }
 0x42a   :  { %v5671_v50 = vsel %vm2423_vm7, %v5607_v1, %v8794_v40  ;;  %v5672_v6 = vsel %vm2423_vm7, %v5608_v25, %v8795_v23  ;;  %v8808_v35 = vpop.permute.xlu1 %8807 }
 0x42b   :  { %v8803_v20 = vpop.permute.xlu0 %8802  ;;  %v8810_v53 = vunpack.i.h.bf16 %v8808_v35  ;;  %v8809_v54 = vunpack.i.l.bf16 %v8808_v35  ;;  %v5735_v33 = vsel %vm2488_vm8, %v5671_v50, %v8799_v48  ;;  %v5736_v9 = vsel %vm2488_vm8, %v5672_v6, %v8800_v0  ;;  %v17675_v0 = vld [vmem:[#allocation238_spill] sm:$0xff]  ;;  %v9430_v6 = vld [vmem:[#allocation2 + $0x1e8] sm:$0xff] }
 0x42c   :  { %v8805_v63 = vunpack.i.h.bf16 %v8803_v20  ;;  %v8804_v4 = vunpack.i.l.bf16 %v8803_v20  ;;  %9097 = vrot.lane.b32.xlu1 %v9076_v57, %s9463_s0  ;;  %v17673_v57 = vld [vmem:[#allocation149_spill] sm:$0xff]  ;;  %v17676_v48 = vld [vmem:[#allocation126_spill] sm:$0xff]  ;;  %v9431_v20 = vld [vmem:[#allocation2 + $0x1e0] sm:$0xff] }
 0x42d   :  { %9092 = vrot.lane.b32.xlu0 %v15074_v22, %s9462_s19  ;;  %v3806_v12 = vrot.slane %v17673_v57, 1  ;;  %v17674_v22 = vld [vmem:[#allocation125_spill] sm:$0xff]  ;;  %v5930_v50 = vpack.c.bf16 %v17676_v48, %v17675_v0 }
 0x42e   :  { %v8818_v39 = vpop.permute.xlu1 %8817  ;;  %v5799_v21 = vsel %vm2553_vm9, %v5735_v33, %v8804_v4  ;;  %v5800_v7 = vsel %vm2553_vm9, %v5736_v9, %v8805_v63  ;;  %v3808_v23 = vrot.slane %v17674_v22, 1  ;;  %v17677_v63 = vld [vmem:[#allocation231_spill] sm:$0xff] }
 0x42f   :  { %v15129_v34 = vpop.f32.mrf.mxu1  ;;  %v8813_v16 = vpop.permute.xlu0 %8812  ;;  %v5863_v29 = vsel %vm2618_vm10, %v5799_v21, %v8809_v54  ;;  %v5864_v59 = vsel %vm2618_vm10, %v5800_v7, %v8810_v53  ;;  %v8820_v1 = vunpack.i.h.bf16 %v8818_v39  ;;  %v8819_v25 = vunpack.i.l.bf16 %v8818_v39 }
 0x430   :  { %v8815_v55 = vunpack.i.h.bf16 %v8813_v16  ;;  %v8814_v8 = vunpack.i.l.bf16 %v8813_v16  ;;  %v5927_v37 = vpack.c.bf16 %v5864_v59, %v5863_v29  ;;  %9107 = vrot.lane.b32.xlu1 %v15111_v11, %s9465_s10  ;;  %v9116_v4 = vpack.i.bf16 %v17673_v57, %v17677_v63 }
 0x431   :  { %v6185_v40 = vpop.f32.mrf.mxu1  ;;  %9102 = vrot.lane.b32.xlu0 %v9081_v47, %s9464_s9  ;;  %v3805_v33 = vrot.slane %v17677_v63, 1  ;;  %v9111_v47 = vpack.i.bf16 %v14852_v3, %v14849_v62  ;;  %v3809_v29 = vsel %vm447_vm3, %v3806_v12, %v3808_v23 }
 0x432   :  { %v5482_v35 = vsel %vm90_vm0, %v9430_v6, %v8815_v55  ;;  %v5481_v53 = vsel %vm90_vm0, %v9431_v20, %v8814_v8  ;;  %6294 = vmatmul.mubr.bf16.gmra.mxu1 %v5927_v37  ;;  %v8828_v54 = vpop.permute.xlu1 %8827 }
 0x433   :  { %v15145_v9 = vpop.f32.mrf.mxu1  ;;  %v8823_v39 = vpop.permute.xlu0 %8822  ;;  %7015 = vmatprep.mubr.msk.bf16.mxu1 %vm90_vm0, %v5930_v50  ;;  %v3807_v16 = vsel %vm447_vm3, %v3805_v33, %v3806_v12  ;;  %v5546_v59 = vsel %vm2293_vm5, %v5482_v35, %v8820_v1  ;;  %v5545_v57 = vsel %vm2293_vm5, %v5481_v53, %v8819_v25  ;;  %v8830_v8 = vunpack.i.h.bf16 %v8828_v54  ;;  %v17678_v33 = vld [vmem:[#allocation141_spill] sm:$0xff] }
 0x434   :  { %v8825_v21 = vunpack.i.h.bf16 %v8823_v39  ;;  %v8824_v7 = vunpack.i.l.bf16 %v8823_v39  ;;  %9117 = vrot.lane.b32.xlu1 %v9116_v4, %s9468_s1  ;;  %v8829_v37 = vunpack.i.l.bf16 %v8828_v54  ;;  %v15158_v50 = vpack.i.bf16 %v3809_v29, %v3807_v16  ;;  %v17680_v29 = vld [vmem:[#allocation133_spill] sm:$0xff] }
 0x435   :  { %v6188_v55 = vpop.f32.mrf.mxu1  ;;  %9112 = vrot.lane.b32.xlu0 %v9111_v47, %s9467_s24  ;;  %v3811_v39 = vrot.slane %v17678_v33, 1 }
 0x436   :  { %v5609_v22 = vsel %vm2358_vm6, %v5545_v57, %v8824_v7  ;;  %v5610_v40 = vsel %vm2358_vm6, %v5546_v59, %v8825_v21  ;;  %v8838_v0 = vpop.permute.xlu1 %8837  ;;  %v17679_v21 = vld [vmem:[#allocation154_spill] sm:$0xff]  ;;  %v3810_v59 = vrot.slane %v17680_v29, 1 }
 0x437   :  { %v8833_v48 = vpop.permute.xlu0 %8832  ;;  %v5673_v12 = vsel %vm2423_vm7, %v5609_v22, %v8829_v37  ;;  %v5674_v23 = vsel %vm2423_vm7, %v5610_v40, %v8830_v8  ;;  %v8840_v1 = vunpack.i.h.bf16 %v8838_v0  ;;  %v8839_v25 = vunpack.i.l.bf16 %v8838_v0 }
 0x438   :  { %v8835_v6 = vunpack.i.h.bf16 %v8833_v48  ;;  %v8834_v20 = vunpack.i.l.bf16 %v8833_v48  ;;  %9127 = vrot.lane.b32.xlu1 %v15111_v11, %s9462_s19  ;;  %v3813_v7 = vrot.slane %v17679_v21, 1 }
 0x439   :  { %9122 = vrot.lane.b32.xlu0 %v15158_v50, %s9469_s7 }
 0x43a   :  { %v5737_v35 = vsel %vm2488_vm8, %v5673_v12, %v8834_v20  ;;  %v5738_v53 = vsel %vm2488_vm8, %v5674_v23, %v8835_v6  ;;  %v8848_v54 = vpop.permute.xlu1 %8847  ;;  %v3812_v12 = vsel %vm447_vm3, %v3810_v59, %v3811_v39  ;;  %v3814_v23 = vsel %vm447_vm3, %v3811_v39, %v3813_v7 }
 0x43b   :  { %v8843_v63 = vpop.permute.xlu0 %8842  ;;  %v5802_v57 = vsel %vm2553_vm9, %v5738_v53, %v8840_v1  ;;  %v5801_v55 = vsel %vm2553_vm9, %v5737_v35, %v8839_v25  ;;  %v8850_v8 = vunpack.i.h.bf16 %v8848_v54  ;;  %v8849_v37 = vunpack.i.l.bf16 %v8848_v54  ;;  %v17683_v53 = vld [vmem:[#allocation230_spill] sm:$0xff] }
 0x43c   :  { %v8845_v11 = vunpack.i.h.bf16 %v8843_v63  ;;  %v8844_v16 = vunpack.i.l.bf16 %v8843_v63  ;;  %9137 = vrot.lane.b32.xlu1 %v9116_v4, %s9464_s9  ;;  %v9146_v4 = vpack.i.bf16 %v14867_v19, %v14855_v44  ;;  %v9432_v63 = vld [vmem:[#allocation2 + $0x200] sm:$0xff] }
 0x43d   :  { %9132 = vrot.lane.b32.xlu0 %v9111_v47, %s9463_s0  ;;  %v15175_v22 = vpop.f32.mrf.mxu1  ;;  %v17682_v47 = vld [vmem:[#allocation137_spill] sm:$0xff]  ;;  %v5484_v21 = vsel %vm90_vm0, %v9432_v63, %v8850_v8 }
 0x43e   :  { %17681 = vst [vmem:[#allocation184_spill] sm:$0xff] %v15175_v22  ;;  %v8858_v40 = vpop.permute.xlu1 %8857  ;;  %v5865_v0 = vsel %vm2618_vm10, %v5801_v55, %v8844_v16  ;;  %v5866_v48 = vsel %vm2618_vm10, %v5802_v57, %v8845_v11  ;;  %v5932_v54 = vpack.c.bf16 %v17683_v53, %v17682_v47  ;;  %v9433_v11 = vld [vmem:[#allocation2 + $0x1f8] sm:$0xff] }
 0x43f   :  { %v8853_v6 = vpop.permute.xlu0 %8852  ;;  %v5929_v20 = vpack.c.bf16 %v5866_v48, %v5865_v0  ;;  %v6193_v1 = vpop.f32.mrf.mxu1  ;;  %v5483_v16 = vsel %vm90_vm0, %v9433_v11, %v8849_v37  ;;  %v8860_v57 = vunpack.i.h.bf16 %v8858_v40  ;;  %v8859_v55 = vunpack.i.l.bf16 %v8858_v40 }
 0x440   :  { %v8855_v25 = vunpack.i.h.bf16 %v8853_v6  ;;  %v8854_v35 = vunpack.i.l.bf16 %v8853_v6  ;;  %9147 = vrot.lane.b32.xlu1 %v9146_v4, %s9467_s24  ;;  %v15195_v48 = vpack.i.bf16 %v3814_v23, %v3812_v12  ;;  %v9151_v37 = vpack.i.bf16 %v17678_v33, %v17680_v29 }
 0x441   :  { %6302 = vmatmul.mubr.bf16.gmra.mxu1 %v5929_v20  ;;  %9142 = vrot.lane.b32.xlu0 %v15158_v50, %s9465_s10  ;;  %v15192_v59 = vpop.f32.mrf.mxu1 }
 0x442   :  { %v5548_v39 = vsel %vm2293_vm5, %v5484_v21, %v8855_v25  ;;  %v5547_v7 = vsel %vm2293_vm5, %v5483_v16, %v8854_v35  ;;  %17684 = vst [vmem:[#allocation182_spill] sm:$0xff] %v15192_v59  ;;  %7016 = vmatprep.mubr.msk.bf16.mxu1 %vm90_vm0, %v5932_v54  ;;  %v8868_v0 = vpop.permute.xlu1 %8867 }
 0x443   :  { %v8863_v8 = vpop.permute.xlu0 %8862  ;;  %v6196_v40 = vpop.f32.mrf.mxu1  ;;  %v5611_v1 = vsel %vm2358_vm6, %v5547_v7, %v8859_v55  ;;  %v5612_v25 = vsel %vm2358_vm6, %v5548_v39, %v8860_v57  ;;  %v8870_v35 = vunpack.i.h.bf16 %v8868_v0  ;;  %v8869_v47 = vunpack.i.l.bf16 %v8868_v0 }
 0x444   :  { %v8865_v6 = vunpack.i.h.bf16 %v8863_v8  ;;  %v8864_v20 = vunpack.i.l.bf16 %v8863_v8  ;;  %9157 = vrot.lane.b32.xlu1 %v15195_v48, %s9469_s7 }
 0x445   :  { %9152 = vrot.lane.b32.xlu0 %v9151_v37, %s9468_s1 }
 0x446   :  { %v5675_v12 = vsel %vm2423_vm7, %v5611_v1, %v8864_v20  ;;  %v5676_v23 = vsel %vm2423_vm7, %v5612_v25, %v8865_v6  ;;  %v8878_v53 = vpop.permute.xlu1 %8877 }
 0x447   :  { %v8873_v33 = vpop.permute.xlu0 %8872  ;;  %v8880_v29 = vunpack.i.h.bf16 %v8878_v53  ;;  %v8879_v54 = vunpack.i.l.bf16 %v8878_v53  ;;  %v5739_v11 = vsel %vm2488_vm8, %v5675_v12, %v8869_v47  ;;  %v5740_v16 = vsel %vm2488_vm8, %v5676_v23, %v8870_v35  ;;  %v17687_v53 = vld [vmem:[#allocation136_spill] sm:$0xff] }
 0x448   :  { %v8875_v63 = vunpack.i.h.bf16 %v8873_v33  ;;  %v8874_v21 = vunpack.i.l.bf16 %v8873_v33  ;;  %9167 = vrot.lane.b32.xlu1 %v9146_v4, %s9463_s0  ;;  %v17685_v4 = vld [vmem:[#allocation232_spill] sm:$0xff] }
 0x449   :  { %9162 = vrot.lane.b32.xlu0 %v15158_v50, %s9462_s19  ;;  %v3816_v6 = vrot.slane %v17685_v4, 1  ;;  %v17686_v50 = vld [vmem:[#allocation233_spill] sm:$0xff]  ;;  %v17688_v33 = vld [vmem:[#allocation148_spill] sm:$0xff] }
 0x44a   :  { %v5804_v57 = vsel %vm2553_vm9, %v5740_v16, %v8875_v63  ;;  %v5803_v55 = vsel %vm2553_vm9, %v5739_v11, %v8874_v21  ;;  %v8888_v39 = vpop.permute.xlu1 %8887  ;;  %v3818_v35 = vrot.slane %v17686_v50, 1  ;;  %v9434_v63 = vld [vmem:[#allocation2 + $0x218] sm:$0xff]  ;;  %v9435_v21 = vld [vmem:[#allocation2 + $0x210] sm:$0xff] }
 0x44b   :  { %v15213_v7 = vpop.f32.mrf.mxu1  ;;  %v8883_v0 = vpop.permute.xlu0 %8882  ;;  %v5867_v8 = vsel %vm2618_vm10, %v5803_v55, %v8879_v54  ;;  %v5868_v40 = vsel %vm2618_vm10, %v5804_v57, %v8880_v29  ;;  %v8890_v12 = vunpack.i.h.bf16 %v8888_v39  ;;  %v8889_v23 = vunpack.i.l.bf16 %v8888_v39  ;;  %v17689_v57 = vld [vmem:[#allocation155_spill] sm:$0xff] }
 0x44c   :  { %v8885_v20 = vunpack.i.h.bf16 %v8883_v0  ;;  %v8884_v1 = vunpack.i.l.bf16 %v8883_v0  ;;  %v5931_v25 = vpack.c.bf16 %v5868_v40, %v5867_v8  ;;  %9177 = vrot.lane.b32.xlu1 %v15195_v48, %s9465_s10  ;;  %v5934_v54 = vpack.c.bf16 %v17688_v33, %v17687_v53 }
 0x44d   :  { %v6201_v47 = vpop.f32.mrf.mxu1  ;;  %9172 = vrot.lane.b32.xlu0 %v9151_v37, %s9464_s9  ;;  %v9186_v55 = vpack.i.bf16 %v17685_v4, %v17689_v57  ;;  %v3815_v0 = vrot.slane %v17689_v57, 1  ;;  %v9181_v37 = vpack.i.bf16 %v14913_v43, %v14909_v49  ;;  %v6558_v4 = vld [vmem:[%s16382_s4 + $0x8] sm:$0xff] }
 0x44e   :  { %v5486_v29 = vsel %vm90_vm0, %v9434_v63, %v8885_v20  ;;  %v5485_v11 = vsel %vm90_vm0, %v9435_v21, %v8884_v1  ;;  %6310 = vmatmul.mubr.bf16.gmra.mxu1 %v5931_v25  ;;  %v8898_v16 = vpop.permute.xlu1 %8897  ;;  %v3819_v25 = vsel %vm447_vm3, %v3816_v6, %v3818_v35  ;;  %7039 = vmatpush3.msra.mxu0 %v6558_v4  ;;  %v17691_v4 = vld [vmem:[#allocation132_spill] sm:$0xff] }
 0x44f   :  { %v15229_v8 = vpop.f32.mrf.mxu1  ;;  %v8893_v39 = vpop.permute.xlu0 %8892  ;;  %7017 = vmatprep.mubr.msk.bf16.mxu1 %vm90_vm0, %v5934_v54  ;;  %v3817_v1 = vsel %vm447_vm3, %v3815_v0, %v3816_v6  ;;  %v5550_v50 = vsel %vm2293_vm5, %v5486_v29, %v8890_v12  ;;  %v5549_v47 = vsel %vm2293_vm5, %v5485_v11, %v8889_v23  ;;  %v8900_v33 = vunpack.i.h.bf16 %v8898_v16 }
 0x450   :  { %v8895_v40 = vunpack.i.h.bf16 %v8893_v39  ;;  %v8894_v20 = vunpack.i.l.bf16 %v8893_v39  ;;  %9187 = vrot.lane.b32.xlu1 %v9186_v55, %s9468_s1  ;;  %v8899_v54 = vunpack.i.l.bf16 %v8898_v16  ;;  %v17690_v6 = vmov 0.0  }
 0x451   :  { %v6204_v53 = vpop.f32.mrf.mxu1  ;;  %9182 = vrot.lane.b32.xlu0 %v9181_v37, %s9467_s24  ;;  %7040 = vmatprep.subr.mxu0 %v17690_v6  ;;  %v15246_v0 = vpack.i.bf16 %v3819_v25, %v3817_v1 }
 0x452   :  { %v5613_v63 = vsel %vm2358_vm6, %v5549_v47, %v8894_v20  ;;  %v5614_v21 = vsel %vm2358_vm6, %v5550_v50, %v8895_v40  ;;  %v8908_v57 = vpop.permute.xlu1 %8907  ;;  %v3821_v50 = vrot.slane %v17691_v4, 1  ;;  %v17692_v47 = vld [vmem:[#allocation152_spill] sm:$0xff] }
 0x453   :  { %v8903_v35 = vpop.permute.xlu0 %8902  ;;  %v5677_v23 = vsel %vm2423_vm7, %v5613_v63, %v8899_v54  ;;  %v5678_v29 = vsel %vm2423_vm7, %v5614_v21, %v8900_v33  ;;  %v8910_v11 = vunpack.i.h.bf16 %v8908_v57  ;;  %v8909_v16 = vunpack.i.l.bf16 %v8908_v57  ;;  %v17693_v33 = vld [vmem:[#allocation153_spill] sm:$0xff] }
 0x454   :  { %v8905_v39 = vunpack.i.h.bf16 %v8903_v35  ;;  %v8904_v12 = vunpack.i.l.bf16 %v8903_v35  ;;  %9197 = vrot.lane.b32.xlu1 %v15195_v48, %s9462_s19  ;;  %v3823_v53 = vrot.slane %v17692_v47, 1  ;;  %v3820_v54 = vrot.slane %v17693_v33, 1 }
 0x455   :  { %9192 = vrot.lane.b32.xlu0 %v15246_v0, %s9469_s7 }
 0x456   :  { %v5741_v40 = vsel %vm2488_vm8, %v5677_v23, %v8904_v12  ;;  %v5742_v20 = vsel %vm2488_vm8, %v5678_v29, %v8905_v39  ;;  %v8918_v1 = vpop.permute.xlu1 %8917 }
 0x457   :  { %v8913_v25 = vpop.permute.xlu0 %8912  ;;  %v5806_v63 = vsel %vm2553_vm9, %v5742_v20, %v8910_v11  ;;  %v5805_v21 = vsel %vm2553_vm9, %v5741_v40, %v8909_v16  ;;  %v8920_v57 = vunpack.i.h.bf16 %v8918_v1  ;;  %v8919_v12 = vunpack.i.l.bf16 %v8918_v1 }
 0x458   :  { %v8915_v48 = vunpack.i.h.bf16 %v8913_v25  ;;  %v8914_v35 = vunpack.i.l.bf16 %v8913_v25  ;;  %9207 = vrot.lane.b32.xlu1 %v9186_v55, %s9464_s9  ;;  %v9216_v55 = vpack.i.bf16 %v14921_v28, %v14916_v17  ;;  %v3822_v11 = vsel %vm447_vm3, %v3820_v54, %v3821_v50 }
 0x459   :  { %9202 = vrot.lane.b32.xlu0 %v9181_v37, %s9463_s0  ;;  %v15263_v39 = vpop.f32.mrf.mxu1  ;;  %v3824_v16 = vsel %vm447_vm3, %v3821_v50, %v3823_v53  ;;  %v5936_v37 = vpack.c.bf16 %v14785_v42, %v14761_v45 }
 0x45a   :  { %v8928_v23 = vpop.permute.xlu1 %8927  ;;  %v5869_v29 = vsel %vm2618_vm10, %v5805_v21, %v8914_v35  ;;  %v5870_v4 = vsel %vm2618_vm10, %v5806_v63, %v8915_v48  ;;  %v9436_v35 = vld [vmem:[#allocation2 + $0x230] sm:$0xff]  ;;  %v9437_v63 = vld [vmem:[#allocation2 + $0x228] sm:$0xff]  ;;  %v15283_v42 = vpack.i.bf16 %v3824_v16, %v3822_v11 }
 0x45b   :  { %v8923_v25 = vpop.permute.xlu0 %8922  ;;  %v5933_v47 = vpack.c.bf16 %v5870_v4, %v5869_v29  ;;  %v6209_v40 = vpop.f32.mrf.mxu1  ;;  %v5488_v48 = vsel %vm90_vm0, %v9436_v35, %v8920_v57  ;;  %v5487_v21 = vsel %vm90_vm0, %v9437_v63, %v8919_v12  ;;  %v8930_v56 = vunpack.i.h.bf16 %v8928_v23  ;;  %v15285_v4 = vld [vmem:[#allocation2 + $0x320] sm:$0xff] }
 0x45c   :  { %v8925_v20 = vunpack.i.h.bf16 %v8923_v25  ;;  %v8924_v1 = vunpack.i.l.bf16 %v8923_v25  ;;  %9217 = vrot.lane.b32.xlu1 %v9216_v55, %s9467_s24  ;;  %v8929_v29 = vunpack.i.l.bf16 %v8928_v23  ;;  %v9221_v12 = vpack.i.bf16 %v15285_v4, %v17693_v33 }
 0x45d   :  { %6318 = vmatmul.mubr.bf16.gmra.mxu1 %v5933_v47  ;;  %9212 = vrot.lane.b32.xlu0 %v15246_v0, %s9465_s10  ;;  %v15280_v54 = vpop.f32.mrf.mxu1 }
 0x45e   :  { %v5552_v50 = vsel %vm2293_vm5, %v5488_v48, %v8925_v20  ;;  %v5551_v53 = vsel %vm2293_vm5, %v5487_v21, %v8924_v1  ;;  %7018 = vmatprep.mubr.msk.bf16.mxu1 %vm90_vm0, %v5936_v37  ;;  %v8938_v45 = vpop.permute.xlu1 %8937 }
 0x45f   :  { %v8933_v57 = vpop.permute.xlu0 %8932  ;;  %v6212_v23 = vpop.f32.mrf.mxu1  ;;  %v5615_v40 = vsel %vm2358_vm6, %v5551_v53, %v8929_v29  ;;  %v5616_v20 = vsel %vm2358_vm6, %v5552_v50, %v8930_v56  ;;  %v8940_v1 = vunpack.i.h.bf16 %v8938_v45  ;;  %v8939_v37 = vunpack.i.l.bf16 %v8938_v45 }
 0x460   :  { %v8935_v25 = vunpack.i.h.bf16 %v8933_v57  ;;  %v8934_v47 = vunpack.i.l.bf16 %v8933_v57  ;;  %9227 = vrot.lane.b32.xlu1 %v15283_v42, %s9469_s7 }
 0x461   :  { %9222 = vrot.lane.b32.xlu0 %v9221_v12, %s9468_s1 }
 0x462   :  { %v5679_v11 = vsel %vm2423_vm7, %v5615_v40, %v8934_v47  ;;  %v5680_v16 = vsel %vm2423_vm7, %v5616_v20, %v8935_v25  ;;  %v8948_v35 = vpop.permute.xlu1 %8947  ;;  %v15305_v25 = vld [vmem:[#allocation2 + $0x318] sm:$0xff] }
 0x463   :  { %v8943_v33 = vpop.permute.xlu0 %8942  ;;  %v8950_v48 = vunpack.i.h.bf16 %v8948_v35  ;;  %v8949_v63 = vunpack.i.l.bf16 %v8948_v35  ;;  %v5743_v29 = vsel %vm2488_vm8, %v5679_v11, %v8939_v37  ;;  %v5744_v56 = vsel %vm2488_vm8, %v5680_v16, %v8940_v1  ;;  %v9440_v20 = vld [vmem:[#allocation2 + $0x338] sm:$0xff]  ;;  %v9441_v16 = vld [vmem:[#allocation2 + $0x340] sm:$0x3] }
 0x464   :  { %v8945_v21 = vunpack.i.h.bf16 %v8943_v33  ;;  %v8944_v57 = vunpack.i.l.bf16 %v8943_v33  ;;  %9237 = vrot.lane.b32.xlu1 %v9216_v55, %s9463_s0  ;;  %v9241_v55 = vpack.i.bf16 %v15285_v4, %v15305_v25  ;;  %v3997_v1 = vrot.slane %v9440_v20, 1 }
 0x465   :  { %9232 = vrot.lane.b32.xlu0 %v15246_v0, %s9462_s19  ;;  %v3999_v35 = vrot.slane %v9441_v16, 1  ;;  %v17695_v16 = vpack.c.bf16 %v14793_v13, %v14790_v60 }
 0x466   :  { %v5808_v50 = vsel %vm2553_vm9, %v5744_v56, %v8945_v21  ;;  %v5807_v53 = vsel %vm2553_vm9, %v5743_v29, %v8944_v57  ;;  %v8958_v45 = vpop.permute.xlu1 %8957  ;;  %v9442_v29 = vld [vmem:[#allocation2 + $0x248] sm:$0xff]  ;;  %v9443_v56 = vld [vmem:[#allocation2 + $0x240] sm:$0xff] }
 0x467   :  { %v15303_v12 = vpop.f32.mrf.mxu1  ;;  %v8953_v23 = vpop.permute.xlu0 %8952  ;;  %v5871_v47 = vsel %vm2618_vm10, %v5807_v53, %v8949_v63  ;;  %v5872_v40 = vsel %vm2618_vm10, %v5808_v50, %v8950_v48  ;;  %v8960_v21 = vunpack.i.h.bf16 %v8958_v45  ;;  %v8959_v57 = vunpack.i.l.bf16 %v8958_v45  ;;  %v9444_v53 = vld [vmem:[#allocation2 + $0x330] sm:$0xff] }
 0x468   :  { %v8955_v0 = vunpack.i.h.bf16 %v8953_v23  ;;  %v8954_v37 = vunpack.i.l.bf16 %v8953_v23  ;;  %v5935_v11 = vpack.c.bf16 %v5872_v40, %v5871_v47  ;;  %9247 = vrot.lane.b32.xlu1 %v15283_v42, %s9465_s10  ;;  %v9256_v23 = vpack.i.bf16 %v9440_v20, %v9444_v53 }
 0x469   :  { %v6217_v33 = vpop.f32.mrf.mxu1  ;;  %9242 = vrot.lane.b32.xlu0 %v9241_v55, %s9464_s9  ;;  %v3996_v47 = vrot.slane %v9444_v53, 1  ;;  %v9251_v45 = vpack.i.bf16 %v14931_v51, %v14924_v61  ;;  %v4000_v20 = vsel %vm447_vm3, %v3997_v1, %v3999_v35 }
 0x46a   :  { %v5490_v63 = vsel %vm90_vm0, %v9442_v29, %v8955_v0  ;;  %v5489_v48 = vsel %vm90_vm0, %v9443_v56, %v8954_v37  ;;  %6326 = vmatmul.mubr.bf16.gmra.mxu1 %v5935_v11  ;;  %v8968_v50 = vpop.permute.xlu1 %8967  ;;  %v15327_v11 = vld [vmem:[#allocation2 + $0x348] sm:$0xff]  ;;  %v15329_v33 = vld [vmem:[#allocation2 + $0x350] sm:$0xff]  ;;  %v3568_v29 = vld [vmem:[#allocation2 + $0x358] sm:$0x3] }
 0x46b   :  { %v15316_v40 = vpop.f32.mrf.mxu1  ;;  %v8963_v30 = vpop.permute.xlu0 %8962  ;;  %7019 = vmatprep.mubr.msk.bf16.mxu1 %vm90_vm0, %v17695_v16  ;;  %v3998_v37 = vsel %vm447_vm3, %v3996_v47, %v3997_v1  ;;  %v5554_v60 = vsel %vm2293_vm5, %v5490_v63, %v8960_v21  ;;  %v5553_v13 = vsel %vm2293_vm5, %v5489_v48, %v8959_v57  ;;  %v8970_v53 = vunpack.i.h.bf16 %v8968_v50 }
 0x46c   :  { %17694 = vst [vmem:[#allocation191_spill] sm:$0xff] %v15316_v40  ;;  %v8965_v55 = vunpack.i.h.bf16 %v8963_v30  ;;  %v8964_v0 = vunpack.i.l.bf16 %v8963_v30  ;;  %9257 = vrot.lane.b32.xlu1 %v9256_v23, %s9468_s1  ;;  %v8969_v16 = vunpack.i.l.bf16 %v8968_v50  ;;  %v9261_v35 = vpack.i.bf16 %v4000_v20, %v3998_v37 }
 0x46d   :  { %v6220_v56 = vpop.f32.mrf.mxu1  ;;  %9252 = vrot.lane.b32.xlu0 %v9251_v45, %s9467_s24  ;;  %v4023_v52 = vrot.slane %v15329_v33, 1  ;;  %v4022_v5 = vrot.slane %v15327_v11, 1  ;;  %v4025_v32 = vrot.slane %v3568_v29, 1  ;;  %v4033_v57 = vrot.slane %v15329_v33, 2 }
 0x46e   :  { %v5617_v30 = vsel %vm2358_vm6, %v5553_v13, %v8964_v0  ;;  %v5618_v47 = vsel %vm2358_vm6, %v5554_v60, %v8965_v55  ;;  %v8978_v41 = vpop.permute.xlu1 %8977  ;;  %v4032_v48 = vrot.slane %v15327_v11, 2 }
 0x46f   :  { %v8973_v1 = vpop.permute.xlu0 %8972  ;;  %v5681_v50 = vsel %vm2423_vm7, %v5617_v30, %v8969_v16  ;;  %v5682_v55 = vsel %vm2423_vm7, %v5618_v47, %v8970_v53  ;;  %v8980_v0 = vunpack.i.h.bf16 %v8978_v41  ;;  %v8979_v37 = vunpack.i.l.bf16 %v8978_v41 }
 0x470   :  { %v8975_v21 = vunpack.i.h.bf16 %v8973_v1  ;;  %v8974_v63 = vunpack.i.l.bf16 %v8973_v1  ;;  %9267 = vrot.lane.b32.xlu1 %v15283_v42, %s9462_s19  ;;  %v4024_v42 = vsel %vm447_vm3, %v4022_v5, %v4023_v52  ;;  %v4026_v1 = vsel %vm447_vm3, %v4023_v52, %v4025_v32 }
 0x471   :  { %9262 = vrot.lane.b32.xlu0 %v9261_v35, %s9469_s7  ;;  %v15351_v53 = vsel %vm608_vm4, %v4032_v48, %v4033_v57  ;;  %v4035_v41 = vrot.slane %v3568_v29, 2  ;;  %vm6638_vm3 = vcmask 1043456  }
 0x472   :  { %v5745_v20 = vsel %vm2488_vm8, %v5681_v50, %v8974_v63  ;;  %v5746_v60 = vsel %vm2488_vm8, %v5682_v55, %v8975_v21  ;;  %v8988_v13 = vpop.permute.xlu1 %8987 }
 0x473   :  { %v8983_v56 = vpop.permute.xlu0 %8982  ;;  %v5810_v16 = vsel %vm2553_vm9, %v5746_v60, %v8980_v0  ;;  %v5809_v30 = vsel %vm2553_vm9, %v5745_v20, %v8979_v37  ;;  %v8990_v47 = vunpack.i.h.bf16 %v8988_v13  ;;  %v8989_v21 = vunpack.i.l.bf16 %v8988_v13  ;;  %v9446_v13 = vld [vmem:[#allocation2 + $0x258] sm:$0xff] }
 0x474   :  { %v8985_v27 = vunpack.i.h.bf16 %v8983_v56  ;;  %v8984_v40 = vunpack.i.l.bf16 %v8983_v56  ;;  %9277 = vrot.lane.b32.xlu1 %v9256_v23, %s9464_s9  ;;  %v9286_v23 = vpack.i.bf16 %v14955_v26, %v14944_v2  ;;  %v15363_v29 = vsel %vm608_vm4, %v4033_v57, %v4035_v41 }
 0x475   :  { %v15355_v63 = vpop.f32.mrf.mxu1  ;;  %9272 = vrot.lane.b32.xlu0 %v9251_v45, %s9463_s0  ;;  %v9291_v0 = vpack.i.bf16 %v15329_v33, %v15327_v11  ;;  %v9296_v45 = vpack.i.bf16 %v4026_v1, %v4024_v42  ;;  %v5491_v57 = vsel %vm90_vm0, %v9446_v13, %v8989_v21  ;;  %v17696_v42 = vpack.c.bf16 %v14807_v36, %v14796_v38 }
 0x476   :  { %v8998_v5 = vpop.permute.xlu1 %8997  ;;  %v5873_v32 = vsel %vm2618_vm10, %v5809_v30, %v8984_v40  ;;  %v5874_v52 = vsel %vm2618_vm10, %v5810_v16, %v8985_v27  ;;  %v5956_v27 = vpack.c.bf16 %v15363_v29, %v15351_v53  ;;  %v9445_v40 = vld [vmem:[#allocation2 + $0x260] sm:$0xff]  ;;  %vm9470_vm4 = vmmov 0  }
 0x477   :  { %v6225_v48 = vpop.f32.mrf.mxu1  ;;  %v8993_v50 = vpop.permute.xlu0 %8992  ;;  %v5937_v55 = vpack.c.bf16 %v5874_v52, %v5873_v32  ;;  %v5492_v60 = vsel %vm90_vm0, %v9445_v40, %v8990_v47  ;;  %v9000_v56 = vunpack.i.h.bf16 %v8998_v5  ;;  %v8999_v41 = vunpack.i.l.bf16 %v8998_v5  ;;  %7042 = vmatprep.mubr.msk.f32.mxu0 %vm9470_vm4, %v17690_v6 }
 0x478   :  { %v8995_v37 = vunpack.i.h.bf16 %v8993_v50  ;;  %v8994_v20 = vunpack.i.l.bf16 %v8993_v50  ;;  %9287 = vrot.lane.b32.xlu1 %v9286_v23, %s9467_s24 }
 0x479   :  { %v15372_v16 = vpop.f32.mrf.mxu1  ;;  %6334 = vmatmul.mubr.bf16.gmra.mxu1 %v5937_v55  ;;  %9282 = vrot.lane.b32.xlu0 %v9261_v35, %s9465_s10 }
 0x47a   :  { %v5556_v11 = vsel %vm2293_vm5, %v5492_v60, %v8995_v37  ;;  %v5555_v33 = vsel %vm2293_vm5, %v5491_v57, %v8994_v20  ;;  %7020 = vmatprep.mubr.msk.bf16.mxu1 %vm90_vm0, %v17696_v42  ;;  %v9008_v1 = vpop.permute.xlu1 %9007 }
 0x47b   :  { %v6228_v30 = vpop.f32.mrf.mxu1  ;;  %v9003_v47 = vpop.permute.xlu0 %9002  ;;  %v5619_v5 = vsel %vm2358_vm6, %v5555_v33, %v8999_v41  ;;  %v5620_v35 = vsel %vm2358_vm6, %v5556_v11, %v9000_v56  ;;  %v9010_v52 = vunpack.i.h.bf16 %v9008_v1  ;;  %v9009_v23 = vunpack.i.l.bf16 %v9008_v1 }
 0x47c   :  { %v9005_v21 = vunpack.i.h.bf16 %v9003_v47  ;;  %v9004_v32 = vunpack.i.l.bf16 %v9003_v47  ;;  %9297 = vrot.lane.b32.xlu1 %v9296_v45, %s9469_s7 }
 0x47d   :  { %9292 = vrot.lane.b32.xlu0 %v9291_v0, %s9468_s1 }
 0x47e   :  { %v5683_v48 = vsel %vm2423_vm7, %v5619_v5, %v9004_v32  ;;  %v5684_v38 = vsel %vm2423_vm7, %v5620_v35, %v9005_v21  ;;  %v9018_v36 = vpop.permute.xlu1 %9017  ;;  %v9447_v5 = vld [vmem:[#allocation2 + $0x278] sm:$0xff] }
 0x47f   :  { %v9013_v50 = vpop.permute.xlu0 %9012  ;;  %v9019_v55 = vunpack.i.l.bf16 %v9018_v36  ;;  %v9020_v40 = vunpack.i.h.bf16 %v9018_v36  ;;  %v5747_v45 = vsel %vm2488_vm8, %v5683_v48, %v9009_v23  ;;  %v5748_v60 = vsel %vm2488_vm8, %v5684_v38, %v9010_v52  ;;  %v9448_v52 = vld [vmem:[#allocation2 + $0x270] sm:$0xff] }
 0x480   :  { %v9015_v37 = vunpack.i.h.bf16 %v9013_v50  ;;  %v9014_v20 = vunpack.i.l.bf16 %v9013_v50 }
 0x482   :  { %v5812_v13 = vsel %vm2553_vm9, %v5748_v60, %v9015_v37  ;;  %v5811_v57 = vsel %vm2553_vm9, %v5747_v45, %v9014_v20  ;;  %v15391_v56 = vpop.f32.mrf.mxu1  ;;  %v9028_v0 = vpop.permute.xlu1 %9027  ;;  %v17697_v37 = vpack.c.bf16 %v14846_v24, %v14843_v31 }
 0x483   :  { %v9023_v41 = vpop.permute.xlu0 %9022  ;;  %v5875_v11 = vsel %vm2618_vm10, %v5811_v57, %v9019_v55  ;;  %v5876_v30 = vsel %vm2618_vm10, %v5812_v13, %v9020_v40  ;;  %v9030_v47 = vunpack.i.h.bf16 %v9028_v0  ;;  %v9029_v21 = vunpack.i.l.bf16 %v9028_v0 }
 0x484   :  { %v9025_v33 = vunpack.i.h.bf16 %v9023_v41  ;;  %v9024_v42 = vunpack.i.l.bf16 %v9023_v41  ;;  %v6233_v1 = vpop.f32.mrf.mxu1  ;;  %v5939_v32 = vpack.c.bf16 %v5876_v30, %v5875_v11 }
 0x486   :  { %v5494_v35 = vsel %vm90_vm0, %v9447_v5, %v9025_v33  ;;  %v5493_v23 = vsel %vm90_vm0, %v9448_v52, %v9024_v42  ;;  %v15397_v48 = vpop.f32.mrf.mxu1  ;;  %v9038_v38 = vpop.permute.xlu1 %9037  ;;  %6342 = vmatmul.mubr.bf16.gmra.mxu1 %v5939_v32 }
 0x487   :  { %v9033_v36 = vpop.permute.xlu0 %9032  ;;  %7021 = vmatprep.mubr.msk.bf16.mxu1 %vm90_vm0, %v17697_v37  ;;  %v5558_v40 = vsel %vm2293_vm5, %v5494_v35, %v9030_v47  ;;  %v5557_v45 = vsel %vm2293_vm5, %v5493_v23, %v9029_v21  ;;  %v9040_v60 = vunpack.i.h.bf16 %v9038_v38  ;;  %v9039_v13 = vunpack.i.l.bf16 %v9038_v38 }
 0x488   :  { %v9035_v50 = vunpack.i.h.bf16 %v9033_v36  ;;  %v9034_v55 = vunpack.i.l.bf16 %v9033_v36  ;;  %v6236_v20 = vpop.f32.mrf.mxu1 }
 0x48a   :  { %v5621_v57 = vsel %vm2358_vm6, %v5557_v45, %v9034_v55  ;;  %v5622_v0 = vsel %vm2358_vm6, %v5558_v40, %v9035_v50  ;;  %v9048_v41 = vpop.permute.xlu1 %9047 }
 0x48b   :  { %v9043_v11 = vpop.permute.xlu0 %9042  ;;  %v5685_v1 = vsel %vm2423_vm7, %v5621_v57, %v9039_v13  ;;  %v5686_v31 = vsel %vm2423_vm7, %v5622_v0, %v9040_v60  ;;  %v9050_v24 = vunpack.i.h.bf16 %v9048_v41  ;;  %v9049_v30 = vunpack.i.l.bf16 %v9048_v41  ;;  %v9449_v41 = vld [vmem:[#allocation2 + $0x290] sm:$0xff] }
 0x48c   :  { %v9045_v33 = vunpack.i.h.bf16 %v9043_v11  ;;  %v9044_v42 = vunpack.i.l.bf16 %v9043_v11 }
 0x48e   :  { %v5749_v47 = vsel %vm2488_vm8, %v5685_v1, %v9044_v42  ;;  %v5750_v21 = vsel %vm2488_vm8, %v5686_v31, %v9045_v33  ;;  %v9058_v32 = vpop.permute.xlu1 %9057  ;;  %v9450_v33 = vld [vmem:[#allocation2 + $0x288] sm:$0xff] }
 0x48f   :  { %v9053_v5 = vpop.permute.xlu0 %9052  ;;  %v5814_v23 = vsel %vm2553_vm9, %v5750_v21, %v9050_v24  ;;  %v5813_v38 = vsel %vm2553_vm9, %v5749_v47, %v9049_v30  ;;  %v9060_v36 = vunpack.i.h.bf16 %v9058_v32  ;;  %v9059_v50 = vunpack.i.l.bf16 %v9058_v32 }
 0x490   :  { %v9055_v35 = vunpack.i.h.bf16 %v9053_v5  ;;  %v9054_v52 = vunpack.i.l.bf16 %v9053_v5  ;;  %v17698_v21 = vpack.c.bf16 %v14852_v3, %v14849_v62 }
 0x491   :  { %v15413_v55 = vpop.f32.mrf.mxu1  ;;  %v5496_v11 = vsel %vm90_vm0, %v9449_v41, %v9060_v36  ;;  %v5495_v42 = vsel %vm90_vm0, %v9450_v33, %v9059_v50 }
 0x492   :  { %v9068_v37 = vpop.permute.xlu1 %9067  ;;  %v5877_v20 = vsel %vm2618_vm10, %v5813_v38, %v9054_v52  ;;  %v5878_v40 = vsel %vm2618_vm10, %v5814_v23, %v9055_v35 }
 0x493   :  { %v6241_v45 = vpop.f32.mrf.mxu1  ;;  %v9063_v60 = vpop.permute.xlu0 %9062  ;;  %v5941_v13 = vpack.c.bf16 %v5878_v40, %v5877_v20  ;;  %v9070_v1 = vunpack.i.h.bf16 %v9068_v37  ;;  %v9069_v31 = vunpack.i.l.bf16 %v9068_v37 }
 0x494   :  { %v9065_v57 = vunpack.i.h.bf16 %v9063_v60  ;;  %v9064_v0 = vunpack.i.l.bf16 %v9063_v60 }
 0x495   :  { %v15419_v24 = vpop.f32.mrf.mxu1  ;;  %6350 = vmatmul.mubr.bf16.gmra.mxu1 %v5941_v13 }
 0x496   :  { %v5560_v30 = vsel %vm2293_vm5, %v5496_v11, %v9065_v57  ;;  %v5559_v47 = vsel %vm2293_vm5, %v5495_v42, %v9064_v0  ;;  %7022 = vmatprep.mubr.msk.bf16.mxu1 %vm90_vm0, %v17698_v21  ;;  %v9078_v32 = vpop.permute.xlu1 %9077 }
 0x497   :  { %v6244_v5 = vpop.f32.mrf.mxu1  ;;  %v9073_v35 = vpop.permute.xlu0 %9072  ;;  %v5623_v38 = vsel %vm2358_vm6, %v5559_v47, %v9069_v31  ;;  %v5624_v36 = vsel %vm2358_vm6, %v5560_v30, %v9070_v1  ;;  %v9080_v50 = vunpack.i.h.bf16 %v9078_v32  ;;  %v9079_v37 = vunpack.i.l.bf16 %v9078_v32 }
 0x498   :  { %v9075_v52 = vunpack.i.h.bf16 %v9073_v35  ;;  %v9074_v23 = vunpack.i.l.bf16 %v9073_v35 }
 0x49a   :  { %v5687_v20 = vsel %vm2423_vm7, %v5623_v38, %v9074_v23  ;;  %v5688_v40 = vsel %vm2423_vm7, %v5624_v36, %v9075_v52  ;;  %v9088_v45 = vpop.permute.xlu1 %9087  ;;  %v9451_v38 = vld [vmem:[#allocation2 + $0x2a8] sm:$0xff] }
 0x49b   :  { %v9083_v60 = vpop.permute.xlu0 %9082  ;;  %v9089_v62 = vunpack.i.l.bf16 %v9088_v45  ;;  %v9090_v57 = vunpack.i.h.bf16 %v9088_v45  ;;  %v5751_v0 = vsel %vm2488_vm8, %v5687_v20, %v9079_v37  ;;  %v5752_v41 = vsel %vm2488_vm8, %v5688_v40, %v9080_v50  ;;  %v9452_v50 = vld [vmem:[#allocation2 + $0x2a0] sm:$0xff] }
 0x49c   :  { %v9085_v3 = vunpack.i.h.bf16 %v9083_v60  ;;  %v9084_v13 = vunpack.i.l.bf16 %v9083_v60 }
 0x49e   :  { %v5816_v11 = vsel %vm2553_vm9, %v5752_v41, %v9085_v3  ;;  %v5815_v33 = vsel %vm2553_vm9, %v5751_v0, %v9084_v13  ;;  %v15435_v42 = vpop.f32.mrf.mxu1  ;;  %v9098_v1 = vpop.permute.xlu1 %9097  ;;  %v17699_v3 = vpack.c.bf16 %v14867_v19, %v14855_v44 }
 0x49f   :  { %v9093_v31 = vpop.permute.xlu0 %9092  ;;  %v5879_v30 = vsel %vm2618_vm10, %v5815_v33, %v9089_v62  ;;  %v5880_v5 = vsel %vm2618_vm10, %v5816_v11, %v9090_v57  ;;  %v9100_v35 = vunpack.i.h.bf16 %v9098_v1  ;;  %v9099_v52 = vunpack.i.l.bf16 %v9098_v1 }
 0x4a0   :  { %v9095_v47 = vunpack.i.h.bf16 %v9093_v31  ;;  %v9094_v21 = vunpack.i.l.bf16 %v9093_v31  ;;  %v6249_v32 = vpop.f32.mrf.mxu1  ;;  %v5943_v23 = vpack.c.bf16 %v5880_v5, %v5879_v30 }
 0x4a2   :  { %v5498_v36 = vsel %vm90_vm0, %v9451_v38, %v9095_v47  ;;  %v5497_v37 = vsel %vm90_vm0, %v9452_v50, %v9094_v21  ;;  %v15441_v20 = vpop.f32.mrf.mxu1  ;;  %v9108_v40 = vpop.permute.xlu1 %9107  ;;  %6358 = vmatmul.mubr.bf16.gmra.mxu1 %v5943_v23 }
 0x4a3   :  { %v9103_v45 = vpop.permute.xlu0 %9102  ;;  %7023 = vmatprep.mubr.msk.bf16.mxu1 %vm90_vm0, %v17699_v3  ;;  %v5562_v57 = vsel %vm2293_vm5, %v5498_v36, %v9100_v35  ;;  %v5561_v0 = vsel %vm2293_vm5, %v5497_v37, %v9099_v52  ;;  %v9110_v41 = vunpack.i.h.bf16 %v9108_v40  ;;  %v9109_v11 = vunpack.i.l.bf16 %v9108_v40 }
 0x4a4   :  { %v9105_v60 = vunpack.i.h.bf16 %v9103_v45  ;;  %v9104_v62 = vunpack.i.l.bf16 %v9103_v45  ;;  %v6252_v13 = vpop.f32.mrf.mxu1 }
 0x4a6   :  { %v5625_v33 = vsel %vm2358_vm6, %v5561_v0, %v9104_v62  ;;  %v5626_v1 = vsel %vm2358_vm6, %v5562_v57, %v9105_v60  ;;  %v9118_v31 = vpop.permute.xlu1 %9117 }
 0x4a7   :  { %v9113_v30 = vpop.permute.xlu0 %9112  ;;  %v5689_v32 = vsel %vm2423_vm7, %v5625_v33, %v9109_v11  ;;  %v5690_v44 = vsel %vm2423_vm7, %v5626_v1, %v9110_v41  ;;  %v9120_v19 = vunpack.i.h.bf16 %v9118_v31  ;;  %v9119_v5 = vunpack.i.l.bf16 %v9118_v31  ;;  %v9453_v31 = vld [vmem:[#allocation2 + $0x2c0] sm:$0xff] }
 0x4a8   :  { %v9115_v47 = vunpack.i.h.bf16 %v9113_v30  ;;  %v9114_v21 = vunpack.i.l.bf16 %v9113_v30 }
 0x4aa   :  { %v5753_v35 = vsel %vm2488_vm8, %v5689_v32, %v9114_v21  ;;  %v5754_v52 = vsel %vm2488_vm8, %v5690_v44, %v9115_v47  ;;  %v9128_v23 = vpop.permute.xlu1 %9127  ;;  %v9454_v47 = vld [vmem:[#allocation2 + $0x2b8] sm:$0xff] }
 0x4ab   :  { %v9123_v38 = vpop.permute.xlu0 %9122  ;;  %v5818_v37 = vsel %vm2553_vm9, %v5754_v52, %v9120_v19  ;;  %v5817_v40 = vsel %vm2553_vm9, %v5753_v35, %v9119_v5  ;;  %v9130_v45 = vunpack.i.h.bf16 %v9128_v23  ;;  %v9129_v60 = vunpack.i.l.bf16 %v9128_v23 }
 0x4ac   :  { %v9125_v36 = vunpack.i.h.bf16 %v9123_v38  ;;  %v9124_v50 = vunpack.i.l.bf16 %v9123_v38  ;;  %v17700_v52 = vpack.c.bf16 %v14913_v43, %v14909_v49 }
 0x4ad   :  { %v15457_v62 = vpop.f32.mrf.mxu1  ;;  %v5500_v30 = vsel %vm90_vm0, %v9453_v31, %v9130_v45  ;;  %v5499_v21 = vsel %vm90_vm0, %v9454_v47, %v9129_v60 }
 0x4ae   :  { %v9138_v3 = vpop.permute.xlu1 %9137  ;;  %v5881_v13 = vsel %vm2618_vm10, %v5817_v40, %v9124_v50  ;;  %v5882_v57 = vsel %vm2618_vm10, %v5818_v37, %v9125_v36 }
 0x4af   :  { %v6257_v0 = vpop.f32.mrf.mxu1  ;;  %v9133_v41 = vpop.permute.xlu0 %9132  ;;  %v5945_v11 = vpack.c.bf16 %v5882_v57, %v5881_v13  ;;  %v9140_v32 = vunpack.i.h.bf16 %v9138_v3  ;;  %v9139_v44 = vunpack.i.l.bf16 %v9138_v3 }
 0x4b0   :  { %v9135_v33 = vunpack.i.h.bf16 %v9133_v41  ;;  %v9134_v1 = vunpack.i.l.bf16 %v9133_v41 }
 0x4b1   :  { %v15463_v19 = vpop.f32.mrf.mxu1  ;;  %6366 = vmatmul.mubr.bf16.gmra.mxu1 %v5945_v11 }
 0x4b2   :  { %v5564_v5 = vsel %vm2293_vm5, %v5500_v30, %v9135_v33  ;;  %v5563_v35 = vsel %vm2293_vm5, %v5499_v21, %v9134_v1  ;;  %7024 = vmatprep.mubr.msk.bf16.mxu1 %vm90_vm0, %v17700_v52  ;;  %v9148_v23 = vpop.permute.xlu1 %9147 }
 0x4b3   :  { %v6260_v38 = vpop.f32.mrf.mxu1  ;;  %v9143_v36 = vpop.permute.xlu0 %9142  ;;  %v5627_v40 = vsel %vm2358_vm6, %v5563_v35, %v9139_v44  ;;  %v5628_v45 = vsel %vm2358_vm6, %v5564_v5, %v9140_v32  ;;  %v9150_v60 = vunpack.i.h.bf16 %v9148_v23  ;;  %v9149_v3 = vunpack.i.l.bf16 %v9148_v23 }
 0x4b4   :  { %v9145_v50 = vunpack.i.h.bf16 %v9143_v36  ;;  %v9144_v37 = vunpack.i.l.bf16 %v9143_v36 }
 0x4b6   :  { %v5691_v13 = vsel %vm2423_vm7, %v5627_v40, %v9144_v37  ;;  %v5692_v57 = vsel %vm2423_vm7, %v5628_v45, %v9145_v50  ;;  %v9158_v0 = vpop.permute.xlu1 %9157  ;;  %v9455_v40 = vld [vmem:[#allocation2 + $0x2d8] sm:$0xff] }
 0x4b7   :  { %v9153_v41 = vpop.permute.xlu0 %9152  ;;  %v9159_v49 = vunpack.i.l.bf16 %v9158_v0  ;;  %v9160_v33 = vunpack.i.h.bf16 %v9158_v0  ;;  %v5755_v1 = vsel %vm2488_vm8, %v5691_v13, %v9149_v3  ;;  %v5756_v31 = vsel %vm2488_vm8, %v5692_v57, %v9150_v60  ;;  %v9456_v60 = vld [vmem:[#allocation2 + $0x2d0] sm:$0xff] }
 0x4b8   :  { %v9155_v43 = vunpack.i.h.bf16 %v9153_v41  ;;  %v9154_v11 = vunpack.i.l.bf16 %v9153_v41 }
 0x4ba   :  { %v5820_v30 = vsel %vm2553_vm9, %v5756_v31, %v9155_v43  ;;  %v5819_v47 = vsel %vm2553_vm9, %v5755_v1, %v9154_v11  ;;  %v15479_v21 = vpop.f32.mrf.mxu1  ;;  %v9168_v32 = vpop.permute.xlu1 %9167  ;;  %v17701_v43 = vpack.c.bf16 %v14921_v28, %v14916_v17 }
 0x4bb   :  { %v9163_v44 = vpop.permute.xlu0 %9162  ;;  %v5883_v5 = vsel %vm2618_vm10, %v5819_v47, %v9159_v49  ;;  %v5884_v38 = vsel %vm2618_vm10, %v5820_v30, %v9160_v33  ;;  %v9170_v36 = vunpack.i.h.bf16 %v9168_v32  ;;  %v9169_v50 = vunpack.i.l.bf16 %v9168_v32 }
 0x4bc   :  { %v9165_v35 = vunpack.i.h.bf16 %v9163_v44  ;;  %v9164_v52 = vunpack.i.l.bf16 %v9163_v44  ;;  %v6265_v23 = vpop.f32.mrf.mxu1  ;;  %v5947_v37 = vpack.c.bf16 %v5884_v38, %v5883_v5 }
 0x4be   :  { %v5502_v45 = vsel %vm90_vm0, %v9455_v40, %v9165_v35  ;;  %v5501_v3 = vsel %vm90_vm0, %v9456_v60, %v9164_v52  ;;  %v15485_v13 = vpop.f32.mrf.mxu1  ;;  %v9178_v57 = vpop.permute.xlu1 %9177  ;;  %6374 = vmatmul.mubr.bf16.gmra.mxu1 %v5947_v37 }
 0x4bf   :  { %v9173_v0 = vpop.permute.xlu0 %9172  ;;  %7025 = vmatprep.mubr.msk.bf16.mxu1 %vm90_vm0, %v17701_v43  ;;  %v5566_v33 = vsel %vm2293_vm5, %v5502_v45, %v9170_v36  ;;  %v5565_v1 = vsel %vm2293_vm5, %v5501_v3, %v9169_v50  ;;  %v9180_v31 = vunpack.i.h.bf16 %v9178_v57  ;;  %v9179_v30 = vunpack.i.l.bf16 %v9178_v57 }
 0x4c0   :  { %v9175_v41 = vunpack.i.h.bf16 %v9173_v0  ;;  %v9174_v49 = vunpack.i.l.bf16 %v9173_v0  ;;  %v6268_v11 = vpop.f32.mrf.mxu1 }
 0x4c2   :  { %v5629_v47 = vsel %vm2358_vm6, %v5565_v1, %v9174_v49  ;;  %v5630_v32 = vsel %vm2358_vm6, %v5566_v33, %v9175_v41  ;;  %v9188_v44 = vpop.permute.xlu1 %9187 }
 0x4c3   :  { %v9183_v5 = vpop.permute.xlu0 %9182  ;;  %v5693_v23 = vsel %vm2423_vm7, %v5629_v47, %v9179_v30  ;;  %v5694_v17 = vsel %vm2423_vm7, %v5630_v32, %v9180_v31  ;;  %v9190_v28 = vunpack.i.h.bf16 %v9188_v44  ;;  %v9189_v38 = vunpack.i.l.bf16 %v9188_v44  ;;  %v9457_v44 = vld [vmem:[#allocation2 + $0x2f0] sm:$0xff] }
 0x4c4   :  { %v9185_v35 = vunpack.i.h.bf16 %v9183_v5  ;;  %v9184_v52 = vunpack.i.l.bf16 %v9183_v5 }
 0x4c6   :  { %v5757_v36 = vsel %vm2488_vm8, %v5693_v23, %v9184_v52  ;;  %v5758_v50 = vsel %vm2488_vm8, %v5694_v17, %v9185_v35  ;;  %v9198_v37 = vpop.permute.xlu1 %9197  ;;  %v9458_v35 = vld [vmem:[#allocation2 + $0x2e8] sm:$0xff] }
 0x4c7   :  { %v9193_v40 = vpop.permute.xlu0 %9192  ;;  %v5822_v3 = vsel %vm2553_vm9, %v5758_v50, %v9190_v28  ;;  %v5821_v57 = vsel %vm2553_vm9, %v5757_v36, %v9189_v38  ;;  %v9200_v0 = vunpack.i.h.bf16 %v9198_v37  ;;  %v9199_v41 = vunpack.i.l.bf16 %v9198_v37  ;;  %v6557_v38 = vld [vmem:[%s16382_s4] sm:$0xff] }
 0x4c8   :  { %v9195_v45 = vunpack.i.h.bf16 %v9193_v40  ;;  %v9194_v60 = vunpack.i.l.bf16 %v9193_v40  ;;  %v17702_v37 = vpack.c.bf16 %v14931_v51, %v14924_v61  ;;  %7041 = vmatpush3.msra.mxu0 %v6557_v38 }
 0x4c9   :  { %v15501_v49 = vpop.f32.mrf.mxu1  ;;  %v5504_v5 = vsel %vm90_vm0, %v9457_v44, %v9200_v0  ;;  %v5503_v52 = vsel %vm90_vm0, %v9458_v35, %v9199_v41 }
 0x4ca   :  { %v5886_v43 = vsel %vm2618_vm10, %v5822_v3, %v9195_v45  ;;  %v5885_v11 = vsel %vm2618_vm10, %v5821_v57, %v9194_v60  ;;  %v9208_v33 = vpop.permute.xlu1 %9207 }
 0x4cb   :  { %v5949_v1 = vpack.c.bf16 %v5886_v43, %v5885_v11  ;;  %v6273_v31 = vpop.f32.mrf.mxu1  ;;  %v9203_v30 = vpop.permute.xlu0 %9202  ;;  %v9210_v23 = vunpack.i.h.bf16 %v9208_v33  ;;  %v9209_v17 = vunpack.i.l.bf16 %v9208_v33 }
 0x4cc   :  { %v9205_v47 = vunpack.i.h.bf16 %v9203_v30  ;;  %v9204_v32 = vunpack.i.l.bf16 %v9203_v30 }
 0x4cd   :  { %v15507_v28 = vpop.f32.mrf.mxu1  ;;  %6382 = vmatmul.mubr.bf16.gmra.mxu1 %v5949_v1 }
 0x4ce   :  { %v5568_v36 = vsel %vm2293_vm5, %v5504_v5, %v9205_v47  ;;  %v5567_v50 = vsel %vm2293_vm5, %v5503_v52, %v9204_v32  ;;  %7026 = vmatprep.mubr.msk.bf16.mxu1 %vm90_vm0, %v17702_v37  ;;  %v9218_v40 = vpop.permute.xlu1 %9217 }
 0x4cf   :  { %v6276_v45 = vpop.f32.mrf.mxu1  ;;  %v9213_v60 = vpop.permute.xlu0 %9212  ;;  %v5631_v0 = vsel %vm2358_vm6, %v5567_v50, %v9209_v17  ;;  %v5632_v41 = vsel %vm2358_vm6, %v5568_v36, %v9210_v23  ;;  %v9220_v43 = vunpack.i.h.bf16 %v9218_v40  ;;  %v9219_v11 = vunpack.i.l.bf16 %v9218_v40 }
 0x4d0   :  { %v9215_v3 = vunpack.i.h.bf16 %v9213_v60  ;;  %v9214_v57 = vunpack.i.l.bf16 %v9213_v60 }
 0x4d2   :  { %v5695_v33 = vsel %vm2423_vm7, %v5631_v0, %v9214_v57  ;;  %v5696_v1 = vsel %vm2423_vm7, %v5632_v41, %v9215_v3  ;;  %v9228_v31 = vpop.permute.xlu1 %9227  ;;  %v9459_v0 = vld [vmem:[#allocation2 + $0x308] sm:$0xff] }
 0x4d3   :  { %v9223_v61 = vpop.permute.xlu0 %9222  ;;  %v9230_v51 = vunpack.i.h.bf16 %v9228_v31  ;;  %v9229_v30 = vunpack.i.l.bf16 %v9228_v31  ;;  %v5759_v44 = vsel %vm2488_vm8, %v5695_v33, %v9219_v11  ;;  %v5760_v5 = vsel %vm2488_vm8, %v5696_v1, %v9220_v43  ;;  %v9460_v43 = vld [vmem:[#allocation2 + $0x300] sm:$0xff] }
 0x4d4   :  { %v9225_v47 = vunpack.i.h.bf16 %v9223_v61  ;;  %v9224_v32 = vunpack.i.l.bf16 %v9223_v61  ;;  %v17703_v61 = vpack.c.bf16 %v14955_v26, %v14944_v2 }
 0x4d6   :  { %v5824_v35 = vsel %vm2553_vm9, %v5760_v5, %v9225_v47  ;;  %v5823_v52 = vsel %vm2553_vm9, %v5759_v44, %v9224_v32  ;;  %v15526_v23 = vpop.f32.mrf.mxu1  ;;  %v9238_v17 = vpop.permute.xlu1 %9237 }
 0x4d7   :  { %v5888_v38 = vsel %vm2618_vm10, %v5824_v35, %v9230_v51  ;;  %v5887_v36 = vsel %vm2618_vm10, %v5823_v52, %v9229_v30  ;;  %v9233_v50 = vpop.permute.xlu0 %9232  ;;  %v9240_v3 = vunpack.i.h.bf16 %v9238_v17  ;;  %v9239_v57 = vunpack.i.l.bf16 %v9238_v17 }
 0x4d8   :  { %v5951_v37 = vpack.c.bf16 %v5888_v38, %v5887_v36  ;;  %v9235_v40 = vunpack.i.h.bf16 %v9233_v50  ;;  %v9234_v45 = vunpack.i.l.bf16 %v9233_v50  ;;  %v6281_v60 = vpop.f32.mrf.mxu1 }
 0x4da   :  { %v5506_v41 = vsel %vm90_vm0, %v9459_v0, %v9235_v40  ;;  %v5505_v11 = vsel %vm90_vm0, %v9460_v43, %v9234_v45  ;;  %v15532_v33 = vpop.f32.mrf.mxu1  ;;  %6390 = vmatmul.mubr.bf16.gmra.mxu1 %v5951_v37  ;;  %v9248_v1 = vpop.permute.xlu1 %9247 }
 0x4db   :  { %v9243_v31 = vpop.permute.xlu0 %9242  ;;  %7027 = vmatprep.mubr.msk.bf16.mxu1 %vm90_vm0, %v17703_v61  ;;  %v5570_v32 = vsel %vm2293_vm5, %v5506_v41, %v9240_v3  ;;  %v5569_v44 = vsel %vm2293_vm5, %v5505_v11, %v9239_v57  ;;  %v9250_v5 = vunpack.i.h.bf16 %v9248_v1  ;;  %v9249_v35 = vunpack.i.l.bf16 %v9248_v1 }
 0x4dc   :  { %v9245_v51 = vunpack.i.h.bf16 %v9243_v31  ;;  %v9244_v30 = vunpack.i.l.bf16 %v9243_v31  ;;  %v6284_v47 = vpop.f32.mrf.mxu1 }
 0x4de   :  { %v5633_v52 = vsel %vm2358_vm6, %v5569_v44, %v9244_v30  ;;  %v5634_v17 = vsel %vm2358_vm6, %v5570_v32, %v9245_v51  ;;  %v9258_v38 = vpop.permute.xlu1 %9257 }
 0x4df   :  { %v9253_v36 = vpop.permute.xlu0 %9252  ;;  %v5697_v2 = vsel %vm2423_vm7, %v5633_v52, %v9249_v35  ;;  %v5698_v26 = vsel %vm2423_vm7, %v5634_v17, %v9250_v5  ;;  %v9260_v40 = vunpack.i.h.bf16 %v9258_v38  ;;  %v9259_v45 = vunpack.i.l.bf16 %v9258_v38 }
 0x4e0   :  { %v9255_v50 = vunpack.i.h.bf16 %v9253_v36  ;;  %v9254_v37 = vunpack.i.l.bf16 %v9253_v36 }
 0x4e2   :  { %v5761_v60 = vsel %vm2488_vm8, %v5697_v2, %v9254_v37  ;;  %v5762_v3 = vsel %vm2488_vm8, %v5698_v26, %v9255_v50  ;;  %v9268_v57 = vpop.permute.xlu1 %9267 }
 0x4e3   :  { %v9263_v0 = vpop.permute.xlu0 %9262  ;;  %v5826_v11 = vsel %vm2553_vm9, %v5762_v3, %v9260_v40  ;;  %v5825_v1 = vsel %vm2553_vm9, %v5761_v60, %v9259_v45  ;;  %v9270_v31 = vunpack.i.h.bf16 %v9268_v57  ;;  %v9269_v61 = vunpack.i.l.bf16 %v9268_v57 }
 0x4e4   :  { %v9265_v41 = vunpack.i.h.bf16 %v9263_v0  ;;  %v9264_v43 = vunpack.i.l.bf16 %v9263_v0 }
 0x4e5   :  { %v15548_v51 = vpop.f32.mrf.mxu1  ;;  %v5508_v38 = vsel %vm90_vm0, %v15285_v4, %v9270_v31  ;;  %v5507_v36 = vsel %vm90_vm0, %v15305_v25, %v9269_v61 }
 0x4e6   :  { %17704 = vst [vmem:[#allocation240_spill] sm:$0xff] %v15548_v51  ;;  %v5890_v30 = vsel %vm2618_vm10, %v5826_v11, %v9265_v41  ;;  %v5889_v47 = vsel %vm2618_vm10, %v5825_v1, %v9264_v43  ;;  %v9278_v32 = vpop.permute.xlu1 %9277 }
 0x4e7   :  { %v5953_v44 = vpack.c.bf16 %v5890_v30, %v5889_v47  ;;  %v6289_v5 = vpop.f32.mrf.mxu1  ;;  %v9273_v35 = vpop.permute.xlu0 %9272  ;;  %v9280_v50 = vunpack.i.h.bf16 %v9278_v32  ;;  %v9279_v37 = vunpack.i.l.bf16 %v9278_v32 }
 0x4e8   :  { %v9275_v52 = vunpack.i.h.bf16 %v9273_v35  ;;  %v9274_v17 = vunpack.i.l.bf16 %v9273_v35 }
 0x4e9   :  { %v15556_v2 = vpop.f32.mrf.mxu1  ;;  %6398 = vmatmul.mubr.bf16.gmra.mxu1 %v5953_v44 }
 0x4ea   :  { %17705 = vst [vmem:[#allocation235_spill] sm:$0xff] %v15556_v2  ;;  %v5572_v26 = vsel %vm2293_vm5, %v5508_v38, %v9275_v52  ;;  %v5571_v40 = vsel %vm2293_vm5, %v5507_v36, %v9274_v17  ;;  %v9288_v45 = vpop.permute.xlu1 %9287  ;;  %7028 = vmatprep.mubr.msk.bf16.mxu1 %vm90_vm0, %v5956_v27  ;;  %vm6555_vm5 = vcmask 1040384  }
 0x4eb   :  { %v6292_v60 = vpop.f32.mrf.mxu1  ;;  %v9283_v4 = vpop.permute.xlu0 %9282  ;;  %v5635_v25 = vsel %vm2358_vm6, %v5571_v40, %v9279_v37  ;;  %v5636_v0 = vsel %vm2358_vm6, %v5572_v26, %v9280_v50  ;;  %v9290_v41 = vunpack.i.h.bf16 %v9288_v45  ;;  %v9289_v43 = vunpack.i.l.bf16 %v9288_v45 }
 0x4ec   :  { %v9285_v3 = vunpack.i.h.bf16 %v9283_v4  ;;  %v9284_v57 = vunpack.i.l.bf16 %v9283_v4  ;;  %vm6634_vm6 = vcmask 31744  }
 0x4ee   :  { %v5699_v11 = vsel %vm2423_vm7, %v5635_v25, %v9284_v57  ;;  %v5700_v1 = vsel %vm2423_vm7, %v5636_v0, %v9285_v3  ;;  %v9298_v31 = vpop.permute.xlu1 %9297  ;;  %v6633_v57 = vld [vmem:[%s16383_s5] sm:$0xf] }
 0x4ef   :  { %v9293_v61 = vpop.permute.xlu0 %9292  ;;  %v9300_v30 = vunpack.i.h.bf16 %v9298_v31  ;;  %v9299_v53 = vunpack.i.l.bf16 %v9298_v31  ;;  %v5763_v47 = vsel %vm2488_vm8, %v5699_v11, %v9289_v43  ;;  %v5764_v32 = vsel %vm2488_vm8, %v5700_v1, %v9290_v41  ;;  %7046 = vmatpush3.msk.msra.mxu1 %vm6638_vm3, %v6633_v57 }
 0x4f0   :  { %v9295_v29 = vunpack.i.h.bf16 %v9293_v61  ;;  %v9294_v27 = vunpack.i.l.bf16 %v9293_v61 }
 0x4f2   :  { %v5827_v44 = vsel %vm2553_vm9, %v5763_v47, %v9294_v27  ;;  %v5828_v5 = vsel %vm2553_vm9, %v5764_v32, %v9295_v29  ;;  %v15572_v35 = vpop.f32.mrf.mxu1 }
 0x4f3   :  { %17706 = vst [vmem:[#allocation144_spill] sm:$0xff] %v15572_v35  ;;  %v5891_v52 = vsel %vm2618_vm10, %v5827_v44, %v9299_v53  ;;  %v5892_v17 = vsel %vm2618_vm10, %v5828_v5, %v9300_v30 }
 0x4f4   :  { %v5955_v38 = vpack.c.bf16 %v5892_v17, %v5891_v52  ;;  %v6297_v36 = vpop.f32.mrf.mxu1 }
 0x4f6   :  { %v15576_v50 = vpop.f32.mrf.mxu1  ;;  %6406 = vmatmul.mubr.bf16.gmra.mxu1 %v5955_v38 }
 0x4f7   :  { %7047 = vmatprep.mubr.msk.f32.mxu1 %vm9470_vm4, %v17690_v6  ;;  %v6417_v6 = vsel %vm90_vm0, %v15045_v15, 0.0  ;;  %v6425_v15 = vsel %vm90_vm0, %v15129_v34, 0.0 }
 0x4f8   :  { %v6300_v37 = vpop.f32.mrf.mxu1 }
 0x501   :  { %v15578_v26 = vpop.f32.mrf.mxu1 }
 0x502   :  { %17707 = vst [vmem:[#allocation239_spill] sm:$0xff] %v15578_v26 }
 0x503   :  { %v6305_v40 = vpop.f32.mrf.mxu1 }
 0x505   :  { %v15580_v45 = vpop.f32.mrf.mxu1 }
 0x506   :  { %17708 = vst [vmem:[#allocation259_spill] sm:$0xff] %v15580_v45 }
 0x507   :  { %v6308_v60 = vpop.f32.mrf.mxu1 }
 0x50e   :  { %v15582_v4 = vpop.f32.mrf.mxu1 }
 0x510   :  { %v6313_v3 = vpop.f32.mrf.mxu1 }
 0x512   :  { %v15587_v25 = vpop.f32.mrf.mxu1 }
 0x514   :  { %v6316_v0 = vpop.f32.mrf.mxu1 }
 0x51d   :  { %v15589_v41 = vpop.f32.mrf.mxu1 }
 0x51f   :  { %v6321_v43 = vpop.f32.mrf.mxu1 }
 0x520   :  { %v6415_v43 = vsel %vm90_vm0, %v15021_v10, 0.0 }
 0x521   :  { %v15591_v11 = vpop.f32.mrf.mxu1 }
 0x522   :  { %17709 = vst [vmem:[#allocation159_spill] sm:$0xff] %v15591_v11 }
 0x523   :  { %v6324_v1 = vpop.f32.mrf.mxu1 }
 0x524   :  { %v6414_v1 = vsel %vm90_vm0, %v15006_v46, 0.0 }
 0x52a   :  { %v15593_v31 = vpop.f32.mrf.mxu1 }
 0x52c   :  { %v6329_v61 = vpop.f32.mrf.mxu1 }
 0x52e   :  { %v15595_v30 = vpop.f32.mrf.mxu1 }
 0x52f   :  { %17710 = vst [vmem:[#allocation160_spill] sm:$0xff] %v15595_v30 }
 0x530   :  { %v6332_v53 = vpop.f32.mrf.mxu1 }
 0x531   :  { %v6416_v53 = vadd.f32 %v6415_v43, %v6414_v1  ;;  %v6427_v1 = vsel %vm90_vm0, %v15145_v9, 0.0 }
 0x539   :  { %v15597_v29 = vpop.f32.mrf.mxu1 }
 0x53b   :  { %v6337_v27 = vpop.f32.mrf.mxu1 }
 0x53c   :  { %v6419_v27 = vsel %vm90_vm0, %v15061_v58, 0.0 }
 0x53d   :  { %v15599_v47 = vpop.f32.mrf.mxu1 }
 0x53f   :  { %v6340_v32 = vpop.f32.mrf.mxu1 }
 0x546   :  { %v15601_v44 = vpop.f32.mrf.mxu1 }
 0x548   :  { %v6345_v5 = vpop.f32.mrf.mxu1 }
 0x549   :  { %v6418_v5 = vadd.f32 %v6417_v6, %v6416_v53  ;;  %v6429_v6 = vsel %vm90_vm0, %v15175_v22, 0.0  ;;  %v6486_v53 = vsel %vm90_vm0, %v15556_v2, 0.0 }
 0x54a   :  { %v15603_v52 = vpop.f32.mrf.mxu1 }
 0x54c   :  { %v6348_v17 = vpop.f32.mrf.mxu1 }
 0x54d   :  { %v6421_v17 = vsel %vm90_vm0, %v15091_v18, 0.0 }
 0x555   :  { %v15607_v38 = vpop.f32.mrf.mxu1 }
 0x556   :  { %17711 = vst [vmem:[#allocation139_spill] sm:$0xff] %v15607_v38 }
 0x557   :  { %v6353_v36 = vpop.f32.mrf.mxu1 }
 0x559   :  { %v15609_v37 = vpop.f32.mrf.mxu1 }
 0x55a   :  { %17712 = vst [vmem:[#allocation187_spill] sm:$0xff] %v15609_v37 }
 0x55b   :  { %v6356_v40 = vpop.f32.mrf.mxu1 }
 0x55c   :  { %v6420_v40 = vadd.f32 %v6419_v27, %v6418_v5  ;;  %v6431_v5 = vsel %vm90_vm0, %v15192_v59, 0.0  ;;  %v6435_v59 = vsel %vm90_vm0, %v15229_v8, 0.0 }
 0x55e   :  { %v6422_v10 = vadd.f32 %v6421_v17, %v6420_v40  ;;  %v6485_v17 = vsel %vm90_vm0, %v15548_v51, 0.0  ;;  %v6492_v51 = vsel %vm90_vm0, %v15578_v26, 0.0 }
 0x562   :  { %v15611_v60 = vpop.f32.mrf.mxu1 }
 0x564   :  { %v6361_v3 = vpop.f32.mrf.mxu1 }
 0x565   :  { %v6423_v3 = vsel %vm90_vm0, %v15108_v14, 0.0 }
 0x566   :  { %v15613_v57 = vpop.f32.mrf.mxu1  ;;  %v6424_v43 = vadd.f32 %v6423_v3, %v6422_v10  ;;  %v6488_v10 = vsel %vm90_vm0, %v15572_v35, 0.0 }
 0x568   :  { %v6364_v0 = vpop.f32.mrf.mxu1 }
 0x571   :  { %v15621_v61 = vpop.f32.mrf.mxu1 }
 0x573   :  { %v6369_v32 = vpop.f32.mrf.mxu1 }
 0x574   :  { %v6426_v32 = vadd.f32 %v6425_v15, %v6424_v43  ;;  %v6487_v15 = vadd.f32 %v6486_v53, %v6485_v17  ;;  %v6490_v43 = vsel %vm90_vm0, %v15576_v50, 0.0  ;;  %v6437_v53 = vsel %vm90_vm0, %v15263_v39, 0.0 }
 0x575   :  { %v15627_v36 = vpop.f32.mrf.mxu1 }
 0x576   :  { %v6428_v27 = vadd.f32 %v6427_v1, %v6426_v32  ;;  %v6489_v2 = vadd.f32 %v6488_v10, %v6487_v15  ;;  %v6439_v10 = vsel %vm90_vm0, %v15280_v54, 0.0 }
 0x577   :  { %v6372_v0 = vpop.f32.mrf.mxu1 }
 0x578   :  { %v6430_v3 = vadd.f32 %v6429_v6, %v6428_v27  ;;  %v6433_v0 = vsel %vm90_vm0, %v15213_v7, 0.0  ;;  %v6491_v6 = vadd.f32 %v6490_v43, %v6489_v2  ;;  %v6494_v27 = vsel %vm90_vm0, %v15580_v45, 0.0  ;;  %v17715_v45 = vld [vmem:[#allocation191_spill] sm:$0xff] }
 0x579   :  { %v6441_v2 = vsel %vm90_vm0, %v15303_v12, 0.0 }
 0x57a   :  { %v6432_v32 = vadd.f32 %v6431_v5, %v6430_v3  ;;  %v6493_v5 = vadd.f32 %v6492_v51, %v6491_v6  ;;  %v6496_v3 = vsel %vm90_vm0, %v15582_v4, 0.0 }
 0x57c   :  { %v6434_v22 = vadd.f32 %v6433_v0, %v6432_v32  ;;  %v6495_v26 = vadd.f32 %v6494_v27, %v6493_v5  ;;  %v6498_v0 = vsel %vm90_vm0, %v15587_v25, 0.0  ;;  %v6502_v27 = vsel %vm90_vm0, %v15591_v11, 0.0 }
 0x57e   :  { %v15645_v40 = vpop.f32.mrf.mxu1  ;;  %v6497_v32 = vadd.f32 %v6496_v3, %v6495_v26  ;;  %v6447_v26 = vsel %vm90_vm0, %v15372_v16, 0.0 }
 0x57f   :  { %17713 = vst [vmem:[#allocation180_spill] sm:$0xff] %v15645_v40 }
 0x580   :  { %v6377_v1 = vpop.f32.mrf.mxu1  ;;  %v6499_v6 = vadd.f32 %v6498_v0, %v6497_v32  ;;  %v6449_v0 = vsel %vm90_vm0, %v15391_v56, 0.0 }
 0x581   :  { %v6436_v1 = vadd.f32 %v6435_v59, %v6434_v22  ;;  %v6443_v22 = vsel %vm90_vm0, %v17715_v45, 0.0  ;;  %v6500_v59 = vsel %vm90_vm0, %v15589_v41, 0.0 }
 0x582   :  { %v15655_v35 = vpop.f32.mrf.mxu1  ;;  %v6501_v5 = vadd.f32 %v6500_v59, %v6499_v6  ;;  %v6451_v59 = vsel %vm90_vm0, %v15397_v48, 0.0 }
 0x583   :  { %17714 = vst [vmem:[#allocation147_spill] sm:$0xff] %v15655_v35  ;;  %v6438_v15 = vadd.f32 %v6437_v53, %v6436_v1  ;;  %v6445_v53 = vsel %vm90_vm0, %v15355_v63, 0.0 }
 0x584   :  { %v6380_v17 = vpop.f32.mrf.mxu1 }
 0x585   :  { %v6440_v43 = vadd.f32 %v6439_v10, %v6438_v15  ;;  %v6504_v10 = vsel %vm90_vm0, %v15593_v31, 0.0 }
 0x587   :  { %v6442_v51 = vadd.f32 %v6441_v2, %v6440_v43  ;;  %v6503_v2 = vadd.f32 %v6502_v27, %v6501_v5  ;;  %v6506_v43 = vsel %vm90_vm0, %v15595_v30, 0.0  ;;  %v6453_v27 = vsel %vm90_vm0, %v15413_v55, 0.0 }
 0x589   :  { %v6444_v1 = vadd.f32 %v6443_v22, %v6442_v51  ;;  %v6505_v22 = vadd.f32 %v6504_v10, %v6503_v2  ;;  %v6508_v51 = vsel %vm90_vm0, %v15597_v29, 0.0  ;;  %v6512_v10 = vsel %vm90_vm0, %v15601_v44, 0.0 }
 0x58b   :  { %v6446_v15 = vadd.f32 %v6445_v53, %v6444_v1  ;;  %v6507_v53 = vadd.f32 %v6506_v43, %v6505_v22  ;;  %v6510_v1 = vsel %vm90_vm0, %v15599_v47, 0.0 }
 0x58d   :  { %v15677_v17 = vpop.f32.mrf.mxu1  ;;  %v6448_v11 = vadd.f32 %v6447_v26, %v6446_v15  ;;  %v6509_v30 = vadd.f32 %v6508_v51, %v6507_v53  ;;  %v6455_v26 = vsel %vm90_vm0, %v15419_v24, 0.0  ;;  %v6516_v51 = vsel %vm90_vm0, %v15607_v38, 0.0 }
 0x58e   :  { %17716 = vst [vmem:[#allocation258_spill] sm:$0xff] %v15677_v17 }
 0x58f   :  { %v6385_v3 = vpop.f32.mrf.mxu1  ;;  %v6511_v2 = vadd.f32 %v6510_v1, %v6509_v30  ;;  %v6461_v30 = vsel %vm90_vm0, %v15457_v62, 0.0  ;;  %v6518_v1 = vsel %vm90_vm0, %v15609_v37, 0.0 }
 0x590   :  { %v6450_v3 = vadd.f32 %v6449_v0, %v6448_v11  ;;  %v6457_v11 = vsel %vm90_vm0, %v15435_v42, 0.0  ;;  %v6514_v0 = vsel %vm90_vm0, %v15603_v52, 0.0 }
 0x591   :  { %v15687_v32 = vpop.f32.mrf.mxu1  ;;  %v6513_v22 = vadd.f32 %v6512_v10, %v6511_v2  ;;  %v6520_v2 = vsel %vm90_vm0, %v15611_v60, 0.0 }
 0x592   :  { %v6452_v5 = vadd.f32 %v6451_v59, %v6450_v3  ;;  %v6459_v59 = vsel %vm90_vm0, %v15441_v20, 0.0 }
 0x593   :  { %v6388_v6 = vpop.f32.mrf.mxu1  ;;  %v6515_v53 = vadd.f32 %v6514_v0, %v6513_v22  ;;  %v6522_v22 = vsel %vm90_vm0, %v15613_v57, 0.0 }
 0x594   :  { %v6454_v15 = vadd.f32 %v6453_v27, %v6452_v5 }
 0x596   :  { %v6456_v43 = vadd.f32 %v6455_v26, %v6454_v15  ;;  %v6517_v26 = vadd.f32 %v6516_v51, %v6515_v53  ;;  %v6463_v15 = vsel %vm90_vm0, %v15463_v19, 0.0  ;;  %v6467_v51 = vsel %vm90_vm0, %v15485_v13, 0.0 }
 0x598   :  { %v6458_v3 = vadd.f32 %v6457_v11, %v6456_v43  ;;  %v6519_v11 = vadd.f32 %v6518_v1, %v6517_v26  ;;  %v6465_v43 = vsel %vm90_vm0, %v15479_v21, 0.0  ;;  %v6526_v1 = vsel %vm90_vm0, %v15627_v36, 0.0 }
 0x59a   :  { %v15705_v6 = vpop.f32.mrf.mxu1  ;;  %v6460_v5 = vadd.f32 %v6459_v59, %v6458_v3  ;;  %v6521_v59 = vadd.f32 %v6520_v2, %v6519_v11  ;;  %v6524_v3 = vsel %vm90_vm0, %v15621_v61, 0.0 }
 0x59c   :  { %v6393_v27 = vpop.f32.mrf.mxu1  ;;  %v6462_v38 = vadd.f32 %v6461_v30, %v6460_v5  ;;  %v6523_v37 = vadd.f32 %v6522_v22, %v6521_v59  ;;  %v6469_v30 = vsel %vm90_vm0, %v15501_v49, 0.0 }
 0x59e   :  { %v15715_v10 = vpop.f32.mrf.mxu1  ;;  %v6464_v27 = vadd.f32 %v6463_v15, %v6462_v38  ;;  %v6525_v26 = vadd.f32 %v6524_v3, %v6523_v37  ;;  %v6471_v38 = vsel %vm90_vm0, %v15507_v28, 0.0  ;;  %v6528_v15 = vsel %vm90_vm0, %v15645_v40, 0.0 }
 0x59f   :  { %17717 = vst [vmem:[#allocation157_spill] sm:$0xff] %v15715_v10  ;;  %v6475_v37 = vsel %vm90_vm0, %v15532_v33, 0.0 }
 0x5a0   :  { %v6396_v0 = vpop.f32.mrf.mxu1  ;;  %v6466_v53 = vadd.f32 %v6465_v43, %v6464_v27  ;;  %v6527_v11 = vadd.f32 %v6526_v1, %v6525_v26  ;;  %v6530_v43 = vsel %vm90_vm0, %v15655_v35, 0.0  ;;  %v6534_v1 = vsel %vm90_vm0, %v15687_v32, 0.0 }
 0x5a1   :  { %v6473_v0 = vsel %vm90_vm0, %v15526_v23, 0.0 }
 0x5a2   :  { %v6468_v5 = vadd.f32 %v6467_v51, %v6466_v53  ;;  %v6529_v59 = vadd.f32 %v6528_v15, %v6527_v11  ;;  %v6532_v51 = vsel %vm90_vm0, %v15677_v17, 0.0  ;;  %v6538_v11 = vsel %vm90_vm0, %v15715_v10, 0.0 }
 0x5a4   :  { %v6470_v2 = vadd.f32 %v6469_v30, %v6468_v5  ;;  %v6531_v30 = vadd.f32 %v6530_v43, %v6529_v59 }
 0x5a6   :  { %v6472_v27 = vadd.f32 %v6471_v38, %v6470_v2  ;;  %v6533_v35 = vadd.f32 %v6532_v51, %v6531_v30  ;;  %v6536_v38 = vsel %vm90_vm0, %v15705_v6, 0.0 }
 0x5a8   :  { %v6474_v53 = vadd.f32 %v6473_v0, %v6472_v27  ;;  %v6535_v2 = vadd.f32 %v6534_v1, %v6533_v35 }
 0x5a9   :  { %v15741_v22 = vpop.f32.mrf.mxu1 }
 0x5aa   :  { %17718 = vst [vmem:[#allocation158_spill] sm:$0xff] %v15741_v22  ;;  %v6476_v26 = vadd.f32 %v6475_v37, %v6474_v53  ;;  %v6537_v17 = vadd.f32 %v6536_v38, %v6535_v2  ;;  %v6540_v0 = vsel %vm90_vm0, %v15741_v22, 0.0 }
 0x5ab   :  { %v6401_v3 = vpop.f32.mrf.mxu1 }
 0x5ac   :  { %v6477_v40 = vrot.slane %v6476_v26, 4  ;;  %v6539_v43 = vadd.f32 %v6538_v11, %v6537_v17 }
 0x5ad   :  { %v15749_v5 = vpop.f32.mrf.mxu1 }
 0x5ae   :  { %17719 = vst [vmem:[#allocation146_spill] sm:$0xff] %v15749_v5  ;;  %v6542_v27 = vsel %vm90_vm0, %v15749_v5, 0.0  ;;  %v6478_v59 = vadd.f32 %v6477_v40, %v6476_v26  ;;  %v6541_v37 = vadd.f32 %v6540_v0, %v6539_v43 }
 0x5af   :  { %v6404_v15 = vpop.f32.mrf.mxu1 }
 0x5b0   :  { %v6543_v35 = vadd.f32 %v6542_v27, %v6541_v37  ;;  %v6479_v30 = vrot.slane %v6478_v59, 2 }
 0x5b2   :  { %v6480_v11 = vadd.f32 %v6479_v30, %v6478_v59 }
 0x5b4   :  { %v6481_v26 = vrot.slane %v6480_v11, 1 }
 0x5b6   :  { %v15759_v51 = vpop.f32.mrf.mxu1  ;;  %v6482_v22 = vadd.f32 %v6481_v26, %v6480_v11  ;;  %v6722_v11 = vlaneseq }
 0x5b7   :  { %17720 = vst [vmem:[#allocation185_spill] sm:$0xff] %v15759_v51  ;;  %v6544_v3 = vsel %vm90_vm0, %v15759_v51, 0.0 }
 0x5b8   :  { %v6409_v53 = vpop.f32.mrf.mxu1  ;;  %v6545_v1 = vadd.f32 %v6544_v3, %v6543_v35  ;;  %v6484_v27 = vmul.f32 0.00390625, %v6482_v22 }
 0x5ba   :  { %v15763_v15 = vpop.f32.mrf.mxu1 }
 0x5bb   :  { %v6546_v38 = vsel %vm90_vm0, %v15763_v15, 0.0 }
 0x5bc   :  { %v6547_v17 = vadd.f32 %v6546_v38, %v6545_v1  ;;  %v6412_v2 = vpop.f32.mrf.mxu1 }
 0x5bd   :  { %v9471_v2 = vmov 1966171168  }
 0x5be   :  { %v6548_v5 = vrot.slane %v6547_v17, 4 }
 0x5c0   :  { %v6549_v40 = vadd.f32 %v6548_v5, %v6547_v17 }
 0x5c2   :  { %v6550_v0 = vrot.slane %v6549_v40, 2 }
 0x5c4   :  { %v6551_v43 = vadd.f32 %v6550_v0, %v6549_v40 }
 0x5c6   :  { %v6552_v10 = vrot.slane %v6551_v43, 1 }
 0x5c8   :  { %v6553_v51 = vadd.f32 %v6552_v10, %v6551_v43  ;;  %v6720_v10 = vunpack.c.l.s4 %v9471_v2 }
 0x5ca   :  { %v6554_v37 = vmul.f32 0.00390625, %v6553_v51  ;;  %v6721_v22 = vunpack.c.0.s8 %v6720_v10  ;;  %v6723_v51 = vshrl.u32 %v6722_v11, 7 }
 0x5cc   :  { %v6556_v3 = vsel %vm6555_vm5, %v6484_v27, %v6554_v37  ;;  %v6724_v40 = vsub.s32 %v6721_v22, %v6723_v51  ;;  %v6743_v43 = vsub.s32 0, %v6723_v51  ;;  %v17723_v22 = vld [vmem:[#allocation184_spill] sm:$0xff] }
 0x5cd   :  { %7043 = vmatmul.mubr.msk.f32.vlgmr.msra.gmra.mxu0 %vm90_vm0, %v6556_v3 }
 0x68d   :  { %v6628_v35 = vpop.f32.mrf.mxu0 }
 0x68e   :  { %v6632_v53 = vmax.f32 %v6628_v35, 0.0 }
 0x68f   :  { %v7044_v1 = vpop.f32.mrf.mxu0 }
 0x690   :  { %7048 = vmatmul.mubr.msk.f32.vlgmr.msra.gmra.mxu1 %vm6634_vm6, %v6632_v53 }
 0x750   :  { %v6708_v59 = vpop.f32.mrf.mxu1 }
 0x751   :  { %v7032_v30 = vmul.f32 -1.442695, %v6708_v59  ;;  %v17721_v59 = vld [vmem:[#allocation173_spill] sm:$0xff] }
 0x752   :  { %v7049_v5 = vpop.f32.mrf.mxu1 }
 0x753   :  { %9319 = vpow2.f32 %v7032_v30  ;;  %v17722_v5 = vld [vmem:[#allocation145_spill] sm:$0xff] }
 0x760   :  { %v9320_v38 = vpop.eup %9319 }
 0x761   :  { %v6715_v17 = vadd.f32 1.0, %v9320_v38 }
 0x763   :  { %9321 = vrcp.f32 %v6715_v17 }
 0x770   :  { %v9322_v26 = vpop.eup %9321 }
 0x771   :  { %v6725_v0 = vrot.slane %v9322_v26, %v6724_v40 }
 0x773   :  { %v6726_v27 = vcombine.high %v6725_v0, %v6725_v0  ;;  %v6733_v37 = vrot.slane %v6725_v0, %v6724_v40 }
 0x775   :  { %v6740_v3 = vrot.slane %v6726_v27, %v6724_v40  ;;  %v6744_v35 = vrot.slane %v6733_v37, %v6743_v43  ;;  %v17724_v40 = vld [vmem:[#allocation182_spill] sm:$0xff]  ;;  %v17727_v37 = vld [vmem:[#allocation144_spill] sm:$0xff] }
 0x777   :  { %v15768_v53 = vrot.slane %v6740_v3, %v6743_v43  ;;  %v15771_v1 = vmul.f32 %v6744_v35, %v15006_v46  ;;  %v15774_v30 = vmul.f32 %v6744_v35, %v17721_v59  ;;  %v15777_v38 = vmul.f32 %v6744_v35, %v17722_v5  ;;  %v17729_v3 = vld [vmem:[#allocation259_spill] sm:$0xff] }
 0x778   :  { %v15780_v17 = vmul.f32 %v6744_v35, %v15061_v58  ;;  %v15783_v2 = vmul.f32 %v6744_v35, %v15091_v18  ;;  %v15786_v10 = vmul.f32 %v6744_v35, %v15108_v14  ;;  %v15789_v11 = vmul.f32 %v6744_v35, %v15129_v34 }
 0x779   :  { %v15792_v46 = vmul.f32 %v6744_v35, %v15145_v9  ;;  %v15795_v51 = vmul.f32 %v6744_v35, %v17723_v22  ;;  %v15798_v26 = vmul.f32 %v6744_v35, %v17724_v40  ;;  %v15801_v58 = vmul.f32 %v6744_v35, %v15213_v7  ;;  %v17730_v22 = vld [vmem:[#allocation159_spill] sm:$0xff] }
 0x77a   :  { %v15804_v18 = vmul.f32 %v6744_v35, %v15229_v8  ;;  %v15807_v14 = vmul.f32 %v6744_v35, %v15263_v39  ;;  %v15810_v34 = vmul.f32 %v6744_v35, %v15280_v54  ;;  %v15813_v9 = vmul.f32 %v6744_v35, %v15303_v12 }
 0x77b   :  { %v15816_v0 = vmul.f32 %v6744_v35, %v17715_v45  ;;  %v15819_v43 = vmul.f32 %v6744_v35, %v15355_v63  ;;  %v15822_v7 = vmul.f32 %v6744_v35, %v15372_v16  ;;  %v15825_v8 = vmul.f32 %v6744_v35, %v15391_v56 }
 0x77c   :  { %v15828_v39 = vmul.f32 %v6744_v35, %v15397_v48  ;;  %v15831_v54 = vmul.f32 %v6744_v35, %v15413_v55  ;;  %v15834_v12 = vmul.f32 %v6744_v35, %v15419_v24  ;;  %v15837_v45 = vmul.f32 %v6744_v35, %v15435_v42 }
 0x77d   :  { %v15840_v63 = vmul.f32 %v6744_v35, %v15441_v20  ;;  %v15843_v16 = vmul.f32 %v6744_v35, %v15457_v62  ;;  %v15846_v56 = vmul.f32 %v6744_v35, %v15463_v19  ;;  %v15849_v48 = vmul.f32 %v6744_v35, %v15479_v21  ;;  %v17725_v19 = vld [vmem:[#allocation240_spill] sm:$0xff]  ;;  %v17726_v21 = vld [vmem:[#allocation235_spill] sm:$0xff] }
 0x77e   :  { %v15852_v55 = vmul.f32 %v6744_v35, %v15485_v13  ;;  %v15855_v24 = vmul.f32 %v6744_v35, %v15501_v49  ;;  %v15858_v42 = vmul.f32 %v6744_v35, %v15507_v28  ;;  %v15861_v20 = vmul.f32 %v6744_v35, %v15526_v23  ;;  %v17728_v23 = vld [vmem:[#allocation239_spill] sm:$0xff] }
 0x77f   :  { %v15864_v62 = vmul.f32 %v6744_v35, %v15532_v33  ;;  %v15868_v27 = vmul.f32 %v15768_v53, %v17725_v19  ;;  %v15872_v13 = vmul.f32 %v15768_v53, %v17726_v21  ;;  %v15876_v49 = vmul.f32 %v15768_v53, %v17727_v37  ;;  %v17731_v21 = vld [vmem:[#allocation160_spill] sm:$0xff] }
 0x780   :  { %v15880_v28 = vmul.f32 %v15768_v53, %v15576_v50  ;;  %v15884_v33 = vmul.f32 %v15768_v53, %v17728_v23  ;;  %v15888_v35 = vmul.f32 %v15768_v53, %v17729_v3  ;;  %v15892_v59 = vmul.f32 %v15768_v53, %v15582_v4  ;;  %v17732_v23 = vld [vmem:[#allocation139_spill] sm:$0xff] }
 0x781   :  { %v15896_v5 = vmul.f32 %v15768_v53, %v15587_v25  ;;  %v15900_v50 = vmul.f32 %v15768_v53, %v15589_v41  ;;  %v15904_v40 = vmul.f32 %v15768_v53, %v17730_v22  ;;  %v15908_v19 = vmul.f32 %v15768_v53, %v15593_v31  ;;  %v17733_v22 = vld [vmem:[#allocation187_spill] sm:$0xff] }
 0x782   :  { %v15912_v4 = vmul.f32 %v15768_v53, %v17731_v21  ;;  %v15916_v25 = vmul.f32 %v15768_v53, %v15597_v29  ;;  %v15920_v41 = vmul.f32 %v15768_v53, %v15599_v47  ;;  %v15924_v37 = vmul.f32 %v15768_v53, %v15601_v44 }
 0x783   :  { %v15928_v31 = vmul.f32 %v15768_v53, %v15603_v52  ;;  %v15932_v3 = vmul.f32 %v15768_v53, %v17732_v23  ;;  %v15936_v29 = vmul.f32 %v15768_v53, %v17733_v22  ;;  %v15940_v47 = vmul.f32 %v15768_v53, %v15611_v60  ;;  %v17739_v23 = vld [vmem:[#allocation180_spill] sm:$0xff] }
 0x784   :  { %v15944_v44 = vmul.f32 %v15768_v53, %v15613_v57  ;;  %v15948_v52 = vmul.f32 %v15768_v53, %v15621_v61  ;;  %v15952_v21 = vmul.f32 %v15768_v53, %v15627_v36  ;;  %v15956_v22 = vmul.f32 %v15768_v53, %v17739_v23 }
 0x785   :  { %17734 = vst [vmem:[#allocation242_spill] sm:$0xff] %v15936_v29  ;;  %17735 = vst [vmem:[#allocation179_spill] sm:$0xff] %v15940_v47  ;;  %v17741_v29 = vld [vmem:[#allocation147_spill] sm:$0xff]  ;;  %v17743_v47 = vld [vmem:[#allocation258_spill] sm:$0xff]  ;;  %v15968_v61 = vmul.f32 %v15768_v53, %v15687_v32  ;;  %v15972_v36 = vmul.f32 %v15768_v53, %v15705_v6  ;;  %v15992_v6 = vmul.f32 %v15768_v53, %v15763_v15 }
 0x786   :  { %17736 = vst [vmem:[#allocation261_spill] sm:$0xff] %v15944_v44  ;;  %17737 = vst [vmem:[#allocation163_spill] sm:$0xff] %v15948_v52  ;;  %v15960_v60 = vmul.f32 %v15768_v53, %v17741_v29  ;;  %v15964_v57 = vmul.f32 %v15768_v53, %v17743_v47  ;;  %v17759_v52 = vld [vmem:[#allocation5_spill] sm:$0xff]  ;;  %v17762_v15 = vld [vmem:[#allocation12_spill] sm:$0xff] }
 0x787   :  { %17738 = vst [vmem:[#allocation164_spill] sm:$0xff] %v15952_v21  ;;  %17740 = vst [vmem:[#allocation140_spill] sm:$0xff] %v15956_v22  ;;  %v17747_v21 = vld [vmem:[#allocation157_spill] sm:$0xff]  ;;  %v17749_v22 = vld [vmem:[#allocation158_spill] sm:$0xff] }
 0x788   :  { %17742 = vst [vmem:[#allocation221_spill] sm:$0xff] %v15960_v60  ;;  %17744 = vst [vmem:[#allocation222_spill] sm:$0xff] %v15964_v57  ;;  %v15976_v23 = vmul.f32 %v15768_v53, %v17747_v21  ;;  %v15980_v29 = vmul.f32 %v15768_v53, %v17749_v22  ;;  %v17751_v60 = vld [vmem:[#allocation146_spill] sm:$0xff]  ;;  %v17753_v57 = vld [vmem:[#allocation185_spill] sm:$0xff] }
 0x789   :  { %17745 = vst [vmem:[#allocation234_spill] sm:$0xff] %v15968_v61  ;;  %17746 = vst [vmem:[#allocation241_spill] sm:$0xff] %v15972_v36  ;;  %v15984_v47 = vmul.f32 %v15768_v53, %v17751_v60  ;;  %v15988_v32 = vmul.f32 %v15768_v53, %v17753_v57  ;;  %v17756_v36 = vld [vmem:[#allocation8_spill] sm:$0xff]  ;;  %v6818_v60 = vadd.f32 %v15780_v17, %v17759_v52 }
 0x78a   :  { %17748 = vst [vmem:[#allocation260_spill] sm:$0xff] %v15976_v23  ;;  %17750 = vst [vmem:[#allocation80_spill] sm:$0xff] %v15980_v29  ;;  %v6815_v21 = vadd.f32 %v15771_v1, %v17756_v36  ;;  %v17757_v23 = vld [vmem:[#allocation9_spill] sm:$0xff]  ;;  %v17758_v22 = vld [vmem:[#allocation4_spill] sm:$0xff]  ;;  %v6821_v53 = vadd.f32 %v15789_v11, %v17762_v15 }
 0x78b   :  { %17752 = vst [vmem:[#allocation34_spill] sm:$0xff] %v15984_v47  ;;  %17754 = vst [vmem:[#allocation162_spill] sm:$0xff] %v15988_v32  ;;  %v6816_v61 = vadd.f32 %v15774_v30, %v17757_v23  ;;  %v6817_v29 = vadd.f32 %v15777_v38, %v17758_v22  ;;  %v17760_v47 = vld [vmem:[#allocation6_spill] sm:$0xff]  ;;  %v17761_v32 = vld [vmem:[#allocation7_spill] sm:$0xff] }
 0x78c   :  { %17755 = vst [vmem:[#allocation186_spill] sm:$0xff] %v15992_v6  ;;  %v6819_v57 = vadd.f32 %v15783_v2, %v17760_v47  ;;  %v6820_v44 = vadd.f32 %v15786_v10, %v17761_v32  ;;  %v17763_v6 = vld [vmem:[#allocation13_spill] sm:$0xff]  ;;  %v17764_v36 = vld [vmem:[#allocation10_spill] sm:$0xff]  ;;  %v17765_v23 = vld [vmem:[#allocation11_spill] sm:$0xff] }
 0x78d   :  { %v6822_v1 = vadd.f32 %v15792_v46, %v17763_v6  ;;  %v6823_v30 = vadd.f32 %v15795_v51, %v17764_v36  ;;  %v6824_v38 = vadd.f32 %v15798_v26, %v17765_v23  ;;  %v17766_v22 = vld [vmem:[#allocation16_spill] sm:$0xff]  ;;  %6879 = vst.msk [vmem:[%s16384_s6] sm:$0xff] %vm90_vm0, %v6815_v21  ;;  %6880 = vst.msk [vmem:[%s16384_s6 + $0x8] sm:$0xff] %vm90_vm0, %v6816_v61  ;;  %v17767_v2 = vld [vmem:[#allocation17_spill] sm:$0xff] }
 0x78e   :  { %v6825_v17 = vadd.f32 %v15801_v58, %v17766_v22  ;;  %6881 = vst.msk [vmem:[%s16384_s6 + $0x10] sm:$0xff] %vm90_vm0, %v6817_v29  ;;  %v6826_v10 = vadd.f32 %v15804_v18, %v17767_v2  ;;  %v17768_v11 = vld [vmem:[#allocation14_spill] sm:$0xff]  ;;  %v17769_v51 = vld [vmem:[#allocation15_spill] sm:$0xff]  ;;  %v17770_v58 = vld [vmem:[#allocation20_spill] sm:$0xff] }
 0x78f   :  { %v6827_v46 = vadd.f32 %v15807_v14, %v17768_v11  ;;  %v6828_v26 = vadd.f32 %v15810_v34, %v17769_v51  ;;  %v6829_v52 = vadd.f32 %v15813_v9, %v17770_v58  ;;  %6882 = vst.msk [vmem:[%s16384_s6 + $0x18] sm:$0xff] %vm90_vm0, %v6818_v60  ;;  %6883 = vst.msk [vmem:[%s16384_s6 + $0x20] sm:$0xff] %vm90_vm0, %v6819_v57  ;;  %v17771_v18 = vld [vmem:[#allocation21_spill] sm:$0xff]  ;;  %v17772_v34 = vld [vmem:[#allocation18_spill] sm:$0xff] }
 0x790   :  { %6884 = vst.msk [vmem:[%s16384_s6 + $0x28] sm:$0xff] %vm90_vm0, %v6820_v44  ;;  %6885 = vst.msk [vmem:[%s16384_s6 + $0x30] sm:$0xff] %vm90_vm0, %v6821_v53  ;;  %v6830_v14 = vadd.f32 %v15816_v0, %v17771_v18  ;;  %v6831_v9 = vadd.f32 %v15819_v43, %v17772_v34  ;;  %v17773_v61 = vld [vmem:[#allocation19_spill] sm:$0xff]  ;;  %v17774_v47 = vld [vmem:[#allocation24_spill] sm:$0xff] }
 0x791   :  { %v6832_v29 = vadd.f32 %v15822_v7, %v17773_v61  ;;  %v6833_v32 = vadd.f32 %v15825_v8, %v17774_v47  ;;  %6886 = vst.msk [vmem:[%s16384_s6 + $0x38] sm:$0xff] %vm90_vm0, %v6822_v1  ;;  %6887 = vst.msk [vmem:[%s16384_s6 + $0x40] sm:$0xff] %vm90_vm0, %v6823_v30  ;;  %v17775_v0 = vld [vmem:[#allocation25_spill] sm:$0xff]  ;;  %v17776_v7 = vld [vmem:[#allocation22_spill] sm:$0xff] }
 0x792   :  { %6888 = vst.msk [vmem:[%s16384_s6 + $0x48] sm:$0xff] %vm90_vm0, %v6824_v38  ;;  %6889 = vst.msk [vmem:[%s16384_s6 + $0x50] sm:$0xff] %vm90_vm0, %v6825_v17  ;;  %v6834_v43 = vadd.f32 %v15828_v39, %v17775_v0  ;;  %v6835_v8 = vadd.f32 %v15831_v54, %v17776_v7  ;;  %v17777_v44 = vld [vmem:[#allocation23_spill] sm:$0xff]  ;;  %v17778_v21 = vld [vmem:[#allocation36_spill] sm:$0xff] }
 0x793   :  { %v6836_v6 = vadd.f32 %v15834_v12, %v17777_v44  ;;  %v6837_v60 = vadd.f32 %v15837_v45, %v17778_v21  ;;  %6890 = vst.msk [vmem:[%s16384_s6 + $0x58] sm:$0xff] %vm90_vm0, %v6826_v10  ;;  %6891 = vst.msk [vmem:[%s16384_s6 + $0x60] sm:$0xff] %vm90_vm0, %v6827_v46  ;;  %v17779_v39 = vld [vmem:[#allocation39_spill] sm:$0xff]  ;;  %v17780_v12 = vld [vmem:[#allocation26_spill] sm:$0xff] }
 0x794   :  { %6892 = vst.msk [vmem:[%s16384_s6 + $0x68] sm:$0xff] %vm90_vm0, %v6828_v26  ;;  %6893 = vst.msk [vmem:[%s16384_s6 + $0x70] sm:$0xff] %vm90_vm0, %v6829_v52  ;;  %v6838_v54 = vadd.f32 %v15840_v63, %v17779_v39  ;;  %v6839_v45 = vadd.f32 %v15843_v16, %v17780_v12  ;;  %v17781_v57 = vld [vmem:[#allocation35_spill] sm:$0xff]  ;;  %v17783_v63 = vld [vmem:[#allocation44_spill] sm:$0xff] }
 0x795   :  { %v6840_v15 = vadd.f32 %v15846_v56, %v17781_v57  ;;  %v17782_v53 = vld [vmem:[#allocation43_spill] sm:$0xff]  ;;  %6894 = vst.msk [vmem:[%s16384_s6 + $0x78] sm:$0xff] %vm90_vm0, %v6830_v14  ;;  %6895 = vst.msk [vmem:[%s16384_s6 + $0x80] sm:$0xff] %vm90_vm0, %v6831_v9  ;;  %v6842_v16 = vadd.f32 %v15852_v55, %v17783_v63  ;;  %v17784_v56 = vld [vmem:[#allocation40_spill] sm:$0xff] }
 0x796   :  { %v6841_v1 = vadd.f32 %v15849_v48, %v17782_v53  ;;  %6896 = vst.msk [vmem:[%s16384_s6 + $0x88] sm:$0xff] %vm90_vm0, %v6832_v29  ;;  %6897 = vst.msk [vmem:[%s16384_s6 + $0x90] sm:$0xff] %vm90_vm0, %v6833_v32  ;;  %v6843_v48 = vadd.f32 %v15855_v24, %v17784_v56  ;;  %v17785_v36 = vld [vmem:[#allocation41_spill] sm:$0xff]  ;;  %v17787_v55 = vld [vmem:[#allocation110_spill] sm:$0xff] }
 0x797   :  { %v6844_v30 = vadd.f32 %v15858_v42, %v17785_v36  ;;  %v17786_v23 = vld [vmem:[#allocation109_spill] sm:$0xff]  ;;  %6898 = vst.msk [vmem:[%s16384_s6 + $0x98] sm:$0xff] %vm90_vm0, %v6834_v43  ;;  %6899 = vst.msk [vmem:[%s16384_s6 + $0xa0] sm:$0xff] %vm90_vm0, %v6835_v8  ;;  %v6846_v24 = vadd.f32 %v15864_v62, %v17787_v55  ;;  %v17788_v42 = vld [vmem:[#allocation46_spill] sm:$0xff] }
 0x798   :  { %v6845_v38 = vadd.f32 %v15861_v20, %v17786_v23  ;;  %6900 = vst.msk [vmem:[%s16384_s6 + $0xa8] sm:$0xff] %vm90_vm0, %v6836_v6  ;;  %6901 = vst.msk [vmem:[%s16384_s6 + $0xb0] sm:$0xff] %vm90_vm0, %v6837_v60  ;;  %v6847_v20 = vadd.f32 %v15868_v27, %v17788_v42  ;;  %v17789_v22 = vld [vmem:[#allocation47_spill] sm:$0xff]  ;;  %v17790_v2 = vld [vmem:[#allocation53_spill] sm:$0xff] }
 0x799   :  { %v6848_v17 = vadd.f32 %v15872_v13, %v17789_v22  ;;  %v6849_v10 = vadd.f32 %v15876_v49, %v17790_v2  ;;  %6902 = vst.msk [vmem:[%s16384_s6 + $0xb8] sm:$0xff] %vm90_vm0, %v6838_v54  ;;  %6903 = vst.msk [vmem:[%s16384_s6 + $0xc0] sm:$0xff] %vm90_vm0, %v6839_v45  ;;  %v17791_v62 = vld [vmem:[#allocation54_spill] sm:$0xff]  ;;  %v17792_v13 = vld [vmem:[#allocation49_spill] sm:$0xff] }
 0x79a   :  { %6904 = vst.msk [vmem:[%s16384_s6 + $0xc8] sm:$0xff] %vm90_vm0, %v6840_v15  ;;  %6905 = vst.msk [vmem:[%s16384_s6 + $0xd0] sm:$0xff] %vm90_vm0, %v6841_v1  ;;  %v6850_v27 = vadd.f32 %v15880_v28, %v17791_v62  ;;  %v6851_v49 = vadd.f32 %v15884_v33, %v17792_v13  ;;  %v17793_v11 = vld [vmem:[#allocation52_spill] sm:$0xff]  ;;  %v17794_v51 = vld [vmem:[#allocation57_spill] sm:$0xff] }
 0x79b   :  { %v6852_v46 = vadd.f32 %v15888_v35, %v17793_v11  ;;  %v6853_v26 = vadd.f32 %v15892_v59, %v17794_v51  ;;  %6906 = vst.msk [vmem:[%s16384_s6 + $0xd8] sm:$0xff] %vm90_vm0, %v6842_v16  ;;  %6907 = vst.msk [vmem:[%s16384_s6 + $0xe0] sm:$0xff] %vm90_vm0, %v6843_v48  ;;  %v17795_v28 = vld [vmem:[#allocation58_spill] sm:$0xff]  ;;  %v17796_v35 = vld [vmem:[#allocation55_spill] sm:$0xff] }
 0x79c   :  { %6908 = vst.msk [vmem:[%s16384_s6 + $0xe8] sm:$0xff] %vm90_vm0, %v6844_v30  ;;  %6909 = vst.msk [vmem:[%s16384_s6 + $0xf0] sm:$0xff] %vm90_vm0, %v6845_v38  ;;  %v6854_v33 = vadd.f32 %v15896_v5, %v17795_v28  ;;  %v6855_v59 = vadd.f32 %v15900_v50, %v17796_v35  ;;  %v17797_v58 = vld [vmem:[#allocation56_spill] sm:$0xff]  ;;  %v17798_v18 = vld [vmem:[#allocation85_spill] sm:$0xff] }
 0x79d   :  { %v6856_v52 = vadd.f32 %v15904_v40, %v17797_v58  ;;  %v6857_v14 = vadd.f32 %v15908_v19, %v17798_v18  ;;  %6910 = vst.msk [vmem:[%s16384_s6 + $0xf8] sm:$0xff] %vm90_vm0, %v6846_v24  ;;  %6911 = vst.msk [vmem:[%s16384_s6 + $0x100] sm:$0xff] %vm90_vm0, %v6847_v20  ;;  %v17799_v5 = vld [vmem:[#allocation91_spill] sm:$0xff]  ;;  %v17801_v34 = vld [vmem:[#allocation84_spill] sm:$0xff] }
 0x79e   :  { %6912 = vst.msk [vmem:[%s16384_s6 + $0x108] sm:$0xff] %vm90_vm0, %v6848_v17  ;;  %6913 = vst.msk [vmem:[%s16384_s6 + $0x110] sm:$0xff] %vm90_vm0, %v6849_v10  ;;  %v6858_v50 = vadd.f32 %v15912_v4, %v17799_v5  ;;  %v17800_v40 = vld [vmem:[#allocation59_spill] sm:$0xff]  ;;  %v6860_v9 = vadd.f32 %v15920_v41, %v17801_v34  ;;  %v17802_v61 = vld [vmem:[#allocation94_spill] sm:$0xff] }
 0x79f   :  { %v6859_v19 = vadd.f32 %v15916_v25, %v17800_v40  ;;  %v6861_v29 = vadd.f32 %v15924_v37, %v17802_v61  ;;  %6914 = vst.msk [vmem:[%s16384_s6 + $0x118] sm:$0xff] %vm90_vm0, %v6850_v27  ;;  %6915 = vst.msk [vmem:[%s16384_s6 + $0x120] sm:$0xff] %vm90_vm0, %v6851_v49  ;;  %v17803_v4 = vld [vmem:[#allocation95_spill] sm:$0xff]  ;;  %v17804_v41 = vld [vmem:[#allocation92_spill] sm:$0xff] }
 0x7a0   :  { %6916 = vst.msk [vmem:[%s16384_s6 + $0x128] sm:$0xff] %vm90_vm0, %v6852_v46  ;;  %6917 = vst.msk [vmem:[%s16384_s6 + $0x130] sm:$0xff] %vm90_vm0, %v6853_v26  ;;  %v6862_v25 = vadd.f32 %v15928_v31, %v17803_v4  ;;  %v6863_v37 = vadd.f32 %v15932_v3, %v17804_v41  ;;  %v17805_v47 = vld [vmem:[#allocation93_spill] sm:$0xff]  ;;  %v17806_v32 = vld [vmem:[#allocation242_spill] sm:$0xff] }
 0x7a1   :  { %v6864_v0 = vadd.f32 %v17806_v32, %v17805_v47  ;;  %v17807_v43 = vld [vmem:[#allocation98_spill] sm:$0xff]  ;;  %v17808_v7 = vld [vmem:[#allocation179_spill] sm:$0xff]  ;;  %6918 = vst.msk [vmem:[%s16384_s6 + $0x138] sm:$0xff] %vm90_vm0, %v6854_v33  ;;  %6919 = vst.msk [vmem:[%s16384_s6 + $0x140] sm:$0xff] %vm90_vm0, %v6855_v59 }
 0x7a2   :  { %v6865_v8 = vadd.f32 %v17808_v7, %v17807_v43  ;;  %6920 = vst.msk [vmem:[%s16384_s6 + $0x148] sm:$0xff] %vm90_vm0, %v6856_v52  ;;  %6921 = vst.msk [vmem:[%s16384_s6 + $0x150] sm:$0xff] %vm90_vm0, %v6857_v14  ;;  %v17809_v31 = vld [vmem:[#allocation99_spill] sm:$0xff]  ;;  %v17810_v3 = vld [vmem:[#allocation261_spill] sm:$0xff] }
 0x7a3   :  { %v6866_v44 = vadd.f32 %v17810_v3, %v17809_v31  ;;  %v17811_v6 = vld [vmem:[#allocation96_spill] sm:$0xff]  ;;  %v17812_v21 = vld [vmem:[#allocation163_spill] sm:$0xff]  ;;  %v17813_v39 = vld [vmem:[#allocation97_spill] sm:$0xff]  ;;  %6922 = vst.msk [vmem:[%s16384_s6 + $0x158] sm:$0xff] %vm90_vm0, %v6858_v50 }
 0x7a4   :  { %v6867_v60 = vadd.f32 %v17812_v21, %v17811_v6  ;;  %v17814_v54 = vld [vmem:[#allocation164_spill] sm:$0xff]  ;;  %v17815_v45 = vld [vmem:[#allocation103_spill] sm:$0xff]  ;;  %6923 = vst.msk [vmem:[%s16384_s6 + $0x160] sm:$0xff] %vm90_vm0, %v6859_v19  ;;  %6924 = vst.msk [vmem:[%s16384_s6 + $0x168] sm:$0xff] %vm90_vm0, %v6860_v9 }
 0x7a5   :  { %v6868_v12 = vadd.f32 %v17814_v54, %v17813_v39  ;;  %v17816_v57 = vld [vmem:[#allocation140_spill] sm:$0xff]  ;;  %6925 = vst.msk [vmem:[%s16384_s6 + $0x170] sm:$0xff] %vm90_vm0, %v6861_v29  ;;  %v17818_v1 = vld [vmem:[#allocation221_spill] sm:$0xff]  ;;  %v17820_v56 = vld [vmem:[#allocation222_spill] sm:$0xff] }
 0x7a6   :  { %v6869_v15 = vadd.f32 %v17816_v57, %v17815_v45  ;;  %v17817_v53 = vld [vmem:[#allocation104_spill] sm:$0xff]  ;;  %v17821_v36 = vld [vmem:[#allocation101_spill] sm:$0xff]  ;;  %v17822_v30 = vld [vmem:[#allocation234_spill] sm:$0xff]  ;;  %6926 = vst.msk [vmem:[%s16384_s6 + $0x178] sm:$0xff] %vm90_vm0, %v6862_v25 }
 0x7a7   :  { %v6870_v63 = vadd.f32 %v17818_v1, %v17817_v53  ;;  %v17819_v16 = vld [vmem:[#allocation100_spill] sm:$0xff]  ;;  %v6872_v23 = vadd.f32 %v17822_v30, %v17821_v36  ;;  %v17823_v38 = vld [vmem:[#allocation107_spill] sm:$0xff]  ;;  %v17824_v55 = vld [vmem:[#allocation241_spill] sm:$0xff]  ;;  %6927 = vst.msk [vmem:[%s16384_s6 + $0x180] sm:$0xff] %vm90_vm0, %v6863_v37 }
 0x7a8   :  { %v6871_v48 = vadd.f32 %v17820_v56, %v17819_v16  ;;  %v6873_v24 = vadd.f32 %v17824_v55, %v17823_v38  ;;  %6928 = vst.msk [vmem:[%s16384_s6 + $0x188] sm:$0xff] %vm90_vm0, %v6864_v0  ;;  %6929 = vst.msk [vmem:[%s16384_s6 + $0x190] sm:$0xff] %vm90_vm0, %v6865_v8  ;;  %v17825_v42 = vld [vmem:[#allocation108_spill] sm:$0xff]  ;;  %v17827_v17 = vld [vmem:[#allocation105_spill] sm:$0xff] }
 0x7a9   :  { %v17826_v20 = vld [vmem:[#allocation260_spill] sm:$0xff]  ;;  %v17829_v62 = vld [vmem:[#allocation106_spill] sm:$0xff]  ;;  %6930 = vst.msk [vmem:[%s16384_s6 + $0x198] sm:$0xff] %vm90_vm0, %v6866_v44  ;;  %6931 = vst.msk [vmem:[%s16384_s6 + $0x1a0] sm:$0xff] %vm90_vm0, %v6867_v60 }
 0x7aa   :  { %v6874_v22 = vadd.f32 %v17826_v20, %v17825_v42  ;;  %v17828_v2 = vld [vmem:[#allocation80_spill] sm:$0xff]  ;;  %v17830_v27 = vld [vmem:[#allocation34_spill] sm:$0xff]  ;;  %6932 = vst.msk [vmem:[%s16384_s6 + $0x1a8] sm:$0xff] %vm90_vm0, %v6868_v12  ;;  %6933 = vst.msk [vmem:[%s16384_s6 + $0x1b0] sm:$0xff] %vm90_vm0, %v6869_v15 }
 0x7ab   :  { %v6875_v10 = vadd.f32 %v17828_v2, %v17827_v17  ;;  %v6876_v13 = vadd.f32 %v17830_v27, %v17829_v62  ;;  %v17831_v49 = vld [vmem:[#allocation142_spill] sm:$0xff]  ;;  %v17833_v51 = vld [vmem:[#allocation143_spill] sm:$0xff]  ;;  %6934 = vst.msk [vmem:[%s16384_s6 + $0x1b8] sm:$0xff] %vm90_vm0, %v6870_v63  ;;  %6935 = vst.msk [vmem:[%s16384_s6 + $0x1c0] sm:$0xff] %vm90_vm0, %v6871_v48 }
 0x7ac   :  { %v17832_v11 = vld [vmem:[#allocation162_spill] sm:$0xff]  ;;  %6936 = vst.msk [vmem:[%s16384_s6 + $0x1c8] sm:$0xff] %vm90_vm0, %v6872_v23  ;;  %6937 = vst.msk [vmem:[%s16384_s6 + $0x1d0] sm:$0xff] %vm90_vm0, %v6873_v24 }
 0x7ad   :  { %v6877_v46 = vadd.f32 %v17832_v11, %v17831_v49  ;;  %v17834_v26 = vld [vmem:[#allocation186_spill] sm:$0xff]  ;;  %6938 = vst.msk [vmem:[%s16384_s6 + $0x1d8] sm:$0xff] %vm90_vm0, %v6874_v22  ;;  %6939 = vst.msk [vmem:[%s16384_s6 + $0x1e0] sm:$0xff] %vm90_vm0, %v6875_v10 }
 0x7ae   :  { %v6878_v28 = vadd.f32 %v17834_v26, %v17833_v51  ;;  %6940 = vst.msk [vmem:[%s16384_s6 + $0x1e8] sm:$0xff] %vm90_vm0, %v6876_v13 }
 0x7af   :  { %6941 = vst.msk [vmem:[%s16384_s6 + $0x1f0] sm:$0xff] %vm90_vm0, %v6877_v46 }
 0x7b0   :  { %6942 = vst.msk [vmem:[%s16384_s6 + $0x1f8] sm:$0xff] %vm90_vm0, %v6878_v28 }

</bundles_post_ra>
